<compile_context>
chip_gen: v5e
topology: v5e:2x2
jax: 0.10.0
libtpu: 0.0.40
codegen_flags: <defaults>
</compile_context>

<pallas_src>
import functools

import jax
import jax.numpy as jnp
from jax import lax
from jax.experimental import pallas as pl
from jax.experimental.pallas import tpu as pltpu

NEG_SLOPE = 0.01       # F.leaky_relu default negative_slope
NUM_BLOCKS = 3
NUM_HEADS = 4
ATT_DIM = 64           # DecoderBlock attention width (emb_channels=64)


# --------------------------------------------------------------------------
# Fused forward kernel: one grid step == one batch element.
# --------------------------------------------------------------------------
def _fused_decoder_kernel(
    # per-batch activations / masks
    x_ref, pos_ref, enc_ref, smask_ref, emask_ref,
    # stacked per-block weights (leading dim = NUM_BLOCKS)
    wqkv_s_ref, bqkv_s_ref, wo_s_ref, bo_s_ref,
    wq_c_ref, bq_c_ref, wkv_c_ref, bkv_c_ref, wo_c_ref, bo_c_ref,
    # global weights
    wpre0_ref, bpre0_ref, wpre1_ref, bpre1_ref, wnorm_ref, bnorm_ref,
    wout_ref, bout_ref, wgate_ref, bgate_ref,
    # outputs
    text_ref, gate_ref,
    att_s0_ref, att_s1_ref, att_s2_ref,
    att_c0_ref, att_c1_ref, att_c2_ref,
    *, heads, hdim, att_dim):
    f32 = jnp.float32

    def linear(h, w, b):
        return jnp.dot(h, w, preferred_element_type=f32) + b

    def leaky(h):
        return jnp.where(h >= 0, h, NEG_SLOPE * h)

    x = x_ref[0]                                   # (T, 256)
    enc = enc_ref[0]                               # (T_enc, E)
    # additive masks built in-kernel from 0/1 floats (0 attend / -1e9 masked)
    self_bias = (smask_ref[0] - 1.0) * 1e9         # (T, T)
    cross_bias = (emask_ref[0] - 1.0) * 1e9        # (1, T_enc) broadcasts over Tq

    # pre-net: Linear -> leaky_relu -> dropout(0.5, eval => identity), x2
    x = leaky(linear(x, wpre0_ref[...], bpre0_ref[...]))
    x = leaky(linear(x, wpre1_ref[...], bpre1_ref[...]))
    # "norm" linear + scaled positional embedding + dropout(0.1, eval => identity)
    x = linear(x, wnorm_ref[...], bnorm_ref[...]) + pos_ref[0]

    scale = 1.0 / float(hdim) ** 0.5
    # contract the last dim of q and k directly (q @ k^T with no XLU transpose)
    qkT = (((1,), (1,)), ((), ()))

    att_s_refs = (att_s0_ref, att_s1_ref, att_s2_ref)
    att_c_refs = (att_c0_ref, att_c1_ref, att_c2_ref)

    def mha(q, k, v, wo, bias_add, att_ref):
        """out = sum_h softmax(q_h k_h^T * scale + bias) v_h @ wo[h]  (no concat)."""
        out = jnp.zeros((q.shape[0], wo.shape[1]), f32)
        for h in range(heads):
            lo, hi = h * hdim, (h + 1) * hdim
            s = lax.dot_general(q[:, lo:hi], k[:, lo:hi], qkT,
                                preferred_element_type=f32)
            s = s * scale + bias_add
            s = s - jnp.max(s, axis=-1, keepdims=True)
            e = jnp.exp(s)
            a = e * pl.reciprocal(jnp.sum(e, axis=-1, keepdims=True), approx=True)
            att_ref[0, h] = a.astype(att_ref.dtype)
            hv = jnp.dot(a, v[:, lo:hi], preferred_element_type=f32)       # (Tq, D)
            out = out + jnp.dot(hv, wo[lo:hi, :], preferred_element_type=f32)
        return out

    for blk in range(NUM_BLOCKS):
        # masked multi-head self-attention + residual (packed QKV matmul)
        qkv = linear(x, wqkv_s_ref[blk], bqkv_s_ref[blk])                  # (T, 192)
        q = qkv[:, :att_dim]
        k = qkv[:, att_dim:2 * att_dim]
        v = qkv[:, 2 * att_dim:]
        x = x + mha(q, k, v, wo_s_ref[blk], self_bias, att_s_refs[blk]) + bo_s_ref[blk]
        # multi-head cross-attention over encoder output + residual (packed KV)
        qc = linear(x, wq_c_ref[blk], bq_c_ref[blk])                       # (T, 64)
        kv = linear(enc, wkv_c_ref[blk], bkv_c_ref[blk])                   # (T_enc, 128)
        kc = kv[:, :att_dim]
        vc = kv[:, att_dim:]
        x = x + mha(qc, kc, vc, wo_c_ref[blk], cross_bias, att_c_refs[blk]) + bo_c_ref[blk]
        # inter-block leaky_relu, fused (no extra HBM round trip)
        x = leaky(x)

    text_ref[0] = linear(x, wout_ref[...], bout_ref[...]).astype(text_ref.dtype)
    gate_ref[0] = jax.nn.sigmoid(
        linear(x, wgate_ref[...], bgate_ref[...])).astype(gate_ref.dtype)


def _fused_decoder_call(x, pos_scaled, enc_out, smask, emask, packed,
                        *, heads=NUM_HEADS, att_dim=ATT_DIM):
    b, t, c = x.shape
    t_enc, e = enc_out.shape[1], enc_out.shape[2]
    text_channels = packed["w_out"].shape[1]
    hdim = att_dim // heads

    weight_names = [
        "w_qkv_self", "b_qkv_self", "w_o_self", "b_o_self",
        "w_q_cross", "b_q_cross", "w_kv_cross", "b_kv_cross",
        "w_o_cross", "b_o_cross",
        "w_pre0", "b_pre0", "w_pre1", "b_pre1", "w_norm", "b_norm",
        "w_out", "b_out", "w_gate", "b_gate",
    ]
    weights = [packed[n] for n in weight_names]

    def rep_spec(arr):
        # whole-array block, same block for every grid step (weights)
        nd = arr.ndim
        return pl.BlockSpec(arr.shape, lambda i: (0,) * nd)

    in_specs = [
        pl.BlockSpec((1, t, c), lambda i: (i, 0, 0)),          # x
        pl.BlockSpec((1, t, c), lambda i: (0, 0, 0)),          # pos (shared)
        pl.BlockSpec((1, t_enc, e), lambda i: (i, 0, 0)),      # enc_out
        pl.BlockSpec((1, t, t), lambda i: (i, 0, 0)),          # self mask (0/1)
        pl.BlockSpec((1, 1, t_enc), lambda i: (i, 0, 0)),      # enc mask (0/1)
    ] + [rep_spec(w) for w in weights]

    out_shape = (
        jax.ShapeDtypeStruct((b, t, text_channels), jnp.float32),
        jax.ShapeDtypeStruct((b, t, 1), jnp.float32),
    ) + tuple(jax.ShapeDtypeStruct((b, heads, t, t), jnp.float32)
              for _ in range(NUM_BLOCKS)) \
      + tuple(jax.ShapeDtypeStruct((b, heads, t, t_enc), jnp.float32)
              for _ in range(NUM_BLOCKS))

    out_specs = (
        pl.BlockSpec((1, t, text_channels), lambda i: (i, 0, 0)),
        pl.BlockSpec((1, t, 1), lambda i: (i, 0, 0)),
    ) + tuple(pl.BlockSpec((1, heads, t, t), lambda i: (i, 0, 0, 0))
              for _ in range(NUM_BLOCKS)) \
      + tuple(pl.BlockSpec((1, heads, t, t_enc), lambda i: (i, 0, 0, 0))
              for _ in range(NUM_BLOCKS))

    kernel = functools.partial(_fused_decoder_kernel,
                               heads=heads, hdim=hdim, att_dim=att_dim)
    return pl.pallas_call(
        kernel,
        out_shape=out_shape,
        grid=(b,),
        in_specs=in_specs,
        out_specs=out_specs,
        compiler_params=pltpu.CompilerParams(
            dimension_semantics=("parallel",)),   # >=2-way parallel for v7x dual TC
    )(x, pos_scaled, enc_out, smask, emask, *weights)


# --------------------------------------------------------------------------
# Parameter construction (deterministic, synthetic) + packing
# --------------------------------------------------------------------------
def init_params(key, text_channels, enc_channels, emb_channels=256, att_dim=ATT_DIM):
    keys = iter(jax.random.split(key, 64))

    def dense(cin, cout, scale=0.02):
        w = jax.random.normal(next(keys), (cin, cout), jnp.float32) * scale
        b = jnp.zeros((cout,), jnp.float32)
        return (w, b)

    params = {
        "embedding": jax.random.normal(
            next(keys), (text_channels, emb_channels), jnp.float32) * 0.02,
        "pre_net_0": dense(emb_channels, emb_channels),
        "pre_net_1": dense(emb_channels, emb_channels),
        "norm": dense(emb_channels, emb_channels),
        "pos_alpha": jnp.ones((1,), jnp.float32),
        "to_out": dense(emb_channels, text_channels),
        "to_gate": dense(emb_channels, 1),
    }
    for i in range(NUM_BLOCKS):
        params[f"block_{i}"] = {
            "q_self": dense(emb_channels, att_dim),
            "k_self": dense(emb_channels, att_dim),
            "v_self": dense(emb_channels, att_dim),
            "o_self": dense(att_dim, emb_channels),
            "q_cross": dense(emb_channels, att_dim),
            "k_cross": dense(enc_channels, att_dim),
            "v_cross": dense(enc_channels, att_dim),
            "o_cross": dense(att_dim, emb_channels),
        }
    return params


def pack_params(params):
    """Concatenate Q/K/V (and cross K/V) weights and stack the 3 blocks."""
    blocks = [params[f"block_{i}"] for i in range(NUM_BLOCKS)]

    def stack_w(*names):
        return jnp.stack(
            [jnp.concatenate([bp[n][0] for n in names], axis=1) for bp in blocks])

    def stack_b(*names):
        return jnp.stack(
            [jnp.concatenate([bp[n][1] for n in names]).reshape(1, -1)
             for bp in blocks])

    packed = {
        "w_qkv_self": stack_w("q_self", "k_self", "v_self"),   # (3, 256, 192)
        "b_qkv_self": stack_b("q_self", "k_self", "v_self"),   # (3, 1, 192)
        "w_o_self": stack_w("o_self"),                         # (3, 64, 256)
        "b_o_self": stack_b("o_self"),                         # (3, 1, 256)
        "w_q_cross": stack_w("q_cross"),                       # (3, 256, 64)
        "b_q_cross": stack_b("q_cross"),                       # (3, 1, 64)
        "w_kv_cross": stack_w("k_cross", "v_cross"),           # (3, E, 128)
        "b_kv_cross": stack_b("k_cross", "v_cross"),           # (3, 1, 128)
        "w_o_cross": stack_w("o_cross"),                       # (3, 64, 256)
        "b_o_cross": stack_b("o_cross"),                       # (3, 1, 256)
        "embedding": params["embedding"],
        "pos_alpha": params["pos_alpha"],
    }
    for nm, key in [("pre0", "pre_net_0"), ("pre1", "pre_net_1"),
                    ("norm", "norm"), ("out", "to_out"), ("gate", "to_gate")]:
        w, b = params[key]
        packed[f"w_{nm}"] = w
        packed[f"b_{nm}"] = b.reshape(1, -1)
    return packed


# --------------------------------------------------------------------------
# Forward pass (embedding gather + mask prep in plain JAX, everything else
# inside one Pallas kernel). Jitted so the tiny glue ops fuse with the call.
# --------------------------------------------------------------------------
@jax.jit
def decoder_forward(packed, text_data, enc_out, mask, enc_mask, pos_emb):
    b, _ = text_data.shape
    t_enc = enc_out.shape[1]

    # embedding lookup (gather) + teacher-forcing shift with 256-dim zero frame
    x = jnp.take(packed["embedding"], text_data, axis=0)          # (B, T, 256)
    x = jnp.concatenate([jnp.zeros((b, 1, 256), x.dtype), x[:, :-1]], axis=1)

    # positional embedding pre-scaled by pos_alpha (added inside the kernel)
    pos_scaled = packed["pos_alpha"][0] * pos_emb                 # (1, T, 256)

    # 0/1 float masks; additive (-1e9) form is built inside the kernel
    smask = mask.astype(jnp.float32)                              # (B, T, T)
    emask = enc_mask.astype(jnp.float32).reshape(b, 1, t_enc)     # (B, 1, T_enc)

    (text_out, gate_out,
     att_s0, att_s1, att_s2,
     att_c0, att_c1, att_c2) = _fused_decoder_call(
         x, pos_scaled, enc_out, smask, emask, packed)
    return text_out, gate_out, (att_s0, att_s1, att_s2), (att_c0, att_c1, att_c2)


# --------------------------------------------------------------------------
if __name__ == "__main__":
    key = jax.random.PRNGKey(0)
    text_channels, enc_channels, emb_channels = 32, 48, 256  # 256 forced by forward()
    B, T_DEC, T_ENC = 2, 8, 16

    kp, kt, ke, kpos = jax.random.split(key, 4)
    params = init_params(kp, text_channels, enc_channels, emb_channels)
    packed = pack_params(params)

    text_data = jax.random.randint(kt, (B, T_DEC), 0, text_channels, dtype=jnp.int32)
    enc_out = jax.random.normal(ke, (B, T_ENC, enc_channels), jnp.float32)
    mask = jnp.broadcast_to(
        jnp.tril(jnp.ones((T_DEC, T_DEC), jnp.bool_))[None], (B, T_DEC, T_DEC))
    enc_mask = jnp.ones((B, T_ENC), jnp.bool_)
    pos_emb = jax.random.normal(kpos, (1, T_DEC, emb_channels), jnp.float32)

    text_out, gate_out, att_dec, att = decoder_forward(
        packed, text_data, enc_out, mask, enc_mask, pos_emb)
    jax.block_until_ready((text_out, gate_out, att_dec, att))

    assert text_out.shape == (B, T_DEC, text_channels)
    assert gate_out.shape == (B, T_DEC, 1)
    assert len(att_dec) == 3 and att_dec[0].shape == (B, NUM_HEADS, T_DEC, T_DEC)
    assert len(att) == 3 and att[0].shape == (B, NUM_HEADS, T_DEC, T_ENC)
    assert bool(jnp.all(jnp.isfinite(text_out))) and bool(jnp.all(jnp.isfinite(gate_out)))
    # attention rows must sum to ~1 (approx reciprocal => loose tolerance)
    for a_ in att_dec + att:
        assert bool(jnp.all(jnp.abs(jnp.sum(a_, axis=-1) - 1.0) < 1e-2))
    print("KERNEL_OK")
</pallas_src>

<mosaic_0001>
module attributes {stable_mosaic.version = 11 : i64} {
  func.func @_fused_decoder_kernel(%arg0: i32, %arg1: memref<1x8x256xf32, #tpu.memory_space<vmem>>, %arg2: memref<1x8x256xf32, #tpu.memory_space<vmem>>, %arg3: memref<1x16x48xf32, #tpu.memory_space<vmem>>, %arg4: memref<1x8x8xf32, #tpu.memory_space<vmem>>, %arg5: memref<1x1x16xf32, #tpu.memory_space<vmem>>, %arg6: memref<3x256x192xf32, #tpu.memory_space<vmem>>, %arg7: memref<3x1x192xf32, #tpu.memory_space<vmem>>, %arg8: memref<3x64x256xf32, #tpu.memory_space<vmem>>, %arg9: memref<3x1x256xf32, #tpu.memory_space<vmem>>, %arg10: memref<3x256x64xf32, #tpu.memory_space<vmem>>, %arg11: memref<3x1x64xf32, #tpu.memory_space<vmem>>, %arg12: memref<3x48x128xf32, #tpu.memory_space<vmem>>, %arg13: memref<3x1x128xf32, #tpu.memory_space<vmem>>, %arg14: memref<3x64x256xf32, #tpu.memory_space<vmem>>, %arg15: memref<3x1x256xf32, #tpu.memory_space<vmem>>, %arg16: memref<256x256xf32, #tpu.memory_space<vmem>>, %arg17: memref<1x256xf32, #tpu.memory_space<vmem>>, %arg18: memref<256x256xf32, #tpu.memory_space<vmem>>, %arg19: memref<1x256xf32, #tpu.memory_space<vmem>>, %arg20: memref<256x256xf32, #tpu.memory_space<vmem>>, %arg21: memref<1x256xf32, #tpu.memory_space<vmem>>, %arg22: memref<256x32xf32, #tpu.memory_space<vmem>>, %arg23: memref<1x32xf32, #tpu.memory_space<vmem>>, %arg24: memref<256x1xf32, #tpu.memory_space<vmem>>, %arg25: memref<1x1xf32, #tpu.memory_space<vmem>>, %arg26: memref<1x8x32xf32, #tpu.memory_space<vmem>>, %arg27: memref<1x8x1xf32, #tpu.memory_space<vmem>>, %arg28: memref<1x4x8x8xf32, #tpu.memory_space<vmem>>, %arg29: memref<1x4x8x8xf32, #tpu.memory_space<vmem>>, %arg30: memref<1x4x8x8xf32, #tpu.memory_space<vmem>>, %arg31: memref<1x4x8x16xf32, #tpu.memory_space<vmem>>, %arg32: memref<1x4x8x16xf32, #tpu.memory_space<vmem>>, %arg33: memref<1x4x8x16xf32, #tpu.memory_space<vmem>>) attributes {dimension_semantics = [#tpu.dimension_semantics<parallel>], iteration_bounds = array<i64: 2>, scalar_prefetch = 0 : i64, scratch_operands = 0 : i64, tpu.core_type = #tpu.core_type<tc>, window_params = [{transform_indices = @transform_0, window_bounds = array<i64: 1, 8, 256>}, {pipeline_mode = #tpu.pipeline_mode<synchronous>, transform_indices = @transform_1, window_bounds = array<i64: 1, 8, 256>}, {transform_indices = @transform_2, window_bounds = array<i64: 1, 16, 48>}, {transform_indices = @transform_3, window_bounds = array<i64: 1, 8, 8>}, {transform_indices = @transform_4, window_bounds = array<i64: 1, 1, 16>}, {pipeline_mode = #tpu.pipeline_mode<synchronous>, transform_indices = @transform_5, window_bounds = array<i64: 3, 256, 192>}, {pipeline_mode = #tpu.pipeline_mode<synchronous>, transform_indices = @transform_6, window_bounds = array<i64: 3, 1, 192>}, {pipeline_mode = #tpu.pipeline_mode<synchronous>, transform_indices = @transform_7, window_bounds = array<i64: 3, 64, 256>}, {pipeline_mode = #tpu.pipeline_mode<synchronous>, transform_indices = @transform_8, window_bounds = array<i64: 3, 1, 256>}, {pipeline_mode = #tpu.pipeline_mode<synchronous>, transform_indices = @transform_9, window_bounds = array<i64: 3, 256, 64>}, {pipeline_mode = #tpu.pipeline_mode<synchronous>, transform_indices = @transform_10, window_bounds = array<i64: 3, 1, 64>}, {pipeline_mode = #tpu.pipeline_mode<synchronous>, transform_indices = @transform_11, window_bounds = array<i64: 3, 48, 128>}, {pipeline_mode = #tpu.pipeline_mode<synchronous>, transform_indices = @transform_12, window_bounds = array<i64: 3, 1, 128>}, {pipeline_mode = #tpu.pipeline_mode<synchronous>, transform_indices = @transform_13, window_bounds = array<i64: 3, 64, 256>}, {pipeline_mode = #tpu.pipeline_mode<synchronous>, transform_indices = @transform_14, window_bounds = array<i64: 3, 1, 256>}, {pipeline_mode = #tpu.pipeline_mode<synchronous>, transform_indices = @transform_15, window_bounds = array<i64: 256, 256>}, {pipeline_mode = #tpu.pipeline_mode<synchronous>, transform_indices = @transform_16, window_bounds = array<i64: 1, 256>}, {pipeline_mode = #tpu.pipeline_mode<synchronous>, transform_indices = @transform_17, window_bounds = array<i64: 256, 256>}, {pipeline_mode = #tpu.pipeline_mode<synchronous>, transform_indices = @transform_18, window_bounds = array<i64: 1, 256>}, {pipeline_mode = #tpu.pipeline_mode<synchronous>, transform_indices = @transform_19, window_bounds = array<i64: 256, 256>}, {pipeline_mode = #tpu.pipeline_mode<synchronous>, transform_indices = @transform_20, window_bounds = array<i64: 1, 256>}, {pipeline_mode = #tpu.pipeline_mode<synchronous>, transform_indices = @transform_21, window_bounds = array<i64: 256, 32>}, {pipeline_mode = #tpu.pipeline_mode<synchronous>, transform_indices = @transform_22, window_bounds = array<i64: 1, 32>}, {pipeline_mode = #tpu.pipeline_mode<synchronous>, transform_indices = @transform_23, window_bounds = array<i64: 256, 1>}, {pipeline_mode = #tpu.pipeline_mode<synchronous>, transform_indices = @transform_24, window_bounds = array<i64: 1, 1>}, {transform_indices = @transform_25, window_bounds = array<i64: 1, 8, 32>}, {transform_indices = @transform_26, window_bounds = array<i64: 1, 8, 1>}, {transform_indices = @transform_27, window_bounds = array<i64: 1, 4, 8, 8>}, {transform_indices = @transform_28, window_bounds = array<i64: 1, 4, 8, 8>}, {transform_indices = @transform_29, window_bounds = array<i64: 1, 4, 8, 8>}, {transform_indices = @transform_30, window_bounds = array<i64: 1, 4, 8, 16>}, {transform_indices = @transform_31, window_bounds = array<i64: 1, 4, 8, 16>}, {transform_indices = @transform_32, window_bounds = array<i64: 1, 4, 8, 16>}]} {
    %c0 = arith.constant 0 : index
    %c0_0 = arith.constant 0 : index
    %c0_1 = arith.constant 0 : index
    %0 = vector.load %arg1[%c0, %c0_0, %c0_1] : memref<1x8x256xf32, #tpu.memory_space<vmem>>, vector<1x8x256xf32>
    %1 = vector.shape_cast %0 : vector<1x8x256xf32> to vector<8x256xf32>
    %c0_2 = arith.constant 0 : index
    %c0_3 = arith.constant 0 : index
    %c0_4 = arith.constant 0 : index
    %2 = vector.load %arg3[%c0_2, %c0_3, %c0_4] : memref<1x16x48xf32, #tpu.memory_space<vmem>>, vector<1x16x48xf32>
    %3 = vector.shape_cast %2 : vector<1x16x48xf32> to vector<16x48xf32>
    %c0_5 = arith.constant 0 : index
    %c0_6 = arith.constant 0 : index
    %c0_7 = arith.constant 0 : index
    %4 = vector.load %arg4[%c0_5, %c0_6, %c0_7] : memref<1x8x8xf32, #tpu.memory_space<vmem>>, vector<1x8x8xf32>
    %5 = vector.shape_cast %4 : vector<1x8x8xf32> to vector<8x8xf32>
    %cst = arith.constant 1.000000e+00 : f32
    %6 = vector.broadcast %cst : f32 to vector<8x8xf32>
    %7 = arith.subf %5, %6 : vector<8x8xf32>
    %cst_8 = arith.constant 1.000000e+09 : f32
    %8 = vector.broadcast %cst_8 : f32 to vector<8x8xf32>
    %9 = arith.mulf %7, %8 : vector<8x8xf32>
    %c0_9 = arith.constant 0 : index
    %c0_10 = arith.constant 0 : index
    %c0_11 = arith.constant 0 : index
    %10 = vector.load %arg5[%c0_9, %c0_10, %c0_11] : memref<1x1x16xf32, #tpu.memory_space<vmem>>, vector<1x1x16xf32>
    %11 = vector.shape_cast %10 : vector<1x1x16xf32> to vector<1x16xf32>
    %cst_12 = arith.constant 1.000000e+00 : f32
    %12 = vector.broadcast %cst_12 : f32 to vector<1x16xf32>
    %13 = arith.subf %11, %12 : vector<1x16xf32>
    %cst_13 = arith.constant 1.000000e+09 : f32
    %14 = vector.broadcast %cst_13 : f32 to vector<1x16xf32>
    %15 = arith.mulf %13, %14 : vector<1x16xf32>
    %c0_14 = arith.constant 0 : index
    %c0_15 = arith.constant 0 : index
    %16 = vector.load %arg16[%c0_14, %c0_15] : memref<256x256xf32, #tpu.memory_space<vmem>>, vector<256x256xf32>
    %c0_16 = arith.constant 0 : index
    %c0_17 = arith.constant 0 : index
    %17 = vector.load %arg17[%c0_16, %c0_17] : memref<1x256xf32, #tpu.memory_space<vmem>>, vector<1x256xf32>
    %cst_18 = arith.constant dense<0.000000e+00> : vector<8x256xf32>
    %18 = tpu.matmul %1, %16, %cst_18 {dimension_numbers = #tpu.dot_dimension_numbers<[1], [0], [0], [1], [0, 0, 1, 1], [], []>} : vector<8x256xf32>, vector<256x256xf32>, vector<8x256xf32> -> vector<8x256xf32>
    %19 = vector.broadcast %17 : vector<1x256xf32> to vector<8x256xf32>
    %20 = arith.addf %18, %19 : vector<8x256xf32>
    %cst_19 = arith.constant 0.000000e+00 : f32
    %21 = vector.broadcast %cst_19 : f32 to vector<8x256xf32>
    %22 = arith.cmpf oge, %20, %21 : vector<8x256xf32>
    %cst_20 = arith.constant 0.00999999977 : f32
    %23 = vector.broadcast %cst_20 : f32 to vector<8x256xf32>
    %24 = arith.mulf %23, %20 : vector<8x256xf32>
    %25 = arith.select %22, %20, %24 : vector<8x256xi1>, vector<8x256xf32>
    %c0_21 = arith.constant 0 : index
    %c0_22 = arith.constant 0 : index
    %26 = vector.load %arg18[%c0_21, %c0_22] : memref<256x256xf32, #tpu.memory_space<vmem>>, vector<256x256xf32>
    %c0_23 = arith.constant 0 : index
    %c0_24 = arith.constant 0 : index
    %27 = vector.load %arg19[%c0_23, %c0_24] : memref<1x256xf32, #tpu.memory_space<vmem>>, vector<1x256xf32>
    %cst_25 = arith.constant dense<0.000000e+00> : vector<8x256xf32>
    %28 = tpu.matmul %25, %26, %cst_25 {dimension_numbers = #tpu.dot_dimension_numbers<[1], [0], [0], [1], [0, 0, 1, 1], [], []>} : vector<8x256xf32>, vector<256x256xf32>, vector<8x256xf32> -> vector<8x256xf32>
    %29 = vector.broadcast %27 : vector<1x256xf32> to vector<8x256xf32>
    %30 = arith.addf %28, %29 : vector<8x256xf32>
    %cst_26 = arith.constant 0.000000e+00 : f32
    %31 = vector.broadcast %cst_26 : f32 to vector<8x256xf32>
    %32 = arith.cmpf oge, %30, %31 : vector<8x256xf32>
    %cst_27 = arith.constant 0.00999999977 : f32
    %33 = vector.broadcast %cst_27 : f32 to vector<8x256xf32>
    %34 = arith.mulf %33, %30 : vector<8x256xf32>
    %35 = arith.select %32, %30, %34 : vector<8x256xi1>, vector<8x256xf32>
    %c0_28 = arith.constant 0 : index
    %c0_29 = arith.constant 0 : index
    %36 = vector.load %arg20[%c0_28, %c0_29] : memref<256x256xf32, #tpu.memory_space<vmem>>, vector<256x256xf32>
    %c0_30 = arith.constant 0 : index
    %c0_31 = arith.constant 0 : index
    %37 = vector.load %arg21[%c0_30, %c0_31] : memref<1x256xf32, #tpu.memory_space<vmem>>, vector<1x256xf32>
    %cst_32 = arith.constant dense<0.000000e+00> : vector<8x256xf32>
    %38 = tpu.matmul %35, %36, %cst_32 {dimension_numbers = #tpu.dot_dimension_numbers<[1], [0], [0], [1], [0, 0, 1, 1], [], []>} : vector<8x256xf32>, vector<256x256xf32>, vector<8x256xf32> -> vector<8x256xf32>
    %39 = vector.broadcast %37 : vector<1x256xf32> to vector<8x256xf32>
    %40 = arith.addf %38, %39 : vector<8x256xf32>
    %c0_33 = arith.constant 0 : index
    %c0_34 = arith.constant 0 : index
    %c0_35 = arith.constant 0 : index
    %41 = vector.load %arg2[%c0_33, %c0_34, %c0_35] : memref<1x8x256xf32, #tpu.memory_space<vmem>>, vector<1x8x256xf32>
    %42 = vector.shape_cast %41 : vector<1x8x256xf32> to vector<8x256xf32>
    %43 = arith.addf %40, %42 : vector<8x256xf32>
    %c0_36 = arith.constant 0 : index
    %c0_37 = arith.constant 0 : index
    %c0_38 = arith.constant 0 : index
    %44 = vector.load %arg6[%c0_36, %c0_37, %c0_38] : memref<3x256x192xf32, #tpu.memory_space<vmem>>, vector<1x256x192xf32>
    %45 = vector.shape_cast %44 : vector<1x256x192xf32> to vector<256x192xf32>
    %c0_39 = arith.constant 0 : index
    %c0_40 = arith.constant 0 : index
    %c0_41 = arith.constant 0 : index
    %46 = vector.load %arg7[%c0_39, %c0_40, %c0_41] : memref<3x1x192xf32, #tpu.memory_space<vmem>>, vector<1x1x192xf32>
    %47 = vector.shape_cast %46 : vector<1x1x192xf32> to vector<1x192xf32>
    %cst_42 = arith.constant dense<0.000000e+00> : vector<8x192xf32>
    %48 = tpu.matmul %43, %45, %cst_42 {dimension_numbers = #tpu.dot_dimension_numbers<[1], [0], [0], [1], [0, 0, 1, 1], [], []>} : vector<8x256xf32>, vector<256x192xf32>, vector<8x192xf32> -> vector<8x192xf32>
    %49 = vector.broadcast %47 : vector<1x192xf32> to vector<8x192xf32>
    %50 = arith.addf %48, %49 : vector<8x192xf32>
    %51 = vector.extract_strided_slice %50 {offsets = [0, 0], sizes = [8, 64], strides = [1, 1]} : vector<8x192xf32> to vector<8x64xf32>
    %52 = vector.extract_strided_slice %50 {offsets = [0, 64], sizes = [8, 64], strides = [1, 1]} : vector<8x192xf32> to vector<8x64xf32>
    %53 = vector.extract_strided_slice %50 {offsets = [0, 128], sizes = [8, 64], strides = [1, 1]} : vector<8x192xf32> to vector<8x64xf32>
    %c0_43 = arith.constant 0 : index
    %c0_44 = arith.constant 0 : index
    %c0_45 = arith.constant 0 : index
    %54 = vector.load %arg8[%c0_43, %c0_44, %c0_45] : memref<3x64x256xf32, #tpu.memory_space<vmem>>, vector<1x64x256xf32>
    %55 = vector.shape_cast %54 : vector<1x64x256xf32> to vector<64x256xf32>
    %cst_46 = arith.constant 0.000000e+00 : f32
    %56 = vector.broadcast %cst_46 : f32 to vector<8x256xf32>
    %57 = vector.extract_strided_slice %51 {offsets = [0, 0], sizes = [8, 16], strides = [1, 1]} : vector<8x64xf32> to vector<8x16xf32>
    %58 = vector.extract_strided_slice %52 {offsets = [0, 0], sizes = [8, 16], strides = [1, 1]} : vector<8x64xf32> to vector<8x16xf32>
    %cst_47 = arith.constant dense<0.000000e+00> : vector<8x8xf32>
    %59 = tpu.matmul %57, %58, %cst_47 {dimension_numbers = #tpu.dot_dimension_numbers<[1], [1], [0], [0], [0, 0, 1, 0], [], []>} : vector<8x16xf32>, vector<8x16xf32>, vector<8x8xf32> -> vector<8x8xf32>
    %cst_48 = arith.constant 2.500000e-01 : f32
    %60 = vector.broadcast %cst_48 : f32 to vector<8x8xf32>
    %61 = arith.mulf %59, %60 : vector<8x8xf32>
    %62 = arith.addf %61, %9 : vector<8x8xf32>
    %cst_49 = arith.constant dense<0xFF800000> : vector<8xf32>
    %63 = vector.multi_reduction <maximumf>, %62, %cst_49 [1] : vector<8x8xf32> to vector<8xf32>
    %64 = vector.shape_cast %63 : vector<8xf32> to vector<8x1xf32>
    %65 = vector.broadcast %64 : vector<8x1xf32> to vector<8x8xf32>
    %66 = arith.subf %62, %65 : vector<8x8xf32>
    %67 = math.exp %66 : vector<8x8xf32>
    %cst_50 = arith.constant dense<0.000000e+00> : vector<8xf32>
    %68 = vector.multi_reduction <add>, %67, %cst_50 [1] : vector<8x8xf32> to vector<8xf32>
    %69 = vector.shape_cast %68 : vector<8xf32> to vector<8x1xf32>
    %70 = tpu.reciprocal %69 {approx = true} : vector<8x1xf32> -> vector<8x1xf32>
    %71 = vector.broadcast %70 : vector<8x1xf32> to vector<8x8xf32>
    %72 = arith.mulf %67, %71 : vector<8x8xf32>
    %c0_51 = arith.constant 0 : index
    %c0_52 = arith.constant 0 : index
    %c0_53 = arith.constant 0 : index
    %c0_54 = arith.constant 0 : index
    %73 = vector.load %arg28[%c0_51, %c0_52, %c0_53, %c0_54] : memref<1x4x8x8xf32, #tpu.memory_space<vmem>>, vector<1x1x8x8xf32>
    %74 = vector.shape_cast %73 : vector<1x1x8x8xf32> to vector<8x8xf32>
    %75 = vector.shape_cast %72 : vector<8x8xf32> to vector<1x1x8x8xf32>
    tpu.vector_store %arg28[%c0_51, %c0_52, %c0_53, %c0_54], %75 {strides = array<i32>} : memref<1x4x8x8xf32, #tpu.memory_space<vmem>>, vector<1x1x8x8xf32>,
    %76 = vector.extract_strided_slice %53 {offsets = [0, 0], sizes = [8, 16], strides = [1, 1]} : vector<8x64xf32> to vector<8x16xf32>
    %cst_55 = arith.constant dense<0.000000e+00> : vector<8x16xf32>
    %77 = tpu.matmul %72, %76, %cst_55 {dimension_numbers = #tpu.dot_dimension_numbers<[1], [0], [0], [1], [0, 0, 1, 1], [], []>} : vector<8x8xf32>, vector<8x16xf32>, vector<8x16xf32> -> vector<8x16xf32>
    %78 = vector.extract_strided_slice %55 {offsets = [0, 0], sizes = [16, 256], strides = [1, 1]} : vector<64x256xf32> to vector<16x256xf32>
    %cst_56 = arith.constant dense<0.000000e+00> : vector<8x256xf32>
    %79 = tpu.matmul %77, %78, %cst_56 {dimension_numbers = #tpu.dot_dimension_numbers<[1], [0], [0], [1], [0, 0, 1, 1], [], []>} : vector<8x16xf32>, vector<16x256xf32>, vector<8x256xf32> -> vector<8x256xf32>
    %80 = arith.addf %56, %79 : vector<8x256xf32>
    %81 = vector.extract_strided_slice %51 {offsets = [0, 16], sizes = [8, 16], strides = [1, 1]} : vector<8x64xf32> to vector<8x16xf32>
    %82 = vector.extract_strided_slice %52 {offsets = [0, 16], sizes = [8, 16], strides = [1, 1]} : vector<8x64xf32> to vector<8x16xf32>
    %cst_57 = arith.constant dense<0.000000e+00> : vector<8x8xf32>
    %83 = tpu.matmul %81, %82, %cst_57 {dimension_numbers = #tpu.dot_dimension_numbers<[1], [1], [0], [0], [0, 0, 1, 0], [], []>} : vector<8x16xf32>, vector<8x16xf32>, vector<8x8xf32> -> vector<8x8xf32>
    %cst_58 = arith.constant 2.500000e-01 : f32
    %84 = vector.broadcast %cst_58 : f32 to vector<8x8xf32>
    %85 = arith.mulf %83, %84 : vector<8x8xf32>
    %86 = arith.addf %85, %9 : vector<8x8xf32>
    %cst_59 = arith.constant dense<0xFF800000> : vector<8xf32>
    %87 = vector.multi_reduction <maximumf>, %86, %cst_59 [1] : vector<8x8xf32> to vector<8xf32>
    %88 = vector.shape_cast %87 : vector<8xf32> to vector<8x1xf32>
    %89 = vector.broadcast %88 : vector<8x1xf32> to vector<8x8xf32>
    %90 = arith.subf %86, %89 : vector<8x8xf32>
    %91 = math.exp %90 : vector<8x8xf32>
    %cst_60 = arith.constant dense<0.000000e+00> : vector<8xf32>
    %92 = vector.multi_reduction <add>, %91, %cst_60 [1] : vector<8x8xf32> to vector<8xf32>
    %93 = vector.shape_cast %92 : vector<8xf32> to vector<8x1xf32>
    %94 = tpu.reciprocal %93 {approx = true} : vector<8x1xf32> -> vector<8x1xf32>
    %95 = vector.broadcast %94 : vector<8x1xf32> to vector<8x8xf32>
    %96 = arith.mulf %91, %95 : vector<8x8xf32>
    %c0_61 = arith.constant 0 : index
    %c1 = arith.constant 1 : index
    %c0_62 = arith.constant 0 : index
    %c0_63 = arith.constant 0 : index
    %97 = vector.load %arg28[%c0_61, %c1, %c0_62, %c0_63] : memref<1x4x8x8xf32, #tpu.memory_space<vmem>>, vector<1x1x8x8xf32>
    %98 = vector.shape_cast %97 : vector<1x1x8x8xf32> to vector<8x8xf32>
    %99 = vector.shape_cast %96 : vector<8x8xf32> to vector<1x1x8x8xf32>
    tpu.vector_store %arg28[%c0_61, %c1, %c0_62, %c0_63], %99 {strides = array<i32>} : memref<1x4x8x8xf32, #tpu.memory_space<vmem>>, vector<1x1x8x8xf32>,
    %100 = vector.extract_strided_slice %53 {offsets = [0, 16], sizes = [8, 16], strides = [1, 1]} : vector<8x64xf32> to vector<8x16xf32>
    %cst_64 = arith.constant dense<0.000000e+00> : vector<8x16xf32>
    %101 = tpu.matmul %96, %100, %cst_64 {dimension_numbers = #tpu.dot_dimension_numbers<[1], [0], [0], [1], [0, 0, 1, 1], [], []>} : vector<8x8xf32>, vector<8x16xf32>, vector<8x16xf32> -> vector<8x16xf32>
    %102 = vector.extract_strided_slice %55 {offsets = [16, 0], sizes = [16, 256], strides = [1, 1]} : vector<64x256xf32> to vector<16x256xf32>
    %cst_65 = arith.constant dense<0.000000e+00> : vector<8x256xf32>
    %103 = tpu.matmul %101, %102, %cst_65 {dimension_numbers = #tpu.dot_dimension_numbers<[1], [0], [0], [1], [0, 0, 1, 1], [], []>} : vector<8x16xf32>, vector<16x256xf32>, vector<8x256xf32> -> vector<8x256xf32>
    %104 = arith.addf %80, %103 : vector<8x256xf32>
    %105 = vector.extract_strided_slice %51 {offsets = [0, 32], sizes = [8, 16], strides = [1, 1]} : vector<8x64xf32> to vector<8x16xf32>
    %106 = vector.extract_strided_slice %52 {offsets = [0, 32], sizes = [8, 16], strides = [1, 1]} : vector<8x64xf32> to vector<8x16xf32>
    %cst_66 = arith.constant dense<0.000000e+00> : vector<8x8xf32>
    %107 = tpu.matmul %105, %106, %cst_66 {dimension_numbers = #tpu.dot_dimension_numbers<[1], [1], [0], [0], [0, 0, 1, 0], [], []>} : vector<8x16xf32>, vector<8x16xf32>, vector<8x8xf32> -> vector<8x8xf32>
    %cst_67 = arith.constant 2.500000e-01 : f32
    %108 = vector.broadcast %cst_67 : f32 to vector<8x8xf32>
    %109 = arith.mulf %107, %108 : vector<8x8xf32>
    %110 = arith.addf %109, %9 : vector<8x8xf32>
    %cst_68 = arith.constant dense<0xFF800000> : vector<8xf32>
    %111 = vector.multi_reduction <maximumf>, %110, %cst_68 [1] : vector<8x8xf32> to vector<8xf32>
    %112 = vector.shape_cast %111 : vector<8xf32> to vector<8x1xf32>
    %113 = vector.broadcast %112 : vector<8x1xf32> to vector<8x8xf32>
    %114 = arith.subf %110, %113 : vector<8x8xf32>
    %115 = math.exp %114 : vector<8x8xf32>
    %cst_69 = arith.constant dense<0.000000e+00> : vector<8xf32>
    %116 = vector.multi_reduction <add>, %115, %cst_69 [1] : vector<8x8xf32> to vector<8xf32>
    %117 = vector.shape_cast %116 : vector<8xf32> to vector<8x1xf32>
    %118 = tpu.reciprocal %117 {approx = true} : vector<8x1xf32> -> vector<8x1xf32>
    %119 = vector.broadcast %118 : vector<8x1xf32> to vector<8x8xf32>
    %120 = arith.mulf %115, %119 : vector<8x8xf32>
    %c0_70 = arith.constant 0 : index
    %c2 = arith.constant 2 : index
    %c0_71 = arith.constant 0 : index
    %c0_72 = arith.constant 0 : index
    %121 = vector.load %arg28[%c0_70, %c2, %c0_71, %c0_72] : memref<1x4x8x8xf32, #tpu.memory_space<vmem>>, vector<1x1x8x8xf32>
    %122 = vector.shape_cast %121 : vector<1x1x8x8xf32> to vector<8x8xf32>
    %123 = vector.shape_cast %120 : vector<8x8xf32> to vector<1x1x8x8xf32>
    tpu.vector_store %arg28[%c0_70, %c2, %c0_71, %c0_72], %123 {strides = array<i32>} : memref<1x4x8x8xf32, #tpu.memory_space<vmem>>, vector<1x1x8x8xf32>,
    %124 = vector.extract_strided_slice %53 {offsets = [0, 32], sizes = [8, 16], strides = [1, 1]} : vector<8x64xf32> to vector<8x16xf32>
    %cst_73 = arith.constant dense<0.000000e+00> : vector<8x16xf32>
    %125 = tpu.matmul %120, %124, %cst_73 {dimension_numbers = #tpu.dot_dimension_numbers<[1], [0], [0], [1], [0, 0, 1, 1], [], []>} : vector<8x8xf32>, vector<8x16xf32>, vector<8x16xf32> -> vector<8x16xf32>
    %126 = vector.extract_strided_slice %55 {offsets = [32, 0], sizes = [16, 256], strides = [1, 1]} : vector<64x256xf32> to vector<16x256xf32>
    %cst_74 = arith.constant dense<0.000000e+00> : vector<8x256xf32>
    %127 = tpu.matmul %125, %126, %cst_74 {dimension_numbers = #tpu.dot_dimension_numbers<[1], [0], [0], [1], [0, 0, 1, 1], [], []>} : vector<8x16xf32>, vector<16x256xf32>, vector<8x256xf32> -> vector<8x256xf32>
    %128 = arith.addf %104, %127 : vector<8x256xf32>
    %129 = vector.extract_strided_slice %51 {offsets = [0, 48], sizes = [8, 16], strides = [1, 1]} : vector<8x64xf32> to vector<8x16xf32>
    %130 = vector.extract_strided_slice %52 {offsets = [0, 48], sizes = [8, 16], strides = [1, 1]} : vector<8x64xf32> to vector<8x16xf32>
    %cst_75 = arith.constant dense<0.000000e+00> : vector<8x8xf32>
    %131 = tpu.matmul %129, %130, %cst_75 {dimension_numbers = #tpu.dot_dimension_numbers<[1], [1], [0], [0], [0, 0, 1, 0], [], []>} : vector<8x16xf32>, vector<8x16xf32>, vector<8x8xf32> -> vector<8x8xf32>
    %cst_76 = arith.constant 2.500000e-01 : f32
    %132 = vector.broadcast %cst_76 : f32 to vector<8x8xf32>
    %133 = arith.mulf %131, %132 : vector<8x8xf32>
    %134 = arith.addf %133, %9 : vector<8x8xf32>
    %cst_77 = arith.constant dense<0xFF800000> : vector<8xf32>
    %135 = vector.multi_reduction <maximumf>, %134, %cst_77 [1] : vector<8x8xf32> to vector<8xf32>
    %136 = vector.shape_cast %135 : vector<8xf32> to vector<8x1xf32>
    %137 = vector.broadcast %136 : vector<8x1xf32> to vector<8x8xf32>
    %138 = arith.subf %134, %137 : vector<8x8xf32>
    %139 = math.exp %138 : vector<8x8xf32>
    %cst_78 = arith.constant dense<0.000000e+00> : vector<8xf32>
    %140 = vector.multi_reduction <add>, %139, %cst_78 [1] : vector<8x8xf32> to vector<8xf32>
    %141 = vector.shape_cast %140 : vector<8xf32> to vector<8x1xf32>
    %142 = tpu.reciprocal %141 {approx = true} : vector<8x1xf32> -> vector<8x1xf32>
    %143 = vector.broadcast %142 : vector<8x1xf32> to vector<8x8xf32>
    %144 = arith.mulf %139, %143 : vector<8x8xf32>
    %c0_79 = arith.constant 0 : index
    %c3 = arith.constant 3 : index
    %c0_80 = arith.constant 0 : index
    %c0_81 = arith.constant 0 : index
    %145 = vector.load %arg28[%c0_79, %c3, %c0_80, %c0_81] : memref<1x4x8x8xf32, #tpu.memory_space<vmem>>, vector<1x1x8x8xf32>
    %146 = vector.shape_cast %145 : vector<1x1x8x8xf32> to vector<8x8xf32>
    %147 = vector.shape_cast %144 : vector<8x8xf32> to vector<1x1x8x8xf32>
    tpu.vector_store %arg28[%c0_79, %c3, %c0_80, %c0_81], %147 {strides = array<i32>} : memref<1x4x8x8xf32, #tpu.memory_space<vmem>>, vector<1x1x8x8xf32>,
    %148 = vector.extract_strided_slice %53 {offsets = [0, 48], sizes = [8, 16], strides = [1, 1]} : vector<8x64xf32> to vector<8x16xf32>
    %cst_82 = arith.constant dense<0.000000e+00> : vector<8x16xf32>
    %149 = tpu.matmul %144, %148, %cst_82 {dimension_numbers = #tpu.dot_dimension_numbers<[1], [0], [0], [1], [0, 0, 1, 1], [], []>} : vector<8x8xf32>, vector<8x16xf32>, vector<8x16xf32> -> vector<8x16xf32>
    %150 = vector.extract_strided_slice %55 {offsets = [48, 0], sizes = [16, 256], strides = [1, 1]} : vector<64x256xf32> to vector<16x256xf32>
    %cst_83 = arith.constant dense<0.000000e+00> : vector<8x256xf32>
    %151 = tpu.matmul %149, %150, %cst_83 {dimension_numbers = #tpu.dot_dimension_numbers<[1], [0], [0], [1], [0, 0, 1, 1], [], []>} : vector<8x16xf32>, vector<16x256xf32>, vector<8x256xf32> -> vector<8x256xf32>
    %152 = arith.addf %128, %151 : vector<8x256xf32>
    %153 = arith.addf %43, %152 : vector<8x256xf32>
    %c0_84 = arith.constant 0 : index
    %c0_85 = arith.constant 0 : index
    %c0_86 = arith.constant 0 : index
    %154 = vector.load %arg9[%c0_84, %c0_85, %c0_86] : memref<3x1x256xf32, #tpu.memory_space<vmem>>, vector<1x1x256xf32>
    %155 = vector.shape_cast %154 : vector<1x1x256xf32> to vector<1x256xf32>
    %156 = vector.broadcast %155 : vector<1x256xf32> to vector<8x256xf32>
    %157 = arith.addf %153, %156 : vector<8x256xf32>
    %c0_87 = arith.constant 0 : index
    %c0_88 = arith.constant 0 : index
    %c0_89 = arith.constant 0 : index
    %158 = vector.load %arg10[%c0_87, %c0_88, %c0_89] : memref<3x256x64xf32, #tpu.memory_space<vmem>>, vector<1x256x64xf32>
    %159 = vector.shape_cast %158 : vector<1x256x64xf32> to vector<256x64xf32>
    %c0_90 = arith.constant 0 : index
    %c0_91 = arith.constant 0 : index
    %c0_92 = arith.constant 0 : index
    %160 = vector.load %arg11[%c0_90, %c0_91, %c0_92] : memref<3x1x64xf32, #tpu.memory_space<vmem>>, vector<1x1x64xf32>
    %161 = vector.shape_cast %160 : vector<1x1x64xf32> to vector<1x64xf32>
    %cst_93 = arith.constant dense<0.000000e+00> : vector<8x64xf32>
    %162 = tpu.matmul %157, %159, %cst_93 {dimension_numbers = #tpu.dot_dimension_numbers<[1], [0], [0], [1], [0, 0, 1, 1], [], []>} : vector<8x256xf32>, vector<256x64xf32>, vector<8x64xf32> -> vector<8x64xf32>
    %163 = vector.broadcast %161 : vector<1x64xf32> to vector<8x64xf32>
    %164 = arith.addf %162, %163 : vector<8x64xf32>
    %c0_94 = arith.constant 0 : index
    %c0_95 = arith.constant 0 : index
    %c0_96 = arith.constant 0 : index
    %165 = vector.load %arg12[%c0_94, %c0_95, %c0_96] : memref<3x48x128xf32, #tpu.memory_space<vmem>>, vector<1x48x128xf32>
    %166 = vector.shape_cast %165 : vector<1x48x128xf32> to vector<48x128xf32>
    %c0_97 = arith.constant 0 : index
    %c0_98 = arith.constant 0 : index
    %c0_99 = arith.constant 0 : index
    %167 = vector.load %arg13[%c0_97, %c0_98, %c0_99] : memref<3x1x128xf32, #tpu.memory_space<vmem>>, vector<1x1x128xf32>
    %168 = vector.shape_cast %167 : vector<1x1x128xf32> to vector<1x128xf32>
    %cst_100 = arith.constant dense<0.000000e+00> : vector<16x128xf32>
    %169 = tpu.matmul %3, %166, %cst_100 {dimension_numbers = #tpu.dot_dimension_numbers<[1], [0], [0], [1], [0, 0, 1, 1], [], []>} : vector<16x48xf32>, vector<48x128xf32>, vector<16x128xf32> -> vector<16x128xf32>
    %170 = vector.broadcast %168 : vector<1x128xf32> to vector<16x128xf32>
    %171 = arith.addf %169, %170 : vector<16x128xf32>
    %172 = vector.extract_strided_slice %171 {offsets = [0, 0], sizes = [16, 64], strides = [1, 1]} : vector<16x128xf32> to vector<16x64xf32>
    %173 = vector.extract_strided_slice %171 {offsets = [0, 64], sizes = [16, 64], strides = [1, 1]} : vector<16x128xf32> to vector<16x64xf32>
    %c0_101 = arith.constant 0 : index
    %c0_102 = arith.constant 0 : index
    %c0_103 = arith.constant 0 : index
    %174 = vector.load %arg14[%c0_101, %c0_102, %c0_103] : memref<3x64x256xf32, #tpu.memory_space<vmem>>, vector<1x64x256xf32>
    %175 = vector.shape_cast %174 : vector<1x64x256xf32> to vector<64x256xf32>
    %cst_104 = arith.constant 0.000000e+00 : f32
    %176 = vector.broadcast %cst_104 : f32 to vector<8x256xf32>
    %177 = vector.extract_strided_slice %164 {offsets = [0, 0], sizes = [8, 16], strides = [1, 1]} : vector<8x64xf32> to vector<8x16xf32>
    %178 = vector.extract_strided_slice %172 {offsets = [0, 0], sizes = [16, 16], strides = [1, 1]} : vector<16x64xf32> to vector<16x16xf32>
    %cst_105 = arith.constant dense<0.000000e+00> : vector<8x16xf32>
    %179 = tpu.matmul %177, %178, %cst_105 {dimension_numbers = #tpu.dot_dimension_numbers<[1], [1], [0], [0], [0, 0, 1, 0], [], []>} : vector<8x16xf32>, vector<16x16xf32>, vector<8x16xf32> -> vector<8x16xf32>
    %cst_106 = arith.constant 2.500000e-01 : f32
    %180 = vector.broadcast %cst_106 : f32 to vector<8x16xf32>
    %181 = arith.mulf %179, %180 : vector<8x16xf32>
    %182 = vector.broadcast %15 : vector<1x16xf32> to vector<8x16xf32>
    %183 = arith.addf %181, %182 : vector<8x16xf32>
    %cst_107 = arith.constant dense<0xFF800000> : vector<8xf32>
    %184 = vector.multi_reduction <maximumf>, %183, %cst_107 [1] : vector<8x16xf32> to vector<8xf32>
    %185 = vector.shape_cast %184 : vector<8xf32> to vector<8x1xf32>
    %186 = vector.broadcast %185 : vector<8x1xf32> to vector<8x16xf32>
    %187 = arith.subf %183, %186 : vector<8x16xf32>
    %188 = math.exp %187 : vector<8x16xf32>
    %cst_108 = arith.constant dense<0.000000e+00> : vector<8xf32>
    %189 = vector.multi_reduction <add>, %188, %cst_108 [1] : vector<8x16xf32> to vector<8xf32>
    %190 = vector.shape_cast %189 : vector<8xf32> to vector<8x1xf32>
    %191 = tpu.reciprocal %190 {approx = true} : vector<8x1xf32> -> vector<8x1xf32>
    %192 = vector.broadcast %191 : vector<8x1xf32> to vector<8x16xf32>
    %193 = arith.mulf %188, %192 : vector<8x16xf32>
    %c0_109 = arith.constant 0 : index
    %c0_110 = arith.constant 0 : index
    %c0_111 = arith.constant 0 : index
    %c0_112 = arith.constant 0 : index
    %194 = vector.load %arg31[%c0_109, %c0_110, %c0_111, %c0_112] : memref<1x4x8x16xf32, #tpu.memory_space<vmem>>, vector<1x1x8x16xf32>
    %195 = vector.shape_cast %194 : vector<1x1x8x16xf32> to vector<8x16xf32>
    %196 = vector.shape_cast %193 : vector<8x16xf32> to vector<1x1x8x16xf32>
    tpu.vector_store %arg31[%c0_109, %c0_110, %c0_111, %c0_112], %196 {strides = array<i32>} : memref<1x4x8x16xf32, #tpu.memory_space<vmem>>, vector<1x1x8x16xf32>,
    %197 = vector.extract_strided_slice %173 {offsets = [0, 0], sizes = [16, 16], strides = [1, 1]} : vector<16x64xf32> to vector<16x16xf32>
    %cst_113 = arith.constant dense<0.000000e+00> : vector<8x16xf32>
    %198 = tpu.matmul %193, %197, %cst_113 {dimension_numbers = #tpu.dot_dimension_numbers<[1], [0], [0], [1], [0, 0, 1, 1], [], []>} : vector<8x16xf32>, vector<16x16xf32>, vector<8x16xf32> -> vector<8x16xf32>
    %199 = vector.extract_strided_slice %175 {offsets = [0, 0], sizes = [16, 256], strides = [1, 1]} : vector<64x256xf32> to vector<16x256xf32>
    %cst_114 = arith.constant dense<0.000000e+00> : vector<8x256xf32>
    %200 = tpu.matmul %198, %199, %cst_114 {dimension_numbers = #tpu.dot_dimension_numbers<[1], [0], [0], [1], [0, 0, 1, 1], [], []>} : vector<8x16xf32>, vector<16x256xf32>, vector<8x256xf32> -> vector<8x256xf32>
    %201 = arith.addf %176, %200 : vector<8x256xf32>
    %202 = vector.extract_strided_slice %164 {offsets = [0, 16], sizes = [8, 16], strides = [1, 1]} : vector<8x64xf32> to vector<8x16xf32>
    %203 = vector.extract_strided_slice %172 {offsets = [0, 16], sizes = [16, 16], strides = [1, 1]} : vector<16x64xf32> to vector<16x16xf32>
    %cst_115 = arith.constant dense<0.000000e+00> : vector<8x16xf32>
    %204 = tpu.matmul %202, %203, %cst_115 {dimension_numbers = #tpu.dot_dimension_numbers<[1], [1], [0], [0], [0, 0, 1, 0], [], []>} : vector<8x16xf32>, vector<16x16xf32>, vector<8x16xf32> -> vector<8x16xf32>
    %cst_116 = arith.constant 2.500000e-01 : f32
    %205 = vector.broadcast %cst_116 : f32 to vector<8x16xf32>
    %206 = arith.mulf %204, %205 : vector<8x16xf32>
    %207 = vector.broadcast %15 : vector<1x16xf32> to vector<8x16xf32>
    %208 = arith.addf %206, %207 : vector<8x16xf32>
    %cst_117 = arith.constant dense<0xFF800000> : vector<8xf32>
    %209 = vector.multi_reduction <maximumf>, %208, %cst_117 [1] : vector<8x16xf32> to vector<8xf32>
    %210 = vector.shape_cast %209 : vector<8xf32> to vector<8x1xf32>
    %211 = vector.broadcast %210 : vector<8x1xf32> to vector<8x16xf32>
    %212 = arith.subf %208, %211 : vector<8x16xf32>
    %213 = math.exp %212 : vector<8x16xf32>
    %cst_118 = arith.constant dense<0.000000e+00> : vector<8xf32>
    %214 = vector.multi_reduction <add>, %213, %cst_118 [1] : vector<8x16xf32> to vector<8xf32>
    %215 = vector.shape_cast %214 : vector<8xf32> to vector<8x1xf32>
    %216 = tpu.reciprocal %215 {approx = true} : vector<8x1xf32> -> vector<8x1xf32>
    %217 = vector.broadcast %216 : vector<8x1xf32> to vector<8x16xf32>
    %218 = arith.mulf %213, %217 : vector<8x16xf32>
    %c0_119 = arith.constant 0 : index
    %c1_120 = arith.constant 1 : index
    %c0_121 = arith.constant 0 : index
    %c0_122 = arith.constant 0 : index
    %219 = vector.load %arg31[%c0_119, %c1_120, %c0_121, %c0_122] : memref<1x4x8x16xf32, #tpu.memory_space<vmem>>, vector<1x1x8x16xf32>
    %220 = vector.shape_cast %219 : vector<1x1x8x16xf32> to vector<8x16xf32>
    %221 = vector.shape_cast %218 : vector<8x16xf32> to vector<1x1x8x16xf32>
    tpu.vector_store %arg31[%c0_119, %c1_120, %c0_121, %c0_122], %221 {strides = array<i32>} : memref<1x4x8x16xf32, #tpu.memory_space<vmem>>, vector<1x1x8x16xf32>,
    %222 = vector.extract_strided_slice %173 {offsets = [0, 16], sizes = [16, 16], strides = [1, 1]} : vector<16x64xf32> to vector<16x16xf32>
    %cst_123 = arith.constant dense<0.000000e+00> : vector<8x16xf32>
    %223 = tpu.matmul %218, %222, %cst_123 {dimension_numbers = #tpu.dot_dimension_numbers<[1], [0], [0], [1], [0, 0, 1, 1], [], []>} : vector<8x16xf32>, vector<16x16xf32>, vector<8x16xf32> -> vector<8x16xf32>
    %224 = vector.extract_strided_slice %175 {offsets = [16, 0], sizes = [16, 256], strides = [1, 1]} : vector<64x256xf32> to vector<16x256xf32>
    %cst_124 = arith.constant dense<0.000000e+00> : vector<8x256xf32>
    %225 = tpu.matmul %223, %224, %cst_124 {dimension_numbers = #tpu.dot_dimension_numbers<[1], [0], [0], [1], [0, 0, 1, 1], [], []>} : vector<8x16xf32>, vector<16x256xf32>, vector<8x256xf32> -> vector<8x256xf32>
    %226 = arith.addf %201, %225 : vector<8x256xf32>
    %227 = vector.extract_strided_slice %164 {offsets = [0, 32], sizes = [8, 16], strides = [1, 1]} : vector<8x64xf32> to vector<8x16xf32>
    %228 = vector.extract_strided_slice %172 {offsets = [0, 32], sizes = [16, 16], strides = [1, 1]} : vector<16x64xf32> to vector<16x16xf32>
    %cst_125 = arith.constant dense<0.000000e+00> : vector<8x16xf32>
    %229 = tpu.matmul %227, %228, %cst_125 {dimension_numbers = #tpu.dot_dimension_numbers<[1], [1], [0], [0], [0, 0, 1, 0], [], []>} : vector<8x16xf32>, vector<16x16xf32>, vector<8x16xf32> -> vector<8x16xf32>
    %cst_126 = arith.constant 2.500000e-01 : f32
    %230 = vector.broadcast %cst_126 : f32 to vector<8x16xf32>
    %231 = arith.mulf %229, %230 : vector<8x16xf32>
    %232 = vector.broadcast %15 : vector<1x16xf32> to vector<8x16xf32>
    %233 = arith.addf %231, %232 : vector<8x16xf32>
    %cst_127 = arith.constant dense<0xFF800000> : vector<8xf32>
    %234 = vector.multi_reduction <maximumf>, %233, %cst_127 [1] : vector<8x16xf32> to vector<8xf32>
    %235 = vector.shape_cast %234 : vector<8xf32> to vector<8x1xf32>
    %236 = vector.broadcast %235 : vector<8x1xf32> to vector<8x16xf32>
    %237 = arith.subf %233, %236 : vector<8x16xf32>
    %238 = math.exp %237 : vector<8x16xf32>
    %cst_128 = arith.constant dense<0.000000e+00> : vector<8xf32>
    %239 = vector.multi_reduction <add>, %238, %cst_128 [1] : vector<8x16xf32> to vector<8xf32>
    %240 = vector.shape_cast %239 : vector<8xf32> to vector<8x1xf32>
    %241 = tpu.reciprocal %240 {approx = true} : vector<8x1xf32> -> vector<8x1xf32>
    %242 = vector.broadcast %241 : vector<8x1xf32> to vector<8x16xf32>
    %243 = arith.mulf %238, %242 : vector<8x16xf32>
    %c0_129 = arith.constant 0 : index
    %c2_130 = arith.constant 2 : index
    %c0_131 = arith.constant 0 : index
    %c0_132 = arith.constant 0 : index
    %244 = vector.load %arg31[%c0_129, %c2_130, %c0_131, %c0_132] : memref<1x4x8x16xf32, #tpu.memory_space<vmem>>, vector<1x1x8x16xf32>
    %245 = vector.shape_cast %244 : vector<1x1x8x16xf32> to vector<8x16xf32>
    %246 = vector.shape_cast %243 : vector<8x16xf32> to vector<1x1x8x16xf32>
    tpu.vector_store %arg31[%c0_129, %c2_130, %c0_131, %c0_132], %246 {strides = array<i32>} : memref<1x4x8x16xf32, #tpu.memory_space<vmem>>, vector<1x1x8x16xf32>,
    %247 = vector.extract_strided_slice %173 {offsets = [0, 32], sizes = [16, 16], strides = [1, 1]} : vector<16x64xf32> to vector<16x16xf32>
    %cst_133 = arith.constant dense<0.000000e+00> : vector<8x16xf32>
    %248 = tpu.matmul %243, %247, %cst_133 {dimension_numbers = #tpu.dot_dimension_numbers<[1], [0], [0], [1], [0, 0, 1, 1], [], []>} : vector<8x16xf32>, vector<16x16xf32>, vector<8x16xf32> -> vector<8x16xf32>
    %249 = vector.extract_strided_slice %175 {offsets = [32, 0], sizes = [16, 256], strides = [1, 1]} : vector<64x256xf32> to vector<16x256xf32>
    %cst_134 = arith.constant dense<0.000000e+00> : vector<8x256xf32>
    %250 = tpu.matmul %248, %249, %cst_134 {dimension_numbers = #tpu.dot_dimension_numbers<[1], [0], [0], [1], [0, 0, 1, 1], [], []>} : vector<8x16xf32>, vector<16x256xf32>, vector<8x256xf32> -> vector<8x256xf32>
    %251 = arith.addf %226, %250 : vector<8x256xf32>
    %252 = vector.extract_strided_slice %164 {offsets = [0, 48], sizes = [8, 16], strides = [1, 1]} : vector<8x64xf32> to vector<8x16xf32>
    %253 = vector.extract_strided_slice %172 {offsets = [0, 48], sizes = [16, 16], strides = [1, 1]} : vector<16x64xf32> to vector<16x16xf32>
    %cst_135 = arith.constant dense<0.000000e+00> : vector<8x16xf32>
    %254 = tpu.matmul %252, %253, %cst_135 {dimension_numbers = #tpu.dot_dimension_numbers<[1], [1], [0], [0], [0, 0, 1, 0], [], []>} : vector<8x16xf32>, vector<16x16xf32>, vector<8x16xf32> -> vector<8x16xf32>
    %cst_136 = arith.constant 2.500000e-01 : f32
    %255 = vector.broadcast %cst_136 : f32 to vector<8x16xf32>
    %256 = arith.mulf %254, %255 : vector<8x16xf32>
    %257 = vector.broadcast %15 : vector<1x16xf32> to vector<8x16xf32>
    %258 = arith.addf %256, %257 : vector<8x16xf32>
    %cst_137 = arith.constant dense<0xFF800000> : vector<8xf32>
    %259 = vector.multi_reduction <maximumf>, %258, %cst_137 [1] : vector<8x16xf32> to vector<8xf32>
    %260 = vector.shape_cast %259 : vector<8xf32> to vector<8x1xf32>
    %261 = vector.broadcast %260 : vector<8x1xf32> to vector<8x16xf32>
    %262 = arith.subf %258, %261 : vector<8x16xf32>
    %263 = math.exp %262 : vector<8x16xf32>
    %cst_138 = arith.constant dense<0.000000e+00> : vector<8xf32>
    %264 = vector.multi_reduction <add>, %263, %cst_138 [1] : vector<8x16xf32> to vector<8xf32>
    %265 = vector.shape_cast %264 : vector<8xf32> to vector<8x1xf32>
    %266 = tpu.reciprocal %265 {approx = true} : vector<8x1xf32> -> vector<8x1xf32>
    %267 = vector.broadcast %266 : vector<8x1xf32> to vector<8x16xf32>
    %268 = arith.mulf %263, %267 : vector<8x16xf32>
    %c0_139 = arith.constant 0 : index
    %c3_140 = arith.constant 3 : index
    %c0_141 = arith.constant 0 : index
    %c0_142 = arith.constant 0 : index
    %269 = vector.load %arg31[%c0_139, %c3_140, %c0_141, %c0_142] : memref<1x4x8x16xf32, #tpu.memory_space<vmem>>, vector<1x1x8x16xf32>
    %270 = vector.shape_cast %269 : vector<1x1x8x16xf32> to vector<8x16xf32>
    %271 = vector.shape_cast %268 : vector<8x16xf32> to vector<1x1x8x16xf32>
    tpu.vector_store %arg31[%c0_139, %c3_140, %c0_141, %c0_142], %271 {strides = array<i32>} : memref<1x4x8x16xf32, #tpu.memory_space<vmem>>, vector<1x1x8x16xf32>,
    %272 = vector.extract_strided_slice %173 {offsets = [0, 48], sizes = [16, 16], strides = [1, 1]} : vector<16x64xf32> to vector<16x16xf32>
    %cst_143 = arith.constant dense<0.000000e+00> : vector<8x16xf32>
    %273 = tpu.matmul %268, %272, %cst_143 {dimension_numbers = #tpu.dot_dimension_numbers<[1], [0], [0], [1], [0, 0, 1, 1], [], []>} : vector<8x16xf32>, vector<16x16xf32>, vector<8x16xf32> -> vector<8x16xf32>
    %274 = vector.extract_strided_slice %175 {offsets = [48, 0], sizes = [16, 256], strides = [1, 1]} : vector<64x256xf32> to vector<16x256xf32>
    %cst_144 = arith.constant dense<0.000000e+00> : vector<8x256xf32>
    %275 = tpu.matmul %273, %274, %cst_144 {dimension_numbers = #tpu.dot_dimension_numbers<[1], [0], [0], [1], [0, 0, 1, 1], [], []>} : vector<8x16xf32>, vector<16x256xf32>, vector<8x256xf32> -> vector<8x256xf32>
    %276 = arith.addf %251, %275 : vector<8x256xf32>
    %277 = arith.addf %157, %276 : vector<8x256xf32>
    %c0_145 = arith.constant 0 : index
    %c0_146 = arith.constant 0 : index
    %c0_147 = arith.constant 0 : index
    %278 = vector.load %arg15[%c0_145, %c0_146, %c0_147] : memref<3x1x256xf32, #tpu.memory_space<vmem>>, vector<1x1x256xf32>
    %279 = vector.shape_cast %278 : vector<1x1x256xf32> to vector<1x256xf32>
    %280 = vector.broadcast %279 : vector<1x256xf32> to vector<8x256xf32>
    %281 = arith.addf %277, %280 : vector<8x256xf32>
    %cst_148 = arith.constant 0.000000e+00 : f32
    %282 = vector.broadcast %cst_148 : f32 to vector<8x256xf32>
    %283 = arith.cmpf oge, %281, %282 : vector<8x256xf32>
    %cst_149 = arith.constant 0.00999999977 : f32
    %284 = vector.broadcast %cst_149 : f32 to vector<8x256xf32>
    %285 = arith.mulf %284, %281 : vector<8x256xf32>
    %286 = arith.select %283, %281, %285 : vector<8x256xi1>, vector<8x256xf32>
    %c1_150 = arith.constant 1 : index
    %c0_151 = arith.constant 0 : index
    %c0_152 = arith.constant 0 : index
    %287 = vector.load %arg6[%c1_150, %c0_151, %c0_152] : memref<3x256x192xf32, #tpu.memory_space<vmem>>, vector<1x256x192xf32>
    %288 = vector.shape_cast %287 : vector<1x256x192xf32> to vector<256x192xf32>
    %c1_153 = arith.constant 1 : index
    %c0_154 = arith.constant 0 : index
    %c0_155 = arith.constant 0 : index
    %289 = vector.load %arg7[%c1_153, %c0_154, %c0_155] : memref<3x1x192xf32, #tpu.memory_space<vmem>>, vector<1x1x192xf32>
    %290 = vector.shape_cast %289 : vector<1x1x192xf32> to vector<1x192xf32>
    %cst_156 = arith.constant dense<0.000000e+00> : vector<8x192xf32>
    %291 = tpu.matmul %286, %288, %cst_156 {dimension_numbers = #tpu.dot_dimension_numbers<[1], [0], [0], [1], [0, 0, 1, 1], [], []>} : vector<8x256xf32>, vector<256x192xf32>, vector<8x192xf32> -> vector<8x192xf32>
    %292 = vector.broadcast %290 : vector<1x192xf32> to vector<8x192xf32>
    %293 = arith.addf %291, %292 : vector<8x192xf32>
    %294 = vector.extract_strided_slice %293 {offsets = [0, 0], sizes = [8, 64], strides = [1, 1]} : vector<8x192xf32> to vector<8x64xf32>
    %295 = vector.extract_strided_slice %293 {offsets = [0, 64], sizes = [8, 64], strides = [1, 1]} : vector<8x192xf32> to vector<8x64xf32>
    %296 = vector.extract_strided_slice %293 {offsets = [0, 128], sizes = [8, 64], strides = [1, 1]} : vector<8x192xf32> to vector<8x64xf32>
    %c1_157 = arith.constant 1 : index
    %c0_158 = arith.constant 0 : index
    %c0_159 = arith.constant 0 : index
    %297 = vector.load %arg8[%c1_157, %c0_158, %c0_159] : memref<3x64x256xf32, #tpu.memory_space<vmem>>, vector<1x64x256xf32>
    %298 = vector.shape_cast %297 : vector<1x64x256xf32> to vector<64x256xf32>
    %cst_160 = arith.constant 0.000000e+00 : f32
    %299 = vector.broadcast %cst_160 : f32 to vector<8x256xf32>
    %300 = vector.extract_strided_slice %294 {offsets = [0, 0], sizes = [8, 16], strides = [1, 1]} : vector<8x64xf32> to vector<8x16xf32>
    %301 = vector.extract_strided_slice %295 {offsets = [0, 0], sizes = [8, 16], strides = [1, 1]} : vector<8x64xf32> to vector<8x16xf32>
    %cst_161 = arith.constant dense<0.000000e+00> : vector<8x8xf32>
    %302 = tpu.matmul %300, %301, %cst_161 {dimension_numbers = #tpu.dot_dimension_numbers<[1], [1], [0], [0], [0, 0, 1, 0], [], []>} : vector<8x16xf32>, vector<8x16xf32>, vector<8x8xf32> -> vector<8x8xf32>
    %cst_162 = arith.constant 2.500000e-01 : f32
    %303 = vector.broadcast %cst_162 : f32 to vector<8x8xf32>
    %304 = arith.mulf %302, %303 : vector<8x8xf32>
    %305 = arith.addf %304, %9 : vector<8x8xf32>
    %cst_163 = arith.constant dense<0xFF800000> : vector<8xf32>
    %306 = vector.multi_reduction <maximumf>, %305, %cst_163 [1] : vector<8x8xf32> to vector<8xf32>
    %307 = vector.shape_cast %306 : vector<8xf32> to vector<8x1xf32>
    %308 = vector.broadcast %307 : vector<8x1xf32> to vector<8x8xf32>
    %309 = arith.subf %305, %308 : vector<8x8xf32>
    %310 = math.exp %309 : vector<8x8xf32>
    %cst_164 = arith.constant dense<0.000000e+00> : vector<8xf32>
    %311 = vector.multi_reduction <add>, %310, %cst_164 [1] : vector<8x8xf32> to vector<8xf32>
    %312 = vector.shape_cast %311 : vector<8xf32> to vector<8x1xf32>
    %313 = tpu.reciprocal %312 {approx = true} : vector<8x1xf32> -> vector<8x1xf32>
    %314 = vector.broadcast %313 : vector<8x1xf32> to vector<8x8xf32>
    %315 = arith.mulf %310, %314 : vector<8x8xf32>
    %c0_165 = arith.constant 0 : index
    %c0_166 = arith.constant 0 : index
    %c0_167 = arith.constant 0 : index
    %c0_168 = arith.constant 0 : index
    %316 = vector.load %arg29[%c0_165, %c0_166, %c0_167, %c0_168] : memref<1x4x8x8xf32, #tpu.memory_space<vmem>>, vector<1x1x8x8xf32>
    %317 = vector.shape_cast %316 : vector<1x1x8x8xf32> to vector<8x8xf32>
    %318 = vector.shape_cast %315 : vector<8x8xf32> to vector<1x1x8x8xf32>
    tpu.vector_store %arg29[%c0_165, %c0_166, %c0_167, %c0_168], %318 {strides = array<i32>} : memref<1x4x8x8xf32, #tpu.memory_space<vmem>>, vector<1x1x8x8xf32>,
    %319 = vector.extract_strided_slice %296 {offsets = [0, 0], sizes = [8, 16], strides = [1, 1]} : vector<8x64xf32> to vector<8x16xf32>
    %cst_169 = arith.constant dense<0.000000e+00> : vector<8x16xf32>
    %320 = tpu.matmul %315, %319, %cst_169 {dimension_numbers = #tpu.dot_dimension_numbers<[1], [0], [0], [1], [0, 0, 1, 1], [], []>} : vector<8x8xf32>, vector<8x16xf32>, vector<8x16xf32> -> vector<8x16xf32>
    %321 = vector.extract_strided_slice %298 {offsets = [0, 0], sizes = [16, 256], strides = [1, 1]} : vector<64x256xf32> to vector<16x256xf32>
    %cst_170 = arith.constant dense<0.000000e+00> : vector<8x256xf32>
    %322 = tpu.matmul %320, %321, %cst_170 {dimension_numbers = #tpu.dot_dimension_numbers<[1], [0], [0], [1], [0, 0, 1, 1], [], []>} : vector<8x16xf32>, vector<16x256xf32>, vector<8x256xf32> -> vector<8x256xf32>
    %323 = arith.addf %299, %322 : vector<8x256xf32>
    %324 = vector.extract_strided_slice %294 {offsets = [0, 16], sizes = [8, 16], strides = [1, 1]} : vector<8x64xf32> to vector<8x16xf32>
    %325 = vector.extract_strided_slice %295 {offsets = [0, 16], sizes = [8, 16], strides = [1, 1]} : vector<8x64xf32> to vector<8x16xf32>
    %cst_171 = arith.constant dense<0.000000e+00> : vector<8x8xf32>
    %326 = tpu.matmul %324, %325, %cst_171 {dimension_numbers = #tpu.dot_dimension_numbers<[1], [1], [0], [0], [0, 0, 1, 0], [], []>} : vector<8x16xf32>, vector<8x16xf32>, vector<8x8xf32> -> vector<8x8xf32>
    %cst_172 = arith.constant 2.500000e-01 : f32
    %327 = vector.broadcast %cst_172 : f32 to vector<8x8xf32>
    %328 = arith.mulf %326, %327 : vector<8x8xf32>
    %329 = arith.addf %328, %9 : vector<8x8xf32>
    %cst_173 = arith.constant dense<0xFF800000> : vector<8xf32>
    %330 = vector.multi_reduction <maximumf>, %329, %cst_173 [1] : vector<8x8xf32> to vector<8xf32>
    %331 = vector.shape_cast %330 : vector<8xf32> to vector<8x1xf32>
    %332 = vector.broadcast %331 : vector<8x1xf32> to vector<8x8xf32>
    %333 = arith.subf %329, %332 : vector<8x8xf32>
    %334 = math.exp %333 : vector<8x8xf32>
    %cst_174 = arith.constant dense<0.000000e+00> : vector<8xf32>
    %335 = vector.multi_reduction <add>, %334, %cst_174 [1] : vector<8x8xf32> to vector<8xf32>
    %336 = vector.shape_cast %335 : vector<8xf32> to vector<8x1xf32>
    %337 = tpu.reciprocal %336 {approx = true} : vector<8x1xf32> -> vector<8x1xf32>
    %338 = vector.broadcast %337 : vector<8x1xf32> to vector<8x8xf32>
    %339 = arith.mulf %334, %338 : vector<8x8xf32>
    %c0_175 = arith.constant 0 : index
    %c1_176 = arith.constant 1 : index
    %c0_177 = arith.constant 0 : index
    %c0_178 = arith.constant 0 : index
    %340 = vector.load %arg29[%c0_175, %c1_176, %c0_177, %c0_178] : memref<1x4x8x8xf32, #tpu.memory_space<vmem>>, vector<1x1x8x8xf32>
    %341 = vector.shape_cast %340 : vector<1x1x8x8xf32> to vector<8x8xf32>
    %342 = vector.shape_cast %339 : vector<8x8xf32> to vector<1x1x8x8xf32>
    tpu.vector_store %arg29[%c0_175, %c1_176, %c0_177, %c0_178], %342 {strides = array<i32>} : memref<1x4x8x8xf32, #tpu.memory_space<vmem>>, vector<1x1x8x8xf32>,
    %343 = vector.extract_strided_slice %296 {offsets = [0, 16], sizes = [8, 16], strides = [1, 1]} : vector<8x64xf32> to vector<8x16xf32>
    %cst_179 = arith.constant dense<0.000000e+00> : vector<8x16xf32>
    %344 = tpu.matmul %339, %343, %cst_179 {dimension_numbers = #tpu.dot_dimension_numbers<[1], [0], [0], [1], [0, 0, 1, 1], [], []>} : vector<8x8xf32>, vector<8x16xf32>, vector<8x16xf32> -> vector<8x16xf32>
    %345 = vector.extract_strided_slice %298 {offsets = [16, 0], sizes = [16, 256], strides = [1, 1]} : vector<64x256xf32> to vector<16x256xf32>
    %cst_180 = arith.constant dense<0.000000e+00> : vector<8x256xf32>
    %346 = tpu.matmul %344, %345, %cst_180 {dimension_numbers = #tpu.dot_dimension_numbers<[1], [0], [0], [1], [0, 0, 1, 1], [], []>} : vector<8x16xf32>, vector<16x256xf32>, vector<8x256xf32> -> vector<8x256xf32>
    %347 = arith.addf %323, %346 : vector<8x256xf32>
    %348 = vector.extract_strided_slice %294 {offsets = [0, 32], sizes = [8, 16], strides = [1, 1]} : vector<8x64xf32> to vector<8x16xf32>
    %349 = vector.extract_strided_slice %295 {offsets = [0, 32], sizes = [8, 16], strides = [1, 1]} : vector<8x64xf32> to vector<8x16xf32>
    %cst_181 = arith.constant dense<0.000000e+00> : vector<8x8xf32>
    %350 = tpu.matmul %348, %349, %cst_181 {dimension_numbers = #tpu.dot_dimension_numbers<[1], [1], [0], [0], [0, 0, 1, 0], [], []>} : vector<8x16xf32>, vector<8x16xf32>, vector<8x8xf32> -> vector<8x8xf32>
    %cst_182 = arith.constant 2.500000e-01 : f32
    %351 = vector.broadcast %cst_182 : f32 to vector<8x8xf32>
    %352 = arith.mulf %350, %351 : vector<8x8xf32>
    %353 = arith.addf %352, %9 : vector<8x8xf32>
    %cst_183 = arith.constant dense<0xFF800000> : vector<8xf32>
    %354 = vector.multi_reduction <maximumf>, %353, %cst_183 [1] : vector<8x8xf32> to vector<8xf32>
    %355 = vector.shape_cast %354 : vector<8xf32> to vector<8x1xf32>
    %356 = vector.broadcast %355 : vector<8x1xf32> to vector<8x8xf32>
    %357 = arith.subf %353, %356 : vector<8x8xf32>
    %358 = math.exp %357 : vector<8x8xf32>
    %cst_184 = arith.constant dense<0.000000e+00> : vector<8xf32>
    %359 = vector.multi_reduction <add>, %358, %cst_184 [1] : vector<8x8xf32> to vector<8xf32>
    %360 = vector.shape_cast %359 : vector<8xf32> to vector<8x1xf32>
    %361 = tpu.reciprocal %360 {approx = true} : vector<8x1xf32> -> vector<8x1xf32>
    %362 = vector.broadcast %361 : vector<8x1xf32> to vector<8x8xf32>
    %363 = arith.mulf %358, %362 : vector<8x8xf32>
    %c0_185 = arith.constant 0 : index
    %c2_186 = arith.constant 2 : index
    %c0_187 = arith.constant 0 : index
    %c0_188 = arith.constant 0 : index
    %364 = vector.load %arg29[%c0_185, %c2_186, %c0_187, %c0_188] : memref<1x4x8x8xf32, #tpu.memory_space<vmem>>, vector<1x1x8x8xf32>
    %365 = vector.shape_cast %364 : vector<1x1x8x8xf32> to vector<8x8xf32>
    %366 = vector.shape_cast %363 : vector<8x8xf32> to vector<1x1x8x8xf32>
    tpu.vector_store %arg29[%c0_185, %c2_186, %c0_187, %c0_188], %366 {strides = array<i32>} : memref<1x4x8x8xf32, #tpu.memory_space<vmem>>, vector<1x1x8x8xf32>,
    %367 = vector.extract_strided_slice %296 {offsets = [0, 32], sizes = [8, 16], strides = [1, 1]} : vector<8x64xf32> to vector<8x16xf32>
    %cst_189 = arith.constant dense<0.000000e+00> : vector<8x16xf32>
    %368 = tpu.matmul %363, %367, %cst_189 {dimension_numbers = #tpu.dot_dimension_numbers<[1], [0], [0], [1], [0, 0, 1, 1], [], []>} : vector<8x8xf32>, vector<8x16xf32>, vector<8x16xf32> -> vector<8x16xf32>
    %369 = vector.extract_strided_slice %298 {offsets = [32, 0], sizes = [16, 256], strides = [1, 1]} : vector<64x256xf32> to vector<16x256xf32>
    %cst_190 = arith.constant dense<0.000000e+00> : vector<8x256xf32>
    %370 = tpu.matmul %368, %369, %cst_190 {dimension_numbers = #tpu.dot_dimension_numbers<[1], [0], [0], [1], [0, 0, 1, 1], [], []>} : vector<8x16xf32>, vector<16x256xf32>, vector<8x256xf32> -> vector<8x256xf32>
    %371 = arith.addf %347, %370 : vector<8x256xf32>
    %372 = vector.extract_strided_slice %294 {offsets = [0, 48], sizes = [8, 16], strides = [1, 1]} : vector<8x64xf32> to vector<8x16xf32>
    %373 = vector.extract_strided_slice %295 {offsets = [0, 48], sizes = [8, 16], strides = [1, 1]} : vector<8x64xf32> to vector<8x16xf32>
    %cst_191 = arith.constant dense<0.000000e+00> : vector<8x8xf32>
    %374 = tpu.matmul %372, %373, %cst_191 {dimension_numbers = #tpu.dot_dimension_numbers<[1], [1], [0], [0], [0, 0, 1, 0], [], []>} : vector<8x16xf32>, vector<8x16xf32>, vector<8x8xf32> -> vector<8x8xf32>
    %cst_192 = arith.constant 2.500000e-01 : f32
    %375 = vector.broadcast %cst_192 : f32 to vector<8x8xf32>
    %376 = arith.mulf %374, %375 : vector<8x8xf32>
    %377 = arith.addf %376, %9 : vector<8x8xf32>
    %cst_193 = arith.constant dense<0xFF800000> : vector<8xf32>
    %378 = vector.multi_reduction <maximumf>, %377, %cst_193 [1] : vector<8x8xf32> to vector<8xf32>
    %379 = vector.shape_cast %378 : vector<8xf32> to vector<8x1xf32>
    %380 = vector.broadcast %379 : vector<8x1xf32> to vector<8x8xf32>
    %381 = arith.subf %377, %380 : vector<8x8xf32>
    %382 = math.exp %381 : vector<8x8xf32>
    %cst_194 = arith.constant dense<0.000000e+00> : vector<8xf32>
    %383 = vector.multi_reduction <add>, %382, %cst_194 [1] : vector<8x8xf32> to vector<8xf32>
    %384 = vector.shape_cast %383 : vector<8xf32> to vector<8x1xf32>
    %385 = tpu.reciprocal %384 {approx = true} : vector<8x1xf32> -> vector<8x1xf32>
    %386 = vector.broadcast %385 : vector<8x1xf32> to vector<8x8xf32>
    %387 = arith.mulf %382, %386 : vector<8x8xf32>
    %c0_195 = arith.constant 0 : index
    %c3_196 = arith.constant 3 : index
    %c0_197 = arith.constant 0 : index
    %c0_198 = arith.constant 0 : index
    %388 = vector.load %arg29[%c0_195, %c3_196, %c0_197, %c0_198] : memref<1x4x8x8xf32, #tpu.memory_space<vmem>>, vector<1x1x8x8xf32>
    %389 = vector.shape_cast %388 : vector<1x1x8x8xf32> to vector<8x8xf32>
    %390 = vector.shape_cast %387 : vector<8x8xf32> to vector<1x1x8x8xf32>
    tpu.vector_store %arg29[%c0_195, %c3_196, %c0_197, %c0_198], %390 {strides = array<i32>} : memref<1x4x8x8xf32, #tpu.memory_space<vmem>>, vector<1x1x8x8xf32>,
    %391 = vector.extract_strided_slice %296 {offsets = [0, 48], sizes = [8, 16], strides = [1, 1]} : vector<8x64xf32> to vector<8x16xf32>
    %cst_199 = arith.constant dense<0.000000e+00> : vector<8x16xf32>
    %392 = tpu.matmul %387, %391, %cst_199 {dimension_numbers = #tpu.dot_dimension_numbers<[1], [0], [0], [1], [0, 0, 1, 1], [], []>} : vector<8x8xf32>, vector<8x16xf32>, vector<8x16xf32> -> vector<8x16xf32>
    %393 = vector.extract_strided_slice %298 {offsets = [48, 0], sizes = [16, 256], strides = [1, 1]} : vector<64x256xf32> to vector<16x256xf32>
    %cst_200 = arith.constant dense<0.000000e+00> : vector<8x256xf32>
    %394 = tpu.matmul %392, %393, %cst_200 {dimension_numbers = #tpu.dot_dimension_numbers<[1], [0], [0], [1], [0, 0, 1, 1], [], []>} : vector<8x16xf32>, vector<16x256xf32>, vector<8x256xf32> -> vector<8x256xf32>
    %395 = arith.addf %371, %394 : vector<8x256xf32>
    %396 = arith.addf %286, %395 : vector<8x256xf32>
    %c1_201 = arith.constant 1 : index
    %c0_202 = arith.constant 0 : index
    %c0_203 = arith.constant 0 : index
    %397 = vector.load %arg9[%c1_201, %c0_202, %c0_203] : memref<3x1x256xf32, #tpu.memory_space<vmem>>, vector<1x1x256xf32>
    %398 = vector.shape_cast %397 : vector<1x1x256xf32> to vector<1x256xf32>
    %399 = vector.broadcast %398 : vector<1x256xf32> to vector<8x256xf32>
    %400 = arith.addf %396, %399 : vector<8x256xf32>
    %c1_204 = arith.constant 1 : index
    %c0_205 = arith.constant 0 : index
    %c0_206 = arith.constant 0 : index
    %401 = vector.load %arg10[%c1_204, %c0_205, %c0_206] : memref<3x256x64xf32, #tpu.memory_space<vmem>>, vector<1x256x64xf32>
    %402 = vector.shape_cast %401 : vector<1x256x64xf32> to vector<256x64xf32>
    %c1_207 = arith.constant 1 : index
    %c0_208 = arith.constant 0 : index
    %c0_209 = arith.constant 0 : index
    %403 = vector.load %arg11[%c1_207, %c0_208, %c0_209] : memref<3x1x64xf32, #tpu.memory_space<vmem>>, vector<1x1x64xf32>
    %404 = vector.shape_cast %403 : vector<1x1x64xf32> to vector<1x64xf32>
    %cst_210 = arith.constant dense<0.000000e+00> : vector<8x64xf32>
    %405 = tpu.matmul %400, %402, %cst_210 {dimension_numbers = #tpu.dot_dimension_numbers<[1], [0], [0], [1], [0, 0, 1, 1], [], []>} : vector<8x256xf32>, vector<256x64xf32>, vector<8x64xf32> -> vector<8x64xf32>
    %406 = vector.broadcast %404 : vector<1x64xf32> to vector<8x64xf32>
    %407 = arith.addf %405, %406 : vector<8x64xf32>
    %c1_211 = arith.constant 1 : index
    %c0_212 = arith.constant 0 : index
    %c0_213 = arith.constant 0 : index
    %408 = vector.load %arg12[%c1_211, %c0_212, %c0_213] : memref<3x48x128xf32, #tpu.memory_space<vmem>>, vector<1x48x128xf32>
    %409 = vector.shape_cast %408 : vector<1x48x128xf32> to vector<48x128xf32>
    %c1_214 = arith.constant 1 : index
    %c0_215 = arith.constant 0 : index
    %c0_216 = arith.constant 0 : index
    %410 = vector.load %arg13[%c1_214, %c0_215, %c0_216] : memref<3x1x128xf32, #tpu.memory_space<vmem>>, vector<1x1x128xf32>
    %411 = vector.shape_cast %410 : vector<1x1x128xf32> to vector<1x128xf32>
    %cst_217 = arith.constant dense<0.000000e+00> : vector<16x128xf32>
    %412 = tpu.matmul %3, %409, %cst_217 {dimension_numbers = #tpu.dot_dimension_numbers<[1], [0], [0], [1], [0, 0, 1, 1], [], []>} : vector<16x48xf32>, vector<48x128xf32>, vector<16x128xf32> -> vector<16x128xf32>
    %413 = vector.broadcast %411 : vector<1x128xf32> to vector<16x128xf32>
    %414 = arith.addf %412, %413 : vector<16x128xf32>
    %415 = vector.extract_strided_slice %414 {offsets = [0, 0], sizes = [16, 64], strides = [1, 1]} : vector<16x128xf32> to vector<16x64xf32>
    %416 = vector.extract_strided_slice %414 {offsets = [0, 64], sizes = [16, 64], strides = [1, 1]} : vector<16x128xf32> to vector<16x64xf32>
    %c1_218 = arith.constant 1 : index
    %c0_219 = arith.constant 0 : index
    %c0_220 = arith.constant 0 : index
    %417 = vector.load %arg14[%c1_218, %c0_219, %c0_220] : memref<3x64x256xf32, #tpu.memory_space<vmem>>, vector<1x64x256xf32>
    %418 = vector.shape_cast %417 : vector<1x64x256xf32> to vector<64x256xf32>
    %cst_221 = arith.constant 0.000000e+00 : f32
    %419 = vector.broadcast %cst_221 : f32 to vector<8x256xf32>
    %420 = vector.extract_strided_slice %407 {offsets = [0, 0], sizes = [8, 16], strides = [1, 1]} : vector<8x64xf32> to vector<8x16xf32>
    %421 = vector.extract_strided_slice %415 {offsets = [0, 0], sizes = [16, 16], strides = [1, 1]} : vector<16x64xf32> to vector<16x16xf32>
    %cst_222 = arith.constant dense<0.000000e+00> : vector<8x16xf32>
    %422 = tpu.matmul %420, %421, %cst_222 {dimension_numbers = #tpu.dot_dimension_numbers<[1], [1], [0], [0], [0, 0, 1, 0], [], []>} : vector<8x16xf32>, vector<16x16xf32>, vector<8x16xf32> -> vector<8x16xf32>
    %cst_223 = arith.constant 2.500000e-01 : f32
    %423 = vector.broadcast %cst_223 : f32 to vector<8x16xf32>
    %424 = arith.mulf %422, %423 : vector<8x16xf32>
    %425 = vector.broadcast %15 : vector<1x16xf32> to vector<8x16xf32>
    %426 = arith.addf %424, %425 : vector<8x16xf32>
    %cst_224 = arith.constant dense<0xFF800000> : vector<8xf32>
    %427 = vector.multi_reduction <maximumf>, %426, %cst_224 [1] : vector<8x16xf32> to vector<8xf32>
    %428 = vector.shape_cast %427 : vector<8xf32> to vector<8x1xf32>
    %429 = vector.broadcast %428 : vector<8x1xf32> to vector<8x16xf32>
    %430 = arith.subf %426, %429 : vector<8x16xf32>
    %431 = math.exp %430 : vector<8x16xf32>
    %cst_225 = arith.constant dense<0.000000e+00> : vector<8xf32>
    %432 = vector.multi_reduction <add>, %431, %cst_225 [1] : vector<8x16xf32> to vector<8xf32>
    %433 = vector.shape_cast %432 : vector<8xf32> to vector<8x1xf32>
    %434 = tpu.reciprocal %433 {approx = true} : vector<8x1xf32> -> vector<8x1xf32>
    %435 = vector.broadcast %434 : vector<8x1xf32> to vector<8x16xf32>
    %436 = arith.mulf %431, %435 : vector<8x16xf32>
    %c0_226 = arith.constant 0 : index
    %c0_227 = arith.constant 0 : index
    %c0_228 = arith.constant 0 : index
    %c0_229 = arith.constant 0 : index
    %437 = vector.load %arg32[%c0_226, %c0_227, %c0_228, %c0_229] : memref<1x4x8x16xf32, #tpu.memory_space<vmem>>, vector<1x1x8x16xf32>
    %438 = vector.shape_cast %437 : vector<1x1x8x16xf32> to vector<8x16xf32>
    %439 = vector.shape_cast %436 : vector<8x16xf32> to vector<1x1x8x16xf32>
    tpu.vector_store %arg32[%c0_226, %c0_227, %c0_228, %c0_229], %439 {strides = array<i32>} : memref<1x4x8x16xf32, #tpu.memory_space<vmem>>, vector<1x1x8x16xf32>,
    %440 = vector.extract_strided_slice %416 {offsets = [0, 0], sizes = [16, 16], strides = [1, 1]} : vector<16x64xf32> to vector<16x16xf32>
    %cst_230 = arith.constant dense<0.000000e+00> : vector<8x16xf32>
    %441 = tpu.matmul %436, %440, %cst_230 {dimension_numbers = #tpu.dot_dimension_numbers<[1], [0], [0], [1], [0, 0, 1, 1], [], []>} : vector<8x16xf32>, vector<16x16xf32>, vector<8x16xf32> -> vector<8x16xf32>
    %442 = vector.extract_strided_slice %418 {offsets = [0, 0], sizes = [16, 256], strides = [1, 1]} : vector<64x256xf32> to vector<16x256xf32>
    %cst_231 = arith.constant dense<0.000000e+00> : vector<8x256xf32>
    %443 = tpu.matmul %441, %442, %cst_231 {dimension_numbers = #tpu.dot_dimension_numbers<[1], [0], [0], [1], [0, 0, 1, 1], [], []>} : vector<8x16xf32>, vector<16x256xf32>, vector<8x256xf32> -> vector<8x256xf32>
    %444 = arith.addf %419, %443 : vector<8x256xf32>
    %445 = vector.extract_strided_slice %407 {offsets = [0, 16], sizes = [8, 16], strides = [1, 1]} : vector<8x64xf32> to vector<8x16xf32>
    %446 = vector.extract_strided_slice %415 {offsets = [0, 16], sizes = [16, 16], strides = [1, 1]} : vector<16x64xf32> to vector<16x16xf32>
    %cst_232 = arith.constant dense<0.000000e+00> : vector<8x16xf32>
    %447 = tpu.matmul %445, %446, %cst_232 {dimension_numbers = #tpu.dot_dimension_numbers<[1], [1], [0], [0], [0, 0, 1, 0], [], []>} : vector<8x16xf32>, vector<16x16xf32>, vector<8x16xf32> -> vector<8x16xf32>
    %cst_233 = arith.constant 2.500000e-01 : f32
    %448 = vector.broadcast %cst_233 : f32 to vector<8x16xf32>
    %449 = arith.mulf %447, %448 : vector<8x16xf32>
    %450 = vector.broadcast %15 : vector<1x16xf32> to vector<8x16xf32>
    %451 = arith.addf %449, %450 : vector<8x16xf32>
    %cst_234 = arith.constant dense<0xFF800000> : vector<8xf32>
    %452 = vector.multi_reduction <maximumf>, %451, %cst_234 [1] : vector<8x16xf32> to vector<8xf32>
    %453 = vector.shape_cast %452 : vector<8xf32> to vector<8x1xf32>
    %454 = vector.broadcast %453 : vector<8x1xf32> to vector<8x16xf32>
    %455 = arith.subf %451, %454 : vector<8x16xf32>
    %456 = math.exp %455 : vector<8x16xf32>
    %cst_235 = arith.constant dense<0.000000e+00> : vector<8xf32>
    %457 = vector.multi_reduction <add>, %456, %cst_235 [1] : vector<8x16xf32> to vector<8xf32>
    %458 = vector.shape_cast %457 : vector<8xf32> to vector<8x1xf32>
    %459 = tpu.reciprocal %458 {approx = true} : vector<8x1xf32> -> vector<8x1xf32>
    %460 = vector.broadcast %459 : vector<8x1xf32> to vector<8x16xf32>
    %461 = arith.mulf %456, %460 : vector<8x16xf32>
    %c0_236 = arith.constant 0 : index
    %c1_237 = arith.constant 1 : index
    %c0_238 = arith.constant 0 : index
    %c0_239 = arith.constant 0 : index
    %462 = vector.load %arg32[%c0_236, %c1_237, %c0_238, %c0_239] : memref<1x4x8x16xf32, #tpu.memory_space<vmem>>, vector<1x1x8x16xf32>
    %463 = vector.shape_cast %462 : vector<1x1x8x16xf32> to vector<8x16xf32>
    %464 = vector.shape_cast %461 : vector<8x16xf32> to vector<1x1x8x16xf32>
    tpu.vector_store %arg32[%c0_236, %c1_237, %c0_238, %c0_239], %464 {strides = array<i32>} : memref<1x4x8x16xf32, #tpu.memory_space<vmem>>, vector<1x1x8x16xf32>,
    %465 = vector.extract_strided_slice %416 {offsets = [0, 16], sizes = [16, 16], strides = [1, 1]} : vector<16x64xf32> to vector<16x16xf32>
    %cst_240 = arith.constant dense<0.000000e+00> : vector<8x16xf32>
    %466 = tpu.matmul %461, %465, %cst_240 {dimension_numbers = #tpu.dot_dimension_numbers<[1], [0], [0], [1], [0, 0, 1, 1], [], []>} : vector<8x16xf32>, vector<16x16xf32>, vector<8x16xf32> -> vector<8x16xf32>
    %467 = vector.extract_strided_slice %418 {offsets = [16, 0], sizes = [16, 256], strides = [1, 1]} : vector<64x256xf32> to vector<16x256xf32>
    %cst_241 = arith.constant dense<0.000000e+00> : vector<8x256xf32>
    %468 = tpu.matmul %466, %467, %cst_241 {dimension_numbers = #tpu.dot_dimension_numbers<[1], [0], [0], [1], [0, 0, 1, 1], [], []>} : vector<8x16xf32>, vector<16x256xf32>, vector<8x256xf32> -> vector<8x256xf32>
    %469 = arith.addf %444, %468 : vector<8x256xf32>
    %470 = vector.extract_strided_slice %407 {offsets = [0, 32], sizes = [8, 16], strides = [1, 1]} : vector<8x64xf32> to vector<8x16xf32>
    %471 = vector.extract_strided_slice %415 {offsets = [0, 32], sizes = [16, 16], strides = [1, 1]} : vector<16x64xf32> to vector<16x16xf32>
    %cst_242 = arith.constant dense<0.000000e+00> : vector<8x16xf32>
    %472 = tpu.matmul %470, %471, %cst_242 {dimension_numbers = #tpu.dot_dimension_numbers<[1], [1], [0], [0], [0, 0, 1, 0], [], []>} : vector<8x16xf32>, vector<16x16xf32>, vector<8x16xf32> -> vector<8x16xf32>
    %cst_243 = arith.constant 2.500000e-01 : f32
    %473 = vector.broadcast %cst_243 : f32 to vector<8x16xf32>
    %474 = arith.mulf %472, %473 : vector<8x16xf32>
    %475 = vector.broadcast %15 : vector<1x16xf32> to vector<8x16xf32>
    %476 = arith.addf %474, %475 : vector<8x16xf32>
    %cst_244 = arith.constant dense<0xFF800000> : vector<8xf32>
    %477 = vector.multi_reduction <maximumf>, %476, %cst_244 [1] : vector<8x16xf32> to vector<8xf32>
    %478 = vector.shape_cast %477 : vector<8xf32> to vector<8x1xf32>
    %479 = vector.broadcast %478 : vector<8x1xf32> to vector<8x16xf32>
    %480 = arith.subf %476, %479 : vector<8x16xf32>
    %481 = math.exp %480 : vector<8x16xf32>
    %cst_245 = arith.constant dense<0.000000e+00> : vector<8xf32>
    %482 = vector.multi_reduction <add>, %481, %cst_245 [1] : vector<8x16xf32> to vector<8xf32>
    %483 = vector.shape_cast %482 : vector<8xf32> to vector<8x1xf32>
    %484 = tpu.reciprocal %483 {approx = true} : vector<8x1xf32> -> vector<8x1xf32>
    %485 = vector.broadcast %484 : vector<8x1xf32> to vector<8x16xf32>
    %486 = arith.mulf %481, %485 : vector<8x16xf32>
    %c0_246 = arith.constant 0 : index
    %c2_247 = arith.constant 2 : index
    %c0_248 = arith.constant 0 : index
    %c0_249 = arith.constant 0 : index
    %487 = vector.load %arg32[%c0_246, %c2_247, %c0_248, %c0_249] : memref<1x4x8x16xf32, #tpu.memory_space<vmem>>, vector<1x1x8x16xf32>
    %488 = vector.shape_cast %487 : vector<1x1x8x16xf32> to vector<8x16xf32>
    %489 = vector.shape_cast %486 : vector<8x16xf32> to vector<1x1x8x16xf32>
    tpu.vector_store %arg32[%c0_246, %c2_247, %c0_248, %c0_249], %489 {strides = array<i32>} : memref<1x4x8x16xf32, #tpu.memory_space<vmem>>, vector<1x1x8x16xf32>,
    %490 = vector.extract_strided_slice %416 {offsets = [0, 32], sizes = [16, 16], strides = [1, 1]} : vector<16x64xf32> to vector<16x16xf32>
    %cst_250 = arith.constant dense<0.000000e+00> : vector<8x16xf32>
    %491 = tpu.matmul %486, %490, %cst_250 {dimension_numbers = #tpu.dot_dimension_numbers<[1], [0], [0], [1], [0, 0, 1, 1], [], []>} : vector<8x16xf32>, vector<16x16xf32>, vector<8x16xf32> -> vector<8x16xf32>
    %492 = vector.extract_strided_slice %418 {offsets = [32, 0], sizes = [16, 256], strides = [1, 1]} : vector<64x256xf32> to vector<16x256xf32>
    %cst_251 = arith.constant dense<0.000000e+00> : vector<8x256xf32>
    %493 = tpu.matmul %491, %492, %cst_251 {dimension_numbers = #tpu.dot_dimension_numbers<[1], [0], [0], [1], [0, 0, 1, 1], [], []>} : vector<8x16xf32>, vector<16x256xf32>, vector<8x256xf32> -> vector<8x256xf32>
    %494 = arith.addf %469, %493 : vector<8x256xf32>
    %495 = vector.extract_strided_slice %407 {offsets = [0, 48], sizes = [8, 16], strides = [1, 1]} : vector<8x64xf32> to vector<8x16xf32>
    %496 = vector.extract_strided_slice %415 {offsets = [0, 48], sizes = [16, 16], strides = [1, 1]} : vector<16x64xf32> to vector<16x16xf32>
    %cst_252 = arith.constant dense<0.000000e+00> : vector<8x16xf32>
    %497 = tpu.matmul %495, %496, %cst_252 {dimension_numbers = #tpu.dot_dimension_numbers<[1], [1], [0], [0], [0, 0, 1, 0], [], []>} : vector<8x16xf32>, vector<16x16xf32>, vector<8x16xf32> -> vector<8x16xf32>
    %cst_253 = arith.constant 2.500000e-01 : f32
    %498 = vector.broadcast %cst_253 : f32 to vector<8x16xf32>
    %499 = arith.mulf %497, %498 : vector<8x16xf32>
    %500 = vector.broadcast %15 : vector<1x16xf32> to vector<8x16xf32>
    %501 = arith.addf %499, %500 : vector<8x16xf32>
    %cst_254 = arith.constant dense<0xFF800000> : vector<8xf32>
    %502 = vector.multi_reduction <maximumf>, %501, %cst_254 [1] : vector<8x16xf32> to vector<8xf32>
    %503 = vector.shape_cast %502 : vector<8xf32> to vector<8x1xf32>
    %504 = vector.broadcast %503 : vector<8x1xf32> to vector<8x16xf32>
    %505 = arith.subf %501, %504 : vector<8x16xf32>
    %506 = math.exp %505 : vector<8x16xf32>
    %cst_255 = arith.constant dense<0.000000e+00> : vector<8xf32>
    %507 = vector.multi_reduction <add>, %506, %cst_255 [1] : vector<8x16xf32> to vector<8xf32>
    %508 = vector.shape_cast %507 : vector<8xf32> to vector<8x1xf32>
    %509 = tpu.reciprocal %508 {approx = true} : vector<8x1xf32> -> vector<8x1xf32>
    %510 = vector.broadcast %509 : vector<8x1xf32> to vector<8x16xf32>
    %511 = arith.mulf %506, %510 : vector<8x16xf32>
    %c0_256 = arith.constant 0 : index
    %c3_257 = arith.constant 3 : index
    %c0_258 = arith.constant 0 : index
    %c0_259 = arith.constant 0 : index
    %512 = vector.load %arg32[%c0_256, %c3_257, %c0_258, %c0_259] : memref<1x4x8x16xf32, #tpu.memory_space<vmem>>, vector<1x1x8x16xf32>
    %513 = vector.shape_cast %512 : vector<1x1x8x16xf32> to vector<8x16xf32>
    %514 = vector.shape_cast %511 : vector<8x16xf32> to vector<1x1x8x16xf32>
    tpu.vector_store %arg32[%c0_256, %c3_257, %c0_258, %c0_259], %514 {strides = array<i32>} : memref<1x4x8x16xf32, #tpu.memory_space<vmem>>, vector<1x1x8x16xf32>,
    %515 = vector.extract_strided_slice %416 {offsets = [0, 48], sizes = [16, 16], strides = [1, 1]} : vector<16x64xf32> to vector<16x16xf32>
    %cst_260 = arith.constant dense<0.000000e+00> : vector<8x16xf32>
    %516 = tpu.matmul %511, %515, %cst_260 {dimension_numbers = #tpu.dot_dimension_numbers<[1], [0], [0], [1], [0, 0, 1, 1], [], []>} : vector<8x16xf32>, vector<16x16xf32>, vector<8x16xf32> -> vector<8x16xf32>
    %517 = vector.extract_strided_slice %418 {offsets = [48, 0], sizes = [16, 256], strides = [1, 1]} : vector<64x256xf32> to vector<16x256xf32>
    %cst_261 = arith.constant dense<0.000000e+00> : vector<8x256xf32>
    %518 = tpu.matmul %516, %517, %cst_261 {dimension_numbers = #tpu.dot_dimension_numbers<[1], [0], [0], [1], [0, 0, 1, 1], [], []>} : vector<8x16xf32>, vector<16x256xf32>, vector<8x256xf32> -> vector<8x256xf32>
    %519 = arith.addf %494, %518 : vector<8x256xf32>
    %520 = arith.addf %400, %519 : vector<8x256xf32>
    %c1_262 = arith.constant 1 : index
    %c0_263 = arith.constant 0 : index
    %c0_264 = arith.constant 0 : index
    %521 = vector.load %arg15[%c1_262, %c0_263, %c0_264] : memref<3x1x256xf32, #tpu.memory_space<vmem>>, vector<1x1x256xf32>
    %522 = vector.shape_cast %521 : vector<1x1x256xf32> to vector<1x256xf32>
    %523 = vector.broadcast %522 : vector<1x256xf32> to vector<8x256xf32>
    %524 = arith.addf %520, %523 : vector<8x256xf32>
    %cst_265 = arith.constant 0.000000e+00 : f32
    %525 = vector.broadcast %cst_265 : f32 to vector<8x256xf32>
    %526 = arith.cmpf oge, %524, %525 : vector<8x256xf32>
    %cst_266 = arith.constant 0.00999999977 : f32
    %527 = vector.broadcast %cst_266 : f32 to vector<8x256xf32>
    %528 = arith.mulf %527, %524 : vector<8x256xf32>
    %529 = arith.select %526, %524, %528 : vector<8x256xi1>, vector<8x256xf32>
    %c2_267 = arith.constant 2 : index
    %c0_268 = arith.constant 0 : index
    %c0_269 = arith.constant 0 : index
    %530 = vector.load %arg6[%c2_267, %c0_268, %c0_269] : memref<3x256x192xf32, #tpu.memory_space<vmem>>, vector<1x256x192xf32>
    %531 = vector.shape_cast %530 : vector<1x256x192xf32> to vector<256x192xf32>
    %c2_270 = arith.constant 2 : index
    %c0_271 = arith.constant 0 : index
    %c0_272 = arith.constant 0 : index
    %532 = vector.load %arg7[%c2_270, %c0_271, %c0_272] : memref<3x1x192xf32, #tpu.memory_space<vmem>>, vector<1x1x192xf32>
    %533 = vector.shape_cast %532 : vector<1x1x192xf32> to vector<1x192xf32>
    %cst_273 = arith.constant dense<0.000000e+00> : vector<8x192xf32>
    %534 = tpu.matmul %529, %531, %cst_273 {dimension_numbers = #tpu.dot_dimension_numbers<[1], [0], [0], [1], [0, 0, 1, 1], [], []>} : vector<8x256xf32>, vector<256x192xf32>, vector<8x192xf32> -> vector<8x192xf32>
    %535 = vector.broadcast %533 : vector<1x192xf32> to vector<8x192xf32>
    %536 = arith.addf %534, %535 : vector<8x192xf32>
    %537 = vector.extract_strided_slice %536 {offsets = [0, 0], sizes = [8, 64], strides = [1, 1]} : vector<8x192xf32> to vector<8x64xf32>
    %538 = vector.extract_strided_slice %536 {offsets = [0, 64], sizes = [8, 64], strides = [1, 1]} : vector<8x192xf32> to vector<8x64xf32>
    %539 = vector.extract_strided_slice %536 {offsets = [0, 128], sizes = [8, 64], strides = [1, 1]} : vector<8x192xf32> to vector<8x64xf32>
    %c2_274 = arith.constant 2 : index
    %c0_275 = arith.constant 0 : index
    %c0_276 = arith.constant 0 : index
    %540 = vector.load %arg8[%c2_274, %c0_275, %c0_276] : memref<3x64x256xf32, #tpu.memory_space<vmem>>, vector<1x64x256xf32>
    %541 = vector.shape_cast %540 : vector<1x64x256xf32> to vector<64x256xf32>
    %cst_277 = arith.constant 0.000000e+00 : f32
    %542 = vector.broadcast %cst_277 : f32 to vector<8x256xf32>
    %543 = vector.extract_strided_slice %537 {offsets = [0, 0], sizes = [8, 16], strides = [1, 1]} : vector<8x64xf32> to vector<8x16xf32>
    %544 = vector.extract_strided_slice %538 {offsets = [0, 0], sizes = [8, 16], strides = [1, 1]} : vector<8x64xf32> to vector<8x16xf32>
    %cst_278 = arith.constant dense<0.000000e+00> : vector<8x8xf32>
    %545 = tpu.matmul %543, %544, %cst_278 {dimension_numbers = #tpu.dot_dimension_numbers<[1], [1], [0], [0], [0, 0, 1, 0], [], []>} : vector<8x16xf32>, vector<8x16xf32>, vector<8x8xf32> -> vector<8x8xf32>
    %cst_279 = arith.constant 2.500000e-01 : f32
    %546 = vector.broadcast %cst_279 : f32 to vector<8x8xf32>
    %547 = arith.mulf %545, %546 : vector<8x8xf32>
    %548 = arith.addf %547, %9 : vector<8x8xf32>
    %cst_280 = arith.constant dense<0xFF800000> : vector<8xf32>
    %549 = vector.multi_reduction <maximumf>, %548, %cst_280 [1] : vector<8x8xf32> to vector<8xf32>
    %550 = vector.shape_cast %549 : vector<8xf32> to vector<8x1xf32>
    %551 = vector.broadcast %550 : vector<8x1xf32> to vector<8x8xf32>
    %552 = arith.subf %548, %551 : vector<8x8xf32>
    %553 = math.exp %552 : vector<8x8xf32>
    %cst_281 = arith.constant dense<0.000000e+00> : vector<8xf32>
    %554 = vector.multi_reduction <add>, %553, %cst_281 [1] : vector<8x8xf32> to vector<8xf32>
    %555 = vector.shape_cast %554 : vector<8xf32> to vector<8x1xf32>
    %556 = tpu.reciprocal %555 {approx = true} : vector<8x1xf32> -> vector<8x1xf32>
    %557 = vector.broadcast %556 : vector<8x1xf32> to vector<8x8xf32>
    %558 = arith.mulf %553, %557 : vector<8x8xf32>
    %c0_282 = arith.constant 0 : index
    %c0_283 = arith.constant 0 : index
    %c0_284 = arith.constant 0 : index
    %c0_285 = arith.constant 0 : index
    %559 = vector.load %arg30[%c0_282, %c0_283, %c0_284, %c0_285] : memref<1x4x8x8xf32, #tpu.memory_space<vmem>>, vector<1x1x8x8xf32>
    %560 = vector.shape_cast %559 : vector<1x1x8x8xf32> to vector<8x8xf32>
    %561 = vector.shape_cast %558 : vector<8x8xf32> to vector<1x1x8x8xf32>
    tpu.vector_store %arg30[%c0_282, %c0_283, %c0_284, %c0_285], %561 {strides = array<i32>} : memref<1x4x8x8xf32, #tpu.memory_space<vmem>>, vector<1x1x8x8xf32>,
    %562 = vector.extract_strided_slice %539 {offsets = [0, 0], sizes = [8, 16], strides = [1, 1]} : vector<8x64xf32> to vector<8x16xf32>
    %cst_286 = arith.constant dense<0.000000e+00> : vector<8x16xf32>
    %563 = tpu.matmul %558, %562, %cst_286 {dimension_numbers = #tpu.dot_dimension_numbers<[1], [0], [0], [1], [0, 0, 1, 1], [], []>} : vector<8x8xf32>, vector<8x16xf32>, vector<8x16xf32> -> vector<8x16xf32>
    %564 = vector.extract_strided_slice %541 {offsets = [0, 0], sizes = [16, 256], strides = [1, 1]} : vector<64x256xf32> to vector<16x256xf32>
    %cst_287 = arith.constant dense<0.000000e+00> : vector<8x256xf32>
    %565 = tpu.matmul %563, %564, %cst_287 {dimension_numbers = #tpu.dot_dimension_numbers<[1], [0], [0], [1], [0, 0, 1, 1], [], []>} : vector<8x16xf32>, vector<16x256xf32>, vector<8x256xf32> -> vector<8x256xf32>
    %566 = arith.addf %542, %565 : vector<8x256xf32>
    %567 = vector.extract_strided_slice %537 {offsets = [0, 16], sizes = [8, 16], strides = [1, 1]} : vector<8x64xf32> to vector<8x16xf32>
    %568 = vector.extract_strided_slice %538 {offsets = [0, 16], sizes = [8, 16], strides = [1, 1]} : vector<8x64xf32> to vector<8x16xf32>
    %cst_288 = arith.constant dense<0.000000e+00> : vector<8x8xf32>
    %569 = tpu.matmul %567, %568, %cst_288 {dimension_numbers = #tpu.dot_dimension_numbers<[1], [1], [0], [0], [0, 0, 1, 0], [], []>} : vector<8x16xf32>, vector<8x16xf32>, vector<8x8xf32> -> vector<8x8xf32>
    %cst_289 = arith.constant 2.500000e-01 : f32
    %570 = vector.broadcast %cst_289 : f32 to vector<8x8xf32>
    %571 = arith.mulf %569, %570 : vector<8x8xf32>
    %572 = arith.addf %571, %9 : vector<8x8xf32>
    %cst_290 = arith.constant dense<0xFF800000> : vector<8xf32>
    %573 = vector.multi_reduction <maximumf>, %572, %cst_290 [1] : vector<8x8xf32> to vector<8xf32>
    %574 = vector.shape_cast %573 : vector<8xf32> to vector<8x1xf32>
    %575 = vector.broadcast %574 : vector<8x1xf32> to vector<8x8xf32>
    %576 = arith.subf %572, %575 : vector<8x8xf32>
    %577 = math.exp %576 : vector<8x8xf32>
    %cst_291 = arith.constant dense<0.000000e+00> : vector<8xf32>
    %578 = vector.multi_reduction <add>, %577, %cst_291 [1] : vector<8x8xf32> to vector<8xf32>
    %579 = vector.shape_cast %578 : vector<8xf32> to vector<8x1xf32>
    %580 = tpu.reciprocal %579 {approx = true} : vector<8x1xf32> -> vector<8x1xf32>
    %581 = vector.broadcast %580 : vector<8x1xf32> to vector<8x8xf32>
    %582 = arith.mulf %577, %581 : vector<8x8xf32>
    %c0_292 = arith.constant 0 : index
    %c1_293 = arith.constant 1 : index
    %c0_294 = arith.constant 0 : index
    %c0_295 = arith.constant 0 : index
    %583 = vector.load %arg30[%c0_292, %c1_293, %c0_294, %c0_295] : memref<1x4x8x8xf32, #tpu.memory_space<vmem>>, vector<1x1x8x8xf32>
    %584 = vector.shape_cast %583 : vector<1x1x8x8xf32> to vector<8x8xf32>
    %585 = vector.shape_cast %582 : vector<8x8xf32> to vector<1x1x8x8xf32>
    tpu.vector_store %arg30[%c0_292, %c1_293, %c0_294, %c0_295], %585 {strides = array<i32>} : memref<1x4x8x8xf32, #tpu.memory_space<vmem>>, vector<1x1x8x8xf32>,
    %586 = vector.extract_strided_slice %539 {offsets = [0, 16], sizes = [8, 16], strides = [1, 1]} : vector<8x64xf32> to vector<8x16xf32>
    %cst_296 = arith.constant dense<0.000000e+00> : vector<8x16xf32>
    %587 = tpu.matmul %582, %586, %cst_296 {dimension_numbers = #tpu.dot_dimension_numbers<[1], [0], [0], [1], [0, 0, 1, 1], [], []>} : vector<8x8xf32>, vector<8x16xf32>, vector<8x16xf32> -> vector<8x16xf32>
    %588 = vector.extract_strided_slice %541 {offsets = [16, 0], sizes = [16, 256], strides = [1, 1]} : vector<64x256xf32> to vector<16x256xf32>
    %cst_297 = arith.constant dense<0.000000e+00> : vector<8x256xf32>
    %589 = tpu.matmul %587, %588, %cst_297 {dimension_numbers = #tpu.dot_dimension_numbers<[1], [0], [0], [1], [0, 0, 1, 1], [], []>} : vector<8x16xf32>, vector<16x256xf32>, vector<8x256xf32> -> vector<8x256xf32>
    %590 = arith.addf %566, %589 : vector<8x256xf32>
    %591 = vector.extract_strided_slice %537 {offsets = [0, 32], sizes = [8, 16], strides = [1, 1]} : vector<8x64xf32> to vector<8x16xf32>
    %592 = vector.extract_strided_slice %538 {offsets = [0, 32], sizes = [8, 16], strides = [1, 1]} : vector<8x64xf32> to vector<8x16xf32>
    %cst_298 = arith.constant dense<0.000000e+00> : vector<8x8xf32>
    %593 = tpu.matmul %591, %592, %cst_298 {dimension_numbers = #tpu.dot_dimension_numbers<[1], [1], [0], [0], [0, 0, 1, 0], [], []>} : vector<8x16xf32>, vector<8x16xf32>, vector<8x8xf32> -> vector<8x8xf32>
    %cst_299 = arith.constant 2.500000e-01 : f32
    %594 = vector.broadcast %cst_299 : f32 to vector<8x8xf32>
    %595 = arith.mulf %593, %594 : vector<8x8xf32>
    %596 = arith.addf %595, %9 : vector<8x8xf32>
    %cst_300 = arith.constant dense<0xFF800000> : vector<8xf32>
    %597 = vector.multi_reduction <maximumf>, %596, %cst_300 [1] : vector<8x8xf32> to vector<8xf32>
    %598 = vector.shape_cast %597 : vector<8xf32> to vector<8x1xf32>
    %599 = vector.broadcast %598 : vector<8x1xf32> to vector<8x8xf32>
    %600 = arith.subf %596, %599 : vector<8x8xf32>
    %601 = math.exp %600 : vector<8x8xf32>
    %cst_301 = arith.constant dense<0.000000e+00> : vector<8xf32>
    %602 = vector.multi_reduction <add>, %601, %cst_301 [1] : vector<8x8xf32> to vector<8xf32>
    %603 = vector.shape_cast %602 : vector<8xf32> to vector<8x1xf32>
    %604 = tpu.reciprocal %603 {approx = true} : vector<8x1xf32> -> vector<8x1xf32>
    %605 = vector.broadcast %604 : vector<8x1xf32> to vector<8x8xf32>
    %606 = arith.mulf %601, %605 : vector<8x8xf32>
    %c0_302 = arith.constant 0 : index
    %c2_303 = arith.constant 2 : index
    %c0_304 = arith.constant 0 : index
    %c0_305 = arith.constant 0 : index
    %607 = vector.load %arg30[%c0_302, %c2_303, %c0_304, %c0_305] : memref<1x4x8x8xf32, #tpu.memory_space<vmem>>, vector<1x1x8x8xf32>
    %608 = vector.shape_cast %607 : vector<1x1x8x8xf32> to vector<8x8xf32>
    %609 = vector.shape_cast %606 : vector<8x8xf32> to vector<1x1x8x8xf32>
    tpu.vector_store %arg30[%c0_302, %c2_303, %c0_304, %c0_305], %609 {strides = array<i32>} : memref<1x4x8x8xf32, #tpu.memory_space<vmem>>, vector<1x1x8x8xf32>,
    %610 = vector.extract_strided_slice %539 {offsets = [0, 32], sizes = [8, 16], strides = [1, 1]} : vector<8x64xf32> to vector<8x16xf32>
    %cst_306 = arith.constant dense<0.000000e+00> : vector<8x16xf32>
    %611 = tpu.matmul %606, %610, %cst_306 {dimension_numbers = #tpu.dot_dimension_numbers<[1], [0], [0], [1], [0, 0, 1, 1], [], []>} : vector<8x8xf32>, vector<8x16xf32>, vector<8x16xf32> -> vector<8x16xf32>
    %612 = vector.extract_strided_slice %541 {offsets = [32, 0], sizes = [16, 256], strides = [1, 1]} : vector<64x256xf32> to vector<16x256xf32>
    %cst_307 = arith.constant dense<0.000000e+00> : vector<8x256xf32>
    %613 = tpu.matmul %611, %612, %cst_307 {dimension_numbers = #tpu.dot_dimension_numbers<[1], [0], [0], [1], [0, 0, 1, 1], [], []>} : vector<8x16xf32>, vector<16x256xf32>, vector<8x256xf32> -> vector<8x256xf32>
    %614 = arith.addf %590, %613 : vector<8x256xf32>
    %615 = vector.extract_strided_slice %537 {offsets = [0, 48], sizes = [8, 16], strides = [1, 1]} : vector<8x64xf32> to vector<8x16xf32>
    %616 = vector.extract_strided_slice %538 {offsets = [0, 48], sizes = [8, 16], strides = [1, 1]} : vector<8x64xf32> to vector<8x16xf32>
    %cst_308 = arith.constant dense<0.000000e+00> : vector<8x8xf32>
    %617 = tpu.matmul %615, %616, %cst_308 {dimension_numbers = #tpu.dot_dimension_numbers<[1], [1], [0], [0], [0, 0, 1, 0], [], []>} : vector<8x16xf32>, vector<8x16xf32>, vector<8x8xf32> -> vector<8x8xf32>
    %cst_309 = arith.constant 2.500000e-01 : f32
    %618 = vector.broadcast %cst_309 : f32 to vector<8x8xf32>
    %619 = arith.mulf %617, %618 : vector<8x8xf32>
    %620 = arith.addf %619, %9 : vector<8x8xf32>
    %cst_310 = arith.constant dense<0xFF800000> : vector<8xf32>
    %621 = vector.multi_reduction <maximumf>, %620, %cst_310 [1] : vector<8x8xf32> to vector<8xf32>
    %622 = vector.shape_cast %621 : vector<8xf32> to vector<8x1xf32>
    %623 = vector.broadcast %622 : vector<8x1xf32> to vector<8x8xf32>
    %624 = arith.subf %620, %623 : vector<8x8xf32>
    %625 = math.exp %624 : vector<8x8xf32>
    %cst_311 = arith.constant dense<0.000000e+00> : vector<8xf32>
    %626 = vector.multi_reduction <add>, %625, %cst_311 [1] : vector<8x8xf32> to vector<8xf32>
    %627 = vector.shape_cast %626 : vector<8xf32> to vector<8x1xf32>
    %628 = tpu.reciprocal %627 {approx = true} : vector<8x1xf32> -> vector<8x1xf32>
    %629 = vector.broadcast %628 : vector<8x1xf32> to vector<8x8xf32>
    %630 = arith.mulf %625, %629 : vector<8x8xf32>
    %c0_312 = arith.constant 0 : index
    %c3_313 = arith.constant 3 : index
    %c0_314 = arith.constant 0 : index
    %c0_315 = arith.constant 0 : index
    %631 = vector.load %arg30[%c0_312, %c3_313, %c0_314, %c0_315] : memref<1x4x8x8xf32, #tpu.memory_space<vmem>>, vector<1x1x8x8xf32>
    %632 = vector.shape_cast %631 : vector<1x1x8x8xf32> to vector<8x8xf32>
    %633 = vector.shape_cast %630 : vector<8x8xf32> to vector<1x1x8x8xf32>
    tpu.vector_store %arg30[%c0_312, %c3_313, %c0_314, %c0_315], %633 {strides = array<i32>} : memref<1x4x8x8xf32, #tpu.memory_space<vmem>>, vector<1x1x8x8xf32>,
    %634 = vector.extract_strided_slice %539 {offsets = [0, 48], sizes = [8, 16], strides = [1, 1]} : vector<8x64xf32> to vector<8x16xf32>
    %cst_316 = arith.constant dense<0.000000e+00> : vector<8x16xf32>
    %635 = tpu.matmul %630, %634, %cst_316 {dimension_numbers = #tpu.dot_dimension_numbers<[1], [0], [0], [1], [0, 0, 1, 1], [], []>} : vector<8x8xf32>, vector<8x16xf32>, vector<8x16xf32> -> vector<8x16xf32>
    %636 = vector.extract_strided_slice %541 {offsets = [48, 0], sizes = [16, 256], strides = [1, 1]} : vector<64x256xf32> to vector<16x256xf32>
    %cst_317 = arith.constant dense<0.000000e+00> : vector<8x256xf32>
    %637 = tpu.matmul %635, %636, %cst_317 {dimension_numbers = #tpu.dot_dimension_numbers<[1], [0], [0], [1], [0, 0, 1, 1], [], []>} : vector<8x16xf32>, vector<16x256xf32>, vector<8x256xf32> -> vector<8x256xf32>
    %638 = arith.addf %614, %637 : vector<8x256xf32>
    %639 = arith.addf %529, %638 : vector<8x256xf32>
    %c2_318 = arith.constant 2 : index
    %c0_319 = arith.constant 0 : index
    %c0_320 = arith.constant 0 : index
    %640 = vector.load %arg9[%c2_318, %c0_319, %c0_320] : memref<3x1x256xf32, #tpu.memory_space<vmem>>, vector<1x1x256xf32>
    %641 = vector.shape_cast %640 : vector<1x1x256xf32> to vector<1x256xf32>
    %642 = vector.broadcast %641 : vector<1x256xf32> to vector<8x256xf32>
    %643 = arith.addf %639, %642 : vector<8x256xf32>
    %c2_321 = arith.constant 2 : index
    %c0_322 = arith.constant 0 : index
    %c0_323 = arith.constant 0 : index
    %644 = vector.load %arg10[%c2_321, %c0_322, %c0_323] : memref<3x256x64xf32, #tpu.memory_space<vmem>>, vector<1x256x64xf32>
    %645 = vector.shape_cast %644 : vector<1x256x64xf32> to vector<256x64xf32>
    %c2_324 = arith.constant 2 : index
    %c0_325 = arith.constant 0 : index
    %c0_326 = arith.constant 0 : index
    %646 = vector.load %arg11[%c2_324, %c0_325, %c0_326] : memref<3x1x64xf32, #tpu.memory_space<vmem>>, vector<1x1x64xf32>
    %647 = vector.shape_cast %646 : vector<1x1x64xf32> to vector<1x64xf32>
    %cst_327 = arith.constant dense<0.000000e+00> : vector<8x64xf32>
    %648 = tpu.matmul %643, %645, %cst_327 {dimension_numbers = #tpu.dot_dimension_numbers<[1], [0], [0], [1], [0, 0, 1, 1], [], []>} : vector<8x256xf32>, vector<256x64xf32>, vector<8x64xf32> -> vector<8x64xf32>
    %649 = vector.broadcast %647 : vector<1x64xf32> to vector<8x64xf32>
    %650 = arith.addf %648, %649 : vector<8x64xf32>
    %c2_328 = arith.constant 2 : index
    %c0_329 = arith.constant 0 : index
    %c0_330 = arith.constant 0 : index
    %651 = vector.load %arg12[%c2_328, %c0_329, %c0_330] : memref<3x48x128xf32, #tpu.memory_space<vmem>>, vector<1x48x128xf32>
    %652 = vector.shape_cast %651 : vector<1x48x128xf32> to vector<48x128xf32>
    %c2_331 = arith.constant 2 : index
    %c0_332 = arith.constant 0 : index
    %c0_333 = arith.constant 0 : index
    %653 = vector.load %arg13[%c2_331, %c0_332, %c0_333] : memref<3x1x128xf32, #tpu.memory_space<vmem>>, vector<1x1x128xf32>
    %654 = vector.shape_cast %653 : vector<1x1x128xf32> to vector<1x128xf32>
    %cst_334 = arith.constant dense<0.000000e+00> : vector<16x128xf32>
    %655 = tpu.matmul %3, %652, %cst_334 {dimension_numbers = #tpu.dot_dimension_numbers<[1], [0], [0], [1], [0, 0, 1, 1], [], []>} : vector<16x48xf32>, vector<48x128xf32>, vector<16x128xf32> -> vector<16x128xf32>
    %656 = vector.broadcast %654 : vector<1x128xf32> to vector<16x128xf32>
    %657 = arith.addf %655, %656 : vector<16x128xf32>
    %658 = vector.extract_strided_slice %657 {offsets = [0, 0], sizes = [16, 64], strides = [1, 1]} : vector<16x128xf32> to vector<16x64xf32>
    %659 = vector.extract_strided_slice %657 {offsets = [0, 64], sizes = [16, 64], strides = [1, 1]} : vector<16x128xf32> to vector<16x64xf32>
    %c2_335 = arith.constant 2 : index
    %c0_336 = arith.constant 0 : index
    %c0_337 = arith.constant 0 : index
    %660 = vector.load %arg14[%c2_335, %c0_336, %c0_337] : memref<3x64x256xf32, #tpu.memory_space<vmem>>, vector<1x64x256xf32>
    %661 = vector.shape_cast %660 : vector<1x64x256xf32> to vector<64x256xf32>
    %cst_338 = arith.constant 0.000000e+00 : f32
    %662 = vector.broadcast %cst_338 : f32 to vector<8x256xf32>
    %663 = vector.extract_strided_slice %650 {offsets = [0, 0], sizes = [8, 16], strides = [1, 1]} : vector<8x64xf32> to vector<8x16xf32>
    %664 = vector.extract_strided_slice %658 {offsets = [0, 0], sizes = [16, 16], strides = [1, 1]} : vector<16x64xf32> to vector<16x16xf32>
    %cst_339 = arith.constant dense<0.000000e+00> : vector<8x16xf32>
    %665 = tpu.matmul %663, %664, %cst_339 {dimension_numbers = #tpu.dot_dimension_numbers<[1], [1], [0], [0], [0, 0, 1, 0], [], []>} : vector<8x16xf32>, vector<16x16xf32>, vector<8x16xf32> -> vector<8x16xf32>
    %cst_340 = arith.constant 2.500000e-01 : f32
    %666 = vector.broadcast %cst_340 : f32 to vector<8x16xf32>
    %667 = arith.mulf %665, %666 : vector<8x16xf32>
    %668 = vector.broadcast %15 : vector<1x16xf32> to vector<8x16xf32>
    %669 = arith.addf %667, %668 : vector<8x16xf32>
    %cst_341 = arith.constant dense<0xFF800000> : vector<8xf32>
    %670 = vector.multi_reduction <maximumf>, %669, %cst_341 [1] : vector<8x16xf32> to vector<8xf32>
    %671 = vector.shape_cast %670 : vector<8xf32> to vector<8x1xf32>
    %672 = vector.broadcast %671 : vector<8x1xf32> to vector<8x16xf32>
    %673 = arith.subf %669, %672 : vector<8x16xf32>
    %674 = math.exp %673 : vector<8x16xf32>
    %cst_342 = arith.constant dense<0.000000e+00> : vector<8xf32>
    %675 = vector.multi_reduction <add>, %674, %cst_342 [1] : vector<8x16xf32> to vector<8xf32>
    %676 = vector.shape_cast %675 : vector<8xf32> to vector<8x1xf32>
    %677 = tpu.reciprocal %676 {approx = true} : vector<8x1xf32> -> vector<8x1xf32>
    %678 = vector.broadcast %677 : vector<8x1xf32> to vector<8x16xf32>
    %679 = arith.mulf %674, %678 : vector<8x16xf32>
    %c0_343 = arith.constant 0 : index
    %c0_344 = arith.constant 0 : index
    %c0_345 = arith.constant 0 : index
    %c0_346 = arith.constant 0 : index
    %680 = vector.load %arg33[%c0_343, %c0_344, %c0_345, %c0_346] : memref<1x4x8x16xf32, #tpu.memory_space<vmem>>, vector<1x1x8x16xf32>
    %681 = vector.shape_cast %680 : vector<1x1x8x16xf32> to vector<8x16xf32>
    %682 = vector.shape_cast %679 : vector<8x16xf32> to vector<1x1x8x16xf32>
    tpu.vector_store %arg33[%c0_343, %c0_344, %c0_345, %c0_346], %682 {strides = array<i32>} : memref<1x4x8x16xf32, #tpu.memory_space<vmem>>, vector<1x1x8x16xf32>,
    %683 = vector.extract_strided_slice %659 {offsets = [0, 0], sizes = [16, 16], strides = [1, 1]} : vector<16x64xf32> to vector<16x16xf32>
    %cst_347 = arith.constant dense<0.000000e+00> : vector<8x16xf32>
    %684 = tpu.matmul %679, %683, %cst_347 {dimension_numbers = #tpu.dot_dimension_numbers<[1], [0], [0], [1], [0, 0, 1, 1], [], []>} : vector<8x16xf32>, vector<16x16xf32>, vector<8x16xf32> -> vector<8x16xf32>
    %685 = vector.extract_strided_slice %661 {offsets = [0, 0], sizes = [16, 256], strides = [1, 1]} : vector<64x256xf32> to vector<16x256xf32>
    %cst_348 = arith.constant dense<0.000000e+00> : vector<8x256xf32>
    %686 = tpu.matmul %684, %685, %cst_348 {dimension_numbers = #tpu.dot_dimension_numbers<[1], [0], [0], [1], [0, 0, 1, 1], [], []>} : vector<8x16xf32>, vector<16x256xf32>, vector<8x256xf32> -> vector<8x256xf32>
    %687 = arith.addf %662, %686 : vector<8x256xf32>
    %688 = vector.extract_strided_slice %650 {offsets = [0, 16], sizes = [8, 16], strides = [1, 1]} : vector<8x64xf32> to vector<8x16xf32>
    %689 = vector.extract_strided_slice %658 {offsets = [0, 16], sizes = [16, 16], strides = [1, 1]} : vector<16x64xf32> to vector<16x16xf32>
    %cst_349 = arith.constant dense<0.000000e+00> : vector<8x16xf32>
    %690 = tpu.matmul %688, %689, %cst_349 {dimension_numbers = #tpu.dot_dimension_numbers<[1], [1], [0], [0], [0, 0, 1, 0], [], []>} : vector<8x16xf32>, vector<16x16xf32>, vector<8x16xf32> -> vector<8x16xf32>
    %cst_350 = arith.constant 2.500000e-01 : f32
    %691 = vector.broadcast %cst_350 : f32 to vector<8x16xf32>
    %692 = arith.mulf %690, %691 : vector<8x16xf32>
    %693 = vector.broadcast %15 : vector<1x16xf32> to vector<8x16xf32>
    %694 = arith.addf %692, %693 : vector<8x16xf32>
    %cst_351 = arith.constant dense<0xFF800000> : vector<8xf32>
    %695 = vector.multi_reduction <maximumf>, %694, %cst_351 [1] : vector<8x16xf32> to vector<8xf32>
    %696 = vector.shape_cast %695 : vector<8xf32> to vector<8x1xf32>
    %697 = vector.broadcast %696 : vector<8x1xf32> to vector<8x16xf32>
    %698 = arith.subf %694, %697 : vector<8x16xf32>
    %699 = math.exp %698 : vector<8x16xf32>
    %cst_352 = arith.constant dense<0.000000e+00> : vector<8xf32>
    %700 = vector.multi_reduction <add>, %699, %cst_352 [1] : vector<8x16xf32> to vector<8xf32>
    %701 = vector.shape_cast %700 : vector<8xf32> to vector<8x1xf32>
    %702 = tpu.reciprocal %701 {approx = true} : vector<8x1xf32> -> vector<8x1xf32>
    %703 = vector.broadcast %702 : vector<8x1xf32> to vector<8x16xf32>
    %704 = arith.mulf %699, %703 : vector<8x16xf32>
    %c0_353 = arith.constant 0 : index
    %c1_354 = arith.constant 1 : index
    %c0_355 = arith.constant 0 : index
    %c0_356 = arith.constant 0 : index
    %705 = vector.load %arg33[%c0_353, %c1_354, %c0_355, %c0_356] : memref<1x4x8x16xf32, #tpu.memory_space<vmem>>, vector<1x1x8x16xf32>
    %706 = vector.shape_cast %705 : vector<1x1x8x16xf32> to vector<8x16xf32>
    %707 = vector.shape_cast %704 : vector<8x16xf32> to vector<1x1x8x16xf32>
    tpu.vector_store %arg33[%c0_353, %c1_354, %c0_355, %c0_356], %707 {strides = array<i32>} : memref<1x4x8x16xf32, #tpu.memory_space<vmem>>, vector<1x1x8x16xf32>,
    %708 = vector.extract_strided_slice %659 {offsets = [0, 16], sizes = [16, 16], strides = [1, 1]} : vector<16x64xf32> to vector<16x16xf32>
    %cst_357 = arith.constant dense<0.000000e+00> : vector<8x16xf32>
    %709 = tpu.matmul %704, %708, %cst_357 {dimension_numbers = #tpu.dot_dimension_numbers<[1], [0], [0], [1], [0, 0, 1, 1], [], []>} : vector<8x16xf32>, vector<16x16xf32>, vector<8x16xf32> -> vector<8x16xf32>
    %710 = vector.extract_strided_slice %661 {offsets = [16, 0], sizes = [16, 256], strides = [1, 1]} : vector<64x256xf32> to vector<16x256xf32>
    %cst_358 = arith.constant dense<0.000000e+00> : vector<8x256xf32>
    %711 = tpu.matmul %709, %710, %cst_358 {dimension_numbers = #tpu.dot_dimension_numbers<[1], [0], [0], [1], [0, 0, 1, 1], [], []>} : vector<8x16xf32>, vector<16x256xf32>, vector<8x256xf32> -> vector<8x256xf32>
    %712 = arith.addf %687, %711 : vector<8x256xf32>
    %713 = vector.extract_strided_slice %650 {offsets = [0, 32], sizes = [8, 16], strides = [1, 1]} : vector<8x64xf32> to vector<8x16xf32>
    %714 = vector.extract_strided_slice %658 {offsets = [0, 32], sizes = [16, 16], strides = [1, 1]} : vector<16x64xf32> to vector<16x16xf32>
    %cst_359 = arith.constant dense<0.000000e+00> : vector<8x16xf32>
    %715 = tpu.matmul %713, %714, %cst_359 {dimension_numbers = #tpu.dot_dimension_numbers<[1], [1], [0], [0], [0, 0, 1, 0], [], []>} : vector<8x16xf32>, vector<16x16xf32>, vector<8x16xf32> -> vector<8x16xf32>
    %cst_360 = arith.constant 2.500000e-01 : f32
    %716 = vector.broadcast %cst_360 : f32 to vector<8x16xf32>
    %717 = arith.mulf %715, %716 : vector<8x16xf32>
    %718 = vector.broadcast %15 : vector<1x16xf32> to vector<8x16xf32>
    %719 = arith.addf %717, %718 : vector<8x16xf32>
    %cst_361 = arith.constant dense<0xFF800000> : vector<8xf32>
    %720 = vector.multi_reduction <maximumf>, %719, %cst_361 [1] : vector<8x16xf32> to vector<8xf32>
    %721 = vector.shape_cast %720 : vector<8xf32> to vector<8x1xf32>
    %722 = vector.broadcast %721 : vector<8x1xf32> to vector<8x16xf32>
    %723 = arith.subf %719, %722 : vector<8x16xf32>
    %724 = math.exp %723 : vector<8x16xf32>
    %cst_362 = arith.constant dense<0.000000e+00> : vector<8xf32>
    %725 = vector.multi_reduction <add>, %724, %cst_362 [1] : vector<8x16xf32> to vector<8xf32>
    %726 = vector.shape_cast %725 : vector<8xf32> to vector<8x1xf32>
    %727 = tpu.reciprocal %726 {approx = true} : vector<8x1xf32> -> vector<8x1xf32>
    %728 = vector.broadcast %727 : vector<8x1xf32> to vector<8x16xf32>
    %729 = arith.mulf %724, %728 : vector<8x16xf32>
    %c0_363 = arith.constant 0 : index
    %c2_364 = arith.constant 2 : index
    %c0_365 = arith.constant 0 : index
    %c0_366 = arith.constant 0 : index
    %730 = vector.load %arg33[%c0_363, %c2_364, %c0_365, %c0_366] : memref<1x4x8x16xf32, #tpu.memory_space<vmem>>, vector<1x1x8x16xf32>
    %731 = vector.shape_cast %730 : vector<1x1x8x16xf32> to vector<8x16xf32>
    %732 = vector.shape_cast %729 : vector<8x16xf32> to vector<1x1x8x16xf32>
    tpu.vector_store %arg33[%c0_363, %c2_364, %c0_365, %c0_366], %732 {strides = array<i32>} : memref<1x4x8x16xf32, #tpu.memory_space<vmem>>, vector<1x1x8x16xf32>,
    %733 = vector.extract_strided_slice %659 {offsets = [0, 32], sizes = [16, 16], strides = [1, 1]} : vector<16x64xf32> to vector<16x16xf32>
    %cst_367 = arith.constant dense<0.000000e+00> : vector<8x16xf32>
    %734 = tpu.matmul %729, %733, %cst_367 {dimension_numbers = #tpu.dot_dimension_numbers<[1], [0], [0], [1], [0, 0, 1, 1], [], []>} : vector<8x16xf32>, vector<16x16xf32>, vector<8x16xf32> -> vector<8x16xf32>
    %735 = vector.extract_strided_slice %661 {offsets = [32, 0], sizes = [16, 256], strides = [1, 1]} : vector<64x256xf32> to vector<16x256xf32>
    %cst_368 = arith.constant dense<0.000000e+00> : vector<8x256xf32>
    %736 = tpu.matmul %734, %735, %cst_368 {dimension_numbers = #tpu.dot_dimension_numbers<[1], [0], [0], [1], [0, 0, 1, 1], [], []>} : vector<8x16xf32>, vector<16x256xf32>, vector<8x256xf32> -> vector<8x256xf32>
    %737 = arith.addf %712, %736 : vector<8x256xf32>
    %738 = vector.extract_strided_slice %650 {offsets = [0, 48], sizes = [8, 16], strides = [1, 1]} : vector<8x64xf32> to vector<8x16xf32>
    %739 = vector.extract_strided_slice %658 {offsets = [0, 48], sizes = [16, 16], strides = [1, 1]} : vector<16x64xf32> to vector<16x16xf32>
    %cst_369 = arith.constant dense<0.000000e+00> : vector<8x16xf32>
    %740 = tpu.matmul %738, %739, %cst_369 {dimension_numbers = #tpu.dot_dimension_numbers<[1], [1], [0], [0], [0, 0, 1, 0], [], []>} : vector<8x16xf32>, vector<16x16xf32>, vector<8x16xf32> -> vector<8x16xf32>
    %cst_370 = arith.constant 2.500000e-01 : f32
    %741 = vector.broadcast %cst_370 : f32 to vector<8x16xf32>
    %742 = arith.mulf %740, %741 : vector<8x16xf32>
    %743 = vector.broadcast %15 : vector<1x16xf32> to vector<8x16xf32>
    %744 = arith.addf %742, %743 : vector<8x16xf32>
    %cst_371 = arith.constant dense<0xFF800000> : vector<8xf32>
    %745 = vector.multi_reduction <maximumf>, %744, %cst_371 [1] : vector<8x16xf32> to vector<8xf32>
    %746 = vector.shape_cast %745 : vector<8xf32> to vector<8x1xf32>
    %747 = vector.broadcast %746 : vector<8x1xf32> to vector<8x16xf32>
    %748 = arith.subf %744, %747 : vector<8x16xf32>
    %749 = math.exp %748 : vector<8x16xf32>
    %cst_372 = arith.constant dense<0.000000e+00> : vector<8xf32>
    %750 = vector.multi_reduction <add>, %749, %cst_372 [1] : vector<8x16xf32> to vector<8xf32>
    %751 = vector.shape_cast %750 : vector<8xf32> to vector<8x1xf32>
    %752 = tpu.reciprocal %751 {approx = true} : vector<8x1xf32> -> vector<8x1xf32>
    %753 = vector.broadcast %752 : vector<8x1xf32> to vector<8x16xf32>
    %754 = arith.mulf %749, %753 : vector<8x16xf32>
    %c0_373 = arith.constant 0 : index
    %c3_374 = arith.constant 3 : index
    %c0_375 = arith.constant 0 : index
    %c0_376 = arith.constant 0 : index
    %755 = vector.load %arg33[%c0_373, %c3_374, %c0_375, %c0_376] : memref<1x4x8x16xf32, #tpu.memory_space<vmem>>, vector<1x1x8x16xf32>
    %756 = vector.shape_cast %755 : vector<1x1x8x16xf32> to vector<8x16xf32>
    %757 = vector.shape_cast %754 : vector<8x16xf32> to vector<1x1x8x16xf32>
    tpu.vector_store %arg33[%c0_373, %c3_374, %c0_375, %c0_376], %757 {strides = array<i32>} : memref<1x4x8x16xf32, #tpu.memory_space<vmem>>, vector<1x1x8x16xf32>,
    %758 = vector.extract_strided_slice %659 {offsets = [0, 48], sizes = [16, 16], strides = [1, 1]} : vector<16x64xf32> to vector<16x16xf32>
    %cst_377 = arith.constant dense<0.000000e+00> : vector<8x16xf32>
    %759 = tpu.matmul %754, %758, %cst_377 {dimension_numbers = #tpu.dot_dimension_numbers<[1], [0], [0], [1], [0, 0, 1, 1], [], []>} : vector<8x16xf32>, vector<16x16xf32>, vector<8x16xf32> -> vector<8x16xf32>
    %760 = vector.extract_strided_slice %661 {offsets = [48, 0], sizes = [16, 256], strides = [1, 1]} : vector<64x256xf32> to vector<16x256xf32>
    %cst_378 = arith.constant dense<0.000000e+00> : vector<8x256xf32>
    %761 = tpu.matmul %759, %760, %cst_378 {dimension_numbers = #tpu.dot_dimension_numbers<[1], [0], [0], [1], [0, 0, 1, 1], [], []>} : vector<8x16xf32>, vector<16x256xf32>, vector<8x256xf32> -> vector<8x256xf32>
    %762 = arith.addf %737, %761 : vector<8x256xf32>
    %763 = arith.addf %643, %762 : vector<8x256xf32>
    %c2_379 = arith.constant 2 : index
    %c0_380 = arith.constant 0 : index
    %c0_381 = arith.constant 0 : index
    %764 = vector.load %arg15[%c2_379, %c0_380, %c0_381] : memref<3x1x256xf32, #tpu.memory_space<vmem>>, vector<1x1x256xf32>
    %765 = vector.shape_cast %764 : vector<1x1x256xf32> to vector<1x256xf32>
    %766 = vector.broadcast %765 : vector<1x256xf32> to vector<8x256xf32>
    %767 = arith.addf %763, %766 : vector<8x256xf32>
    %cst_382 = arith.constant 0.000000e+00 : f32
    %768 = vector.broadcast %cst_382 : f32 to vector<8x256xf32>
    %769 = arith.cmpf oge, %767, %768 : vector<8x256xf32>
    %cst_383 = arith.constant 0.00999999977 : f32
    %770 = vector.broadcast %cst_383 : f32 to vector<8x256xf32>
    %771 = arith.mulf %770, %767 : vector<8x256xf32>
    %772 = arith.select %769, %767, %771 : vector<8x256xi1>, vector<8x256xf32>
    %c0_384 = arith.constant 0 : index
    %c0_385 = arith.constant 0 : index
    %773 = vector.load %arg22[%c0_384, %c0_385] : memref<256x32xf32, #tpu.memory_space<vmem>>, vector<256x32xf32>
    %c0_386 = arith.constant 0 : index
    %c0_387 = arith.constant 0 : index
    %774 = vector.load %arg23[%c0_386, %c0_387] : memref<1x32xf32, #tpu.memory_space<vmem>>, vector<1x32xf32>
    %cst_388 = arith.constant dense<0.000000e+00> : vector<8x32xf32>
    %775 = tpu.matmul %772, %773, %cst_388 {dimension_numbers = #tpu.dot_dimension_numbers<[1], [0], [0], [1], [0, 0, 1, 1], [], []>} : vector<8x256xf32>, vector<256x32xf32>, vector<8x32xf32> -> vector<8x32xf32>
    %776 = vector.broadcast %774 : vector<1x32xf32> to vector<8x32xf32>
    %777 = arith.addf %775, %776 : vector<8x32xf32>
    %c0_389 = arith.constant 0 : index
    %c0_390 = arith.constant 0 : index
    %c0_391 = arith.constant 0 : index
    %778 = vector.load %arg26[%c0_389, %c0_390, %c0_391] : memref<1x8x32xf32, #tpu.memory_space<vmem>>, vector<1x8x32xf32>
    %779 = vector.shape_cast %778 : vector<1x8x32xf32> to vector<8x32xf32>
    %780 = vector.shape_cast %777 : vector<8x32xf32> to vector<1x8x32xf32>
    tpu.vector_store %arg26[%c0_389, %c0_390, %c0_391], %780 {strides = array<i32>} : memref<1x8x32xf32, #tpu.memory_space<vmem>>, vector<1x8x32xf32>,
    %c0_392 = arith.constant 0 : index
    %c0_393 = arith.constant 0 : index
    %781 = vector.load %arg24[%c0_392, %c0_393] : memref<256x1xf32, #tpu.memory_space<vmem>>, vector<256x1xf32>
    %c0_394 = arith.constant 0 : index
    %c0_395 = arith.constant 0 : index
    %782 = vector.load %arg25[%c0_394, %c0_395] : memref<1x1xf32, #tpu.memory_space<vmem>>, vector<1x1xf32>
    %cst_396 = arith.constant dense<0.000000e+00> : vector<8x1xf32>
    %783 = tpu.matmul %772, %781, %cst_396 {dimension_numbers = #tpu.dot_dimension_numbers<[1], [0], [0], [1], [0, 0, 1, 1], [], []>} : vector<8x256xf32>, vector<256x1xf32>, vector<8x1xf32> -> vector<8x1xf32>
    %784 = vector.broadcast %782 : vector<1x1xf32> to vector<8x1xf32>
    %785 = arith.addf %783, %784 : vector<8x1xf32>
    %786 = arith.negf %785 : vector<8x1xf32>
    %787 = math.exp %786 : vector<8x1xf32>
    %cst_397 = arith.constant 1.000000e+00 : f32
    %788 = vector.broadcast %cst_397 : f32 to vector<8x1xf32>
    %789 = arith.addf %788, %787 : vector<8x1xf32>
    %790 = arith.divf %788, %789 : vector<8x1xf32>
    %c0_398 = arith.constant 0 : index
    %c0_399 = arith.constant 0 : index
    %c0_400 = arith.constant 0 : index
    %791 = vector.load %arg27[%c0_398, %c0_399, %c0_400] : memref<1x8x1xf32, #tpu.memory_space<vmem>>, vector<1x8x1xf32>
    %792 = vector.shape_cast %791 : vector<1x8x1xf32> to vector<8x1xf32>
    %793 = vector.shape_cast %790 : vector<8x1xf32> to vector<1x8x1xf32>
    tpu.vector_store %arg27[%c0_398, %c0_399, %c0_400], %793 {strides = array<i32>} : memref<1x8x1xf32, #tpu.memory_space<vmem>>, vector<1x8x1xf32>,
    return
  }
  func.func @transform_0(%arg0: i32) -> (i32, i32, i32) {
    %c0_i32 = arith.constant 0 : i32
    %c0_i32_0 = arith.constant 0 : i32
    %c0_i32_1 = arith.constant 0 : i32
    return %arg0, %c0_i32, %c0_i32_0 : i32, i32, i32
  }
  func.func @transform_1(%arg0: i32) -> (i32, i32, i32) {
    %c0_i32 = arith.constant 0 : i32
    %c0_i32_0 = arith.constant 0 : i32
    %c0_i32_1 = arith.constant 0 : i32
    %c0_i32_2 = arith.constant 0 : i32
    return %c0_i32, %c0_i32_0, %c0_i32_1 : i32, i32, i32
  }
  func.func @transform_2(%arg0: i32) -> (i32, i32, i32) {
    %c0_i32 = arith.constant 0 : i32
    %c0_i32_0 = arith.constant 0 : i32
    %c0_i32_1 = arith.constant 0 : i32
    return %arg0, %c0_i32, %c0_i32_0 : i32, i32, i32
  }
  func.func @transform_3(%arg0: i32) -> (i32, i32, i32) {
    %c0_i32 = arith.constant 0 : i32
    %c0_i32_0 = arith.constant 0 : i32
    %c0_i32_1 = arith.constant 0 : i32
    return %arg0, %c0_i32, %c0_i32_0 : i32, i32, i32
  }
  func.func @transform_4(%arg0: i32) -> (i32, i32, i32) {
    %c0_i32 = arith.constant 0 : i32
    %c0_i32_0 = arith.constant 0 : i32
    %c0_i32_1 = arith.constant 0 : i32
    return %arg0, %c0_i32, %c0_i32_0 : i32, i32, i32
  }
  func.func @transform_5(%arg0: i32) -> (i32, i32, i32) {
    %c0_i32 = arith.constant 0 : i32
    %c0_i32_0 = arith.constant 0 : i32
    %c0_i32_1 = arith.constant 0 : i32
    %c0_i32_2 = arith.constant 0 : i32
    return %c0_i32, %c0_i32_0, %c0_i32_1 : i32, i32, i32
  }
  func.func @transform_6(%arg0: i32) -> (i32, i32, i32) {
    %c0_i32 = arith.constant 0 : i32
    %c0_i32_0 = arith.constant 0 : i32
    %c0_i32_1 = arith.constant 0 : i32
    %c0_i32_2 = arith.constant 0 : i32
    return %c0_i32, %c0_i32_0, %c0_i32_1 : i32, i32, i32
  }
  func.func @transform_7(%arg0: i32) -> (i32, i32, i32) {
    %c0_i32 = arith.constant 0 : i32
    %c0_i32_0 = arith.constant 0 : i32
    %c0_i32_1 = arith.constant 0 : i32
    %c0_i32_2 = arith.constant 0 : i32
    return %c0_i32, %c0_i32_0, %c0_i32_1 : i32, i32, i32
  }
  func.func @transform_8(%arg0: i32) -> (i32, i32, i32) {
    %c0_i32 = arith.constant 0 : i32
    %c0_i32_0 = arith.constant 0 : i32
    %c0_i32_1 = arith.constant 0 : i32
    %c0_i32_2 = arith.constant 0 : i32
    return %c0_i32, %c0_i32_0, %c0_i32_1 : i32, i32, i32
  }
  func.func @transform_9(%arg0: i32) -> (i32, i32, i32) {
    %c0_i32 = arith.constant 0 : i32
    %c0_i32_0 = arith.constant 0 : i32
    %c0_i32_1 = arith.constant 0 : i32
    %c0_i32_2 = arith.constant 0 : i32
    return %c0_i32, %c0_i32_0, %c0_i32_1 : i32, i32, i32
  }
  func.func @transform_10(%arg0: i32) -> (i32, i32, i32) {
    %c0_i32 = arith.constant 0 : i32
    %c0_i32_0 = arith.constant 0 : i32
    %c0_i32_1 = arith.constant 0 : i32
    %c0_i32_2 = arith.constant 0 : i32
    return %c0_i32, %c0_i32_0, %c0_i32_1 : i32, i32, i32
  }
  func.func @transform_11(%arg0: i32) -> (i32, i32, i32) {
    %c0_i32 = arith.constant 0 : i32
    %c0_i32_0 = arith.constant 0 : i32
    %c0_i32_1 = arith.constant 0 : i32
    %c0_i32_2 = arith.constant 0 : i32
    return %c0_i32, %c0_i32_0, %c0_i32_1 : i32, i32, i32
  }
  func.func @transform_12(%arg0: i32) -> (i32, i32, i32) {
    %c0_i32 = arith.constant 0 : i32
    %c0_i32_0 = arith.constant 0 : i32
    %c0_i32_1 = arith.constant 0 : i32
    %c0_i32_2 = arith.constant 0 : i32
    return %c0_i32, %c0_i32_0, %c0_i32_1 : i32, i32, i32
  }
  func.func @transform_13(%arg0: i32) -> (i32, i32, i32) {
    %c0_i32 = arith.constant 0 : i32
    %c0_i32_0 = arith.constant 0 : i32
    %c0_i32_1 = arith.constant 0 : i32
    %c0_i32_2 = arith.constant 0 : i32
    return %c0_i32, %c0_i32_0, %c0_i32_1 : i32, i32, i32
  }
  func.func @transform_14(%arg0: i32) -> (i32, i32, i32) {
    %c0_i32 = arith.constant 0 : i32
    %c0_i32_0 = arith.constant 0 : i32
    %c0_i32_1 = arith.constant 0 : i32
    %c0_i32_2 = arith.constant 0 : i32
    return %c0_i32, %c0_i32_0, %c0_i32_1 : i32, i32, i32
  }
  func.func @transform_15(%arg0: i32) -> (i32, i32) {
    %c0_i32 = arith.constant 0 : i32
    %c0_i32_0 = arith.constant 0 : i32
    %c0_i32_1 = arith.constant 0 : i32
    return %c0_i32, %c0_i32_0 : i32, i32
  }
  func.func @transform_16(%arg0: i32) -> (i32, i32) {
    %c0_i32 = arith.constant 0 : i32
    %c0_i32_0 = arith.constant 0 : i32
    %c0_i32_1 = arith.constant 0 : i32
    return %c0_i32, %c0_i32_0 : i32, i32
  }
  func.func @transform_17(%arg0: i32) -> (i32, i32) {
    %c0_i32 = arith.constant 0 : i32
    %c0_i32_0 = arith.constant 0 : i32
    %c0_i32_1 = arith.constant 0 : i32
    return %c0_i32, %c0_i32_0 : i32, i32
  }
  func.func @transform_18(%arg0: i32) -> (i32, i32) {
    %c0_i32 = arith.constant 0 : i32
    %c0_i32_0 = arith.constant 0 : i32
    %c0_i32_1 = arith.constant 0 : i32
    return %c0_i32, %c0_i32_0 : i32, i32
  }
  func.func @transform_19(%arg0: i32) -> (i32, i32) {
    %c0_i32 = arith.constant 0 : i32
    %c0_i32_0 = arith.constant 0 : i32
    %c0_i32_1 = arith.constant 0 : i32
    return %c0_i32, %c0_i32_0 : i32, i32
  }
  func.func @transform_20(%arg0: i32) -> (i32, i32) {
    %c0_i32 = arith.constant 0 : i32
    %c0_i32_0 = arith.constant 0 : i32
    %c0_i32_1 = arith.constant 0 : i32
    return %c0_i32, %c0_i32_0 : i32, i32
  }
  func.func @transform_21(%arg0: i32) -> (i32, i32) {
    %c0_i32 = arith.constant 0 : i32
    %c0_i32_0 = arith.constant 0 : i32
    %c0_i32_1 = arith.constant 0 : i32
    return %c0_i32, %c0_i32_0 : i32, i32
  }
  func.func @transform_22(%arg0: i32) -> (i32, i32) {
    %c0_i32 = arith.constant 0 : i32
    %c0_i32_0 = arith.constant 0 : i32
    %c0_i32_1 = arith.constant 0 : i32
    return %c0_i32, %c0_i32_0 : i32, i32
  }
  func.func @transform_23(%arg0: i32) -> (i32, i32) {
    %c0_i32 = arith.constant 0 : i32
    %c0_i32_0 = arith.constant 0 : i32
    %c0_i32_1 = arith.constant 0 : i32
    return %c0_i32, %c0_i32_0 : i32, i32
  }
  func.func @transform_24(%arg0: i32) -> (i32, i32) {
    %c0_i32 = arith.constant 0 : i32
    %c0_i32_0 = arith.constant 0 : i32
    %c0_i32_1 = arith.constant 0 : i32
    return %c0_i32, %c0_i32_0 : i32, i32
  }
  func.func @transform_25(%arg0: i32) -> (i32, i32, i32) {
    %c0_i32 = arith.constant 0 : i32
    %c0_i32_0 = arith.constant 0 : i32
    %c0_i32_1 = arith.constant 0 : i32
    return %arg0, %c0_i32, %c0_i32_0 : i32, i32, i32
  }
  func.func @transform_26(%arg0: i32) -> (i32, i32, i32) {
    %c0_i32 = arith.constant 0 : i32
    %c0_i32_0 = arith.constant 0 : i32
    %c0_i32_1 = arith.constant 0 : i32
    return %arg0, %c0_i32, %c0_i32_0 : i32, i32, i32
  }
  func.func @transform_27(%arg0: i32) -> (i32, i32, i32, i32) {
    %c0_i32 = arith.constant 0 : i32
    %c0_i32_0 = arith.constant 0 : i32
    %c0_i32_1 = arith.constant 0 : i32
    %c0_i32_2 = arith.constant 0 : i32
    return %arg0, %c0_i32, %c0_i32_0, %c0_i32_1 : i32, i32, i32, i32
  }
  func.func @transform_28(%arg0: i32) -> (i32, i32, i32, i32) {
    %c0_i32 = arith.constant 0 : i32
    %c0_i32_0 = arith.constant 0 : i32
    %c0_i32_1 = arith.constant 0 : i32
    %c0_i32_2 = arith.constant 0 : i32
    return %arg0, %c0_i32, %c0_i32_0, %c0_i32_1 : i32, i32, i32, i32
  }
  func.func @transform_29(%arg0: i32) -> (i32, i32, i32, i32) {
    %c0_i32 = arith.constant 0 : i32
    %c0_i32_0 = arith.constant 0 : i32
    %c0_i32_1 = arith.constant 0 : i32
    %c0_i32_2 = arith.constant 0 : i32
    return %arg0, %c0_i32, %c0_i32_0, %c0_i32_1 : i32, i32, i32, i32
  }
  func.func @transform_30(%arg0: i32) -> (i32, i32, i32, i32) {
    %c0_i32 = arith.constant 0 : i32
    %c0_i32_0 = arith.constant 0 : i32
    %c0_i32_1 = arith.constant 0 : i32
    %c0_i32_2 = arith.constant 0 : i32
    return %arg0, %c0_i32, %c0_i32_0, %c0_i32_1 : i32, i32, i32, i32
  }
  func.func @transform_31(%arg0: i32) -> (i32, i32, i32, i32) {
    %c0_i32 = arith.constant 0 : i32
    %c0_i32_0 = arith.constant 0 : i32
    %c0_i32_1 = arith.constant 0 : i32
    %c0_i32_2 = arith.constant 0 : i32
    return %arg0, %c0_i32, %c0_i32_0, %c0_i32_1 : i32, i32, i32, i32
  }
  func.func @transform_32(%arg0: i32) -> (i32, i32, i32, i32) {
    %c0_i32 = arith.constant 0 : i32
    %c0_i32_0 = arith.constant 0 : i32
    %c0_i32_1 = arith.constant 0 : i32
    %c0_i32_2 = arith.constant 0 : i32
    return %arg0, %c0_i32, %c0_i32_0, %c0_i32_1 : i32, i32, i32, i32
  }
}

</mosaic_0001>

<bundles_post_ra>
// kernel: decoder_forward.1
= control target key start
LH: loop header
LB: loop body
LE: loop exit
PB: predicated region body
PF: predicated region fallthrough
CT: control target
= control target key end

     0   :  { %s7008_s6 = smov 1   ;;  %s7009_s10 = smov 2   ;;  %s8632_s0 = inlined_call_operand.smem [shape: u32[33], index: -1, kind: input, shape index: {}] }
   0x1   :  { %s7057_s5 = sld [smem:[%s8632_s0]]   ;;  %s7010_s14 = smov 3  }
   0x2   :  { %s7062_s9 = sld [smem:[%s8632_s0 + %s7008_s6]]   ;;  %s7011_s18 = smov 4  }
   0x3   :  { %s7067_s13 = sld [smem:[%s8632_s0 + %s7009_s10]]   ;;  %s7012_s22 = smov 5  }
   0x4   :  { %s7072_s17 = sld [smem:[%s8632_s0 + %s7010_s14]]   ;;  %s7013_s26 = smov 6  }
   0x5   :  { %s7077_s21 = sld [smem:[%s8632_s0 + %s7011_s18]]   ;;  %s7014_s30 = smov 7  }
   0x6   :  { %s7082_s25 = sld [smem:[%s8632_s0 + %s7012_s22]]   ;;  %s7015_s4 = smov 8  }
   0x7   :  { %8684 = sst [smem:[#allocation18_spill]] %s7057_s5  ;;  %s7016_s10 = smov 9  }
   0x8   :  { %8685 = sst [smem:[#allocation19_spill]] %s7062_s9  ;;  %s7017_s15 = smov 10  }
   0x9   :  { %8686 = sst [smem:[#allocation20_spill]] %s7067_s13  ;;  %s7018_s20 = smov 11  }
   0xa   :  { %8687 = sst [smem:[#allocation21_spill]] %s7072_s17  ;;  %s7020_s1 = smov 13  }
   0xb   :  { %8688 = sst [smem:[#allocation22_spill]] %s7077_s21  ;;  %s7021_s7 = smov 14  }
   0xc   :  { %8689 = sst [smem:[#allocation23_spill]] %s7082_s25  ;;  %s7023_s22 = smov 16  }
   0xd   :  { %s7087_s29 = sld [smem:[%s8632_s0 + %s7013_s26]]   ;;  %s7019_s26 = smov 12  }
   0xe   :  { %s7092_s3 = sld [smem:[%s8632_s0 + %s7014_s30]]   ;;  %s7024_s28 = smov 17  }
   0xf   :  { %s7097_s8 = sld [smem:[%s8632_s0 + %s7015_s4]]   ;;  %s7034_s16 = smov 27  }
  0x10   :  { %s7102_s14 = sld [smem:[%s8632_s0 + %s7016_s10]]   ;;  %s7033_s10 = smov 26  }
  0x11   :  { %s7107_s19 = sld [smem:[%s8632_s0 + %s7017_s15]]   ;;  %s7022_s15 = smov 15  }
  0x12   :  { %s7112_s24 = sld [smem:[%s8632_s0 + %s7018_s20]]   ;;  %s7035_s23 = smov 28  }
  0x13   :  { %s7117_s30 = sld [smem:[%s8632_s0 + %s7019_s26]]  }
  0x14   :  { %8690 = sst [smem:[#allocation24_spill]] %s7092_s3 }
  0x15   :  { %8691 = sst [smem:[#allocation25_spill]] %s7097_s8 }
  0x16   :  { %8692 = sst [smem:[#allocation26_spill]] %s7102_s14 }
  0x17   :  { %8693 = sst [smem:[#allocation27_spill]] %s7107_s19 }
  0x18   :  { %8694 = sst [smem:[#allocation28_spill]] %s7112_s24 }
  0x19   :  { %8695 = sst [smem:[#allocation29_spill]] %s7117_s30 }
  0x1a   :  { %s7122_s6 = sld [smem:[%s8632_s0 + %s7020_s1]]   ;;  %s7032_s1 = smov 25  }
  0x1b   :  { %s7127_s12 = sld [smem:[%s8632_s0 + %s7021_s7]]   ;;  %s7025_s7 = smov 18  }
  0x1c   :  { %s7132_s20 = sld [smem:[%s8632_s0 + %s7022_s15]]   ;;  %s7026_s15 = smov 19  }
  0x1d   :  { %s7137_s27 = sld [smem:[%s8632_s0 + %s7023_s22]]   ;;  %s7027_s22 = smov 20  }
  0x1e   :  { %s7142_s4 = sld [smem:[%s8632_s0 + %s7024_s28]]   ;;  %s7028_s28 = smov 21  }
  0x1f   :  { %s7157_s21 = sld [smem:[%s8632_s0 + %s7027_s22]]   ;;  %s7031_s22 = smov 24  }
  0x20   :  { %8696 = sst [smem:[#allocation30_spill]] %s7122_s6 }
  0x21   :  { %8697 = sst [smem:[#allocation31_spill]] %s7127_s12 }
  0x22   :  { %8698 = sst [smem:[#allocation32_spill]] %s7132_s20 }
  0x23   :  { %8699 = sst [smem:[#allocation33_spill]] %s7137_s27 }
  0x24   :  { %8700 = sst [smem:[#allocation34_spill]] %s7142_s4 }
  0x25   :  { %s7147_s12 = sld [smem:[%s8632_s0 + %s7025_s7]]   ;;  %s7029_s7 = smov 22  }
  0x26   :  { %s7152_s6 = sld [smem:[%s8632_s0 + %s7026_s15]]   ;;  %s7030_s15 = smov 23  }
  0x27   :  { %8703 = sst [smem:[#allocation37_spill]] %s7157_s21 }
  0x28   :  { %s7162_s19 = sld [smem:[%s8632_s0 + %s7028_s28]]  }
  0x29   :  { %s7167_s30 = sld [smem:[%s8632_s0 + %s7029_s7]]  }
  0x2a   :  { %s7172_s8 = sld [smem:[%s8632_s0 + %s7030_s15]]  }
  0x2b   :  { %8701 = sst [smem:[#allocation35_spill]] %s7147_s12 }
  0x2c   :  { %8702 = sst [smem:[#allocation36_spill]] %s7152_s6 }
  0x2d   :  { %s5988_s13 = sld [smem:[%s8632_s0 + %s7031_s22]]  }
  0x2e   :  { %8704 = sst [smem:[#allocation38_spill]] %s7162_s19 }
  0x2f   :  { %8705 = sst [smem:[#allocation39_spill]] %s7167_s30 }
  0x30   :  { %8706 = sst [smem:[#allocation40_spill]] %s7172_s8 }
  0x31   :  { %s7180_s19 = sld [smem:[%s8632_s0 + %s7032_s1]]   ;;  %s7036_s1 = smov 29  }
  0x32   :  { %s7185_s30 = sld [smem:[%s8632_s0 + %s7033_s10]]   ;;  %s7037_s10 = smov 30  }
  0x33   :  { %s7190_s8 = sld [smem:[%s8632_s0 + %s7034_s16]]   ;;  %v71_v0 = vstv %s5988_s13  ;;  %s7038_s16 = smov 31  }
  0x34   :  { %s7195_s24 = sld [smem:[%s8632_s0 + %s7035_s23]]   ;;  %72 = vst [vmem:[#allocation2] sm:$0x1] %v71_v0  ;;  %s7039_s23 = smov 32  }
  0x35   :  { %s7210_s22 = sld [smem:[%s8632_s0 + %s7038_s16]]  }
  0x37   :  { %8707 = sst [smem:[#allocation41_spill]] %s7180_s19 }
  0x38   :  { %8708 = sst [smem:[#allocation42_spill]] %s7185_s30 }
  0x39   :  { %8709 = sst [smem:[#allocation43_spill]] %s7190_s8 }
  0x3a   :  { %8710 = sst [smem:[#allocation44_spill]] %s7195_s24 }
  0x3b   :  { %s7200_s19 = sld [smem:[%s8632_s0 + %s7036_s1]]  }
  0x3c   :  { %s7205_s30 = sld [smem:[%s8632_s0 + %s7037_s10]]  }
  0x3d   :  { %s7215_s1 = sld [smem:[%s8632_s0 + %s7039_s23]]  }
  0x3e   :  { %73 = vsyncpa [#allocation4], 0 }
  0x3f   :  { %75 = vsyncpa [#allocation4 + $0x1], 0 }
  0x40   :  { %76 = vsyncpa [#allocation6], 0 }
  0x41   :  { %78 = vsyncpa [#allocation6 + $0x1], 0 }
  0x42   :  { %79 = vsyncpa [#allocation9], 0 }
  0x43   :  { %81 = vsyncpa [#allocation9 + $0x1], 0 }
  0x44   :  { %82 = vsyncpa [#allocation12], 0 }
  0x45   :  { %84 = vsyncpa [#allocation12 + $0x1], 0  ;;  %s7217_s13 = smov 0   ;;  %s7219_s28 = smov 0  }
  0x46   :  { %s7221_s2 = smov 0   ;;  %s7223_s10 = smov 0  }
  0x47 LB: > { %s8711_s14 = sld [smem:[#allocation26_spill]]  ;;  %s7238_s0 = sadd.s32 4294967295, %s7006_s10   ;;  %s7006_s10 = sphi %s7223_s10, %s8767_s10   ;;  %s7002_s2 = sphi %s7221_s2, %s8770_s2   ;;  %s6998_s28 = sphi %s7219_s28, %s8769_s28   ;;  %s6994_s13 = sphi %s7217_s13, %s8768_s13  }
  0x48   : > { %s8712_s8 = sld [smem:[#allocation43_spill]]  ;;  %s8643_s24 = sadd.s32 4294967294, %s7006_s10  }
  0x49   : > { %s8713_s3 = sld [smem:[#allocation24_spill]]  ;;  %s7242_s7 = sadd.s32 1, %s7006_s10  }
  0x4a   : > { %s8714_s25 = sld [smem:[#allocation23_spill]]  ;;  %s642_s11 = sadd.s32 1, %s7002_s2 }
  0x4b   : > { %s8715_s20 = sld [smem:[#allocation32_spill]]  ;;  %s639_s16 = ssub.s32 %s7006_s10, %s7242_s7 }
  0x4c   : > { %s8716_s9 = sld [smem:[#allocation19_spill]]  ;;  %p652_p0 = scmp.ne.s32.totalorder %s7002_s2, %s6998_s28 }
  0x4d   : > { %s8717_s6 = sld [smem:[#allocation36_spill]]  ;;  %p640_p1 = scmp.eq.s32.totalorder %s639_s16, 0 }
  0x4e   : > { %s8718_s4 = sld [smem:[#allocation34_spill]]  ;;  %p653_p2 = scmp.eq.s32.totalorder %s7238_s0, 1 }
  0x4f   : > { %8719 = sst [smem:[#allocation45_spill]] %s6994_s13  ;;  %p658_p3 = scmp.ne.s32.totalorder %s6998_s28, %s6994_s13 }
  0x50   : > { %8720 = sst [smem:[#allocation46_spill]] %s6998_s28  ;;  %p659_p4 = scmp.eq.s32.totalorder %s8643_s24, 1 }
  0x51   : > { %8721 = sst [smem:[#allocation47_spill]] %s7002_s2  ;;  %p7257_p5 = por %p653_p2, %p652_p0 }
  0x52   : > { %8722 = sst [smem:[#allocation48_spill]] %s7006_s10  ;;  %p7261_p6 = por %p659_p4, %p658_p3 }
  0x53   : > { %8723 = sst [smem:[#allocation49_spill]] %s7242_s7  ;;  %p6001_p7 = scmp.ge.s32.totalorder %s7006_s10, 1 }
  0x54   : > { %s7255_s15 = scalar_select %p640_p1, %s7002_s2, %s642_s11  }
  0x55   : > { %s8726_s23 = scalar_select %p7261_p6, 1, 0 }
  0x56   : > { %8724 = sst [smem:[#allocation50_spill]] %s7255_s15  ;;  %p951_p8 = scmp.lt.s32.totalorder %s7006_s10, 3 }
  0x57   : > { %8727 = sst [smem:[#allocation51_spill]] %s8726_s23 }
  0x58   : > { %p952_p9 = pnand %p6001_p7, %p951_p8 }
  0x5a   : > { %955 = sbr.rel (%p952_p9) target bundleno = 10269 (0x281d), region = 120 }
  0x5f   : > { %v1141_v1 = vld [vmem:[%s8715_s20 + $0xf8] sm:$0xff]  ;;  %v1140_v2 = vld [vmem:[%s8715_s20 + $0xf0] sm:$0xff]  ;;  %v1139_v3 = vld [vmem:[%s8715_s20 + $0xe8] sm:$0xff]  ;;  %p1079_p10 = scmp.lt.s32.totalorder %s7238_s0, 1  ;;  %s8729_s5 = sld [smem:[#allocation18_spill]]  ;;  %vm1745_vm4 = vcmask 130048  }
  0x60   : > { %1220 = vmatpush.msra.mxu2 %v1141_v1  ;;  %1180 = vmatpush.msra.mxu0 %v1140_v2  ;;  %v1173_v4 = vld [vmem:[%s8715_s20 + $0x1f8] sm:$0xff]  ;;  %v1138_v5 = vld [vmem:[%s8715_s20 + $0xe0] sm:$0xff]  ;;  %v1172_v6 = vld [vmem:[%s8715_s20 + $0x1f0] sm:$0xff]  ;;  %s8730_s27 = sld [smem:[#allocation33_spill]]  ;;  %s8655_s24 = smov 112   ;;  %vm1772_vm5 = vcmask 64512  }
  0x61   : > { %1240 = vmatpush.msra.mxu3 %v1173_v4  ;;  %1200 = vmatpush.msra.mxu1 %v1172_v6  ;;  %v1137_v7 = vld [vmem:[%s8715_s20 + $0xd8] sm:$0xff]  ;;  %v1171_v8 = vld [vmem:[%s8715_s20 + $0x1e8] sm:$0xff]  ;;  %v1136_v9 = vld [vmem:[%s8715_s20 + $0xd0] sm:$0xff]  ;;  %s7315_s26 = scalar_select %p1079_p10, %s7238_s0, 1  ;;  %vm2288_vm6 = vcmask 392192  }
  0x62   : > { %1221 = vmatpush.msra.mxu2 %v1139_v3  ;;  %1181 = vmatpush.msra.mxu0 %v1138_v5  ;;  %v1170_v10 = vld [vmem:[%s8715_s20 + $0x1e0] sm:$0xff]  ;;  %v1169_v11 = vld [vmem:[%s8715_s20 + $0x1d8] sm:$0xff]  ;;  %v1135_v12 = vld [vmem:[%s8715_s20 + $0xc8] sm:$0xff]  ;;  %s8731_s12 = sld [smem:[#allocation35_spill]]  ;;  %s8745_s15 = smov 80  }
  0x63   : > { %1241 = vmatpush.msra.mxu3 %v1171_v8  ;;  %1201 = vmatpush.msra.mxu1 %v1170_v10  ;;  %v1134_v13 = vld [vmem:[%s8715_s20 + $0xc0] sm:$0xff]  ;;  %v1168_v14 = vld [vmem:[%s8715_s20 + $0x1d0] sm:$0xff]  ;;  %v1167_v15 = vld [vmem:[%s8715_s20 + $0x1c8] sm:$0xff]  ;;  %8728 = sst [smem:[#allocation52_spill]] %s7315_s26  ;;  %s8644_s11 = sshll.u32 %s7315_s26, 4 }
  0x64   : > { %1222 = vmatpush.msra.mxu2 %v1137_v7  ;;  %1182 = vmatpush.msra.mxu0 %v1136_v9  ;;  %v1166_v16 = vld [vmem:[%s8715_s20 + $0x1c0] sm:$0xff]  ;;  %v1133_v17 = vld [vmem:[%s8715_s20 + $0xb8] sm:$0xff]  ;;  %v1132_v18 = vld [vmem:[%s8715_s20 + $0xb0] sm:$0xff]  ;;  %s8732_s21 = sld [smem:[#allocation37_spill]]  ;;  %s8749_s23 = smov 16  }
  0x65   : > { %1242 = vmatpush.msra.mxu3 %v1169_v11  ;;  %1202 = vmatpush.msra.mxu1 %v1168_v14  ;;  %v1165_v19 = vld [vmem:[%s8715_s20 + $0x1b8] sm:$0xff]  ;;  %v1164_v20 = vld [vmem:[%s8715_s20 + $0x1b0] sm:$0xff]  ;;  %v1131_v21 = vld [vmem:[%s8715_s20 + $0xa8] sm:$0xff]  ;;  %s1083_s16 = scalar_lea.vmem %s8729_s5, %s8644_s11  ;;  %s8653_s11 = smov 64  }
  0x66   : > { %1223 = vmatpush.msra.mxu2 %v1135_v12  ;;  %1183 = vmatpush.msra.mxu0 %v1134_v13  ;;  %v1130_v22 = vld [vmem:[%s8715_s20 + $0xa0] sm:$0xff]  ;;  %v1163_v23 = vld [vmem:[%s8715_s20 + $0x1a8] sm:$0xff]  ;;  %v1129_v25 = vld [vmem:[%s8715_s20 + $0x98] sm:$0xff]  ;;  %s8657_s5 = smov 80   ;;  %s8733_s17 = sld [smem:[#allocation21_spill]] }
  0x67   : > { %1243 = vmatpush.msra.mxu3 %v1167_v15  ;;  %1203 = vmatpush.msra.mxu1 %v1166_v16  ;;  %v1162_v24 = vld [vmem:[%s8715_s20 + $0x1a0] sm:$0xff]  ;;  %v1128_v26 = vld [vmem:[%s8715_s20 + $0x90] sm:$0xff]  ;;  %v1161_v27 = vld [vmem:[%s8715_s20 + $0x198] sm:$0xff]  ;;  %s8746_s2 = sld [smem:[#allocation30_spill]] }
  0x68   : > { %1224 = vmatpush.msra.mxu2 %v1133_v17  ;;  %1184 = vmatpush.msra.mxu0 %v1132_v18  ;;  %v1160_v28 = vld [vmem:[%s8715_s20 + $0x190] sm:$0xff]  ;;  %v1127_v29 = vld [vmem:[%s8715_s20 + $0x88] sm:$0xff]  ;;  %v1126_v30 = vld [vmem:[%s8715_s20 + $0x80] sm:$0xff]  ;;  %s8750_s13 = sld [smem:[#allocation31_spill]] }
  0x69   : > { %1244 = vmatpush.msra.mxu3 %v1165_v19  ;;  %1204 = vmatpush.msra.mxu1 %v1164_v20  ;;  %v1159_v31 = vld [vmem:[%s8715_s20 + $0x188] sm:$0xff]  ;;  %v1158_v32 = vld [vmem:[%s8715_s20 + $0x180] sm:$0xff]  ;;  %v1125_v33 = vld [vmem:[%s8715_s20 + $0x78] sm:$0xff] }
  0x6a   : > { %1225 = vmatpush.msra.mxu2 %v1131_v21  ;;  %1185 = vmatpush.msra.mxu0 %v1130_v22  ;;  %v1124_v34 = vld [vmem:[%s8715_s20 + $0x70] sm:$0xff]  ;;  %v1157_v35 = vld [vmem:[%s8715_s20 + $0x178] sm:$0xff]  ;;  %v1123_v37 = vld [vmem:[%s8715_s20 + $0x68] sm:$0xff] }
  0x6b   : > { %1245 = vmatpush.msra.mxu3 %v1163_v23  ;;  %1205 = vmatpush.msra.mxu1 %v1162_v24  ;;  %v1156_v36 = vld [vmem:[%s8715_s20 + $0x170] sm:$0xff]  ;;  %v1122_v38 = vld [vmem:[%s8715_s20 + $0x60] sm:$0xff]  ;;  %v1155_v39 = vld [vmem:[%s8715_s20 + $0x168] sm:$0xff] }
  0x6c   : > { %1226 = vmatpush.msra.mxu2 %v1129_v25  ;;  %1186 = vmatpush.msra.mxu0 %v1128_v26  ;;  %v1154_v40 = vld [vmem:[%s8715_s20 + $0x160] sm:$0xff]  ;;  %v1121_v41 = vld [vmem:[%s8715_s20 + $0x58] sm:$0xff]  ;;  %v1120_v42 = vld [vmem:[%s8715_s20 + $0x50] sm:$0xff] }
  0x6d   : > { %1246 = vmatpush.msra.mxu3 %v1161_v27  ;;  %1206 = vmatpush.msra.mxu1 %v1160_v28  ;;  %v1153_v43 = vld [vmem:[%s8715_s20 + $0x158] sm:$0xff]  ;;  %v1152_v44 = vld [vmem:[%s8715_s20 + $0x150] sm:$0xff]  ;;  %v1119_v45 = vld [vmem:[%s8715_s20 + $0x48] sm:$0xff]  ;;  %s8747_s7 = smov %s8746_s2 }
  0x6e   : > { %1227 = vmatpush.msra.mxu2 %v1127_v29  ;;  %1187 = vmatpush.msra.mxu0 %v1126_v30  ;;  %v1118_v46 = vld [vmem:[%s8715_s20 + $0x40] sm:$0xff]  ;;  %v1151_v47 = vld [vmem:[%s8715_s20 + $0x148] sm:$0xff]  ;;  %v1117_v49 = vld [vmem:[%s8715_s20 + $0x38] sm:$0xff] }
  0x6f   : > { %1247 = vmatpush.msra.mxu3 %v1159_v31  ;;  %1207 = vmatpush.msra.mxu1 %v1158_v32  ;;  %v1150_v48 = vld [vmem:[%s8715_s20 + $0x140] sm:$0xff]  ;;  %v1116_v50 = vld [vmem:[%s8715_s20 + $0x30] sm:$0xff]  ;;  %v1149_v51 = vld [vmem:[%s8715_s20 + $0x138] sm:$0xff] }
  0x70   : > { %1228 = vmatpush.msra.mxu2 %v1125_v33  ;;  %1188 = vmatpush.msra.mxu0 %v1124_v34  ;;  %v1148_v52 = vld [vmem:[%s8715_s20 + $0x130] sm:$0xff]  ;;  %v1115_v53 = vld [vmem:[%s8715_s20 + $0x28] sm:$0xff]  ;;  %v1114_v54 = vld [vmem:[%s8715_s20 + $0x20] sm:$0xff] }
  0x71   : > { %1248 = vmatpush.msra.mxu3 %v1157_v35  ;;  %1208 = vmatpush.msra.mxu1 %v1156_v36  ;;  %v1147_v55 = vld [vmem:[%s8715_s20 + $0x128] sm:$0xff]  ;;  %v1146_v56 = vld [vmem:[%s8715_s20 + $0x120] sm:$0xff]  ;;  %v1113_v57 = vld [vmem:[%s8715_s20 + $0x18] sm:$0xff] }
  0x72   : > { %1229 = vmatpush.msra.mxu2 %v1123_v37  ;;  %1189 = vmatpush.msra.mxu0 %v1122_v38  ;;  %v1112_v58 = vld [vmem:[%s8715_s20 + $0x10] sm:$0xff]  ;;  %v1145_v59 = vld [vmem:[%s8715_s20 + $0x118] sm:$0xff]  ;;  %v1111_v61 = vld [vmem:[%s8715_s20 + $0x8] sm:$0xff] }
  0x73   : > { %1249 = vmatpush.msra.mxu3 %v1155_v39  ;;  %1209 = vmatpush.msra.mxu1 %v1154_v40  ;;  %v1144_v60 = vld [vmem:[%s8715_s20 + $0x110] sm:$0xff]  ;;  %v1110_v62 = vld [vmem:[%s8715_s20] sm:$0xff]  ;;  %v1143_v0 = vld [vmem:[%s8715_s20 + $0x108] sm:$0xff] }
  0x74   : > { %1230 = vmatpush.msra.mxu2 %v1121_v41  ;;  %1190 = vmatpush.msra.mxu0 %v1120_v42  ;;  %v1100_v63 = vld [vmem:[%s1083_s16] sm:$0xff]  ;;  %v1101_v1 = vld [vmem:[%s1083_s16 + $0x8] sm:$0xff]  ;;  %v1296_v3 = vld [vmem:[%s8718_s4 + $0xf0] sm:$0xff]  ;;  %s8645_s16 = smov 48  }
  0x75   : > { %1250 = vmatpush.msra.mxu3 %v1153_v43  ;;  %1210 = vmatpush.msra.mxu1 %v1152_v44  ;;  %v1142_v2 = vld [vmem:[%s8715_s20 + $0x100] sm:$0xff]  ;;  %v1297_v4 = vld [vmem:[%s8718_s4 + $0xf8] sm:$0xff]  ;;  %v1328_v6 = vld [vmem:[%s8718_s4 + $0x1f0] sm:$0xff]  ;;  %s8741_s20 = smov 112  }
  0x76   : > { %1231 = vmatpush.msra.mxu2 %v1119_v45  ;;  %1191 = vmatpush.msra.mxu0 %v1118_v46  ;;  %v1294_v5 = vld [vmem:[%s8718_s4 + $0xe0] sm:$0xff]  ;;  %v1295_v7 = vld [vmem:[%s8718_s4 + $0xe8] sm:$0xff]  ;;  %v1329_v8 = vld [vmem:[%s8718_s4 + $0x1f8] sm:$0xff] }
  0x77   : > { %1251 = vmatpush.msra.mxu3 %v1151_v47  ;;  %1211 = vmatpush.msra.mxu1 %v1150_v48  ;;  %v1292_v9 = vld [vmem:[%s8718_s4 + $0xd0] sm:$0xff]  ;;  %v1293_v10 = vld [vmem:[%s8718_s4 + $0xd8] sm:$0xff]  ;;  %v1326_v11 = vld [vmem:[%s8718_s4 + $0x1e0] sm:$0xff] }
  0x78   : > { %1232 = vmatpush.msra.mxu2 %v1117_v49  ;;  %1192 = vmatpush.msra.mxu0 %v1116_v50  ;;  %v1290_v12 = vld [vmem:[%s8718_s4 + $0xc0] sm:$0xff]  ;;  %v1291_v13 = vld [vmem:[%s8718_s4 + $0xc8] sm:$0xff]  ;;  %v1288_v15 = vld [vmem:[%s8718_s4 + $0xb0] sm:$0xff] }
  0x79   : > { %1252 = vmatpush.msra.mxu3 %v1149_v51  ;;  %1212 = vmatpush.msra.mxu1 %v1148_v52  ;;  %v1327_v14 = vld [vmem:[%s8718_s4 + $0x1e8] sm:$0xff]  ;;  %v1324_v16 = vld [vmem:[%s8718_s4 + $0x1d0] sm:$0xff]  ;;  %v1325_v17 = vld [vmem:[%s8718_s4 + $0x1d8] sm:$0xff] }
  0x7a   : > { %1233 = vmatpush.msra.mxu2 %v1115_v53  ;;  %1193 = vmatpush.msra.mxu0 %v1114_v54  ;;  %v1322_v18 = vld [vmem:[%s8718_s4 + $0x1c0] sm:$0xff]  ;;  %v1289_v19 = vld [vmem:[%s8718_s4 + $0xb8] sm:$0xff]  ;;  %v1323_v20 = vld [vmem:[%s8718_s4 + $0x1c8] sm:$0xff] }
  0x7b   : > { %1253 = vmatpush.msra.mxu3 %v1147_v55  ;;  %1213 = vmatpush.msra.mxu1 %v1146_v56  ;;  %v1286_v21 = vld [vmem:[%s8718_s4 + $0xa0] sm:$0xff]  ;;  %v1320_v22 = vld [vmem:[%s8718_s4 + $0x1b0] sm:$0xff]  ;;  %v1287_v23 = vld [vmem:[%s8718_s4 + $0xa8] sm:$0xff] }
  0x7c   : > { %1234 = vmatpush.msra.mxu2 %v1113_v57  ;;  %1194 = vmatpush.msra.mxu0 %v1112_v58  ;;  %v1321_v24 = vld [vmem:[%s8718_s4 + $0x1b8] sm:$0xff]  ;;  %v1284_v25 = vld [vmem:[%s8718_s4 + $0x90] sm:$0xff]  ;;  %v1318_v26 = vld [vmem:[%s8718_s4 + $0x1a0] sm:$0xff] }
  0x7d   : > { %1254 = vmatpush.msra.mxu3 %v1145_v59  ;;  %1214 = vmatpush.msra.mxu1 %v1144_v60  ;;  %v1285_v27 = vld [vmem:[%s8718_s4 + $0x98] sm:$0xff]  ;;  %v1319_v28 = vld [vmem:[%s8718_s4 + $0x1a8] sm:$0xff]  ;;  %v1282_v29 = vld [vmem:[%s8718_s4 + $0x80] sm:$0xff] }
  0x7e   : > { %1235 = vmatpush.msra.mxu2 %v1111_v61  ;;  %1195 = vmatpush.msra.mxu0 %v1110_v62  ;;  %v1316_v30 = vld [vmem:[%s8718_s4 + $0x190] sm:$0xff]  ;;  %v1283_v31 = vld [vmem:[%s8718_s4 + $0x88] sm:$0xff]  ;;  %v1317_v32 = vld [vmem:[%s8718_s4 + $0x198] sm:$0xff] }
  0x7f   : > { %1236 = vmatmul.f32.vlgmr.msra.gmra.mxu2 %v1100_v63  ;;  %1255 = vmatpush.msra.mxu3 %v1143_v0  ;;  %v1280_v33 = vld [vmem:[%s8718_s4 + $0x70] sm:$0xff]  ;;  %v1314_v34 = vld [vmem:[%s8718_s4 + $0x180] sm:$0xff]  ;;  %v1281_v35 = vld [vmem:[%s8718_s4 + $0x78] sm:$0xff] }
  0x80   : > { %1196 = vmatmul.f32.vlgmr.msra.gmra.mxu0 %v1100_v63  ;;  %1256 = vmatmul.f32.vlgmr.msra.gmra.mxu3 %v1101_v1  ;;  %v1315_v36 = vld [vmem:[%s8718_s4 + $0x188] sm:$0xff]  ;;  %v1278_v37 = vld [vmem:[%s8718_s4 + $0x60] sm:$0xff]  ;;  %v1312_v38 = vld [vmem:[%s8718_s4 + $0x170] sm:$0xff] }
  0x81   : > { %1215 = vmatpush.msra.mxu1 %v1142_v2  ;;  %1336 = vmatpush.msrb.mxu0 %v1296_v3  ;;  %v1279_v39 = vld [vmem:[%s8718_s4 + $0x68] sm:$0xff]  ;;  %v1313_v40 = vld [vmem:[%s8718_s4 + $0x178] sm:$0xff]  ;;  %v1276_v41 = vld [vmem:[%s8718_s4 + $0x50] sm:$0xff] }
  0x82   : > { %1216 = vmatmul.f32.vlgmr.msra.gmra.mxu1 %v1101_v1  ;;  %1376 = vmatpush.msrb.mxu2 %v1297_v4  ;;  %v1310_v42 = vld [vmem:[%s8718_s4 + $0x160] sm:$0xff]  ;;  %v1277_v43 = vld [vmem:[%s8718_s4 + $0x58] sm:$0xff]  ;;  %v1311_v44 = vld [vmem:[%s8718_s4 + $0x168] sm:$0xff] }
  0x83   : > { %1337 = vmatpush.msrb.mxu0 %v1294_v5  ;;  %1356 = vmatpush.msrb.mxu1 %v1328_v6  ;;  %v1274_v45 = vld [vmem:[%s8718_s4 + $0x40] sm:$0xff]  ;;  %v1275_v46 = vld [vmem:[%s8718_s4 + $0x48] sm:$0xff]  ;;  %v1272_v47 = vld [vmem:[%s8718_s4 + $0x30] sm:$0xff] }
  0x84   : > { %1377 = vmatpush.msrb.mxu2 %v1295_v7  ;;  %1396 = vmatpush.msrb.mxu3 %v1329_v8  ;;  %v1308_v48 = vld [vmem:[%s8718_s4 + $0x150] sm:$0xff]  ;;  %v1273_v49 = vld [vmem:[%s8718_s4 + $0x38] sm:$0xff]  ;;  %v1270_v51 = vld [vmem:[%s8718_s4 + $0x20] sm:$0xff] }
  0x85   : > { %1338 = vmatpush.msrb.mxu0 %v1292_v9  ;;  %1357 = vmatpush.msrb.mxu1 %v1326_v11  ;;  %v1309_v50 = vld [vmem:[%s8718_s4 + $0x158] sm:$0xff]  ;;  %v1306_v52 = vld [vmem:[%s8718_s4 + $0x140] sm:$0xff]  ;;  %v1271_v53 = vld [vmem:[%s8718_s4 + $0x28] sm:$0xff] }
  0x86   : > { %1378 = vmatpush.msrb.mxu2 %v1293_v10  ;;  %1397 = vmatpush.msrb.mxu3 %v1327_v14  ;;  %v1307_v54 = vld [vmem:[%s8718_s4 + $0x148] sm:$0xff]  ;;  %v1268_v55 = vld [vmem:[%s8718_s4 + $0x10] sm:$0xff]  ;;  %v1269_v57 = vld [vmem:[%s8718_s4 + $0x18] sm:$0xff] }
  0x87   : > { %1339 = vmatpush.msrb.mxu0 %v1290_v12  ;;  %1358 = vmatpush.msrb.mxu1 %v1324_v16  ;;  %v1304_v56 = vld [vmem:[%s8718_s4 + $0x130] sm:$0xff]  ;;  %v1305_v58 = vld [vmem:[%s8718_s4 + $0x138] sm:$0xff]  ;;  %v1266_v59 = vld [vmem:[%s8718_s4] sm:$0xff] }
  0x88   : > { %1379 = vmatpush.msrb.mxu2 %v1291_v13  ;;  %1398 = vmatpush.msrb.mxu3 %v1325_v17  ;;  %v1302_v60 = vld [vmem:[%s8718_s4 + $0x120] sm:$0xff]  ;;  %v1267_v61 = vld [vmem:[%s8718_s4 + $0x8] sm:$0xff]  ;;  %v1300_v63 = vld [vmem:[%s8718_s4 + $0x110] sm:$0xff] }
  0x89   : > { %1340 = vmatpush.msrb.mxu0 %v1288_v15  ;;  %1359 = vmatpush.msrb.mxu1 %v1322_v18  ;;  %v1303_v62 = vld [vmem:[%s8718_s4 + $0x128] sm:$0xff]  ;;  %v1301_v0 = vld [vmem:[%s8718_s4 + $0x118] sm:$0xff]  ;;  %v1298_v1 = vld [vmem:[%s8718_s4 + $0x100] sm:$0xff] }
  0x8a   : > { %1380 = vmatpush.msrb.mxu2 %v1289_v19  ;;  %1399 = vmatpush.msrb.mxu3 %v1323_v20  ;;  %v1299_v2 = vld [vmem:[%s8718_s4 + $0x108] sm:$0xff]  ;;  %v1452_v3 = vld [vmem:[%s8717_s6 + $0xf0] sm:$0xff]  ;;  %v1453_v4 = vld [vmem:[%s8717_s6 + $0xf8] sm:$0xff]  ;;  %s8648_s4 = smov 16  }
  0x8b   : > { %1341 = vmatpush.msrb.mxu0 %v1286_v21  ;;  %1360 = vmatpush.msrb.mxu1 %v1320_v22  ;;  %v1450_v5 = vld [vmem:[%s8717_s6 + $0xe0] sm:$0xff]  ;;  %v1451_v6 = vld [vmem:[%s8717_s6 + $0xe8] sm:$0xff]  ;;  %v1448_v7 = vld [vmem:[%s8717_s6 + $0xd0] sm:$0xff] }
  0x8c   : > { %1381 = vmatpush.msrb.mxu2 %v1287_v23  ;;  %1400 = vmatpush.msrb.mxu3 %v1321_v24  ;;  %v1449_v8 = vld [vmem:[%s8717_s6 + $0xd8] sm:$0xff]  ;;  %v1484_v9 = vld [vmem:[%s8717_s6 + $0x1f0] sm:$0xff]  ;;  %v1482_v11 = vld [vmem:[%s8717_s6 + $0x1e0] sm:$0xff] }
  0x8d   : > { %1342 = vmatpush.msrb.mxu0 %v1284_v25  ;;  %1361 = vmatpush.msrb.mxu1 %v1318_v26  ;;  %v1485_v10 = vld [vmem:[%s8717_s6 + $0x1f8] sm:$0xff]  ;;  %v1446_v12 = vld [vmem:[%s8717_s6 + $0xc0] sm:$0xff]  ;;  %v1447_v13 = vld [vmem:[%s8717_s6 + $0xc8] sm:$0xff] }
  0x8e   : > { %1382 = vmatpush.msrb.mxu2 %v1285_v27  ;;  %1401 = vmatpush.msrb.mxu3 %v1319_v28  ;;  %v1483_v14 = vld [vmem:[%s8717_s6 + $0x1e8] sm:$0xff]  ;;  %v1480_v15 = vld [vmem:[%s8717_s6 + $0x1d0] sm:$0xff]  ;;  %v1481_v16 = vld [vmem:[%s8717_s6 + $0x1d8] sm:$0xff] }
  0x8f   : > { %1343 = vmatpush.msrb.mxu0 %v1282_v29  ;;  %1362 = vmatpush.msrb.mxu1 %v1316_v30  ;;  %v1444_v17 = vld [vmem:[%s8717_s6 + $0xb0] sm:$0xff]  ;;  %v1445_v18 = vld [vmem:[%s8717_s6 + $0xb8] sm:$0xff]  ;;  %v1478_v19 = vld [vmem:[%s8717_s6 + $0x1c0] sm:$0xff] }
  0x90   : > { %1383 = vmatpush.msrb.mxu2 %v1283_v31  ;;  %1402 = vmatpush.msrb.mxu3 %v1317_v32  ;;  %v1479_v20 = vld [vmem:[%s8717_s6 + $0x1c8] sm:$0xff]  ;;  %v1442_v21 = vld [vmem:[%s8717_s6 + $0xa0] sm:$0xff]  ;;  %v1476_v23 = vld [vmem:[%s8717_s6 + $0x1b0] sm:$0xff] }
  0x91   : > { %1344 = vmatpush.msrb.mxu0 %v1280_v33  ;;  %1363 = vmatpush.msrb.mxu1 %v1314_v34  ;;  %v1443_v22 = vld [vmem:[%s8717_s6 + $0xa8] sm:$0xff]  ;;  %v1477_v24 = vld [vmem:[%s8717_s6 + $0x1b8] sm:$0xff]  ;;  %v1440_v25 = vld [vmem:[%s8717_s6 + $0x90] sm:$0xff] }
  0x92   : > { %1384 = vmatpush.msrb.mxu2 %v1281_v35  ;;  %1403 = vmatpush.msrb.mxu3 %v1315_v36  ;;  %v1441_v26 = vld [vmem:[%s8717_s6 + $0x98] sm:$0xff]  ;;  %v1474_v27 = vld [vmem:[%s8717_s6 + $0x1a0] sm:$0xff]  ;;  %v1475_v28 = vld [vmem:[%s8717_s6 + $0x1a8] sm:$0xff] }
  0x93   : > { %1345 = vmatpush.msrb.mxu0 %v1278_v37  ;;  %1364 = vmatpush.msrb.mxu1 %v1312_v38  ;;  %v1438_v29 = vld [vmem:[%s8717_s6 + $0x80] sm:$0xff]  ;;  %v1439_v30 = vld [vmem:[%s8717_s6 + $0x88] sm:$0xff]  ;;  %v1472_v32 = vld [vmem:[%s8717_s6 + $0x190] sm:$0xff] }
  0x94   : > { %1385 = vmatpush.msrb.mxu2 %v1279_v39  ;;  %1404 = vmatpush.msrb.mxu3 %v1313_v40  ;;  %v1174_v31 = vld [vmem:[%s8730_s27] sm:$0x3]  ;;  %v1473_v33 = vld [vmem:[%s8717_s6 + $0x198] sm:$0xff]  ;;  %v1436_v34 = vld [vmem:[%s8717_s6 + $0x70] sm:$0xff]  ;;  %s8744_s27 = smov 96  }
  0x95   : > { %1346 = vmatpush.msrb.mxu0 %v1276_v41  ;;  %1365 = vmatpush.msrb.mxu1 %v1310_v42  ;;  %v1437_v35 = vld [vmem:[%s8717_s6 + $0x78] sm:$0xff]  ;;  %v1470_v36 = vld [vmem:[%s8717_s6 + $0x180] sm:$0xff]  ;;  %v1471_v37 = vld [vmem:[%s8717_s6 + $0x188] sm:$0xff]  ;;  %v1176_v38 = vperm.slane %v1174_v31, 0 }
  0x96   : > { %1386 = vmatpush.msrb.mxu2 %v1277_v43  ;;  %1405 = vmatpush.msrb.mxu3 %v1311_v44  ;;  %v1434_v39 = vld [vmem:[%s8717_s6 + $0x60] sm:$0xff]  ;;  %v1435_v40 = vld [vmem:[%s8717_s6 + $0x68] sm:$0xff]  ;;  %v1432_v41 = vld [vmem:[%s8717_s6 + $0x50] sm:$0xff] }
  0x97   : > { %1347 = vmatpush.msrb.mxu0 %v1274_v45  ;;  %1366 = vmatpush.msrb.mxu1 %v1308_v48  ;;  %v1433_v42 = vld [vmem:[%s8717_s6 + $0x58] sm:$0xff] }
  0x98   : > { %1387 = vmatpush.msrb.mxu2 %v1275_v46  ;;  %1406 = vmatpush.msrb.mxu3 %v1309_v50  ;;  %v1177_v46 = vperm.slane %v1174_v31, 1  ;;  %v1635_v31 = vld [vmem:[%s8714_s25 + $0x1d8] sm:$0xff] }
  0x99   : > { %1348 = vmatpush.msrb.mxu0 %v1272_v47  ;;  %1367 = vmatpush.msrb.mxu1 %v1306_v52 }
  0x9a   : > { %1388 = vmatpush.msrb.mxu2 %v1273_v49  ;;  %1407 = vmatpush.msrb.mxu3 %v1307_v54 }
  0x9b   : > { %1349 = vmatpush.msrb.mxu0 %v1270_v51  ;;  %1368 = vmatpush.msrb.mxu1 %v1304_v56  ;;  %v1430_v56 = vld [vmem:[%s8717_s6 + $0x40] sm:$0xff] }
  0x9c   : > { %1389 = vmatpush.msrb.mxu2 %v1271_v53  ;;  %1408 = vmatpush.msrb.mxu3 %v1305_v58  ;;  %v1431_v58 = vld [vmem:[%s8717_s6 + $0x48] sm:$0xff] }
  0x9d   : > { %1350 = vmatpush.msrb.mxu0 %v1268_v55  ;;  %1369 = vmatpush.msrb.mxu1 %v1302_v60  ;;  %v1428_v60 = vld [vmem:[%s8717_s6 + $0x30] sm:$0xff] }
  0x9e   : > { %1390 = vmatpush.msrb.mxu2 %v1269_v57  ;;  %1409 = vmatpush.msrb.mxu3 %v1303_v62  ;;  %v1468_v57 = vld [vmem:[%s8717_s6 + $0x170] sm:$0xff]  ;;  %v1429_v62 = vld [vmem:[%s8717_s6 + $0x38] sm:$0xff] }
  0x9f   : > { %1351 = vmatpush.msrb.mxu0 %v1266_v59  ;;  %1370 = vmatpush.msrb.mxu1 %v1300_v63  ;;  %v1469_v59 = vld [vmem:[%s8717_s6 + $0x178] sm:$0xff]  ;;  %v1467_v63 = vld [vmem:[%s8717_s6 + $0x168] sm:$0xff] }
  0xa0   : > { %1391 = vmatpush.msrb.mxu2 %v1267_v61  ;;  %1410 = vmatpush.msrb.mxu3 %v1301_v0  ;;  %v1466_v61 = vld [vmem:[%s8717_s6 + $0x160] sm:$0xff] }
  0xa1   : > { %1371 = vmatpush.msrb.mxu1 %v1298_v1  ;;  %1492 = vmatpush.msra.mxu0 %v1452_v3  ;;  %v1426_v0 = vld [vmem:[%s8717_s6 + $0x20] sm:$0xff]  ;;  %v1464_v1 = vld [vmem:[%s8717_s6 + $0x150] sm:$0xff]  ;;  %v1465_v3 = vld [vmem:[%s8717_s6 + $0x158] sm:$0xff] }
  0xa2   : > { %1411 = vmatpush.msrb.mxu3 %v1299_v2  ;;  %1532 = vmatpush.msra.mxu2 %v1453_v4  ;;  %v1427_v2 = vld [vmem:[%s8717_s6 + $0x28] sm:$0xff]  ;;  %v1424_v4 = vld [vmem:[%s8717_s6 + $0x10] sm:$0xff] }
  0xa3   : > { %1493 = vmatpush.msra.mxu0 %v1450_v5  ;;  %1512 = vmatpush.msra.mxu1 %v1484_v9  ;;  %v1462_v5 = vld [vmem:[%s8717_s6 + $0x140] sm:$0xff]  ;;  %v1460_v9 = vld [vmem:[%s8717_s6 + $0x130] sm:$0xff] }
  0xa4   : > { %1533 = vmatpush.msra.mxu2 %v1451_v6  ;;  %1552 = vmatpush.msra.mxu3 %v1485_v10  ;;  %v1425_v6 = vld [vmem:[%s8717_s6 + $0x18] sm:$0xff]  ;;  %v1423_v10 = vld [vmem:[%s8717_s6 + $0x8] sm:$0xff] }
  0xa5   : > { %1494 = vmatpush.msra.mxu0 %v1448_v7  ;;  %1513 = vmatpush.msra.mxu1 %v1482_v11  ;;  %v1463_v7 = vld [vmem:[%s8717_s6 + $0x148] sm:$0xff]  ;;  %v1461_v11 = vld [vmem:[%s8717_s6 + $0x138] sm:$0xff] }
  0xa6   : > { %1534 = vmatpush.msra.mxu2 %v1449_v8  ;;  %1553 = vmatpush.msra.mxu3 %v1483_v14  ;;  %v1422_v8 = vld [vmem:[%s8717_s6] sm:$0xff]  ;;  %v1456_v14 = vld [vmem:[%s8717_s6 + $0x110] sm:$0xff] }
  0xa7   : > { %1495 = vmatpush.msra.mxu0 %v1446_v12  ;;  %1514 = vmatpush.msra.mxu1 %v1480_v15  ;;  %v1458_v12 = vld [vmem:[%s8717_s6 + $0x120] sm:$0xff]  ;;  %v1457_v15 = vld [vmem:[%s8717_s6 + $0x118] sm:$0xff] }
  0xa8   : > { %1535 = vmatpush.msra.mxu2 %v1447_v13  ;;  %1554 = vmatpush.msra.mxu3 %v1481_v16  ;;  %v1459_v13 = vld [vmem:[%s8717_s6 + $0x128] sm:$0xff]  ;;  %v1454_v16 = vld [vmem:[%s8717_s6 + $0x100] sm:$0xff] }
  0xa9   : > { %1496 = vmatpush.msra.mxu0 %v1444_v17  ;;  %1515 = vmatpush.msra.mxu1 %v1478_v19  ;;  %v1455_v17 = vld [vmem:[%s8717_s6 + $0x108] sm:$0xff]  ;;  %v1607_v19 = vld [vmem:[%s8714_s25 + $0xf8] sm:$0xff]  ;;  %s8736_s6 = sshll.u32 %s7315_s26, 4 }
  0xaa   : > { %1536 = vmatpush.msra.mxu2 %v1445_v18  ;;  %1555 = vmatpush.msra.mxu3 %v1479_v20  ;;  %v1606_v18 = vld [vmem:[%s8714_s25 + $0xf0] sm:$0xff]  ;;  %v1604_v20 = vld [vmem:[%s8714_s25 + $0xe0] sm:$0xff] }
  0xab   : > { %1497 = vmatpush.msra.mxu0 %v1442_v21  ;;  %1516 = vmatpush.msra.mxu1 %v1476_v23  ;;  %v1605_v21 = vld [vmem:[%s8714_s25 + $0xe8] sm:$0xff]  ;;  %v1603_v23 = vld [vmem:[%s8714_s25 + $0xd8] sm:$0xff] }
  0xac   : > { %1537 = vmatpush.msra.mxu2 %v1443_v22  ;;  %1556 = vmatpush.msra.mxu3 %v1477_v24  ;;  %v1602_v22 = vld [vmem:[%s8714_s25 + $0xd0] sm:$0xff] }
  0xad   : > { %1498 = vmatpush.msra.mxu0 %v1440_v25  ;;  %1517 = vmatpush.msra.mxu1 %v1474_v27  ;;  %v1638_v24 = vld [vmem:[%s8714_s25 + $0x1f0] sm:$0xff]  ;;  %v1639_v25 = vld [vmem:[%s8714_s25 + $0x1f8] sm:$0xff]  ;;  %v1600_v27 = vld [vmem:[%s8714_s25 + $0xc0] sm:$0xff] }
  0xae   : > { %1538 = vmatpush.msra.mxu2 %v1441_v26  ;;  %1557 = vmatpush.msra.mxu3 %v1475_v28  ;;  %v1636_v26 = vld [vmem:[%s8714_s25 + $0x1e0] sm:$0xff]  ;;  %v1601_v28 = vld [vmem:[%s8714_s25 + $0xc8] sm:$0xff] }
  0xaf   : > { %1499 = vmatpush.msra.mxu0 %v1438_v29  ;;  %1518 = vmatpush.msra.mxu1 %v1472_v32  ;;  %v1637_v29 = vld [vmem:[%s8714_s25 + $0x1e8] sm:$0xff]  ;;  %v1598_v32 = vld [vmem:[%s8714_s25 + $0xb0] sm:$0xff] }
  0xb0   : > { %1539 = vmatpush.msra.mxu2 %v1439_v30  ;;  %1558 = vmatpush.msra.mxu3 %v1473_v33  ;;  %v1634_v30 = vld [vmem:[%s8714_s25 + $0x1d0] sm:$0xff]  ;;  %v1599_v33 = vld [vmem:[%s8714_s25 + $0xb8] sm:$0xff] }
  0xb1   : > { %1500 = vmatpush.msra.mxu0 %v1436_v34  ;;  %1519 = vmatpush.msra.mxu1 %v1470_v36  ;;  %v1632_v34 = vld [vmem:[%s8714_s25 + $0x1c0] sm:$0xff] }
  0xb2   : > { %1540 = vmatpush.msra.mxu2 %v1437_v35  ;;  %1559 = vmatpush.msra.mxu3 %v1471_v37  ;;  %v1633_v35 = vld [vmem:[%s8714_s25 + $0x1c8] sm:$0xff]  ;;  %v1596_v36 = vld [vmem:[%s8714_s25 + $0xa0] sm:$0xff] }
  0xb3   : > { %1501 = vmatpush.msra.mxu0 %v1434_v39  ;;  %1520 = vmatpush.msra.mxu1 %v1468_v57  ;;  %v1597_v37 = vld [vmem:[%s8714_s25 + $0xa8] sm:$0xff]  ;;  %v1631_v39 = vld [vmem:[%s8714_s25 + $0x1b8] sm:$0xff] }
  0xb4   : > { %1541 = vmatpush.msra.mxu2 %v1435_v40  ;;  %1560 = vmatpush.msra.mxu3 %v1469_v59  ;;  %v1594_v40 = vld [vmem:[%s8714_s25 + $0x90] sm:$0xff] }
  0xb5   : > { %1502 = vmatpush.msra.mxu0 %v1432_v41  ;;  %1521 = vmatpush.msra.mxu1 %v1466_v61  ;;  %v1595_v41 = vld [vmem:[%s8714_s25 + $0x98] sm:$0xff] }
  0xb6   : > { %1542 = vmatpush.msra.mxu2 %v1433_v42  ;;  %1561 = vmatpush.msra.mxu3 %v1467_v63  ;;  %v1628_v42 = vld [vmem:[%s8714_s25 + $0x1a0] sm:$0xff] }
  0xb7   : > { %1503 = vmatpush.msra.mxu0 %v1430_v56  ;;  %1522 = vmatpush.msra.mxu1 %v1464_v1 }
  0xb8   : > { %1543 = vmatpush.msra.mxu2 %v1431_v58  ;;  %1562 = vmatpush.msra.mxu3 %v1465_v3  ;;  %v1586_v3 = vld [vmem:[%s8714_s25 + $0x50] sm:$0xff] }
  0xb9   : > { %1504 = vmatpush.msra.mxu0 %v1428_v60  ;;  %1523 = vmatpush.msra.mxu1 %v1462_v5  ;;  %v1587_v5 = vld [vmem:[%s8714_s25 + $0x58] sm:$0xff] }
  0xba   : > { %1544 = vmatpush.msra.mxu2 %v1429_v62  ;;  %1563 = vmatpush.msra.mxu3 %v1463_v7  ;;  %v1584_v7 = vld [vmem:[%s8714_s25 + $0x40] sm:$0xff] }
  0xbb   : > { %1505 = vmatpush.msra.mxu0 %v1426_v0  ;;  %1524 = vmatpush.msra.mxu1 %v1460_v9  ;;  %v1585_v9 = vld [vmem:[%s8714_s25 + $0x48] sm:$0xff] }
  0xbc   : > { %1545 = vmatpush.msra.mxu2 %v1427_v2  ;;  %1564 = vmatpush.msra.mxu3 %v1461_v11  ;;  %v1582_v11 = vld [vmem:[%s8714_s25 + $0x30] sm:$0xff] }
  0xbd   : > { %1506 = vmatpush.msra.mxu0 %v1424_v4  ;;  %1525 = vmatpush.msra.mxu1 %v1458_v12  ;;  %v1624_v4 = vld [vmem:[%s8714_s25 + $0x180] sm:$0xff] }
  0xbe   : > { %1546 = vmatpush.msra.mxu2 %v1425_v6  ;;  %1565 = vmatpush.msra.mxu3 %v1459_v13  ;;  %v1625_v6 = vld [vmem:[%s8714_s25 + $0x188] sm:$0xff]  ;;  %v1620_v12 = vld [vmem:[%s8714_s25 + $0x160] sm:$0xff]  ;;  %v1583_v13 = vld [vmem:[%s8714_s25 + $0x38] sm:$0xff] }
  0xbf   : > { %1507 = vmatpush.msra.mxu0 %v1422_v8  ;;  %1526 = vmatpush.msra.mxu1 %v1456_v14  ;;  %v1622_v8 = vld [vmem:[%s8714_s25 + $0x170] sm:$0xff]  ;;  %v1621_v14 = vld [vmem:[%s8714_s25 + $0x168] sm:$0xff] }
  0xc0   : > { %1547 = vmatpush.msra.mxu2 %v1423_v10  ;;  %1566 = vmatpush.msra.mxu3 %v1457_v15  ;;  %v1623_v10 = vld [vmem:[%s8714_s25 + $0x178] sm:$0xff]  ;;  %v1580_v15 = vld [vmem:[%s8714_s25 + $0x20] sm:$0xff] }
  0xc1   : > { %1527 = vmatpush.msra.mxu1 %v1454_v16  ;;  %v1618_v16 = vld [vmem:[%s8714_s25 + $0x150] sm:$0xff] }
  0xc2   : > { %1567 = vmatpush.msra.mxu3 %v1455_v17  ;;  %v1581_v17 = vld [vmem:[%s8714_s25 + $0x28] sm:$0xff] }
  0xfd   : > { %v1197_v43 = vpop.f32.mrf.mxu0 }
  0xfe   : > { %v1198_v44 = vadd.f32 %v1197_v43, %v1176_v38  ;;  %v1630_v38 = vld [vmem:[%s8714_s25 + $0x1b0] sm:$0xff]  ;;  %v1629_v43 = vld [vmem:[%s8714_s25 + $0x1a8] sm:$0xff] }
  0xff   : > { %v1217_v45 = vpop.f32.mrf.mxu1 }
 0x100   : > { %v1218_v47 = vadd.f32 %v1217_v45, %v1198_v44  ;;  %v1330_v44 = vld [vmem:[%s8731_s12] sm:$0x3]  ;;  %s8739_s12 = sld [smem:[#allocation27_spill]] }
 0x101   : > { %v1592_v45 = vld [vmem:[%s8714_s25 + $0x80] sm:$0xff]  ;;  %v1333_v58 = vperm.slane %v1330_v44, 1 }
 0x102   : > { %v1237_v48 = vpop.f32.mrf.mxu2  ;;  %vm1260_vm0 = vcmp.ge.f32.partialorder %v1218_v47, 0.0  ;;  %v1262_v49 = vmul.f32 0.01, %v1218_v47 }
 0x103   : > { %v1238_v50 = vadd.f32 %v1237_v48, %v1177_v46  ;;  %v1257_v51 = vpop.f32.mrf.mxu3  ;;  %v1593_v46 = vld [vmem:[%s8714_s25 + $0x88] sm:$0xff]  ;;  %v1627_v48 = vld [vmem:[%s8714_s25 + $0x198] sm:$0xff] }
 0x104   : > { %v1264_v52 = vsel %vm1260_vm0, %v1218_v47, %v1262_v49  ;;  %v1626_v47 = vld [vmem:[%s8714_s25 + $0x190] sm:$0xff] }
 0x105   : > { %v1258_v53 = vadd.f32 %v1257_v51, %v1238_v50  ;;  %1352 = vmatmul.f32.vlgmr.msrb.gmra.mxu0 %v1264_v52  ;;  %1392 = vmatmul.f32.vlgmr.msrb.gmra.mxu2 %v1264_v52  ;;  %v1590_v49 = vld [vmem:[%s8714_s25 + $0x70] sm:$0xff]  ;;  %v1591_v50 = vld [vmem:[%s8714_s25 + $0x78] sm:$0xff]  ;;  %v1332_v51 = vperm.slane %v1330_v44, 0 }
 0x106   : > { %1646 = vmatpush.msrb.mxu0 %v1606_v18  ;;  %1686 = vmatpush.msrb.mxu2 %v1607_v19  ;;  %v1619_v18 = vld [vmem:[%s8714_s25 + $0x158] sm:$0xff]  ;;  %v1578_v19 = vld [vmem:[%s8714_s25 + $0x10] sm:$0xff] }
 0x107   : > { %vm1261_vm1 = vcmp.ge.f32.partialorder %v1258_v53, 0.0  ;;  %v1263_v54 = vmul.f32 0.01, %v1258_v53 }
 0x108   : > { %1647 = vmatpush.msrb.mxu0 %v1604_v20  ;;  %1687 = vmatpush.msrb.mxu2 %v1605_v21  ;;  %v1616_v20 = vld [vmem:[%s8714_s25 + $0x140] sm:$0xff]  ;;  %v1579_v21 = vld [vmem:[%s8714_s25 + $0x18] sm:$0xff] }
 0x109   : > { %v1265_v55 = vsel %vm1261_vm1, %v1258_v53, %v1263_v54  ;;  %v1588_v53 = vld [vmem:[%s8714_s25 + $0x60] sm:$0xff]  ;;  %v1589_v54 = vld [vmem:[%s8714_s25 + $0x68] sm:$0xff] }
 0x10a   : > { %1372 = vmatmul.f32.vlgmr.msrb.gmra.mxu1 %v1265_v55  ;;  %1412 = vmatmul.f32.vlgmr.msrb.gmra.mxu3 %v1265_v55 }
 0x10b   : > { %1666 = vmatpush.msrb.mxu1 %v1638_v24  ;;  %1706 = vmatpush.msrb.mxu3 %v1639_v25  ;;  %v1614_v24 = vld [vmem:[%s8714_s25 + $0x130] sm:$0xff]  ;;  %v1577_v25 = vld [vmem:[%s8714_s25 + $0x8] sm:$0xff] }
 0x10c   : > { %1648 = vmatpush.msrb.mxu0 %v1602_v22  ;;  %1688 = vmatpush.msrb.mxu2 %v1603_v23  ;;  %v1617_v22 = vld [vmem:[%s8714_s25 + $0x148] sm:$0xff]  ;;  %v1576_v23 = vld [vmem:[%s8714_s25] sm:$0xff] }
 0x10d   : > { %1667 = vmatpush.msrb.mxu1 %v1636_v26  ;;  %1707 = vmatpush.msrb.mxu3 %v1637_v29  ;;  %v1615_v26 = vld [vmem:[%s8714_s25 + $0x138] sm:$0xff]  ;;  %v1610_v29 = vld [vmem:[%s8714_s25 + $0x110] sm:$0xff] }
 0x10e   : > { %1649 = vmatpush.msrb.mxu0 %v1600_v27  ;;  %1689 = vmatpush.msrb.mxu2 %v1601_v28  ;;  %v1612_v27 = vld [vmem:[%s8714_s25 + $0x120] sm:$0xff]  ;;  %v1613_v28 = vld [vmem:[%s8714_s25 + $0x128] sm:$0xff] }
 0x10f   : > { %1668 = vmatpush.msrb.mxu1 %v1634_v30  ;;  %1708 = vmatpush.msrb.mxu3 %v1635_v31  ;;  %v1611_v30 = vld [vmem:[%s8714_s25 + $0x118] sm:$0xff]  ;;  %v1608_v31 = vld [vmem:[%s8714_s25 + $0x100] sm:$0xff] }
 0x110   : > { %1650 = vmatpush.msrb.mxu0 %v1598_v32  ;;  %1690 = vmatpush.msrb.mxu2 %v1599_v33  ;;  %v1609_v32 = vld [vmem:[%s8714_s25 + $0x108] sm:$0xff]  ;;  %v1486_v33 = vld [vmem:[%s8732_s21] sm:$0x3] }
 0x111   : > { %1669 = vmatpush.msrb.mxu1 %v1632_v34  ;;  %1709 = vmatpush.msrb.mxu3 %v1633_v35  ;;  %v1488_v34 = vperm.slane %v1486_v33, 0 }
 0x112   : > { %1651 = vmatpush.msrb.mxu0 %v1596_v36  ;;  %1691 = vmatpush.msrb.mxu2 %v1597_v37 }
 0x113   : > { %1670 = vmatpush.msrb.mxu1 %v1630_v38  ;;  %1710 = vmatpush.msrb.mxu3 %v1631_v39  ;;  %v1572_v38 = vld [vmem:[%s8716_s9] sm:$0xff] }
 0x114   : > { %1652 = vmatpush.msrb.mxu0 %v1594_v40  ;;  %1692 = vmatpush.msrb.mxu2 %v1595_v41  ;;  %v1489_v40 = vperm.slane %v1486_v33, 1  ;;  %v1727_v33 = vld [vmem:[%s8713_s3 + $0x8] sm:$0xff] }
 0x115   : > { %1671 = vmatpush.msrb.mxu1 %v1628_v42  ;;  %1711 = vmatpush.msrb.mxu3 %v1629_v43 }
 0x116   : > { %1653 = vmatpush.msrb.mxu0 %v1592_v45  ;;  %1693 = vmatpush.msrb.mxu2 %v1593_v46  ;;  %v1573_v45 = vld [vmem:[%s8716_s9 + $0x8] sm:$0xff] }
 0x117   : > { %1672 = vmatpush.msrb.mxu1 %v1626_v47  ;;  %1712 = vmatpush.msrb.mxu3 %v1627_v48  ;;  %v1640_v48 = vld [vmem:[%s7087_s29] sm:$0x3] }
 0x118   : > { %1654 = vmatpush.msrb.mxu0 %v1590_v49  ;;  %1694 = vmatpush.msrb.mxu2 %v1591_v50  ;;  %v1642_v49 = vperm.slane %v1640_v48, 0 }
 0x119   : > { %1673 = vmatpush.msrb.mxu1 %v1624_v4  ;;  %1713 = vmatpush.msrb.mxu3 %v1625_v6 }
 0x11a   : > { %1655 = vmatpush.msrb.mxu0 %v1588_v53  ;;  %1695 = vmatpush.msrb.mxu2 %v1589_v54  ;;  %v1643_v54 = vperm.slane %v1640_v48, 1 }
 0x11b   : > { %1674 = vmatpush.msrb.mxu1 %v1622_v8  ;;  %1714 = vmatpush.msrb.mxu3 %v1623_v10 }
 0x11c   : > { %1656 = vmatpush.msrb.mxu0 %v1586_v3  ;;  %1696 = vmatpush.msrb.mxu2 %v1587_v5 }
 0x11d   : > { %1675 = vmatpush.msrb.mxu1 %v1620_v12  ;;  %1715 = vmatpush.msrb.mxu3 %v1621_v14 }
 0x11e   : > { %1657 = vmatpush.msrb.mxu0 %v1584_v7  ;;  %1697 = vmatpush.msrb.mxu2 %v1585_v9 }
 0x11f   : > { %1676 = vmatpush.msrb.mxu1 %v1618_v16  ;;  %1716 = vmatpush.msrb.mxu3 %v1619_v18 }
 0x120   : > { %1658 = vmatpush.msrb.mxu0 %v1582_v11  ;;  %1698 = vmatpush.msrb.mxu2 %v1583_v13 }
 0x121   : > { %1677 = vmatpush.msrb.mxu1 %v1616_v20  ;;  %1717 = vmatpush.msrb.mxu3 %v1617_v22 }
 0x122   : > { %1659 = vmatpush.msrb.mxu0 %v1580_v15  ;;  %1699 = vmatpush.msrb.mxu2 %v1581_v17 }
 0x123   : > { %1678 = vmatpush.msrb.mxu1 %v1614_v24  ;;  %1718 = vmatpush.msrb.mxu3 %v1615_v26 }
 0x124   : > { %1660 = vmatpush.msrb.mxu0 %v1578_v19  ;;  %1700 = vmatpush.msrb.mxu2 %v1579_v21 }
 0x125   : > { %1679 = vmatpush.msrb.mxu1 %v1612_v27  ;;  %1719 = vmatpush.msrb.mxu3 %v1613_v28  ;;  %v1728_v27 = vld [vmem:[%s8713_s3 + $0x10] sm:$0xff]  ;;  %v1729_v28 = vld [vmem:[%s8713_s3 + $0x18] sm:$0xff] }
 0x126   : > { %1661 = vmatpush.msrb.mxu0 %v1576_v23  ;;  %1701 = vmatpush.msrb.mxu2 %v1577_v25 }
 0x127   : > { %1680 = vmatpush.msrb.mxu1 %v1610_v29  ;;  %1720 = vmatpush.msrb.mxu3 %v1611_v30 }
 0x129   : > { %1681 = vmatpush.msrb.mxu1 %v1608_v31  ;;  %1721 = vmatpush.msrb.mxu3 %v1609_v32  ;;  %v1726_v32 = vld [vmem:[%s8713_s3] sm:$0xff] }
 0x182   : > { %v1353_v52 = vpop.f32.mrf.mxu0 }
 0x183   : > { %v1354_v55 = vadd.f32 %v1353_v52, %v1332_v51 }
 0x187   : > { %v1373_v56 = vpop.f32.mrf.mxu1 }
 0x188   : > { %v1374_v57 = vadd.f32 %v1373_v56, %v1354_v55  ;;  %v1393_v59 = vpop.f32.mrf.mxu2 }
 0x189   : > { %v1394_v61 = vadd.f32 %v1393_v59, %v1333_v58 }
 0x18a   : > { %v1418_v60 = vmul.f32 0.01, %v1374_v57  ;;  %vm1416_vm2 = vcmp.ge.f32.partialorder %v1374_v57, 0.0 }
 0x18c   : > { %v1420_v62 = vsel %vm1416_vm2, %v1374_v57, %v1418_v60  ;;  %v1732_v60 = vld [vmem:[%s8713_s3 + $0x30] sm:$0xff] }
 0x18d   : > { %v1413_v63 = vpop.f32.mrf.mxu3  ;;  %1508 = vmatmul.f32.vlgmr.msra.gmra.mxu0 %v1420_v62  ;;  %1548 = vmatmul.f32.vlgmr.msra.gmra.mxu2 %v1420_v62  ;;  %v1730_v62 = vld [vmem:[%s8713_s3 + $0x20] sm:$0xff] }
 0x18e   : > { %v1414_v0 = vadd.f32 %v1413_v63, %v1394_v61 }
 0x190   : > { %v1419_v1 = vmul.f32 0.01, %v1414_v0  ;;  %vm1417_vm3 = vcmp.ge.f32.partialorder %v1414_v0, 0.0 }
 0x192   : > { %v1421_v2 = vsel %vm1417_vm3, %v1414_v0, %v1419_v1 }
 0x193   : > { %1528 = vmatmul.f32.vlgmr.msra.gmra.mxu1 %v1421_v2  ;;  %1568 = vmatmul.f32.vlgmr.msra.gmra.mxu3 %v1421_v2 }
 0x20a   : > { %v1509_v35 = vpop.f32.mrf.mxu0 }
 0x20b   : > { %v1510_v36 = vadd.f32 %v1509_v35, %v1488_v34  ;;  %v1733_v34 = vld [vmem:[%s8713_s3 + $0x38] sm:$0xff]  ;;  %v1731_v35 = vld [vmem:[%s8713_s3 + $0x28] sm:$0xff] }
 0x210   : > { %v1529_v37 = vpop.f32.mrf.mxu1  ;;  %v1549_v41 = vpop.f32.mrf.mxu2 }
 0x211   : > { %v1530_v39 = vadd.f32 %v1529_v37, %v1510_v36  ;;  %v1550_v43 = vadd.f32 %v1549_v41, %v1489_v40 }
 0x213   : > { %v7537_v42 = vadd.f32 %v1572_v38, %v1530_v39 }
 0x215   : > { %1662 = vmatmul.f32.vlgmr.msrb.gmra.mxu0 %v7537_v42  ;;  %1702 = vmatmul.f32.vlgmr.msrb.gmra.mxu2 %v7537_v42 }
 0x216   : > { %v1569_v44 = vpop.f32.mrf.mxu3 }
 0x217   : > { %v1570_v46 = vadd.f32 %v1569_v44, %v1550_v43 }
 0x219   : > { %v7542_v47 = vadd.f32 %v1573_v45, %v1570_v46 }
 0x21b   : > { %1682 = vmatmul.f32.vlgmr.msrb.gmra.mxu1 %v7542_v47  ;;  %1722 = vmatmul.f32.vlgmr.msrb.gmra.mxu3 %v7542_v47 }
 0x292   : > { %v1663_v50 = vpop.f32.mrf.mxu0 }
 0x293   : > { %v1664_v51 = vadd.f32 %v1663_v50, %v1642_v49 }
 0x298   : > { %v1683_v52 = vpop.f32.mrf.mxu1  ;;  %v1703_v55 = vpop.f32.mrf.mxu2 }
 0x299   : > { %v7547_v53 = vadd.f32 %v1683_v52, %v1664_v51  ;;  %v1704_v56 = vadd.f32 %v1703_v55, %v1643_v54 }
 0x29b   : > { %1810 = vrot.lane.b32.xlu0 %v7547_v53, %s8645_s16  ;;  %s8650_s16 = smov 32  }
 0x29e   : > { %v1723_v57 = vpop.f32.mrf.mxu3 }
 0x29f   : > { %v7551_v58 = vadd.f32 %v1723_v57, %v1704_v56 }
 0x2a1   : > { %1852 = vrot.lane.b32.xlu2 %v7551_v58, %s8655_s24  ;;  %1803 = vmatpush.msra.mxu1 %v7551_v58 }
 0x2a3   : > { %1808 = vrot.lane.b32.xlu0 %v7547_v53, %s8655_s24  ;;  %1915 = vmatpush.msrb.mxu1 %v1733_v34 }
 0x2a5   : > { %1916 = vmatpush.msrb.mxu1 %v1731_v35  ;;  %v2212_v35 = vld [vmem:[%s8711_s14 + $0x50] sm:$0xff] }
 0x2a9   : > { %1743 = vrot.lane.b32.xlu2 %v7547_v53, %s8653_s11 }
 0x2ab   : > { %1966 = vrot.lane.b32.xlu0 %v7547_v53, %s8650_s16 }
 0x2b1   : > { %2080 = vrot.lane.b32.xlu2 %v7547_v53, %s8648_s4  ;;  %s8652_s4 = sshll.u32 %s7315_s26, 3 }
 0x2b2   : > { %s1092_s16 = scalar_lea.vmem %s8733_s17, %s8652_s4  ;;  %s7589_s4 = sand.u32 1, %s6998_s28  }
 0x2b3   : > { %2078 = vrot.lane.b32.xlu0 %v7547_v53, %s8657_s5  ;;  %v1104_v2 = vld [vmem:[%s1092_s16] sm:$0xff]  ;;  %s8659_s16 = smov 96   ;;  %s7592_s11 = sshll.u32 %s7589_s4, 5 }
 0x2b4   : > { %v6015_v3 = vadd.f32 -1.0, %v1104_v2  ;;  %s7595_s24 = scalar_lea.vmem [#allocation5], %s7592_s11  ;;  %s8740_s17 = sld [smem:[#allocation22_spill]] }
 0x2b5   : > { %s7743_s28 = scalar_lea.vmem [#allocation10], %s7592_s11  ;;  %s8052_s10 = scalar_lea.vmem [#allocation11], %s7592_s11 }
 0x2b6   : > { %v7578_v4 = vmul.f32 1e+09, %v6015_v3 }
 0x2ba   : > { %s1095_s21 = scalar_lea.vmem %s8740_s17, %s7315_s26  ;;  %s8742_s17 = smov 64  }
 0x2bb   : > { %s8751_s26 = smov %s8750_s13 }
 0x2fb   : > { %v1853_v59 = vpop.permute.xlu2 %1852 }
 0x2fc   : > { %1873 = vmatpush.msra.mxu3 %v1853_v59 }
 0x2fe   : > { %1958 = vmatpush.msrb.mxu3 %v1729_v28 }
 0x300   : > { %1959 = vmatpush.msrb.mxu3 %v1727_v33  ;;  %v2229_v33 = vld [vmem:[%s8711_s14 + $0xd8] sm:$0xff] }
 0x303   : > { %v1744_v61 = vpop.permute.xlu2 %1743 }
 0x304   : > { %6017 = vmatpush.xpose.msk.msra.mxu0 %vm1745_vm4, %v1744_v61 }
 0x307   : > { %6018 = vmatmul.msk.f32.vlgmr.msra.gmra.mxu0 %vm1745_vm4, %v7547_v53 }
 0x308   : > { %1895 = vmatpush.msrb.mxu0 %v1732_v60 }
 0x30a   : > { %1896 = vmatpush.msrb.mxu0 %v1730_v62  ;;  %v1736_v62 = vld [vmem:[%s8713_s3 + $0x50] sm:$0xff] }
 0x30b   : > { %v2081_v13 = vpop.permute.xlu2 %2080 }
 0x30d   : > { %v1811_v63 = vpop.permute.xlu0 %1810 }
 0x30e   : > { %6020 = vmatpush.xpose.msk.msra.mxu2 %vm1745_vm4, %v1811_v63  ;;  %v1737_v63 = vld [vmem:[%s8713_s3 + $0x58] sm:$0xff] }
 0x312   : > { %1938 = vmatpush.msrb.mxu2 %v1728_v27 }
 0x314   : > { %1939 = vmatpush.msrb.mxu2 %v1726_v32  ;;  %v2213_v32 = vld [vmem:[%s8711_s14 + $0x58] sm:$0xff] }
 0x315   : > { %v1809_v0 = vpop.permute.xlu0 %1808 }
 0x316   : > { %6021 = vmatmul.msk.f32.vlgmr.msra.gmra.mxu2 %vm1745_vm4, %v1809_v0 }
 0x317   : > { %2050 = vmatpush.msra.mxu2 %v1736_v62 }
 0x31d   : > { %v1967_v1 = vpop.permute.xlu0 %1966 }
 0x31e   : > { %6028 = vmatpush.xpose.msk.msra.mxu0 %vm1745_vm4, %v1967_v1 }
 0x325   : > { %v2079_v39 = vpop.permute.xlu0 %2078 }
 0x384   : > { %v1767_v5 = vpop.f32.mrf.mxu0 }
 0x385   : > { %v1770_v6 = vmul.f32 0.25, %v1767_v5 }
 0x387   : > { %v1771_v7 = vadd.f32 %v1770_v6, %v7578_v4 }
 0x389   : > { %v1773_v8 = vsel %vm1772_vm5, %v1771_v7, -inf }
 0x38a   : > { %1774 = vmax.xlane.f32.xlu2 %v1773_v8  ;;  %v1734_v8 = vld [vmem:[%s8713_s3 + $0x40] sm:$0xff] }
 0x38b   : > { %2051 = vmatpush.msra.mxu2 %v1734_v8 }
 0x399   : > { %v1833_v9 = vpop.f32.mrf.mxu2 }
 0x39a   : > { %v1836_v10 = vmul.f32 0.25, %v1833_v9  ;;  %v1735_v9 = vld [vmem:[%s8713_s3 + $0x48] sm:$0xff] }
 0x39c   : > { %v1837_v11 = vadd.f32 %v1836_v10, %v7578_v4  ;;  %v1740_v10 = vld [vmem:[%s8713_s3 + $0x70] sm:$0xff] }
 0x39e   : > { %v1838_v12 = vsel %vm1772_vm5, %v1837_v11, -inf }
 0x39f   : > { %1839 = vmax.xlane.f32.xlu1 %v1838_v12  ;;  %v1738_v12 = vld [vmem:[%s8713_s3 + $0x60] sm:$0xff] }
 0x3fd   : > { %v1775_v14 = vpop.xlane.xlu2 %1774 }
 0x3fe   : > { %v1776_v15 = vsub.f32 %v1771_v7, %v1775_v14  ;;  %v2217_v14 = vld [vmem:[%s8711_s14 + $0x78] sm:$0xff] }
 0x400   : > { %v1777_v16 = vmul.f32 1.442695, %v1776_v15  ;;  %v2233_v15 = vld [vmem:[%s8711_s14 + $0xf8] sm:$0xff] }
 0x402   : > { %6660 = vpow2.f32 %v1777_v16 }
 0x408   : > { %v6661_v17 = vpop.eup %6660 }
 0x409   : > { %v1779_v18 = vsel %vm1772_vm5, %v6661_v17, 0.0 }
 0x40a   : > { %1780 = vadd.xlane.f32.xlu2 %v1779_v18  ;;  %v2232_v18 = vld [vmem:[%s8711_s14 + $0xf0] sm:$0xff] }
 0x412   : > { %v1840_v19 = vpop.xlane.xlu1 %1839 }
 0x413   : > { %v1841_v20 = vsub.f32 %v1837_v11, %v1840_v19  ;;  %v1741_v11 = vld [vmem:[%s8713_s3 + $0x78] sm:$0xff]  ;;  %v2215_v19 = vld [vmem:[%s8711_s14 + $0x68] sm:$0xff] }
 0x415   : > { %v1842_v21 = vmul.f32 1.442695, %v1841_v20  ;;  %v2231_v20 = vld [vmem:[%s8711_s14 + $0xe8] sm:$0xff] }
 0x417   : > { %6662 = vpow2.f32 %v1842_v21 }
 0x41d   : > { %v6663_v22 = vpop.eup %6662 }
 0x41e   : > { %v1844_v23 = vsel %vm1772_vm5, %v6663_v22, 0.0 }
 0x41f   : > { %1845 = vadd.xlane.f32.xlu1 %v1844_v23 }
 0x438   : > { %1964 = vrot.lane.b32.xlu1 %v7547_v53, %s8659_s16 }
 0x47d   : > { %v1781_v24 = vpop.xlane.xlu2 %1780 }
 0x47e   : > { %6664 = vrcp.f32 %v1781_v24 }
 0x484   : > { %v6665_v25 = vpop.eup %6664 }
 0x485   : > { %v1783_v26 = vmul.f32 %v6665_v25, %v6661_v17  ;;  %v2216_v17 = vld [vmem:[%s8711_s14 + $0x70] sm:$0xff] }
 0x487   : > { %1784 = vst.msk [vmem:[%s7595_s24] sm:$0xff] %vm1772_vm5, %v1783_v26  ;;  %6019 = vmatmul.msk.f32.vlgmr.msra.gmra.mxu1 %vm1772_vm5, %v1783_v26 }
 0x492   : > { %v1846_v29 = vpop.xlane.xlu1 %1845 }
 0x493   : > { %6666 = vrcp.f32 %v1846_v29 }
 0x499   : > { %v6667_v30 = vpop.eup %6666 }
 0x49a   : > { %v1848_v31 = vmul.f32 %v6667_v30, %v6663_v22  ;;  %v2214_v30 = vld [vmem:[%s8711_s14 + $0x60] sm:$0xff] }
 0x49c   : > { %6022 = vst.msk [vmem:[%s7595_s24 + $0x8] sm:$0xff] %vm1772_vm5, %v1848_v31  ;;  %6023 = vmatmul.msk.f32.vlgmr.msra.gmra.mxu3 %vm1772_vm5, %v1848_v31  ;;  %v2230_v31 = vld [vmem:[%s8711_s14 + $0xe0] sm:$0xff] }
 0x49d   : > { %2070 = vmatpush.msra.mxu3 %v1737_v63 }
 0x49f   : > { %2071 = vmatpush.msra.mxu3 %v1735_v9 }
 0x4aa   : > { %v1965_v38 = vpop.permute.xlu1 %1964 }
 0x504   : > { %v1805_v36 = vpop.f32.mrf.mxu1 }
 0x505   : > { %6026 = vmatmul.msk.f32.vlgmr.msrb.gmra.mxu2 %vm1745_vm4, %v1805_v36  ;;  %6027 = vmatmul.msk.f32.vlgmr.msrb.gmra.mxu3 %vm1745_vm4, %v1805_v36  ;;  %v2228_v36 = vld [vmem:[%s8711_s14 + $0xd0] sm:$0xff] }
 0x506   : > { %2164 = vmatpush.msrb.mxu2 %v1740_v10  ;;  %2184 = vmatpush.msrb.mxu3 %v1741_v11 }
 0x508   : > { %2165 = vmatpush.msrb.mxu2 %v1738_v12 }
 0x51f   : > { %v1875_v37 = vpop.f32.mrf.mxu3 }
 0x520   : > { %6024 = vmatmul.msk.f32.vlgmr.msrb.gmra.mxu0 %vm1745_vm4, %v1875_v37  ;;  %6025 = vmatmul.msk.f32.vlgmr.msrb.gmra.mxu1 %vm1745_vm4, %v1875_v37  ;;  %v2211_v37 = vld [vmem:[%s8711_s14 + $0x48] sm:$0xff] }
 0x521   : > { %6034 = vmatpush.xpose.msk.msrb.mxu0 %vm1745_vm4, %v2081_v13  ;;  %v1739_v13 = vld [vmem:[%s8713_s3 + $0x68] sm:$0xff] }
 0x522   : > { %2185 = vmatpush.msrb.mxu3 %v1739_v13 }
 0x528   : > { %6029 = vmatmul.msk.f32.vlgmr.msra.gmra.mxu0 %vm1745_vm4, %v1965_v38  ;;  %v2227_v38 = vld [vmem:[%s8711_s14 + $0xc8] sm:$0xff] }
 0x529   : > { %2238 = vmatpush.msra.mxu0 %v2217_v14 }
 0x52b   : > { %2239 = vmatpush.msra.mxu0 %v2216_v17 }
 0x52d   : > { %2240 = vmatpush.msra.mxu0 %v2215_v19 }
 0x52f   : > { %2241 = vmatpush.msra.mxu0 %v2214_v30 }
 0x530   : > { %6035 = vmatmul.msk.f32.vlgmr.msrb.gmra.mxu0 %vm1745_vm4, %v2079_v39  ;;  %v2210_v39 = vld [vmem:[%s8711_s14 + $0x40] sm:$0xff] }
 0x531   : > { %2242 = vmatpush.msra.mxu0 %v2213_v32 }
 0x533   : > { %2243 = vmatpush.msra.mxu0 %v2212_v35 }
 0x535   : > { %2244 = vmatpush.msra.mxu0 %v2211_v37 }
 0x537   : > { %2245 = vmatpush.msra.mxu0 %v2210_v39 }
 0x588   : > { %v1961_v62 = vpop.f32.mrf.mxu3 }
 0x59d   : > { %v7616_v40 = vpop.f32.mrf.mxu0  ;;  %v7644_v16 = vpop.f32.mrf.mxu1 }
 0x5a5   : > { %v1989_v41 = vpop.f32.mrf.mxu0 }
 0x5a6   : > { %v1992_v43 = vmul.f32 0.25, %v1989_v41  ;;  %v2226_v41 = vld [vmem:[%s8711_s14 + $0xc0] sm:$0xff] }
 0x5a8   : > { %v1993_v44 = vadd.f32 %v1992_v43, %v7578_v4  ;;  %v2209_v43 = vld [vmem:[%s8711_s14 + $0x38] sm:$0xff] }
 0x5a9   : > { %2246 = vmatpush.msra.mxu0 %v2209_v43 }
 0x5aa   : > { %v1994_v45 = vsel %vm1772_vm5, %v1993_v44, -inf }
 0x5ab   : > { %1995 = vmax.xlane.f32.xlu0 %v1994_v45  ;;  %v2208_v45 = vld [vmem:[%s8711_s14 + $0x30] sm:$0xff] }
 0x5ac   : > { %2247 = vmatpush.msra.mxu0 %v2208_v45 }
 0x5ad   : > { %v2103_v46 = vpop.f32.mrf.mxu0 }
 0x5ae   : > { %v2106_v48 = vmul.f32 0.25, %v2103_v46  ;;  %v2224_v46 = vld [vmem:[%s8711_s14 + $0xb0] sm:$0xff] }
 0x5b0   : > { %v2107_v49 = vadd.f32 %v2106_v48, %v7578_v4  ;;  %v2207_v48 = vld [vmem:[%s8711_s14 + $0x28] sm:$0xff] }
 0x5b1   : > { %2248 = vmatpush.msra.mxu0 %v2207_v48  ;;  %v2320_v48 = vld [vmem:[%s8746_s2 + $0x10] sm:$0xff]  ;;  %s8748_s2 = smov 32  }
 0x5b2   : > { %v2108_v50 = vsel %vm1772_vm5, %v2107_v49, -inf }
 0x5b3   : > { %2109 = vmax.xlane.f32.xlu1 %v2108_v50  ;;  %v2206_v50 = vld [vmem:[%s8711_s14 + $0x20] sm:$0xff] }
 0x5b4   : > { %2249 = vmatpush.msra.mxu0 %v2206_v50 }
 0x61e   : > { %v1996_v51 = vpop.xlane.xlu0 %1995 }
 0x61f   : > { %v1997_v52 = vsub.f32 %v1993_v44, %v1996_v51  ;;  %v2225_v44 = vld [vmem:[%s8711_s14 + $0xb8] sm:$0xff]  ;;  %v2222_v51 = vld [vmem:[%s8711_s14 + $0xa0] sm:$0xff] }
 0x621   : > { %v1998_v53 = vmul.f32 1.442695, %v1997_v52  ;;  %v2205_v52 = vld [vmem:[%s8711_s14 + $0x18] sm:$0xff] }
 0x622   : > { %2250 = vmatpush.msra.mxu0 %v2205_v52 }
 0x623   : > { %6668 = vpow2.f32 %v1998_v53  ;;  %v2221_v53 = vld [vmem:[%s8711_s14 + $0x98] sm:$0xff] }
 0x626   : > { %v2110_v54 = vpop.xlane.xlu1 %2109 }
 0x627   : > { %v2111_v55 = vsub.f32 %v2107_v49, %v2110_v54  ;;  %v2223_v49 = vld [vmem:[%s8711_s14 + $0xa8] sm:$0xff]  ;;  %v2204_v54 = vld [vmem:[%s8711_s14 + $0x10] sm:$0xff] }
 0x628   : > { %2251 = vmatpush.msra.mxu0 %v2204_v54  ;;  %v2322_v54 = vld [vmem:[%s8747_s7 + $0x20] sm:$0xff] }
 0x629   : > { %v6669_v56 = vpop.eup %6668  ;;  %v2112_v57 = vmul.f32 1.442695, %v2111_v55  ;;  %v2220_v55 = vld [vmem:[%s8711_s14 + $0x90] sm:$0xff] }
 0x62a   : > { %v2000_v59 = vsel %vm1772_vm5, %v6669_v56, 0.0 }
 0x62b   : > { %6670 = vpow2.f32 %v2112_v57  ;;  %2001 = vadd.xlane.f32.xlu2 %v2000_v59  ;;  %v2219_v57 = vld [vmem:[%s8711_s14 + $0x88] sm:$0xff]  ;;  %v2202_v59 = vld [vmem:[%s8711_s14] sm:$0xff] }
 0x631   : > { %v6671_v60 = vpop.eup %6670 }
 0x632   : > { %v2114_v61 = vsel %vm1772_vm5, %v6671_v60, 0.0 }
 0x633   : > { %2115 = vadd.xlane.f32.xlu0 %v2114_v61  ;;  %v1941_v61 = vpop.f32.mrf.mxu2 }
 0x643   : > { %2007 = vrot.lane.b32.xlu2 %v7551_v58, %s8659_s16  ;;  %s8735_s16 = sld [smem:[#allocation20_spill]] }
 0x647   : > { %2121 = vrot.lane.b32.xlu0 %v7551_v58, %s8657_s5  ;;  %s8734_s5 = sld [smem:[#allocation28_spill]] }
 0x649   : > { %s7663_s9 = scalar_lea.vmem %s8735_s16, %s8736_s6  ;;  %s8737_s6 = sld [smem:[#allocation25_spill]] }
 0x64a   : > { %v1102_v29 = vld [vmem:[%s7663_s9] sm:$0xff]  ;;  %v1103_v34 = vld [vmem:[%s7663_s9 + $0x8] sm:$0xff]  ;;  %s8738_s16 = sld [smem:[#allocation29_spill]] }
 0x64d   : > { %v2283_v21 = vld [vmem:[%s8734_s5 + $0x28] sm:$0xff]  ;;  %v2282_v23 = vld [vmem:[%s8734_s5 + $0x20] sm:$0xff]  ;;  %v2281_v24 = vld [vmem:[%s8734_s5 + $0x18] sm:$0xff] }
 0x64e   : > { %v2280_v25 = vld [vmem:[%s8734_s5 + $0x10] sm:$0xff]  ;;  %v2279_v26 = vld [vmem:[%s8734_s5 + $0x8] sm:$0xff]  ;;  %v2278_v27 = vld [vmem:[%s8734_s5] sm:$0xff] }
 0x69e   : > { %v2002_v0 = vpop.xlane.xlu2 %2001 }
 0x69f   : > { %6672 = vrcp.f32 %v2002_v0 }
 0x6a5   : > { %v6673_v1 = vpop.eup %6672 }
 0x6a6   : > { %v2004_v2 = vmul.f32 %v6673_v1, %v6669_v56  ;;  %v2008_v3 = vpop.permute.xlu2 %2007  ;;  %v2116_v5 = vpop.xlane.xlu0 %2115  ;;  %v2203_v56 = vld [vmem:[%s8711_s14 + $0x8] sm:$0xff]  ;;  %v1942_v1 = vadd.f32 %v1941_v61, %v7616_v40 }
 0x6a7   : > { %6674 = vrcp.f32 %v2116_v5  ;;  %2028 = vmatpush.msra.mxu1 %v2008_v3  ;;  %2252 = vmatpush.msra.mxu0 %v2203_v56  ;;  %v2194_v3 = vld [vmem:[%s8737_s6] sm:$0x3] }
 0x6a8   : > { %6030 = vst.msk [vmem:[%s7595_s24 + $0x10] sm:$0xff] %vm1772_vm5, %v2004_v2  ;;  %6031 = vmatmul.msk.f32.vlgmr.msra.gmra.mxu1 %vm1772_vm5, %v2004_v2  ;;  %v1962_v2 = vadd.f32 %v1961_v62, %v7644_v16  ;;  %v2196_v9 = vperm.slane %v2194_v3, 0  ;;  %v2197_v11 = vperm.slane %v2194_v3, 1 }
 0x6a9   : > { %2253 = vmatpush.msra.mxu0 %v2202_v59  ;;  %v2318_v59 = vld [vmem:[%s8747_s7] sm:$0xff] }
 0x6ab   : > { %2545 = vmatpush.msrb.mxu0 %v2320_v48 }
 0x6ad   : > { %v6675_v58 = vpop.eup %6674  ;;  %2546 = vmatpush.msrb.mxu0 %v2318_v59  ;;  %v2331_v59 = vld [vmem:[%s8747_s7 + $0x68] sm:$0xff] }
 0x6ae   : > { %v2118_v6 = vmul.f32 %v6675_v58, %v6671_v60  ;;  %v2218_v60 = vld [vmem:[%s8711_s14 + $0x80] sm:$0xff] }
 0x6b0   : > { %6036 = vst.msk [vmem:[%s7595_s24 + $0x18] sm:$0xff] %vm1772_vm5, %v2118_v6 }
 0x6b9   : > { %v2122_v7 = vpop.permute.xlu0 %2121 }
 0x6ba   : > { %2142 = vmatpush.msrb.mxu1 %v2122_v7 }
 0x6bb   : > { %6037 = vmatmul.msk.f32.vlgmr.msrb.gmra.mxu1 %vm1772_vm5, %v2118_v6 }
 0x6bc   : > { %2258 = vmatpush.msra.mxu1 %v2233_v15  ;;  %v6652_v15 = vld [vmem:[%s8738_s16] ss:$0 sm:$0xff] }
 0x6be   : > { %2259 = vmatpush.msra.mxu1 %v2232_v18 }
 0x6c0   : > { %2260 = vmatpush.msra.mxu1 %v2231_v20 }
 0x6c2   : > { %2261 = vmatpush.msra.mxu1 %v2230_v31 }
 0x6c4   : > { %2262 = vmatpush.msra.mxu1 %v2229_v33 }
 0x6c6   : > { %2263 = vmatpush.msra.mxu1 %v2228_v36 }
 0x6c8   : > { %2264 = vmatpush.msra.mxu1 %v2227_v38 }
 0x6ca   : > { %2265 = vmatpush.msra.mxu1 %v2226_v41 }
 0x6cc   : > { %2266 = vmatpush.msra.mxu1 %v2225_v44 }
 0x6ce   : > { %2267 = vmatpush.msra.mxu1 %v2224_v46 }
 0x6d0   : > { %2268 = vmatpush.msra.mxu1 %v2223_v49  ;;  %v2321_v49 = vld [vmem:[%s8747_s7 + $0x18] sm:$0xff] }
 0x6d2   : > { %2269 = vmatpush.msra.mxu1 %v2222_v51  ;;  %v2324_v51 = vld [vmem:[%s8747_s7 + $0x30] sm:$0xff] }
 0x6d4   : > { %2270 = vmatpush.msra.mxu1 %v2221_v53 }
 0x6d6   : > { %2271 = vmatpush.msra.mxu1 %v2220_v55 }
 0x6d8   : > { %2272 = vmatpush.msra.mxu1 %v2219_v57 }
 0x6da   : > { %2273 = vmatpush.msra.mxu1 %v2218_v60  ;;  %v2319_v60 = vld [vmem:[%s8747_s7 + $0x8] sm:$0xff] }
 0x6dc   : > { %2565 = vmatpush.msrb.mxu1 %v2321_v49 }
 0x6de   : > { %2566 = vmatpush.msrb.mxu1 %v2319_v60  ;;  %v6099_v60 = vld [vmem:[%s8714_s25 + $0x2f0] sm:$0xff] }
 0x725   : > { %v2030_v22 = vpop.f32.mrf.mxu1 }
 0x726   : > { %6032 = vmatmul.msk.f32.vlgmr.msra.gmra.mxu2 %vm1745_vm4, %v2030_v22  ;;  %6033 = vmatmul.msk.f32.vlgmr.msra.gmra.mxu3 %vm1745_vm4, %v2030_v22 }
 0x727   : > { %2305 = vmatpush.msra.mxu2 %v2283_v21 }
 0x729   : > { %2306 = vmatpush.msra.mxu2 %v2282_v23  ;;  %v1107_v23 = vld [vmem:[%s1095_s21] sm:$0x1]  ;;  %s8743_s21 = smov 48  }
 0x72b   : > { %2307 = vmatpush.msra.mxu2 %v2281_v24  ;;  %v6016_v24 = vadd.f32 -1.0, %v1107_v23 }
 0x72d   : > { %2308 = vmatpush.msra.mxu2 %v2280_v25  ;;  %v1109_v25 = vmul.f32 1e+09, %v6016_v24 }
 0x72f   : > { %2309 = vmatpush.msra.mxu2 %v2279_v26  ;;  %v7724_v26 = vperm.slane %v1109_v25, 0 }
 0x731   : > { %2310 = vmatpush.msra.mxu2 %v2278_v27 }
 0x738   : > { %v2144_v28 = vpop.f32.mrf.mxu1 }
 0x739   : > { %6038 = vmatmul.msk.f32.vlgmr.msrb.gmra.mxu2 %vm1745_vm4, %v2144_v28  ;;  %6039 = vmatmul.msk.f32.vlgmr.msrb.gmra.mxu3 %vm1745_vm4, %v2144_v28 }
 0x741   : > { %6040 = vmatmul.msk.f32.vlgmr.msra.gmra.mxu2 %vm2288_vm6, %v1102_v29 }
 0x749   : > { %6041 = vmatmul.msk.f32.gmra.mxu2 %vm2288_vm6, %v1103_v34 }
 0x7a9   : > { %v2053_v63 = vpop.f32.mrf.mxu2  ;;  %v2073_v0 = vpop.f32.mrf.mxu3 }
 0x7aa   : > { %v2076_v5 = vadd.f32 %v2053_v63, %v1942_v1  ;;  %v2077_v58 = vadd.f32 %v2073_v0, %v1962_v2 }
 0x7bc   : > { %v2167_v6 = vpop.f32.mrf.mxu2  ;;  %v2187_v7 = vpop.f32.mrf.mxu3 }
 0x7bd   : > { %v2190_v8 = vadd.f32 %v2167_v6, %v2076_v5  ;;  %v2191_v10 = vadd.f32 %v2187_v7, %v2077_v58  ;;  %v2325_v7 = vld [vmem:[%s8747_s7 + $0x38] sm:$0xff] }
 0x7bf   : > { %v2192_v12 = vadd.f32 %v2190_v8, %v7537_v42  ;;  %v2193_v13 = vadd.f32 %v2191_v10, %v7542_v47  ;;  %v6653_v42 = vld [vmem:[%s8739_s12] ss:$0 sm:$0xff] }
 0x7c1   : > { %v7700_v14 = vadd.f32 %v2196_v9, %v2192_v12  ;;  %v7702_v40 = vadd.f32 %v2197_v11, %v2193_v13  ;;  %v2323_v11 = vld [vmem:[%s8747_s7 + $0x28] sm:$0xff] }
 0x7c3   : > { %2254 = vmatmul.f32.vlgmr.msra.gmra.mxu0 %v7700_v14  ;;  %2274 = vmatmul.f32.vlgmr.msra.gmra.mxu1 %v7702_v40 }
 0x7c4   : > { %v2312_v16 = vpop.f32.mrf.mxu2 }
 0x7c5   : > { %v2313_v17 = vadd.f32 %v6652_v15, %v2312_v16 }
 0x7c7   : > { %2411 = vrot.lane.b32.xlu2 %v2313_v17, %s8741_s20 }
 0x7cc   : > { %v2315_v18 = vpop.f32.mrf.mxu2 }
 0x7cd   : > { %v7708_v19 = vadd.f32 %v6652_v15, %v2315_v18 }
 0x7cf   : > { %6042 = vmatpush.xpose.msk.msra.mxu3 %vm1745_vm4, %v7708_v19  ;;  %2413 = vrot.lane.b32.xlu0 %v7708_v19, %s8741_s20  ;;  %v7730_v36 = vpack.i.bf16 %v2313_v17, %v7708_v19 }
 0x7d3   : > { %6043 = vmatpush.xpose.msk.msra.mxu3 %vm1745_vm4, %v2313_v17 }
 0x821   : > { %v2412_v52 = vpop.permute.xlu2 %2411 }
 0x840   : > { %v2255_v47 = vpop.f32.mrf.mxu0  ;;  %v2275_v21 = vpop.f32.mrf.mxu1 }
 0x841   : > { %v2256_v20 = vadd.f32 %v6653_v42, %v2255_v47  ;;  %v2414_v44 = vpop.permute.xlu0 %2413 }
 0x843   : > { %v7716_v22 = vadd.f32 %v2275_v21, %v2256_v20 }
 0x845   : > { %2409 = vrot.lane.b32.xlu0 %v7716_v22, %s8741_s20  ;;  %6044 = vmatmul.msk.f32.vlgmr.msra.gmra.mxu3 %vm1745_vm4, %v7716_v22 }
 0x8b7   : > { %v2410_v55 = vpop.permute.xlu0 %2409 }
 0x8c8   : > { %v2360_v27 = vpop.f32.mrf.mxu3 }
 0x8c9   : > { %v2363_v28 = vmul.f32 0.25, %v2360_v27 }
 0x8cb   : > { %v2367_v29 = vadd.f32 %v7724_v26, %v2363_v28 }
 0x8cd   : > { %v2368_v30 = vsel %vm1745_vm4, %v2367_v29, -inf }
 0x8ce   : > { %2369 = vmax.xlane.f32.xlu1 %v2368_v30 }
 0x941   : > { %v2370_v31 = vpop.xlane.xlu1 %2369 }
 0x942   : > { %v2371_v32 = vsub.f32 %v2367_v29, %v2370_v31 }
 0x944   : > { %v2372_v33 = vmul.f32 1.442695, %v2371_v32 }
 0x946   : > { %6676 = vpow2.f32 %v2372_v33 }
 0x94c   : > { %v6677_v34 = vpop.eup %6676 }
 0x94d   : > { %v2374_v35 = vsel %vm1745_vm4, %v6677_v34, 0.0 }
 0x94e   : > { %2375 = vadd.xlane.f32.xlu1 %v2374_v35 }
 0x967   : > { %6593 = vrot.lane.b32.xlu1 %v7730_v36, %s8742_s17 }
 0x96f   : > { %6598 = vrot.lane.b32.xlu1 %v7730_v36, %s8743_s21 }
 0x977   : > { %2575 = vrot.lane.b32.xlu1 %v7708_v19, %s8744_s27 }
 0x97f   : > { %2573 = vrot.lane.b32.xlu1 %v2313_v17, %s8744_s27 }
 0x987   : > { %2571 = vrot.lane.b32.xlu1 %v7716_v22, %s8744_s27 }
 0x98f   : > { %2694 = vrot.lane.b32.xlu1 %v2313_v17, %s8745_s15 }
 0x9c1   : > { %v2376_v37 = vpop.xlane.xlu1 %2375 }
 0x9c2   : > { %6678 = vrcp.f32 %v2376_v37 }
 0x9c8   : > { %v6679_v38 = vpop.eup %6678 }
 0x9c9   : > { %v2378_v39 = vmul.f32 %v6679_v38, %v6677_v34 }
 0x9cb   : > { %2379 = vst.msk [vmem:[%s7743_s28] sm:$0xff] %vm1745_vm4, %v2378_v39 }
 0x9d9   : > { %v6594_v41 = vpop.permute.xlu1 %6593 }
 0x9da   : > { %v6595_v43 = vunpack.i.l.bf16 %v6594_v41  ;;  %v6596_v45 = vunpack.i.h.bf16 %v6594_v41  ;;  %v2328_v41 = vld [vmem:[%s8747_s7 + $0x50] sm:$0xff] }
 0x9db   : > { %2664 = vmatpush.msra.mxu0 %v2328_v41  ;;  %v6114_v41 = vld [vmem:[%s8714_s25 + $0x368] sm:$0xff] }
 0x9dc   : > { %2403 = vmatpush.msrb.mxu3 %v6595_v43  ;;  %v2329_v43 = vld [vmem:[%s8747_s7 + $0x58] sm:$0xff] }
 0x9dd   : > { %2684 = vmatpush.msra.mxu1 %v2329_v43  ;;  %v6079_v43 = vld [vmem:[%s8714_s25 + $0x250] sm:$0xff] }
 0x9de   : > { %2404 = vmatpush.msrb.mxu3 %v6596_v45 }
 0x9df   : > { %6045 = vmatmul.msk.f32.vlgmr.msrb.gmra.mxu3 %vm1745_vm4, %v2378_v39 }
 0x9e0   : > { %6046 = vmatpush.xpose.msk.msra.mxu3 %vm1745_vm4, %v2414_v44 }
 0x9e1   : > { %v6599_v46 = vpop.permute.xlu1 %6598 }
 0x9e2   : > { %v6600_v50 = vunpack.i.l.bf16 %v6599_v46  ;;  %v6601_v53 = vunpack.i.h.bf16 %v6599_v46 }
 0x9e4   : > { %6047 = vmatpush.xpose.msk.msra.mxu3 %vm1745_vm4, %v2412_v52  ;;  %2479 = vmatpush.msrb.mxu2 %v6600_v50 }
 0x9e6   : > { %2480 = vmatpush.msrb.mxu2 %v6601_v53  ;;  %v2326_v53 = vld [vmem:[%s8747_s7 + $0x40] sm:$0xff] }
 0x9e7   : > { %6048 = vmatmul.msk.f32.vlgmr.msra.gmra.mxu3 %vm1745_vm4, %v2410_v55  ;;  %2665 = vmatpush.msra.mxu0 %v2326_v53  ;;  %v2332_v55 = vld [vmem:[%s8747_s7 + $0x70] sm:$0xff]  ;;  %v6076_v53 = vld [vmem:[%s8714_s25 + $0x238] sm:$0xff] }
 0x9e8   : > { %2502 = vmatpush.msrb.mxu3 %v2324_v51  ;;  %2522 = vmatpush.msra.mxu2 %v2325_v7  ;;  %v6130_v7 = vld [vmem:[%s8714_s25 + $0x3e8] sm:$0xff] }
 0x9e9   : > { %v2576_v56 = vpop.permute.xlu1 %2575 }
 0x9ea   : > { %2503 = vmatpush.msrb.mxu3 %v2322_v54  ;;  %2523 = vmatpush.msra.mxu2 %v2323_v11  ;;  %v2327_v54 = vld [vmem:[%s8747_s7 + $0x48] sm:$0xff]  ;;  %v6093_v11 = vld [vmem:[%s8714_s25 + $0x2c0] sm:$0xff] }
 0x9eb   : > { %2685 = vmatpush.msra.mxu1 %v2327_v54  ;;  %v6108_v54 = vld [vmem:[%s8714_s25 + $0x338] sm:$0xff] }
 0x9ec   : > { %6055 = vmatpush.xpose.msk.msra.mxu3 %vm1745_vm4, %v2576_v56  ;;  %v2333_v56 = vld [vmem:[%s8747_s7 + $0x78] sm:$0xff] }
 0x9f1   : > { %v2574_v57 = vpop.permute.xlu1 %2573 }
 0x9f2   : > { %6056 = vmatpush.xpose.msk.msra.mxu3 %vm1745_vm4, %v2574_v57  ;;  %v2330_v57 = vld [vmem:[%s8747_s7 + $0x60] sm:$0xff] }
 0x9f9   : > { %v2572_v12 = vpop.permute.xlu1 %2571 }
 0xa01   : > { %v2695_v16 = vpop.permute.xlu1 %2694 }
 0xa62   : > { %v2406_v61 = vpop.f32.mrf.mxu3 }
 0xa63   : > { %6053 = vmatmul.msk.f32.vlgmr.msrb.gmra.mxu0 %vm1745_vm4, %v2406_v61  ;;  %6054 = vmatmul.msk.f32.vlgmr.msrb.gmra.mxu1 %vm1745_vm4, %v2406_v61  ;;  %v6131_v61 = vld [vmem:[%s8714_s25 + $0x3f0] sm:$0xff] }
 0xa64   : > { %2785 = vmatpush.msrb.mxu0 %v2332_v55  ;;  %2805 = vmatpush.msrb.mxu1 %v2333_v56  ;;  %v6073_v55 = vld [vmem:[%s8714_s25 + $0x220] sm:$0xff] }
 0xa65   : > { %v6105_v56 = vld [vmem:[%s8714_s25 + $0x320] sm:$0xff] }
 0xa66   : > { %2786 = vmatpush.msrb.mxu0 %v2330_v57  ;;  %2806 = vmatpush.msrb.mxu1 %v2331_v59  ;;  %v6074_v57 = vld [vmem:[%s8714_s25 + $0x228] sm:$0xff] }
 0xa67   : > { %v6106_v59 = vld [vmem:[%s8714_s25 + $0x328] sm:$0xff] }
 0xa6a   : > { %v2438_v62 = vpop.f32.mrf.mxu3 }
 0xa6b   : > { %v2441_v63 = vmul.f32 0.25, %v2438_v62  ;;  %v6097_v62 = vld [vmem:[%s8714_s25 + $0x2e0] sm:$0xff] }
 0xa6d   : > { %v2442_v0 = vadd.f32 %v2441_v63, %v7724_v26  ;;  %v6129_v63 = vld [vmem:[%s8714_s25 + $0x3e0] sm:$0xff] }
 0xa6f   : > { %v2443_v1 = vsel %vm1745_vm4, %v2442_v0, -inf }
 0xa70   : > { %2444 = vmax.xlane.f32.xlu2 %v2443_v1  ;;  %v6127_v1 = vld [vmem:[%s8714_s25 + $0x3d0] sm:$0xff] }
 0xa88   : > { %2696 = vrot.lane.b32.xlu2 %v7708_v19, %s8745_s15 }
 0xae3   : > { %v2445_v2 = vpop.xlane.xlu2 %2444 }
 0xae4   : > { %v2446_v3 = vsub.f32 %v2442_v0, %v2445_v2  ;;  %v6095_v0 = vld [vmem:[%s8714_s25 + $0x2d0] sm:$0xff] }
 0xae6   : > { %v2447_v5 = vmul.f32 1.442695, %v2446_v3  ;;  %v6100_v3 = vld [vmem:[%s8714_s25 + $0x2f8] sm:$0xff] }
 0xae8   : > { %6680 = vpow2.f32 %v2447_v5  ;;  %v6132_v5 = vld [vmem:[%s8714_s25 + $0x3f8] sm:$0xff] }
 0xaeb   : > { %v2697_v15 = vpop.permute.xlu2 %2696 }
 0xaee   : > { %v6681_v58 = vpop.eup %6680 }
 0xaef   : > { %v2449_v6 = vsel %vm1745_vm4, %v6681_v58, 0.0 }
 0xaf0   : > { %2450 = vadd.xlane.f32.xlu0 %v2449_v6  ;;  %v6098_v6 = vld [vmem:[%s8714_s25 + $0x2e8] sm:$0xff] }
 0xb04   : > { %2692 = vrot.lane.b32.xlu0 %v7716_v22, %s8745_s15 }
 0xb63   : > { %v2451_v8 = vpop.xlane.xlu0 %2450 }
 0xb64   : > { %6682 = vrcp.f32 %v2451_v8  ;;  %v6096_v8 = vld [vmem:[%s8714_s25 + $0x2d8] sm:$0xff] }
 0xb6a   : > { %v6683_v9 = vpop.eup %6682 }
 0xb6b   : > { %v2453_v10 = vmul.f32 %v6683_v9, %v6681_v58  ;;  %v6128_v9 = vld [vmem:[%s8714_s25 + $0x3d8] sm:$0xff] }
 0xb6d   : > { %6049 = vst.msk [vmem:[%s7743_s28 + $0x8] sm:$0xff] %vm1745_vm4, %v2453_v10  ;;  %6050 = vmatmul.msk.f32.vlgmr.msrb.gmra.mxu2 %vm1745_vm4, %v2453_v10 }
 0xb76   : > { %v2693_v17 = vpop.permute.xlu0 %2692 }
 0xbf0   : > { %v2482_v13 = vpop.f32.mrf.mxu2 }
 0xbf1   : > { %6051 = vmatmul.msk.f32.vlgmr.msrb.gmra.mxu3 %vm1745_vm4, %v2482_v13  ;;  %6052 = vmatmul.msk.f32.vlgmr.msra.gmra.mxu2 %vm1745_vm4, %v2482_v13  ;;  %v6094_v13 = vld [vmem:[%s8714_s25 + $0x2c8] sm:$0xff] }
 0xbf2   : > { %6062 = vmatpush.xpose.msk.msrb.mxu3 %vm1745_vm4, %v2697_v15  ;;  %v6126_v15 = vld [vmem:[%s8714_s25 + $0x3c8] sm:$0xff] }
 0xbf6   : > { %6063 = vmatpush.xpose.msk.msrb.mxu3 %vm1745_vm4, %v2695_v16  ;;  %v6091_v16 = vld [vmem:[%s8714_s25 + $0x2b0] sm:$0xff] }
 0xbf9   : > { %6057 = vmatmul.msk.f32.vlgmr.msra.gmra.mxu3 %vm1745_vm4, %v2572_v12  ;;  %v6125_v12 = vld [vmem:[%s8714_s25 + $0x3c0] sm:$0xff] }
 0xbfa   : > { %2901 = vmatpush.msra.mxu3 %v6099_v60  ;;  %v6071_v60 = vld [vmem:[%s8714_s25 + $0x210] sm:$0xff] }
 0xbfc   : > { %2902 = vmatpush.msra.mxu3 %v6097_v62  ;;  %v6072_v62 = vld [vmem:[%s8714_s25 + $0x218] sm:$0xff] }
 0xbfe   : > { %2903 = vmatpush.msra.mxu3 %v6095_v0  ;;  %v6069_v0 = vld [vmem:[%s8714_s25 + $0x200] sm:$0xff] }
 0xc00   : > { %2904 = vmatpush.msra.mxu3 %v6093_v11  ;;  %v2815_v11 = vld [vmem:[%s8750_s13] sm:$0x3]  ;;  %s7914_s13 = scalar_lea.vmem [#allocation7], %s7592_s11 }
 0xc01   : > { %6064 = vmatmul.msk.f32.vlgmr.msrb.gmra.mxu3 %vm1745_vm4, %v2693_v17  ;;  %v6123_v17 = vld [vmem:[%s8714_s25 + $0x3b0] sm:$0xff] }
 0xc02   : > { %2905 = vmatpush.msra.mxu3 %v6091_v16 }
 0xc74   : > { %v7779_v18 = vpop.f32.mrf.mxu3  ;;  %v7811_v2 = vpop.f32.mrf.mxu2 }
 0xc7c   : > { %v2600_v19 = vpop.f32.mrf.mxu3 }
 0xc7d   : > { %v2603_v42 = vmul.f32 0.25, %v2600_v19  ;;  %v6092_v19 = vld [vmem:[%s8714_s25 + $0x2b8] sm:$0xff] }
 0xc7f   : > { %v2604_v47 = vadd.f32 %v2603_v42, %v7724_v26  ;;  %v6124_v42 = vld [vmem:[%s8714_s25 + $0x3b8] sm:$0xff] }
 0xc81   : > { %v2605_v20 = vsel %vm1745_vm4, %v2604_v47, -inf }
 0xc82   : > { %2606 = vmax.xlane.f32.xlu1 %v2605_v20  ;;  %v6121_v20 = vld [vmem:[%s8714_s25 + $0x3a0] sm:$0xff] }
 0xc84   : > { %v2721_v21 = vpop.f32.mrf.mxu3 }
 0xc85   : > { %v2724_v22 = vmul.f32 0.25, %v2721_v21  ;;  %v6090_v21 = vld [vmem:[%s8714_s25 + $0x2a8] sm:$0xff] }
 0xc87   : > { %v2725_v23 = vadd.f32 %v2724_v22, %v7724_v26  ;;  %v6122_v22 = vld [vmem:[%s8714_s25 + $0x3a8] sm:$0xff] }
 0xc89   : > { %v2726_v24 = vsel %vm1745_vm4, %v2725_v23, -inf }
 0xc8a   : > { %2727 = vmax.xlane.f32.xlu2 %v2726_v24  ;;  %v6119_v24 = vld [vmem:[%s8714_s25 + $0x390] sm:$0xff] }
 0xc9b   : > { %6603 = vrot.lane.b32.xlu1 %v7730_v36, %s8748_s2 }
 0xcf5   : > { %v2607_v25 = vpop.xlane.xlu1 %2606 }
 0xcf6   : > { %v2608_v27 = vsub.f32 %v2604_v47, %v2607_v25  ;;  %v6089_v47 = vld [vmem:[%s8714_s25 + $0x2a0] sm:$0xff]  ;;  %v6088_v25 = vld [vmem:[%s8714_s25 + $0x298] sm:$0xff] }
 0xcf7   : > { %2906 = vmatpush.msra.mxu3 %v6089_v47  ;;  %v2818_v47 = vperm.slane %v2815_v11, 1 }
 0xcf8   : > { %v2609_v28 = vmul.f32 1.442695, %v2608_v27  ;;  %v6120_v27 = vld [vmem:[%s8714_s25 + $0x398] sm:$0xff] }
 0xcfa   : > { %6684 = vpow2.f32 %v2609_v28  ;;  %v6085_v28 = vld [vmem:[%s8714_s25 + $0x280] sm:$0xff] }
 0xcfd   : > { %v2728_v29 = vpop.xlane.xlu2 %2727 }
 0xcfe   : > { %v2729_v30 = vsub.f32 %v2725_v23, %v2728_v29  ;;  %v6087_v23 = vld [vmem:[%s8714_s25 + $0x290] sm:$0xff]  ;;  %v6117_v29 = vld [vmem:[%s8714_s25 + $0x380] sm:$0xff] }
 0xcff   : > { %2907 = vmatpush.msra.mxu3 %v6087_v23 }
 0xd00   : > { %v6685_v31 = vpop.eup %6684  ;;  %v2730_v32 = vmul.f32 1.442695, %v2729_v30  ;;  %v6086_v30 = vld [vmem:[%s8714_s25 + $0x288] sm:$0xff] }
 0xd01   : > { %v2611_v33 = vsel %vm1745_vm4, %v6685_v31, 0.0  ;;  %2908 = vmatpush.msra.mxu3 %v6085_v28 }
 0xd02   : > { %6686 = vpow2.f32 %v2730_v32  ;;  %2612 = vadd.xlane.f32.xlu0 %v2611_v33  ;;  %v6083_v32 = vld [vmem:[%s8714_s25 + $0x270] sm:$0xff] }
 0xd03   : > { %v6115_v33 = vld [vmem:[%s8714_s25 + $0x370] sm:$0xff]  ;;  %2909 = vmatpush.msra.mxu3 %v6083_v32 }
 0xd08   : > { %v6687_v34 = vpop.eup %6686 }
 0xd09   : > { %v2732_v35 = vsel %vm1745_vm4, %v6687_v34, 0.0 }
 0xd0a   : > { %2733 = vadd.xlane.f32.xlu2 %v2732_v35  ;;  %v6116_v35 = vld [vmem:[%s8714_s25 + $0x378] sm:$0xff] }
 0xd0d   : > { %v6604_v37 = vpop.permute.xlu1 %6603 }
 0xd0e   : > { %v6605_v38 = vunpack.i.l.bf16 %v6604_v37  ;;  %v6606_v39 = vunpack.i.h.bf16 %v6604_v37  ;;  %v6081_v37 = vld [vmem:[%s8714_s25 + $0x260] sm:$0xff] }
 0xd0f   : > { %2910 = vmatpush.msra.mxu3 %v6081_v37 }
 0xd10   : > { %2641 = vmatpush.msrb.mxu2 %v6605_v38  ;;  %v6113_v38 = vld [vmem:[%s8714_s25 + $0x360] sm:$0xff] }
 0xd11   : > { %2911 = vmatpush.msra.mxu3 %v6079_v43  ;;  %v6138_v43 = vld [vmem:[%s8713_s3 + $0xa0] sm:$0xff] }
 0xd12   : > { %2642 = vmatpush.msrb.mxu2 %v6606_v39  ;;  %v6082_v39 = vld [vmem:[%s8714_s25 + $0x268] sm:$0xff] }
 0xd16   : > { %6608 = vrot.lane.b32.xlu0 %v7730_v36, %s8749_s23 }
 0xd75   : > { %v2613_v44 = vpop.xlane.xlu0 %2612 }
 0xd76   : > { %6688 = vrcp.f32 %v2613_v44  ;;  %v6111_v44 = vld [vmem:[%s8714_s25 + $0x350] sm:$0xff] }
 0xd7c   : > { %v6689_v45 = vpop.eup %6688 }
 0xd7d   : > { %v2615_v46 = vmul.f32 %v6689_v45, %v6685_v31  ;;  %v2734_v48 = vpop.xlane.xlu2 %2733  ;;  %v6118_v31 = vld [vmem:[%s8714_s25 + $0x388] sm:$0xff]  ;;  %v6080_v45 = vld [vmem:[%s8714_s25 + $0x258] sm:$0xff] }
 0xd7e   : > { %6690 = vrcp.f32 %v2734_v48  ;;  %v6077_v48 = vld [vmem:[%s8714_s25 + $0x240] sm:$0xff] }
 0xd7f   : > { %6058 = vst.msk [vmem:[%s7743_s28 + $0x10] sm:$0xff] %vm1745_vm4, %v2615_v46  ;;  %6059 = vmatmul.msk.f32.vlgmr.msrb.gmra.mxu2 %vm1745_vm4, %v2615_v46  ;;  %v6112_v46 = vld [vmem:[%s8714_s25 + $0x358] sm:$0xff]  ;;  %2912 = vmatpush.msra.mxu3 %v6077_v48 }
 0xd84   : > { %v6691_v49 = vpop.eup %6690 }
 0xd85   : > { %v2736_v36 = vmul.f32 %v6691_v49, %v6687_v34  ;;  %v6084_v34 = vld [vmem:[%s8714_s25 + $0x278] sm:$0xff]  ;;  %v6109_v49 = vld [vmem:[%s8714_s25 + $0x340] sm:$0xff] }
 0xd87   : > { %6065 = vst.msk [vmem:[%s7743_s28 + $0x18] sm:$0xff] %vm1745_vm4, %v2736_v36 }
 0xd88   : > { %v6609_v50 = vpop.permute.xlu0 %6608 }
 0xd89   : > { %v6610_v51 = vunpack.i.l.bf16 %v6609_v50  ;;  %v6611_v52 = vunpack.i.h.bf16 %v6609_v50  ;;  %v6110_v50 = vld [vmem:[%s8714_s25 + $0x348] sm:$0xff] }
 0xd8b   : > { %2762 = vmatpush.msra.mxu2 %v6610_v51  ;;  %v6075_v51 = vld [vmem:[%s8714_s25 + $0x230] sm:$0xff] }
 0xd8c   : > { %2913 = vmatpush.msra.mxu3 %v6075_v51 }
 0xd8d   : > { %2763 = vmatpush.msra.mxu2 %v6611_v52  ;;  %v6107_v52 = vld [vmem:[%s8714_s25 + $0x330] sm:$0xff] }
 0xd8e   : > { %6066 = vmatmul.msk.f32.vlgmr.msra.gmra.mxu2 %vm1745_vm4, %v2736_v36  ;;  %v6078_v36 = vld [vmem:[%s8714_s25 + $0x248] sm:$0xff]  ;;  %2914 = vmatpush.msra.mxu3 %v6073_v55 }
 0xd8f   : > { %2921 = vmatpush.msrb.mxu2 %v6131_v61  ;;  %v6103_v61 = vld [vmem:[%s8714_s25 + $0x310] sm:$0xff] }
 0xd90   : > { %2915 = vmatpush.msra.mxu3 %v6071_v60 }
 0xd91   : > { %2922 = vmatpush.msrb.mxu2 %v6129_v63  ;;  %v6104_v63 = vld [vmem:[%s8714_s25 + $0x318] sm:$0xff] }
 0xd92   : > { %2916 = vmatpush.msra.mxu3 %v6069_v0 }
 0xd93   : > { %2923 = vmatpush.msrb.mxu2 %v6127_v1  ;;  %v6101_v1 = vld [vmem:[%s8714_s25 + $0x300] sm:$0xff] }
 0xd95   : > { %2924 = vmatpush.msrb.mxu2 %v6125_v12 }
 0xd97   : > { %2925 = vmatpush.msrb.mxu2 %v6123_v17 }
 0xd99   : > { %2926 = vmatpush.msrb.mxu2 %v6121_v20 }
 0xd9b   : > { %2927 = vmatpush.msrb.mxu2 %v6119_v24 }
 0xd9d   : > { %2928 = vmatpush.msrb.mxu2 %v6117_v29 }
 0xd9f   : > { %2929 = vmatpush.msrb.mxu2 %v6115_v33 }
 0xda1   : > { %2930 = vmatpush.msrb.mxu2 %v6113_v38 }
 0xda3   : > { %2931 = vmatpush.msrb.mxu2 %v6111_v44 }
 0xda5   : > { %2932 = vmatpush.msrb.mxu2 %v6109_v49 }
 0xda7   : > { %2933 = vmatpush.msrb.mxu2 %v6107_v52 }
 0xda9   : > { %2934 = vmatpush.msrb.mxu2 %v6105_v56 }
 0xdab   : > { %2935 = vmatpush.msrb.mxu2 %v6103_v61 }
 0xdad   : > { %2936 = vmatpush.msrb.mxu2 %v6101_v1 }
 0xe02   : > { %v2644_v58 = vpop.f32.mrf.mxu2 }
 0xe03   : > { %6060 = vmatmul.msk.f32.vlgmr.msra.gmra.mxu0 %vm1745_vm4, %v2644_v58  ;;  %6061 = vmatmul.msk.f32.vlgmr.msra.gmra.mxu1 %vm1745_vm4, %v2644_v58  ;;  %v2548_v58 = vpop.f32.mrf.mxu0 }
 0xe04   : > { %2941 = vmatpush.msra.mxu0 %v6100_v3  ;;  %2961 = vmatpush.msra.mxu1 %v6132_v5  ;;  %v6070_v3 = vld [vmem:[%s8714_s25 + $0x208] sm:$0xff] }
 0xe05   : > { %v6102_v5 = vld [vmem:[%s8714_s25 + $0x308] sm:$0xff] }
 0xe06   : > { %2942 = vmatpush.msra.mxu0 %v6098_v6  ;;  %2962 = vmatpush.msra.mxu1 %v6130_v7  ;;  %v2568_v6 = vpop.f32.mrf.mxu1 }
 0xe08   : > { %2943 = vmatpush.msra.mxu0 %v6096_v8  ;;  %2963 = vmatpush.msra.mxu1 %v6128_v9  ;;  %v2549_v9 = vadd.f32 %v2548_v58, %v7779_v18 }
 0xe0a   : > { %2944 = vmatpush.msra.mxu0 %v6094_v13  ;;  %2964 = vmatpush.msra.mxu1 %v6126_v15 }
 0xe0c   : > { %2945 = vmatpush.msra.mxu0 %v6092_v19  ;;  %2965 = vmatpush.msra.mxu1 %v6124_v42  ;;  %v2817_v19 = vperm.slane %v2815_v11, 0 }
 0xe0e   : > { %2946 = vmatpush.msra.mxu0 %v6090_v21  ;;  %2966 = vmatpush.msra.mxu1 %v6122_v22 }
 0xe10   : > { %2947 = vmatpush.msra.mxu0 %v6088_v25  ;;  %2967 = vmatpush.msra.mxu1 %v6120_v27 }
 0xe11   : > { %v2765_v10 = vpop.f32.mrf.mxu2 }
 0xe12   : > { %6067 = vmatmul.msk.f32.vlgmr.msrb.gmra.mxu0 %vm1745_vm4, %v2765_v10  ;;  %6068 = vmatmul.msk.f32.vlgmr.msrb.gmra.mxu1 %vm1745_vm4, %v2765_v10  ;;  %v2569_v10 = vadd.f32 %v2568_v6, %v7811_v2 }
 0xe13   : > { %2948 = vmatpush.msra.mxu0 %v6086_v30  ;;  %2968 = vmatpush.msra.mxu1 %v6118_v31 }
 0xe15   : > { %2949 = vmatpush.msra.mxu0 %v6084_v34  ;;  %2969 = vmatpush.msra.mxu1 %v6116_v35 }
 0xe17   : > { %2950 = vmatpush.msra.mxu0 %v6082_v39  ;;  %2970 = vmatpush.msra.mxu1 %v6114_v41  ;;  %v6140_v39 = vld [vmem:[%s8713_s3 + $0xb0] sm:$0xff] }
 0xe19   : > { %2951 = vmatpush.msra.mxu0 %v6080_v45  ;;  %2971 = vmatpush.msra.mxu1 %v6112_v46 }
 0xe1b   : > { %2952 = vmatpush.msra.mxu0 %v6078_v36  ;;  %2972 = vmatpush.msra.mxu1 %v6110_v50 }
 0xe1d   : > { %2953 = vmatpush.msra.mxu0 %v6076_v53  ;;  %2973 = vmatpush.msra.mxu1 %v6108_v54 }
 0xe1f   : > { %2954 = vmatpush.msra.mxu0 %v6074_v57  ;;  %2974 = vmatpush.msra.mxu1 %v6106_v59 }
 0xe21   : > { %2955 = vmatpush.msra.mxu0 %v6072_v62  ;;  %2975 = vmatpush.msra.mxu1 %v6104_v63 }
 0xe23   : > { %2956 = vmatpush.msra.mxu0 %v6070_v3  ;;  %2976 = vmatpush.msra.mxu1 %v6102_v5 }
 0xe80   : > { %v2667_v7 = vpop.f32.mrf.mxu0  ;;  %v2687_v8 = vpop.f32.mrf.mxu1 }
 0xe81   : > { %v2690_v12 = vadd.f32 %v2667_v7, %v2549_v9  ;;  %v2691_v13 = vadd.f32 %v2687_v8, %v2569_v10 }
 0xe8f   : > { %v2788_v15 = vpop.f32.mrf.mxu0  ;;  %v2808_v16 = vpop.f32.mrf.mxu1 }
 0xe90   : > { %v2811_v17 = vadd.f32 %v2788_v15, %v2690_v12  ;;  %v2812_v42 = vadd.f32 %v2808_v16, %v2691_v13 }
 0xe92   : > { %v2813_v20 = vadd.f32 %v2811_v17, %v7700_v14  ;;  %v2814_v21 = vadd.f32 %v2812_v42, %v7702_v40  ;;  %v6133_v14 = vld [vmem:[%s7087_s29 + $0x2] sm:$0x3]  ;;  %v6141_v42 = vld [vmem:[%s8713_s3 + $0xb8] sm:$0xff] }
 0xe93   : > { %v2898_v40 = vperm.slane %v6133_v14, 1  ;;  %v2897_v30 = vperm.slane %v6133_v14, 0 }
 0xe94   : > { %v2821_v22 = vadd.f32 %v2817_v19, %v2813_v20  ;;  %v2822_v23 = vadd.f32 %v2818_v47, %v2814_v21  ;;  %v6139_v47 = vld [vmem:[%s8713_s3 + $0xa8] sm:$0xff] }
 0xe96   : > { %vm2823_vm7 = vcmp.ge.f32.partialorder %v2821_v22, 0.0  ;;  %v2825_v18 = vmul.f32 0.01, %v2821_v22  ;;  %vm2824_vm8 = vcmp.ge.f32.partialorder %v2822_v23, 0.0  ;;  %v2826_v2 = vmul.f32 0.01, %v2822_v23 }
 0xe98   : > { %v7880_v24 = vsel %vm2823_vm7, %v2821_v22, %v2825_v18  ;;  %v7882_v25 = vsel %vm2824_vm8, %v2822_v23, %v2826_v2 }
 0xe99   : > { %2917 = vmatmul.f32.vlgmr.msra.gmra.mxu3 %v7880_v24  ;;  %2937 = vmatmul.f32.vlgmr.msrb.gmra.mxu2 %v7882_v25 }
 0xe9a   : > { %2957 = vmatmul.f32.vlgmr.msra.gmra.mxu0 %v7880_v24  ;;  %2977 = vmatmul.f32.vlgmr.msra.gmra.mxu1 %v7882_v25 }
 0xf17   : > { %v2958_v27 = vpop.f32.mrf.mxu0  ;;  %v2978_v29 = vpop.f32.mrf.mxu1 }
 0xf18   : > { %v2959_v28 = vadd.f32 %v2958_v27, %v2898_v40 }
 0xf1a   : > { %v7889_v31 = vadd.f32 %v2978_v29, %v2959_v28 }
 0xf1c   : > { %3057 = vmatpush.msra.mxu2 %v7889_v31  ;;  %v2918_v32 = vpop.f32.mrf.mxu3  ;;  %v2938_v34 = vpop.f32.mrf.mxu2 }
 0xf1d   : > { %v2919_v33 = vadd.f32 %v2918_v32, %v2897_v30 }
 0xf1e   : > { %3169 = vmatpush.msrb.mxu2 %v6141_v42 }
 0xf1f   : > { %v2939_v35 = vadd.f32 %v2938_v34, %v2919_v33  ;;  %v6136_v33 = vld [vmem:[%s8713_s3 + $0x90] sm:$0xff]  ;;  %v6137_v34 = vld [vmem:[%s8713_s3 + $0x98] sm:$0xff] }
 0xf20   : > { %3170 = vmatpush.msrb.mxu2 %v6139_v47  ;;  %v6207_v47 = vld [vmem:[%s8734_s5 + $0x30] sm:$0xff] }
 0xf21   : > { %3062 = vrot.lane.b32.xlu1 %v2939_v35, %s8741_s20  ;;  %3064 = vrot.lane.b32.xlu2 %v2939_v35, %s8743_s21 }
 0xf29   : > { %3106 = vrot.lane.b32.xlu2 %v7889_v31, %s8741_s20 }
 0xf31   : > { %2999 = vrot.lane.b32.xlu2 %v2939_v35, %s8742_s17 }
 0xf39   : > { %3220 = vrot.lane.b32.xlu2 %v2939_v35, %s8748_s2 }
 0xf41   : > { %3218 = vrot.lane.b32.xlu2 %v2939_v35, %s8744_s27 }
 0xf49   : > { %3332 = vrot.lane.b32.xlu2 %v2939_v35, %s8745_s15 }
 0xf7b   : > { %v3065_v37 = vpop.permute.xlu2 %3064 }
 0xf7c   : > { %6153 = vmatpush.xpose.msk.msrb.mxu0 %vm1745_vm4, %v3065_v37  ;;  %v6135_v37 = vld [vmem:[%s8713_s3 + $0x88] sm:$0xff] }
 0xf80   : > { %3192 = vmatpush.msra.mxu0 %v6136_v33  ;;  %v6192_v33 = vld [vmem:[%s8711_s14 + $0x190] sm:$0xff] }
 0xf83   : > { %v3107_v38 = vpop.permute.xlu2 %3106 }
 0xf84   : > { %3127 = vmatpush.msrb.mxu1 %v3107_v38 }
 0xf86   : > { %3212 = vmatpush.msra.mxu1 %v6137_v34  ;;  %v6175_v34 = vld [vmem:[%s8711_s14 + $0x108] sm:$0xff] }
 0xf88   : > { %3213 = vmatpush.msra.mxu1 %v6135_v37  ;;  %v6174_v37 = vld [vmem:[%s8711_s14 + $0x100] sm:$0xff] }
 0xf8b   : > { %v3000_v41 = vpop.permute.xlu2 %2999 }
 0xf8c   : > { %6150 = vmatpush.xpose.msk.msrb.mxu3 %vm1745_vm4, %v3000_v41 }
 0xf8f   : > { %6151 = vmatmul.msk.f32.vlgmr.msrb.gmra.mxu3 %vm1745_vm4, %v2939_v35 }
 0xf90   : > { %3149 = vmatpush.msra.mxu3 %v6140_v39 }
 0xf92   : > { %3150 = vmatpush.msra.mxu3 %v6138_v43 }
 0xf93   : > { %v3063_v44 = vpop.permute.xlu1 %3062  ;;  %v3221_v45 = vpop.permute.xlu2 %3220 }
 0xf94   : > { %6154 = vmatmul.msk.f32.vlgmr.msrb.gmra.mxu0 %vm1745_vm4, %v3063_v44  ;;  %6161 = vmatpush.xpose.msk.msrb.mxu3 %vm1745_vm4, %v3221_v45 }
 0xf9b   : > { %v3219_v1 = vpop.permute.xlu2 %3218 }
 0xfa3   : > { %v3333_v3 = vpop.permute.xlu2 %3332 }
0x1011   : > { %v3087_v46 = vpop.f32.mrf.mxu0 }
0x1012   : > { %v3090_v48 = vmul.f32 0.25, %v3087_v46  ;;  %v3022_v53 = vpop.f32.mrf.mxu3 }
0x1013   : > { %v3025_v55 = vmul.f32 0.25, %v3022_v53  ;;  %v6149_v53 = vld [vmem:[%s8713_s3 + $0xf8] sm:$0xff] }
0x1014   : > { %v3091_v49 = vadd.f32 %v3090_v48, %v7578_v4 }
0x1015   : > { %v3026_v57 = vadd.f32 %v3025_v55, %v7578_v4  ;;  %v6147_v55 = vld [vmem:[%s8713_s3 + $0xe8] sm:$0xff] }
0x1016   : > { %v3092_v36 = vsel %vm1772_vm5, %v3091_v49, -inf }
0x1017   : > { %3093 = vmax.xlane.f32.xlu1 %v3092_v36  ;;  %v3027_v59 = vsel %vm1772_vm5, %v3026_v57, -inf  ;;  %v6145_v36 = vld [vmem:[%s8713_s3 + $0xd8] sm:$0xff] }
0x1030   : > { %3334 = vrot.lane.b32.xlu1 %v2939_v35, %s8749_s23  ;;  %v6134_v35 = vld [vmem:[%s8713_s3 + $0x80] sm:$0xff] }
0x1031   : > { %3193 = vmatpush.msra.mxu0 %v6134_v35  ;;  %v6191_v35 = vld [vmem:[%s8711_s14 + $0x188] sm:$0xff] }
0x108a   : > { %v3094_v50 = vpop.xlane.xlu1 %3093 }
0x108b   : > { %v3095_v51 = vsub.f32 %v3091_v49, %v3094_v50  ;;  %v6144_v49 = vld [vmem:[%s8713_s3 + $0xd0] sm:$0xff]  ;;  %v6142_v50 = vld [vmem:[%s8713_s3 + $0xc0] sm:$0xff] }
0x108c   : > { %3304 = vmatpush.msrb.mxu0 %v6144_v49 }
0x108d   : > { %v3096_v52 = vmul.f32 1.442695, %v3095_v51  ;;  %v6143_v51 = vld [vmem:[%s8713_s3 + $0xc8] sm:$0xff] }
0x108e   : > { %3305 = vmatpush.msrb.mxu0 %v6142_v50 }
0x108f   : > { %6692 = vpow2.f32 %v3096_v52  ;;  %v6148_v52 = vld [vmem:[%s8713_s3 + $0xf0] sm:$0xff] }
0x1095   : > { %v6693_v54 = vpop.eup %6692 }
0x1096   : > { %v3098_v56 = vsel %vm1772_vm5, %v6693_v54, 0.0 }
0x1097   : > { %3099 = vadd.xlane.f32.xlu0 %v3098_v56  ;;  %v6189_v56 = vld [vmem:[%s8711_s14 + $0x178] sm:$0xff] }
0x109f   : > { %3028 = vmax.xlane.f32.xlu0 %v3027_v59  ;;  %v6188_v59 = vld [vmem:[%s8711_s14 + $0x170] sm:$0xff] }
0x10a2   : > { %v3335_v0 = vpop.permute.xlu1 %3334 }
0x110a   : > { %v3100_v60 = vpop.xlane.xlu0 %3099 }
0x110b   : > { %6694 = vrcp.f32 %v3100_v60  ;;  %v6204_v60 = vld [vmem:[%s8711_s14 + $0x1f0] sm:$0xff] }
0x1111   : > { %v6695_v61 = vpop.eup %6694 }
0x1112   : > { %v3102_v62 = vmul.f32 %v6695_v61, %v6693_v54  ;;  %v3029_v6 = vpop.xlane.xlu0 %3028  ;;  %v6146_v54 = vld [vmem:[%s8713_s3 + $0xe0] sm:$0xff]  ;;  %v6187_v61 = vld [vmem:[%s8711_s14 + $0x168] sm:$0xff] }
0x1113   : > { %v3030_v9 = vsub.f32 %v3026_v57, %v3029_v6  ;;  %v6205_v57 = vld [vmem:[%s8711_s14 + $0x1f8] sm:$0xff]  ;;  %v6200_v6 = vld [vmem:[%s8711_s14 + $0x1d0] sm:$0xff] }
0x1114   : > { %6155 = vst.msk [vmem:[%s7914_s13 + $0x8] sm:$0xff] %vm1772_vm5, %v3102_v62  ;;  %6156 = vmatmul.msk.f32.vlgmr.msrb.gmra.mxu1 %vm1772_vm5, %v3102_v62  ;;  %v6203_v62 = vld [vmem:[%s8711_s14 + $0x1e8] sm:$0xff] }
0x1115   : > { %v3031_v11 = vmul.f32 1.442695, %v3030_v9  ;;  %3324 = vmatpush.msrb.mxu1 %v6145_v36  ;;  %v6182_v9 = vld [vmem:[%s8711_s14 + $0x140] sm:$0xff] }
0x1117   : > { %6696 = vpow2.f32 %v3031_v11  ;;  %3325 = vmatpush.msrb.mxu1 %v6143_v51 }
0x111d   : > { %v6697_v17 = vpop.eup %6696 }
0x111e   : > { %v3033_v19 = vsel %vm1772_vm5, %v6697_v17, 0.0 }
0x1191   : > { %v3129_v63 = vpop.f32.mrf.mxu1 }
0x1192   : > { %6157 = vmatmul.msk.f32.vlgmr.msra.gmra.mxu3 %vm1745_vm4, %v3129_v63 }
0x1193   : > { %6167 = vmatpush.xpose.msk.msra.mxu3 %vm1745_vm4, %v3335_v0  ;;  %v6202_v0 = vld [vmem:[%s8711_s14 + $0x1e0] sm:$0xff] }
0x119a   : > { %6162 = vmatmul.msk.f32.vlgmr.msrb.gmra.mxu3 %vm1745_vm4, %v3219_v1  ;;  %v6185_v1 = vld [vmem:[%s8711_s14 + $0x158] sm:$0xff] }
0x119b   : > { %3495 = vmatpush.msrb.mxu3 %v6189_v56 }
0x119d   : > { %3496 = vmatpush.msrb.mxu3 %v6188_v59 }
0x119f   : > { %3497 = vmatpush.msrb.mxu3 %v6187_v61 }
0x11a2   : > { %6168 = vmatmul.msk.f32.vlgmr.msra.gmra.mxu3 %vm1745_vm4, %v3333_v3  ;;  %v6201_v3 = vld [vmem:[%s8711_s14 + $0x1d8] sm:$0xff] }
0x1215   : > { %v7923_v5 = vpop.f32.mrf.mxu3 }
0x121d   : > { %v3243_v58 = vpop.f32.mrf.mxu3 }
0x121e   : > { %v3246_v7 = vmul.f32 0.25, %v3243_v58  ;;  %v6184_v58 = vld [vmem:[%s8711_s14 + $0x150] sm:$0xff] }
0x1220   : > { %v3247_v8 = vadd.f32 %v3246_v7, %v7578_v4  ;;  %v6183_v7 = vld [vmem:[%s8711_s14 + $0x148] sm:$0xff] }
0x1222   : > { %v3248_v10 = vsel %vm1772_vm5, %v3247_v8, -inf }
0x1223   : > { %3249 = vmax.xlane.f32.xlu2 %v3248_v10  ;;  %v6198_v10 = vld [vmem:[%s8711_s14 + $0x1c0] sm:$0xff] }
0x1225   : > { %v3357_v12 = vpop.f32.mrf.mxu3 }
0x1226   : > { %v3360_v13 = vmul.f32 0.25, %v3357_v12  ;;  %v6212_v12 = vld [vmem:[%s8734_s5 + $0x58] sm:$0xff] }
0x1228   : > { %v3361_v15 = vadd.f32 %v3360_v13, %v7578_v4 }
0x122a   : > { %v3362_v16 = vsel %vm1772_vm5, %v3361_v15, -inf }
0x122b   : > { %3363 = vmax.xlane.f32.xlu0 %v3362_v16  ;;  %v6210_v16 = vld [vmem:[%s8734_s5 + $0x48] sm:$0xff] }
0x1233   : > { %3034 = vadd.xlane.f32.xlu0 %v3033_v19  ;;  %v6208_v19 = vld [vmem:[%s8734_s5 + $0x38] sm:$0xff] }
0x123b   : > { %3375 = vrot.lane.b32.xlu2 %v7889_v31, %s8745_s15 }
0x1296   : > { %v3250_v20 = vpop.xlane.xlu2 %3249 }
0x1297   : > { %v3251_v21 = vsub.f32 %v3247_v8, %v3250_v20  ;;  %v6199_v8 = vld [vmem:[%s8711_s14 + $0x1c8] sm:$0xff]  ;;  %v6760_v20 = vld [vmem:[%s7663_s9] sm:$0xff] }
0x1299   : > { %v3252_v22 = vmul.f32 1.442695, %v3251_v21  ;;  %v6761_v21 = vld [vmem:[%s7663_s9 + $0x8] sm:$0xff] }
0x129b   : > { %6698 = vpow2.f32 %v3252_v22  ;;  %v6181_v22 = vld [vmem:[%s8711_s14 + $0x138] sm:$0xff] }
0x129e   : > { %v3364_v23 = vpop.xlane.xlu0 %3363  ;;  %v3376_v46 = vpop.permute.xlu2 %3375 }
0x129f   : > { %v3365_v18 = vsub.f32 %v3361_v15, %v3364_v23  ;;  %v6211_v15 = vld [vmem:[%s8734_s5 + $0x50] sm:$0xff]  ;;  %v6197_v23 = vld [vmem:[%s8711_s14 + $0x1b8] sm:$0xff] }
0x12a1   : > { %v6699_v2 = vpop.eup %6698  ;;  %v3366_v14 = vmul.f32 1.442695, %v3365_v18  ;;  %v6180_v18 = vld [vmem:[%s8711_s14 + $0x130] sm:$0xff] }
0x12a2   : > { %v3254_v40 = vsel %vm1772_vm5, %v6699_v2, 0.0 }
0x12a3   : > { %6700 = vpow2.f32 %v3366_v14  ;;  %3255 = vadd.xlane.f32.xlu1 %v3254_v40  ;;  %v6179_v14 = vld [vmem:[%s8711_s14 + $0x128] sm:$0xff] }
0x12a4   : > { %v6195_v40 = vld [vmem:[%s8711_s14 + $0x1a8] sm:$0xff] }
0x12a6   : > { %v3035_v27 = vpop.xlane.xlu0 %3034 }
0x12a7   : > { %6702 = vrcp.f32 %v3035_v27  ;;  %v6178_v27 = vld [vmem:[%s8711_s14 + $0x120] sm:$0xff] }
0x12a9   : > { %v6701_v28 = vpop.eup %6700 }
0x12aa   : > { %v3368_v29 = vsel %vm1772_vm5, %v6701_v28, 0.0 }
0x12ab   : > { %3369 = vadd.xlane.f32.xlu0 %v3368_v29  ;;  %v6177_v29 = vld [vmem:[%s8711_s14 + $0x118] sm:$0xff] }
0x12ad   : > { %v6703_v30 = vpop.eup %6702 }
0x12ae   : > { %v3037_v32 = vmul.f32 %v6703_v30, %v6697_v17  ;;  %v6209_v17 = vld [vmem:[%s8734_s5 + $0x40] sm:$0xff]  ;;  %v6193_v30 = vld [vmem:[%s8711_s14 + $0x198] sm:$0xff] }
0x12b0   : > { %3038 = vst.msk [vmem:[%s7914_s13] sm:$0xff] %vm1772_vm5, %v3037_v32  ;;  %6152 = vmatmul.msk.f32.vlgmr.msra.gmra.mxu2 %vm1772_vm5, %v3037_v32  ;;  %v6176_v32 = vld [vmem:[%s8711_s14 + $0x110] sm:$0xff] }
0x12b8   : > { %6158 = vmatmul.msk.f32.vlgmr.msrb.gmra.mxu2 %vm1745_vm4, %v3129_v63  ;;  %v6186_v63 = vld [vmem:[%s8711_s14 + $0x160] sm:$0xff] }
0x12b9   : > { %3498 = vmatpush.msrb.mxu3 %v6186_v63 }
0x12bb   : > { %3499 = vmatpush.msrb.mxu3 %v6185_v1 }
0x12bd   : > { %3500 = vmatpush.msrb.mxu3 %v6184_v58 }
0x12bf   : > { %3261 = vrot.lane.b32.xlu0 %v7889_v31, %s8744_s27  ;;  %3501 = vmatpush.msrb.mxu3 %v6183_v7 }
0x12c1   : > { %3502 = vmatpush.msrb.mxu3 %v6182_v9 }
0x12c3   : > { %3503 = vmatpush.msrb.mxu3 %v6181_v22 }
0x12c5   : > { %3504 = vmatpush.msrb.mxu3 %v6180_v18  ;;  %v6219_v18 = vld [vmem:[%s8747_s7 + $0x98] sm:$0xff] }
0x12c7   : > { %3505 = vmatpush.msrb.mxu3 %v6179_v14 }
0x12c9   : > { %3506 = vmatpush.msrb.mxu3 %v6178_v27  ;;  %v6217_v27 = vld [vmem:[%s8747_s7 + $0x88] sm:$0xff] }
0x12cb   : > { %3507 = vmatpush.msrb.mxu3 %v6177_v29 }
0x12cd   : > { %3508 = vmatpush.msrb.mxu3 %v6176_v32 }
0x12cf   : > { %3509 = vmatpush.msrb.mxu3 %v6175_v34  ;;  %v6222_v34 = vld [vmem:[%s8747_s7 + $0xb0] sm:$0xff] }
0x12d1   : > { %3510 = vmatpush.msrb.mxu3 %v6174_v37 }
0x1316   : > { %v3256_v38 = vpop.xlane.xlu1 %3255 }
0x1317   : > { %6704 = vrcp.f32 %v3256_v38  ;;  %v6190_v38 = vld [vmem:[%s8711_s14 + $0x180] sm:$0xff] }
0x131d   : > { %v6705_v39 = vpop.eup %6704 }
0x131e   : > { %v3258_v41 = vmul.f32 %v6705_v39, %v6699_v2  ;;  %v3370_v43 = vpop.xlane.xlu0 %3369  ;;  %v6196_v2 = vld [vmem:[%s8711_s14 + $0x1b0] sm:$0xff] }
0x131f   : > { %6706 = vrcp.f32 %v3370_v43 }
0x1320   : > { %6163 = vst.msk [vmem:[%s7914_s13 + $0x10] sm:$0xff] %vm1772_vm5, %v3258_v41 }
0x1325   : > { %v6707_v31 = vpop.eup %6706 }
0x1326   : > { %v3372_v44 = vmul.f32 %v6707_v31, %v6701_v28  ;;  %v6194_v28 = vld [vmem:[%s8711_s14 + $0x1a0] sm:$0xff] }
0x1328   : > { %6169 = vst.msk [vmem:[%s7914_s13 + $0x18] sm:$0xff] %vm1772_vm5, %v3372_v44 }
0x1331   : > { %v3262_v45 = vpop.permute.xlu0 %3261 }
0x1332   : > { %3282 = vmatpush.msra.mxu2 %v3262_v45 }
0x1333   : > { %v3059_v48 = vpop.f32.mrf.mxu2  ;;  %6164 = vmatmul.msk.f32.vlgmr.msra.gmra.mxu2 %vm1772_vm5, %v3258_v41 }
0x1334   : > { %3396 = vmatpush.msrb.mxu2 %v3376_v46  ;;  %6159 = vmatmul.msk.f32.vlgmr.msra.gmra.mxu0 %vm1745_vm4, %v3059_v48  ;;  %v6173_v46 = vld [vmem:[%s8737_s6 + $0x2] sm:$0x3] }
0x1335   : > { %6160 = vmatmul.msk.f32.vlgmr.msra.gmra.mxu1 %vm1745_vm4, %v3059_v48  ;;  %3418 = vmatpush.msra.mxu0 %v6148_v52  ;;  %v3451_v52 = vperm.slane %v6173_v46, 0 }
0x1336   : > { %3438 = vmatpush.msra.mxu1 %v6149_v53  ;;  %3515 = vmatpush.msra.mxu2 %v6205_v57 }
0x1337   : > { %3419 = vmatpush.msra.mxu0 %v6146_v54  ;;  %v3452_v54 = vperm.slane %v6173_v46, 1  ;;  %v6221_v46 = vld [vmem:[%s8747_s7 + $0xa8] sm:$0xff] }
0x1338   : > { %3439 = vmatpush.msra.mxu1 %v6147_v55  ;;  %3516 = vmatpush.msra.mxu2 %v6204_v60  ;;  %v6654_v60 = vld [vmem:[%s8738_s16 + $0x1] ss:$0 sm:$0xff] }
0x133a   : > { %3517 = vmatpush.msra.mxu2 %v6203_v62 }
0x133b   : > { %6170 = vmatmul.msk.f32.vlgmr.msrb.gmra.mxu2 %vm1772_vm5, %v3372_v44  ;;  %v3172_v11 = vpop.f32.mrf.mxu2 }
0x133c   : > { %3518 = vmatpush.msra.mxu2 %v6202_v0 }
0x133e   : > { %3519 = vmatpush.msra.mxu2 %v6201_v3 }
0x1340   : > { %3520 = vmatpush.msra.mxu2 %v6200_v6 }
0x1342   : > { %3521 = vmatpush.msra.mxu2 %v6199_v8 }
0x1344   : > { %3522 = vmatpush.msra.mxu2 %v6198_v10 }
0x1346   : > { %3523 = vmatpush.msra.mxu2 %v6197_v23 }
0x1348   : > { %3524 = vmatpush.msra.mxu2 %v6196_v2 }
0x134a   : > { %3525 = vmatpush.msra.mxu2 %v6195_v40 }
0x134c   : > { %3526 = vmatpush.msra.mxu2 %v6194_v28 }
0x134e   : > { %3527 = vmatpush.msra.mxu2 %v6193_v30 }
0x1350   : > { %3528 = vmatpush.msra.mxu2 %v6192_v33 }
0x1352   : > { %3529 = vmatpush.msra.mxu2 %v6191_v35  ;;  %v6220_v35 = vld [vmem:[%s8747_s7 + $0xa0] sm:$0xff] }
0x1354   : > { %3530 = vmatpush.msra.mxu2 %v6190_v38 }
0x1356   : > { %3815 = vmatpush.msrb.mxu2 %v6219_v18 }
0x1358   : > { %3816 = vmatpush.msrb.mxu2 %v6217_v27  ;;  %v6224_v27 = vld [vmem:[%s8747_s7 + $0xc0] sm:$0xff] }
0x13b1   : > { %v3195_v39 = vpop.f32.mrf.mxu0 }
0x13b2   : > { %v3215_v41 = vpop.f32.mrf.mxu1  ;;  %v3196_v44 = vadd.f32 %v3195_v39, %v7923_v5 }
0x13b3   : > { %v3216_v45 = vadd.f32 %v3215_v41, %v3172_v11 }
0x13b6   : > { %v3284_v13 = vpop.f32.mrf.mxu2 }
0x13b7   : > { %6165 = vmatmul.msk.f32.vlgmr.msrb.gmra.mxu0 %vm1745_vm4, %v3284_v13  ;;  %6166 = vmatmul.msk.f32.vlgmr.msrb.gmra.mxu1 %vm1745_vm4, %v3284_v13 }
0x13b8   : > { %3557 = vmatpush.msrb.mxu0 %v6212_v12 }
0x13ba   : > { %3558 = vmatpush.msrb.mxu0 %v6211_v15 }
0x13bc   : > { %3559 = vmatpush.msrb.mxu0 %v6210_v16 }
0x13be   : > { %v3398_v42 = vpop.f32.mrf.mxu2  ;;  %3560 = vmatpush.msrb.mxu0 %v6209_v17 }
0x13bf   : > { %6171 = vmatmul.msk.f32.vlgmr.msra.gmra.mxu0 %vm1745_vm4, %v3398_v42  ;;  %6172 = vmatmul.msk.f32.vlgmr.msra.gmra.mxu1 %vm1745_vm4, %v3398_v42 }
0x13c0   : > { %3561 = vmatpush.msrb.mxu0 %v6208_v19 }
0x13c2   : > { %3562 = vmatpush.msrb.mxu0 %v6207_v47 }
0x13c7   : > { %6214 = vmatmul.msk.f32.vlgmr.msrb.gmra.mxu0 %vm2288_vm6, %v6760_v20 }
0x13cf   : > { %6215 = vmatmul.msk.f32.gmra.mxu0 %vm2288_vm6, %v6761_v21 }
0x1434   : > { %v3307_v43 = vpop.f32.mrf.mxu0  ;;  %v3327_v31 = vpop.f32.mrf.mxu1 }
0x1435   : > { %v3330_v48 = vadd.f32 %v3307_v43, %v3196_v44  ;;  %v3331_v49 = vadd.f32 %v3327_v31, %v3216_v45  ;;  %v6223_v45 = vld [vmem:[%s8747_s7 + $0xb8] sm:$0xff] }
0x1436   : > { %3772 = vmatpush.msra.mxu3 %v6223_v45  ;;  %v6280_v45 = vld [vmem:[%s8714_s25 + $0x4a0] sm:$0xff] }
0x1438   : > { %3773 = vmatpush.msra.mxu3 %v6221_v46  ;;  %v6278_v46 = vld [vmem:[%s8714_s25 + $0x490] sm:$0xff] }
0x143c   : > { %v3421_v36 = vpop.f32.mrf.mxu0  ;;  %v3441_v50 = vpop.f32.mrf.mxu1 }
0x143d   : > { %v3444_v51 = vadd.f32 %v3421_v36, %v3330_v48  ;;  %v3445_v53 = vadd.f32 %v3441_v50, %v3331_v49  ;;  %v6218_v48 = vld [vmem:[%s8747_s7 + $0x90] sm:$0xff]  ;;  %v6216_v49 = vld [vmem:[%s8747_s7 + $0x80] sm:$0xff] }
0x143f   : > { %v3446_v55 = vadd.f32 %v3444_v51, %v7880_v24  ;;  %v3447_v56 = vadd.f32 %v3445_v53, %v7882_v25  ;;  %v6655_v24 = vld [vmem:[%s8739_s12 + $0x1] ss:$0 sm:$0xff] }
0x1441   : > { %v8012_v57 = vadd.f32 %v3451_v52, %v3446_v55  ;;  %v8014_v59 = vadd.f32 %v3452_v54, %v3447_v56 }
0x1443   : > { %3511 = vmatmul.f32.vlgmr.msrb.gmra.mxu3 %v8012_v57  ;;  %3531 = vmatmul.f32.vlgmr.msra.gmra.mxu2 %v8014_v59 }
0x1444   : > { %v3564_v5 = vpop.f32.mrf.mxu0 }
0x1445   : > { %v8021_v63 = vadd.f32 %v6654_v60, %v3564_v5 }
0x144c   : > { %v3567_v61 = vpop.f32.mrf.mxu0 }
0x144d   : > { %v8019_v62 = vadd.f32 %v6654_v60, %v3567_v61 }
0x144f   : > { %3663 = vrot.lane.b32.xlu2 %v8019_v62, %s8741_s20  ;;  %6232 = vmatpush.xpose.msk.msrb.mxu1 %vm1745_vm4, %v8019_v62  ;;  %v8039_v15 = vpack.i.bf16 %v8021_v63, %v8019_v62 }
0x1453   : > { %6233 = vmatpush.xpose.msk.msrb.mxu1 %vm1745_vm4, %v8021_v63 }
0x1457   : > { %3661 = vrot.lane.b32.xlu2 %v8021_v63, %s8741_s20 }
0x14a9   : > { %v3664_v42 = vpop.permute.xlu2 %3663 }
0x14b1   : > { %v3662_v22 = vpop.permute.xlu2 %3661 }
0x14c6   : > { %v3512_v25 = vpop.f32.mrf.mxu3  ;;  %v3532_v1 = vpop.f32.mrf.mxu2 }
0x14c7   : > { %v3513_v0 = vadd.f32 %v6655_v24, %v3512_v25 }
0x14c9   : > { %v3533_v3 = vadd.f32 %v3532_v1, %v3513_v0 }
0x14cb   : > { %3659 = vrot.lane.b32.xlu2 %v3533_v3, %s8741_s20  ;;  %6234 = vmatmul.msk.f32.vlgmr.msrb.gmra.mxu1 %vm1745_vm4, %v3533_v3 }
0x1525   : > { %v3660_v40 = vpop.permute.xlu2 %3659 }
0x1548   : > { %v3613_v58 = vpop.f32.mrf.mxu1 }
0x1549   : > { %v3616_v6 = vmul.f32 0.25, %v3613_v58 }
0x154b   : > { %v3617_v7 = vadd.f32 %v3616_v6, %v7724_v26 }
0x154d   : > { %v3618_v8 = vsel %vm1745_vm4, %v3617_v7, -inf }
0x154e   : > { %3619 = vmax.xlane.f32.xlu0 %v3618_v8 }
0x15c1   : > { %v3620_v9 = vpop.xlane.xlu0 %3619 }
0x15c2   : > { %v3621_v10 = vsub.f32 %v3617_v7, %v3620_v9 }
0x15c4   : > { %v3622_v11 = vmul.f32 1.442695, %v3621_v10 }
0x15c6   : > { %6708 = vpow2.f32 %v3622_v11 }
0x15cc   : > { %v6709_v12 = vpop.eup %6708 }
0x15cd   : > { %v3624_v13 = vsel %vm1745_vm4, %v6709_v12, 0.0 }
0x15ce   : > { %3625 = vadd.xlane.f32.xlu1 %v3624_v13 }
0x15e7   : > { %6613 = vrot.lane.b32.xlu1 %v8039_v15, %s8742_s17 }
0x15ef   : > { %6618 = vrot.lane.b32.xlu1 %v8039_v15, %s8743_s21 }
0x15f7   : > { %3823 = vrot.lane.b32.xlu1 %v8021_v63, %s8744_s27 }
0x15ff   : > { %3821 = vrot.lane.b32.xlu1 %v3533_v3, %s8744_s27 }
0x1607   : > { %3946 = vrot.lane.b32.xlu1 %v8019_v62, %s8745_s15 }
0x160f   : > { %3942 = vrot.lane.b32.xlu1 %v3533_v3, %s8745_s15 }
0x1641   : > { %v3626_v16 = vpop.xlane.xlu1 %3625 }
0x1642   : > { %6710 = vrcp.f32 %v3626_v16 }
0x1648   : > { %v6711_v17 = vpop.eup %6710 }
0x1649   : > { %v3628_v19 = vmul.f32 %v6711_v17, %v6709_v12 }
0x164b   : > { %3629 = vst.msk [vmem:[%s8052_s10] sm:$0xff] %vm1745_vm4, %v3628_v19 }
0x1659   : > { %v6614_v47 = vpop.permute.xlu1 %6613 }
0x165a   : > { %v6615_v20 = vunpack.i.l.bf16 %v6614_v47  ;;  %v6616_v21 = vunpack.i.h.bf16 %v6614_v47 }
0x165c   : > { %3653 = vmatpush.msra.mxu1 %v6615_v20  ;;  %v6226_v20 = vld [vmem:[%s8747_s7 + $0xd0] sm:$0xff] }
0x165e   : > { %3654 = vmatpush.msra.mxu1 %v6616_v21  ;;  %v6227_v21 = vld [vmem:[%s8747_s7 + $0xd8] sm:$0xff] }
0x165f   : > { %6235 = vmatmul.msk.f32.vlgmr.msra.gmra.mxu1 %vm1745_vm4, %v3628_v19  ;;  %3934 = vmatpush.msra.mxu2 %v6227_v21  ;;  %v6304_v21 = vld [vmem:[%s8714_s25 + $0x560] sm:$0xff] }
0x1660   : > { %6236 = vmatpush.xpose.msk.msrb.mxu1 %vm1745_vm4, %v3664_v42 }
0x1661   : > { %v6619_v23 = vpop.permute.xlu1 %6618 }
0x1662   : > { %v6620_v2 = vunpack.i.l.bf16 %v6619_v23  ;;  %v6621_v14 = vunpack.i.h.bf16 %v6619_v23 }
0x1664   : > { %6237 = vmatpush.xpose.msk.msrb.mxu1 %vm1745_vm4, %v3662_v22  ;;  %3729 = vmatpush.msra.mxu0 %v6620_v2 }
0x1666   : > { %3730 = vmatpush.msra.mxu0 %v6621_v14 }
0x1667   : > { %6238 = vmatmul.msk.f32.vlgmr.msrb.gmra.mxu1 %vm1745_vm4, %v3660_v40 }
0x1668   : > { %3752 = vmatpush.msra.mxu1 %v6222_v34  ;;  %3795 = vmatpush.msrb.mxu0 %v6218_v48  ;;  %v6290_v34 = vld [vmem:[%s8714_s25 + $0x4f0] sm:$0xff] }
0x1669   : > { %v3824_v44 = vpop.permute.xlu1 %3823 }
0x166a   : > { %3753 = vmatpush.msra.mxu1 %v6220_v35  ;;  %3796 = vmatpush.msrb.mxu0 %v6216_v49  ;;  %v6288_v35 = vld [vmem:[%s8714_s25 + $0x4e0] sm:$0xff]  ;;  %v6291_v49 = vld [vmem:[%s8714_s25 + $0x4f8] sm:$0xff] }
0x1671   : > { %v3822_v55 = vpop.permute.xlu1 %3821 }
0x1679   : > { %v3947_v5 = vpop.permute.xlu1 %3946 }
0x1681   : > { %v3943_v61 = vpop.permute.xlu1 %3942 }
0x16dc   : > { %v3656_v28 = vpop.f32.mrf.mxu1 }
0x16dd   : > { %6244 = vmatmul.msk.f32.vlgmr.msrb.gmra.mxu2 %vm1745_vm4, %v3656_v28 }
0x16e4   : > { %v3688_v29 = vpop.f32.mrf.mxu1 }
0x16e5   : > { %v3691_v30 = vmul.f32 0.25, %v3688_v29  ;;  %v6230_v29 = vld [vmem:[%s8747_s7 + $0xf0] sm:$0xff] }
0x16e7   : > { %v3692_v32 = vadd.f32 %v3691_v30, %v7724_v26  ;;  %v6231_v30 = vld [vmem:[%s8747_s7 + $0xf8] sm:$0xff] }
0x16e9   : > { %v3693_v33 = vsel %vm1745_vm4, %v3692_v32, -inf }
0x16ea   : > { %3694 = vmax.xlane.f32.xlu0 %v3693_v33  ;;  %v6229_v33 = vld [vmem:[%s8747_s7 + $0xe8] sm:$0xff] }
0x16fe   : > { %3825 = vrot.lane.b32.xlu0 %v8019_v62, %s8744_s27 }
0x1706   : > { %3944 = vrot.lane.b32.xlu0 %v8021_v63, %s8745_s15 }
0x175d   : > { %v3695_v37 = vpop.xlane.xlu0 %3694 }
0x175e   : > { %v3696_v38 = vsub.f32 %v3692_v32, %v3695_v37  ;;  %v6228_v32 = vld [vmem:[%s8747_s7 + $0xe0] sm:$0xff]  ;;  %v6286_v37 = vld [vmem:[%s8714_s25 + $0x4d0] sm:$0xff] }
0x1760   : > { %v3697_v39 = vmul.f32 1.442695, %v3696_v38  ;;  %v6322_v38 = vld [vmem:[%s8714_s25 + $0x5f0] sm:$0xff] }
0x1762   : > { %6712 = vpow2.f32 %v3697_v39  ;;  %v6320_v39 = vld [vmem:[%s8714_s25 + $0x5e0] sm:$0xff] }
0x1768   : > { %v6713_v41 = vpop.eup %6712 }
0x1769   : > { %v3699_v43 = vsel %vm1745_vm4, %v6713_v41, 0.0 }
0x176a   : > { %3700 = vadd.xlane.f32.xlu2 %v3699_v43  ;;  %v6318_v43 = vld [vmem:[%s8714_s25 + $0x5d0] sm:$0xff] }
0x1770   : > { %v3826_v31 = vpop.permute.xlu0 %3825 }
0x1771   : > { %6245 = vmatpush.xpose.msk.msrb.mxu1 %vm1745_vm4, %v3826_v31  ;;  %v6282_v31 = vld [vmem:[%s8714_s25 + $0x4b0] sm:$0xff] }
0x1775   : > { %6246 = vmatpush.xpose.msk.msrb.mxu1 %vm1745_vm4, %v3824_v44  ;;  %v6316_v44 = vld [vmem:[%s8714_s25 + $0x5c0] sm:$0xff] }
0x1778   : > { %v3945_v60 = vpop.permute.xlu0 %3944 }
0x1782   : > { %6623 = vrot.lane.b32.xlu2 %v8039_v15, %s8748_s2 }
0x17dd   : > { %v3701_v36 = vpop.xlane.xlu2 %3700 }
0x17de   : > { %6714 = vrcp.f32 %v3701_v36  ;;  %v6323_v36 = vld [vmem:[%s8714_s25 + $0x5f8] sm:$0xff] }
0x17e4   : > { %v6715_v50 = vpop.eup %6714 }
0x17e5   : > { %v3703_v51 = vmul.f32 %v6715_v50, %v6713_v41  ;;  %v6624_v52 = vpop.permute.xlu2 %6623  ;;  %v6284_v41 = vld [vmem:[%s8714_s25 + $0x4c0] sm:$0xff] }
0x17e6   : > { %v6625_v53 = vunpack.i.l.bf16 %v6624_v52  ;;  %v6626_v54 = vunpack.i.h.bf16 %v6624_v52  ;;  %v6321_v52 = vld [vmem:[%s8714_s25 + $0x5e8] sm:$0xff] }
0x17e7   : > { %6239 = vst.msk [vmem:[%s8052_s10 + $0x8] sm:$0xff] %vm1745_vm4, %v3703_v51  ;;  %6240 = vmatmul.msk.f32.vlgmr.msra.gmra.mxu0 %vm1745_vm4, %v3703_v51  ;;  %v6289_v51 = vld [vmem:[%s8714_s25 + $0x4e8] sm:$0xff] }
0x17e8   : > { %3891 = vmatpush.msrb.mxu3 %v6625_v53  ;;  %3914 = vmatpush.msra.mxu0 %v6226_v20  ;;  %v6287_v53 = vld [vmem:[%s8714_s25 + $0x4d8] sm:$0xff]  ;;  %v6266_v20 = vld [vmem:[%s8714_s25 + $0x430] sm:$0xff] }
0x17ea   : > { %3892 = vmatpush.msrb.mxu3 %v6626_v54  ;;  %3915 = vmatpush.msra.mxu0 %v6224_v27  ;;  %v6319_v54 = vld [vmem:[%s8714_s25 + $0x5d8] sm:$0xff]  ;;  %v6262_v27 = vld [vmem:[%s8714_s25 + $0x410] sm:$0xff] }
0x17ef   : > { %6243 = vmatmul.msk.f32.vlgmr.msrb.gmra.mxu0 %vm1745_vm4, %v3656_v28  ;;  %v6225_v28 = vld [vmem:[%s8747_s7 + $0xc8] sm:$0xff] }
0x17f0   : > { %3935 = vmatpush.msra.mxu2 %v6225_v28  ;;  %4035 = vmatpush.msrb.mxu0 %v6230_v29  ;;  %v6300_v28 = vld [vmem:[%s8714_s25 + $0x540] sm:$0xff]  ;;  %v6263_v29 = vld [vmem:[%s8714_s25 + $0x418] sm:$0xff] }
0x17f2   : > { %4055 = vmatpush.msrb.mxu2 %v6231_v30  ;;  %4036 = vmatpush.msrb.mxu0 %v6228_v32  ;;  %v6301_v30 = vld [vmem:[%s8714_s25 + $0x548] sm:$0xff]  ;;  %v6260_v32 = vld [vmem:[%s8714_s25 + $0x400] sm:$0xff] }
0x17f4   : > { %4056 = vmatpush.msrb.mxu2 %v6229_v33  ;;  %v6298_v33 = vld [vmem:[%s8714_s25 + $0x530] sm:$0xff] }
0x1864   : > { %v3732_v56 = vpop.f32.mrf.mxu0 }
0x1865   : > { %6241 = vmatmul.msk.f32.vlgmr.msra.gmra.mxu1 %vm1745_vm4, %v3732_v56  ;;  %6242 = vmatmul.msk.f32.vlgmr.msra.gmra.mxu3 %vm1745_vm4, %v3732_v56  ;;  %v6317_v56 = vld [vmem:[%s8714_s25 + $0x5c8] sm:$0xff] }
0x1866   : > { %6252 = vmatpush.xpose.msk.msra.mxu1 %vm1745_vm4, %v3947_v5  ;;  %v6283_v5 = vld [vmem:[%s8714_s25 + $0x4b8] sm:$0xff] }
0x186a   : > { %6253 = vmatpush.xpose.msk.msra.mxu1 %vm1745_vm4, %v3945_v60 }
0x186d   : > { %6247 = vmatmul.msk.f32.vlgmr.msrb.gmra.mxu1 %vm1745_vm4, %v3822_v55  ;;  %v6285_v55 = vld [vmem:[%s8714_s25 + $0x4c8] sm:$0xff] }
0x186e   : > { %4152 = vmatpush.msrb.mxu1 %v6290_v34  ;;  %v6261_v34 = vld [vmem:[%s8714_s25 + $0x408] sm:$0xff] }
0x1870   : > { %4153 = vmatpush.msrb.mxu1 %v6288_v35  ;;  %v6299_v35 = vld [vmem:[%s8714_s25 + $0x538] sm:$0xff] }
0x1872   : > { %4154 = vmatpush.msrb.mxu1 %v6286_v37  ;;  %v6296_v37 = vld [vmem:[%s8714_s25 + $0x520] sm:$0xff] }
0x1874   : > { %4155 = vmatpush.msrb.mxu1 %v6284_v41  ;;  %v6295_v41 = vld [vmem:[%s8714_s25 + $0x518] sm:$0xff] }
0x1875   : > { %6254 = vmatmul.msk.f32.vlgmr.msra.gmra.mxu1 %vm1745_vm4, %v3943_v61  ;;  %v6281_v61 = vld [vmem:[%s8714_s25 + $0x4a8] sm:$0xff] }
0x1876   : > { %4156 = vmatpush.msrb.mxu1 %v6282_v31  ;;  %v6293_v31 = vld [vmem:[%s8714_s25 + $0x508] sm:$0xff] }
0x1878   : > { %4157 = vmatpush.msrb.mxu1 %v6280_v45  ;;  %v3818_v45 = vpop.f32.mrf.mxu2 }
0x187a   : > { %4158 = vmatpush.msrb.mxu1 %v6278_v46 }
0x18e2   : > { %v8090_v62 = vpop.f32.mrf.mxu1 }
0x18e8   : > { %v8125_v48 = vpop.f32.mrf.mxu3 }
0x18ea   : > { %v3850_v63 = vpop.f32.mrf.mxu1 }
0x18eb   : > { %v3853_v24 = vmul.f32 0.25, %v3850_v63  ;;  %v6279_v63 = vld [vmem:[%s8714_s25 + $0x498] sm:$0xff] }
0x18ed   : > { %v3854_v25 = vadd.f32 %v3853_v24, %v7724_v26  ;;  %v6276_v24 = vld [vmem:[%s8714_s25 + $0x480] sm:$0xff] }
0x18ee   : > { %4159 = vmatpush.msrb.mxu1 %v6276_v24 }
0x18ef   : > { %v3855_v0 = vsel %vm1745_vm4, %v3854_v25, -inf }
0x18f0   : > { %3856 = vmax.xlane.f32.xlu0 %v3855_v0  ;;  %v6277_v0 = vld [vmem:[%s8714_s25 + $0x488] sm:$0xff] }
0x18f2   : > { %v3971_v1 = vpop.f32.mrf.mxu1 }
0x18f3   : > { %v3974_v3 = vmul.f32 0.25, %v3971_v1  ;;  %v6315_v1 = vld [vmem:[%s8714_s25 + $0x5b8] sm:$0xff] }
0x18f5   : > { %v3975_v58 = vadd.f32 %v3974_v3, %v7724_v26  ;;  %v6274_v3 = vld [vmem:[%s8714_s25 + $0x470] sm:$0xff] }
0x18f6   : > { %4160 = vmatpush.msrb.mxu1 %v6274_v3  ;;  %v6324_v3 = vld [vmem:[%s7087_s29 + $0x4] sm:$0x3] }
0x18f7   : > { %v3976_v6 = vsel %vm1745_vm4, %v3975_v58, -inf }
0x18f8   : > { %3977 = vmax.xlane.f32.xlu1 %v3976_v6  ;;  %v6275_v6 = vld [vmem:[%s8714_s25 + $0x478] sm:$0xff] }
0x1904   : > { %6628 = vrot.lane.b32.xlu0 %v8039_v15, %s8749_s23 }
0x1963   : > { %v3857_v7 = vpop.xlane.xlu0 %3856 }
0x1964   : > { %v3858_v8 = vsub.f32 %v3854_v25, %v3857_v7  ;;  %v6314_v25 = vld [vmem:[%s8714_s25 + $0x5b0] sm:$0xff]  ;;  %v6313_v7 = vld [vmem:[%s8714_s25 + $0x5a8] sm:$0xff] }
0x1966   : > { %v3859_v9 = vmul.f32 1.442695, %v3858_v8  ;;  %v6272_v8 = vld [vmem:[%s8714_s25 + $0x460] sm:$0xff] }
0x1967   : > { %4161 = vmatpush.msrb.mxu1 %v6272_v8 }
0x1968   : > { %6716 = vpow2.f32 %v3859_v9  ;;  %v6310_v9 = vld [vmem:[%s8714_s25 + $0x590] sm:$0xff] }
0x196b   : > { %v3978_v10 = vpop.xlane.xlu1 %3977 }
0x196c   : > { %v3979_v11 = vsub.f32 %v3975_v58, %v3978_v10  ;;  %v6312_v58 = vld [vmem:[%s8714_s25 + $0x5a0] sm:$0xff]  ;;  %v6273_v10 = vld [vmem:[%s8714_s25 + $0x468] sm:$0xff] }
0x196e   : > { %v6717_v12 = vpop.eup %6716  ;;  %v3980_v13 = vmul.f32 1.442695, %v3979_v11  ;;  %v6311_v11 = vld [vmem:[%s8714_s25 + $0x598] sm:$0xff] }
0x196f   : > { %v3861_v16 = vsel %vm1745_vm4, %v6717_v12, 0.0 }
0x1970   : > { %6718 = vpow2.f32 %v3980_v13  ;;  %3862 = vadd.xlane.f32.xlu2 %v3861_v16  ;;  %v6308_v13 = vld [vmem:[%s8714_s25 + $0x580] sm:$0xff]  ;;  %v6271_v16 = vld [vmem:[%s8714_s25 + $0x458] sm:$0xff] }
0x1976   : > { %v6719_v17 = vpop.eup %6718  ;;  %v6629_v19 = vpop.permute.xlu0 %6628 }
0x1977   : > { %v6630_v42 = vunpack.i.l.bf16 %v6629_v19  ;;  %v3982_v15 = vsel %vm1745_vm4, %v6719_v17, 0.0  ;;  %v6631_v47 = vunpack.i.h.bf16 %v6629_v19  ;;  %v6268_v19 = vld [vmem:[%s8714_s25 + $0x440] sm:$0xff] }
0x1978   : > { %3983 = vadd.xlane.f32.xlu2 %v3982_v15  ;;  %v6269_v15 = vld [vmem:[%s8714_s25 + $0x448] sm:$0xff] }
0x1979   : > { %4012 = vmatpush.msra.mxu3 %v6630_v42  ;;  %v6306_v42 = vld [vmem:[%s8714_s25 + $0x570] sm:$0xff] }
0x197b   : > { %4013 = vmatpush.msra.mxu3 %v6631_v47  ;;  %v6307_v47 = vld [vmem:[%s8714_s25 + $0x578] sm:$0xff] }
0x19e3   : > { %v3863_v22 = vpop.xlane.xlu2 %3862 }
0x19e4   : > { %6720 = vrcp.f32 %v3863_v22  ;;  %v6267_v22 = vld [vmem:[%s8714_s25 + $0x438] sm:$0xff] }
0x19ea   : > { %v6721_v23 = vpop.eup %6720 }
0x19eb   : > { %v3865_v18 = vmul.f32 %v6721_v23, %v6717_v12  ;;  %v3984_v2 = vpop.xlane.xlu2 %3983  ;;  %v6270_v12 = vld [vmem:[%s8714_s25 + $0x450] sm:$0xff]  ;;  %v6305_v23 = vld [vmem:[%s8714_s25 + $0x568] sm:$0xff] }
0x19ec   : > { %6722 = vrcp.f32 %v3984_v2  ;;  %4162 = vmatpush.msrb.mxu1 %v6270_v12  ;;  %v6302_v2 = vld [vmem:[%s8714_s25 + $0x550] sm:$0xff] }
0x19ed   : > { %6248 = vst.msk [vmem:[%s8052_s10 + $0x10] sm:$0xff] %vm1745_vm4, %v3865_v18  ;;  %6249 = vmatmul.msk.f32.vlgmr.msrb.gmra.mxu3 %vm1745_vm4, %v3865_v18  ;;  %v6264_v18 = vld [vmem:[%s8714_s25 + $0x420] sm:$0xff] }
0x19ee   : > { %4172 = vmatpush.msrb.mxu3 %v6322_v38  ;;  %4163 = vmatpush.msrb.mxu1 %v6268_v19  ;;  %v6297_v38 = vld [vmem:[%s8714_s25 + $0x528] sm:$0xff] }
0x19f0   : > { %4173 = vmatpush.msrb.mxu3 %v6320_v39  ;;  %4164 = vmatpush.msrb.mxu1 %v6266_v20  ;;  %v6294_v39 = vld [vmem:[%s8714_s25 + $0x510] sm:$0xff] }
0x19f2   : > { %v6723_v14 = vpop.eup %6722  ;;  %4174 = vmatpush.msrb.mxu3 %v6318_v43  ;;  %4165 = vmatpush.msrb.mxu1 %v6264_v18  ;;  %v6292_v43 = vld [vmem:[%s8714_s25 + $0x500] sm:$0xff] }
0x19f3   : > { %v3986_v40 = vmul.f32 %v6723_v14, %v6719_v17  ;;  %v6309_v17 = vld [vmem:[%s8714_s25 + $0x588] sm:$0xff] }
0x19f4   : > { %4175 = vmatpush.msrb.mxu3 %v6316_v44  ;;  %v6265_v14 = vld [vmem:[%s8714_s25 + $0x428] sm:$0xff]  ;;  %4166 = vmatpush.msrb.mxu1 %v6262_v27  ;;  %v3798_v44 = vpop.f32.mrf.mxu0  ;;  %v6331_v27 = vld [vmem:[%s8713_s3 + $0x130] sm:$0xff] }
0x19f5   : > { %6255 = vst.msk [vmem:[%s8052_s10 + $0x18] sm:$0xff] %vm1745_vm4, %v3986_v40  ;;  %6256 = vmatmul.msk.f32.vlgmr.msra.gmra.mxu3 %vm1745_vm4, %v3986_v40  ;;  %v6303_v40 = vld [vmem:[%s8714_s25 + $0x558] sm:$0xff]  ;;  %s8226_s25 = scalar_lea.vmem [#allocation8], %s7592_s11 }
0x19f6   : > { %4176 = vmatpush.msrb.mxu3 %v6314_v25  ;;  %4167 = vmatpush.msrb.mxu1 %v6260_v32 }
0x19f8   : > { %4177 = vmatpush.msrb.mxu3 %v6312_v58  ;;  %v4148_v58 = vperm.slane %v6324_v3, 0 }
0x19fa   : > { %4178 = vmatpush.msrb.mxu3 %v6310_v9 }
0x19fc   : > { %4179 = vmatpush.msrb.mxu3 %v6308_v13 }
0x19fe   : > { %4180 = vmatpush.msrb.mxu3 %v6306_v42 }
0x1a00   : > { %4181 = vmatpush.msrb.mxu3 %v6304_v21 }
0x1a02   : > { %4182 = vmatpush.msrb.mxu3 %v6302_v2 }
0x1a04   : > { %4183 = vmatpush.msrb.mxu3 %v6300_v28  ;;  %v6329_v28 = vld [vmem:[%s8713_s3 + $0x120] sm:$0xff] }
0x1a06   : > { %4184 = vmatpush.msrb.mxu3 %v6298_v33 }
0x1a08   : > { %4185 = vmatpush.msrb.mxu3 %v6296_v37 }
0x1a0a   : > { %4186 = vmatpush.msrb.mxu3 %v6294_v39 }
0x1a0c   : > { %4187 = vmatpush.msrb.mxu3 %v6292_v43 }
0x1a70   : > { %v3894_v50 = vpop.f32.mrf.mxu3 }
0x1a71   : > { %6250 = vmatmul.msk.f32.vlgmr.msra.gmra.mxu0 %vm1745_vm4, %v3894_v50  ;;  %6251 = vmatmul.msk.f32.vlgmr.msra.gmra.mxu2 %vm1745_vm4, %v3894_v50  ;;  %v6259_v50 = vld [vmem:[%s8751_s26 + $0x2] sm:$0x3] }
0x1a72   : > { %4192 = vmatpush.msra.mxu0 %v6291_v49  ;;  %4212 = vmatpush.msra.mxu2 %v6323_v36  ;;  %v3799_v49 = vadd.f32 %v3798_v44, %v8090_v62  ;;  %v4069_v24 = vperm.slane %v6259_v50, 1 }
0x1a74   : > { %4193 = vmatpush.msra.mxu0 %v6289_v51  ;;  %4213 = vmatpush.msra.mxu2 %v6321_v52 }
0x1a76   : > { %4194 = vmatpush.msra.mxu0 %v6287_v53  ;;  %4214 = vmatpush.msra.mxu2 %v6319_v54  ;;  %v4068_v54 = vperm.slane %v6259_v50, 0 }
0x1a78   : > { %v4015_v60 = vpop.f32.mrf.mxu3  ;;  %4195 = vmatpush.msra.mxu0 %v6285_v55  ;;  %4215 = vmatpush.msra.mxu2 %v6317_v56  ;;  %v3819_v55 = vadd.f32 %v3818_v45, %v8125_v48 }
0x1a79   : > { %6257 = vmatmul.msk.f32.vlgmr.msrb.gmra.mxu0 %vm1745_vm4, %v4015_v60  ;;  %6258 = vmatmul.msk.f32.vlgmr.msrb.gmra.mxu2 %vm1745_vm4, %v4015_v60 }
0x1a7a   : > { %4196 = vmatpush.msra.mxu0 %v6283_v5  ;;  %4216 = vmatpush.msra.mxu2 %v6315_v1 }
0x1a7c   : > { %4197 = vmatpush.msra.mxu0 %v6281_v61  ;;  %4217 = vmatpush.msra.mxu2 %v6313_v7 }
0x1a7e   : > { %4198 = vmatpush.msra.mxu0 %v6279_v63  ;;  %4218 = vmatpush.msra.mxu2 %v6311_v11 }
0x1a80   : > { %4199 = vmatpush.msra.mxu0 %v6277_v0  ;;  %4219 = vmatpush.msra.mxu2 %v6309_v17 }
0x1a82   : > { %4200 = vmatpush.msra.mxu0 %v6275_v6  ;;  %4220 = vmatpush.msra.mxu2 %v6307_v47  ;;  %v4149_v6 = vperm.slane %v6324_v3, 1 }
0x1a84   : > { %4201 = vmatpush.msra.mxu0 %v6273_v10  ;;  %4221 = vmatpush.msra.mxu2 %v6305_v23 }
0x1a86   : > { %4202 = vmatpush.msra.mxu0 %v6271_v16  ;;  %4222 = vmatpush.msra.mxu2 %v6303_v40 }
0x1a88   : > { %4203 = vmatpush.msra.mxu0 %v6269_v15  ;;  %4223 = vmatpush.msra.mxu2 %v6301_v30 }
0x1a8a   : > { %4204 = vmatpush.msra.mxu0 %v6267_v22  ;;  %4224 = vmatpush.msra.mxu2 %v6299_v35 }
0x1a8c   : > { %4205 = vmatpush.msra.mxu0 %v6265_v14  ;;  %4225 = vmatpush.msra.mxu2 %v6297_v38 }
0x1a8e   : > { %4206 = vmatpush.msra.mxu0 %v6263_v29  ;;  %4226 = vmatpush.msra.mxu2 %v6295_v41 }
0x1a90   : > { %4207 = vmatpush.msra.mxu0 %v6261_v34  ;;  %4227 = vmatpush.msra.mxu2 %v6293_v31 }
0x1aee   : > { %v3917_v46 = vpop.f32.mrf.mxu0 }
0x1aef   : > { %v3940_v51 = vadd.f32 %v3917_v46, %v3799_v49  ;;  %v6327_v46 = vld [vmem:[%s8713_s3 + $0x110] sm:$0xff]  ;;  %v6328_v49 = vld [vmem:[%s8713_s3 + $0x118] sm:$0xff] }
0x1af4   : > { %v3937_v36 = vpop.f32.mrf.mxu2 }
0x1af5   : > { %v3941_v5 = vadd.f32 %v3937_v36, %v3819_v55  ;;  %v6330_v55 = vld [vmem:[%s8713_s3 + $0x128] sm:$0xff] }
0x1af6   : > { %v4038_v52 = vpop.f32.mrf.mxu0 }
0x1af7   : > { %v4061_v53 = vadd.f32 %v4038_v52, %v3940_v51  ;;  %v6325_v52 = vld [vmem:[%s8713_s3 + $0x100] sm:$0xff] }
0x1af9   : > { %v4063_v56 = vadd.f32 %v4061_v53, %v8012_v57  ;;  %v6326_v53 = vld [vmem:[%s8713_s3 + $0x108] sm:$0xff] }
0x1afb   : > { %v4072_v60 = vadd.f32 %v4068_v54, %v4063_v56  ;;  %v6332_v54 = vld [vmem:[%s8713_s3 + $0x138] sm:$0xff] }
0x1afc   : > { %v4058_v61 = vpop.f32.mrf.mxu2 }
0x1afd   : > { %v4062_v63 = vadd.f32 %v4058_v61, %v3941_v5  ;;  %vm4074_vm9 = vcmp.ge.f32.partialorder %v4072_v60, 0.0  ;;  %v4076_v25 = vmul.f32 0.01, %v4072_v60 }
0x1aff   : > { %v4064_v62 = vadd.f32 %v4062_v63, %v8014_v59  ;;  %v8189_v0 = vsel %vm4074_vm9, %v4072_v60, %v4076_v25 }
0x1b00   : > { %4168 = vmatmul.f32.vlgmr.msrb.gmra.mxu1 %v8189_v0  ;;  %4208 = vmatmul.f32.vlgmr.msra.gmra.mxu0 %v8189_v0 }
0x1b01   : > { %v4073_v1 = vadd.f32 %v4069_v24, %v4064_v62 }
0x1b03   : > { %vm4075_vm10 = vcmp.ge.f32.partialorder %v4073_v1, 0.0  ;;  %v4077_v48 = vmul.f32 0.01, %v4073_v1 }
0x1b05   : > { %v8193_v57 = vsel %vm4075_vm10, %v4073_v1, %v4077_v48 }
0x1b06   : > { %4188 = vmatmul.f32.vlgmr.msrb.gmra.mxu3 %v8193_v57  ;;  %4228 = vmatmul.f32.vlgmr.msra.gmra.mxu2 %v8193_v57 }
0x1b7d   : > { %v4169_v7 = vpop.f32.mrf.mxu1  ;;  %v4209_v59 = vpop.f32.mrf.mxu0 }
0x1b7e   : > { %v4170_v8 = vadd.f32 %v4169_v7, %v4148_v58  ;;  %v4210_v9 = vadd.f32 %v4209_v59, %v4149_v6 }
0x1b89   : > { %v4189_v10 = vpop.f32.mrf.mxu3  ;;  %v4229_v11 = vpop.f32.mrf.mxu2 }
0x1b8a   : > { %v4190_v12 = vadd.f32 %v4189_v10, %v4170_v8  ;;  %v8198_v13 = vadd.f32 %v4229_v11, %v4210_v9 }
0x1b8c   : > { %4357 = vrot.lane.b32.xlu2 %v8198_v13, %s8741_s20  ;;  %4308 = vmatpush.msra.mxu3 %v8198_v13 }
0x1b8d   : > { %4313 = vrot.lane.b32.xlu0 %v4190_v12, %s8741_s20  ;;  %4315 = vrot.lane.b32.xlu1 %v4190_v12, %s8743_s21 }
0x1b8e   : > { %4420 = vmatpush.msrb.mxu3 %v6332_v54  ;;  %v6398_v54 = vld [vmem:[%s8734_s5 + $0x60] sm:$0xff] }
0x1b90   : > { %4421 = vmatpush.msrb.mxu3 %v6330_v55  ;;  %v6372_v55 = vld [vmem:[%s8711_s14 + $0x238] sm:$0xff] }
0x1b94   : > { %4250 = vrot.lane.b32.xlu2 %v4190_v12, %s8742_s17 }
0x1b9c   : > { %4469 = vrot.lane.b32.xlu2 %v4190_v12, %s8744_s27 }
0x1ba4   : > { %4583 = vrot.lane.b32.xlu2 %v4190_v12, %s8745_s15 }
0x1be6   : > { %v4358_v16 = vpop.permute.xlu2 %4357 }
0x1be7   : > { %4378 = vmatpush.msrb.mxu2 %v4358_v16 }
0x1be9   : > { %4463 = vmatpush.msra.mxu2 %v6328_v49 }
0x1beb   : > { %4464 = vmatpush.msra.mxu2 %v6326_v53 }
0x1bee   : > { %v4251_v17 = vpop.permute.xlu2 %4250 }
0x1bef   : > { %6341 = vmatpush.xpose.msk.msra.mxu1 %vm1745_vm4, %v4251_v17  ;;  %v6335_v17 = vld [vmem:[%s8713_s3 + $0x150] sm:$0xff] }
0x1bf2   : > { %6342 = vmatmul.msk.f32.vlgmr.msra.gmra.mxu1 %vm1745_vm4, %v4190_v12 }
0x1bf3   : > { %4400 = vmatpush.msrb.mxu1 %v6331_v27  ;;  %v6337_v27 = vld [vmem:[%s8713_s3 + $0x160] sm:$0xff] }
0x1bf5   : > { %4401 = vmatpush.msrb.mxu1 %v6329_v28  ;;  %v6338_v28 = vld [vmem:[%s8713_s3 + $0x168] sm:$0xff] }
0x1bf6   : > { %v4470_v14 = vpop.permute.xlu2 %4469 }
0x1bfe   : > { %v4584_v40 = vpop.permute.xlu2 %4583 }
0x1bff   : > { %v4316_v19 = vpop.permute.xlu1 %4315  ;;  %v4314_v42 = vpop.permute.xlu0 %4313 }
0x1c00   : > { %6344 = vmatpush.xpose.msk.msrb.mxu0 %vm1745_vm4, %v4316_v19  ;;  %v6336_v19 = vld [vmem:[%s8713_s3 + $0x158] sm:$0xff] }
0x1c03   : > { %6345 = vmatmul.msk.f32.vlgmr.msrb.gmra.mxu0 %vm1745_vm4, %v4314_v42 }
0x1c04   : > { %4443 = vmatpush.msra.mxu0 %v6327_v46  ;;  %v6403_v46 = vld [vmem:[%s8734_s5 + $0x88] sm:$0xff] }
0x1c06   : > { %4444 = vmatpush.msra.mxu0 %v6325_v52  ;;  %v6399_v52 = vld [vmem:[%s8734_s5 + $0x68] sm:$0xff] }
0x1c08   : > { %4555 = vmatpush.msrb.mxu0 %v6335_v17 }
0x1c6f   : > { %v4273_v15 = vpop.f32.mrf.mxu1 }
0x1c70   : > { %v4276_v47 = vmul.f32 0.25, %v4273_v15 }
0x1c72   : > { %v4277_v20 = vadd.f32 %v4276_v47, %v7578_v4 }
0x1c74   : > { %v4278_v21 = vsel %vm1772_vm5, %v4277_v20, -inf }
0x1c75   : > { %4279 = vmax.xlane.f32.xlu2 %v4278_v21 }
0x1c80   : > { %v4338_v22 = vpop.f32.mrf.mxu0 }
0x1c81   : > { %v4341_v23 = vmul.f32 0.25, %v4338_v22 }
0x1c83   : > { %v4342_v18 = vadd.f32 %v4341_v23, %v7578_v4 }
0x1c85   : > { %v4343_v2 = vsel %vm1772_vm5, %v4342_v18, -inf }
0x1c86   : > { %4344 = vmax.xlane.f32.xlu0 %v4343_v2  ;;  %v6334_v2 = vld [vmem:[%s8713_s3 + $0x148] sm:$0xff] }
0x1c9a   : > { %4471 = vrot.lane.b32.xlu0 %v4190_v12, %s8748_s2 }
0x1ce8   : > { %v4280_v29 = vpop.xlane.xlu2 %4279 }
0x1ce9   : > { %v4281_v30 = vsub.f32 %v4277_v20, %v4280_v29  ;;  %v6380_v29 = vld [vmem:[%s8711_s14 + $0x278] sm:$0xff] }
0x1ceb   : > { %v4282_v32 = vmul.f32 1.442695, %v4281_v30  ;;  %v6379_v30 = vld [vmem:[%s8711_s14 + $0x270] sm:$0xff] }
0x1ced   : > { %6724 = vpow2.f32 %v4282_v32  ;;  %v6396_v32 = vld [vmem:[%s8711_s14 + $0x2f8] sm:$0xff] }
0x1cf3   : > { %v6725_v33 = vpop.eup %6724 }
0x1cf4   : > { %v4284_v34 = vsel %vm1772_vm5, %v6725_v33, 0.0 }
0x1cf5   : > { %4285 = vadd.xlane.f32.xlu2 %v4284_v34  ;;  %v6395_v34 = vld [vmem:[%s8711_s14 + $0x2f0] sm:$0xff] }
0x1cf9   : > { %v4345_v35 = vpop.xlane.xlu0 %4344 }
0x1cfa   : > { %v4346_v37 = vsub.f32 %v4342_v18, %v4345_v35  ;;  %v6333_v18 = vld [vmem:[%s8713_s3 + $0x140] sm:$0xff]  ;;  %v6394_v35 = vld [vmem:[%s8711_s14 + $0x2e8] sm:$0xff] }
0x1cfb   : > { %4556 = vmatpush.msrb.mxu0 %v6333_v18 }
0x1cfc   : > { %v4347_v38 = vmul.f32 1.442695, %v4346_v37  ;;  %v6377_v37 = vld [vmem:[%s8711_s14 + $0x260] sm:$0xff] }
0x1cfe   : > { %6726 = vpow2.f32 %v4347_v38  ;;  %v6393_v38 = vld [vmem:[%s8711_s14 + $0x2e0] sm:$0xff] }
0x1d04   : > { %v6727_v39 = vpop.eup %6726 }
0x1d05   : > { %v4349_v41 = vsel %vm1772_vm5, %v6727_v39, 0.0 }
0x1d06   : > { %4350 = vadd.xlane.f32.xlu1 %v4349_v41  ;;  %v6392_v41 = vld [vmem:[%s8711_s14 + $0x2d8] sm:$0xff] }
0x1d0c   : > { %v4472_v43 = vpop.permute.xlu0 %4471 }
0x1d0d   : > { %6352 = vmatpush.xpose.msk.msra.mxu1 %vm1745_vm4, %v4472_v43  ;;  %v6375_v43 = vld [vmem:[%s8711_s14 + $0x250] sm:$0xff] }
0x1d1f   : > { %4585 = vrot.lane.b32.xlu1 %v4190_v12, %s8749_s23 }
0x1d68   : > { %v4286_v31 = vpop.xlane.xlu2 %4285 }
0x1d69   : > { %6728 = vrcp.f32 %v4286_v31  ;;  %v6374_v31 = vld [vmem:[%s8711_s14 + $0x248] sm:$0xff] }
0x1d6f   : > { %v6729_v44 = vpop.eup %6728 }
0x1d70   : > { %v4288_v45 = vmul.f32 %v6729_v44, %v6725_v33  ;;  %v6378_v33 = vld [vmem:[%s8711_s14 + $0x268] sm:$0xff]  ;;  %v6373_v44 = vld [vmem:[%s8711_s14 + $0x240] sm:$0xff] }
0x1d72   : > { %4289 = vst.msk [vmem:[%s8226_s25] sm:$0xff] %vm1772_vm5, %v4288_v45  ;;  %6343 = vmatmul.msk.f32.vlgmr.msra.gmra.mxu3 %vm1772_vm5, %v4288_v45 }
0x1d79   : > { %v4351_v36 = vpop.xlane.xlu1 %4350 }
0x1d7a   : > { %6730 = vrcp.f32 %v4351_v36  ;;  %v6402_v36 = vld [vmem:[%s8734_s5 + $0x80] sm:$0xff] }
0x1d80   : > { %v6731_v50 = vpop.eup %6730 }
0x1d81   : > { %v4353_v51 = vmul.f32 %v6731_v50, %v6727_v39  ;;  %v6376_v39 = vld [vmem:[%s8711_s14 + $0x258] sm:$0xff] }
0x1d82   : > { %v6401_v50 = vld [vmem:[%s8734_s5 + $0x78] sm:$0xff] }
0x1d83   : > { %6346 = vst.msk [vmem:[%s8226_s25 + $0x8] sm:$0xff] %vm1772_vm5, %v4353_v51  ;;  %6347 = vmatmul.msk.f32.vlgmr.msrb.gmra.mxu2 %vm1772_vm5, %v4353_v51  ;;  %v6400_v51 = vld [vmem:[%s8734_s5 + $0x70] sm:$0xff] }
0x1d84   : > { %4575 = vmatpush.msrb.mxu2 %v6336_v19 }
0x1d86   : > { %4576 = vmatpush.msrb.mxu2 %v6334_v2 }
0x1d91   : > { %v4586_v60 = vpop.permute.xlu1 %4585 }
0x1df5   : > { %v4310_v56 = vpop.f32.mrf.mxu3 }
0x1df6   : > { %6350 = vmatmul.msk.f32.vlgmr.msra.gmra.mxu0 %vm1745_vm4, %v4310_v56  ;;  %6351 = vmatmul.msk.f32.vlgmr.msra.gmra.mxu2 %vm1745_vm4, %v4310_v56  ;;  %v6391_v56 = vld [vmem:[%s8711_s14 + $0x2d0] sm:$0xff] }
0x1e06   : > { %v4380_v5 = vpop.f32.mrf.mxu2 }
0x1e07   : > { %6348 = vmatmul.msk.f32.vlgmr.msrb.gmra.mxu1 %vm1745_vm4, %v4380_v5  ;;  %6349 = vmatmul.msk.f32.vlgmr.msrb.gmra.mxu3 %vm1745_vm4, %v4380_v5  ;;  %v6371_v5 = vld [vmem:[%s8711_s14 + $0x230] sm:$0xff] }
0x1e08   : > { %6358 = vmatpush.xpose.msk.msrb.mxu1 %vm1745_vm4, %v4586_v60  ;;  %v6390_v60 = vld [vmem:[%s8711_s14 + $0x2c8] sm:$0xff] }
0x1e0f   : > { %6353 = vmatmul.msk.f32.vlgmr.msra.gmra.mxu1 %vm1745_vm4, %v4470_v14  ;;  %v6339_v14 = vld [vmem:[%s8713_s3 + $0x170] sm:$0xff] }
0x1e10   : > { %4669 = vmatpush.msra.mxu0 %v6339_v14  ;;  %4746 = vmatpush.msra.mxu1 %v6380_v29 }
0x1e12   : > { %4670 = vmatpush.msra.mxu0 %v6337_v27  ;;  %4747 = vmatpush.msra.mxu1 %v6379_v30  ;;  %v6656_v30 = vld [vmem:[%s8738_s16 + $0x2] ss:$0 sm:$0xff] }
0x1e14   : > { %4748 = vmatpush.msra.mxu1 %v6378_v33 }
0x1e16   : > { %4749 = vmatpush.msra.mxu1 %v6377_v37 }
0x1e17   : > { %6359 = vmatmul.msk.f32.vlgmr.msrb.gmra.mxu1 %vm1745_vm4, %v4584_v40  ;;  %v6340_v40 = vld [vmem:[%s8713_s3 + $0x178] sm:$0xff] }
0x1e18   : > { %4689 = vmatpush.msra.mxu2 %v6340_v40  ;;  %4750 = vmatpush.msra.mxu1 %v6376_v39 }
0x1e1a   : > { %4690 = vmatpush.msra.mxu2 %v6338_v28  ;;  %4751 = vmatpush.msra.mxu1 %v6375_v43 }
0x1e1c   : > { %4752 = vmatpush.msra.mxu1 %v6374_v31 }
0x1e1e   : > { %4753 = vmatpush.msra.mxu1 %v6373_v44 }
0x1e20   : > { %4754 = vmatpush.msra.mxu1 %v6372_v55 }
0x1e22   : > { %4755 = vmatpush.msra.mxu1 %v6371_v5 }
0x1e79   : > { %v4466_v17 = vpop.f32.mrf.mxu2 }
0x1e84   : > { %v8245_v61 = vpop.f32.mrf.mxu1 }
0x1e8a   : > { %v8284_v45 = vpop.f32.mrf.mxu3 }
0x1e8c   : > { %v4494_v63 = vpop.f32.mrf.mxu1 }
0x1e8d   : > { %v4497_v24 = vmul.f32 0.25, %v4494_v63  ;;  %v6762_v63 = vld [vmem:[%s7663_s9] sm:$0xff] }
0x1e8f   : > { %v4498_v25 = vadd.f32 %v4497_v24, %v7578_v4  ;;  %v6370_v24 = vld [vmem:[%s8711_s14 + $0x228] sm:$0xff] }
0x1e90   : > { %4756 = vmatpush.msra.mxu1 %v6370_v24  ;;  %v6409_v24 = vld [vmem:[%s8747_s7 + $0x110] sm:$0xff] }
0x1e91   : > { %v4499_v62 = vsel %vm1772_vm5, %v4498_v25, -inf }
0x1e92   : > { %4500 = vmax.xlane.f32.xlu0 %v4499_v62  ;;  %v6369_v62 = vld [vmem:[%s8711_s14 + $0x220] sm:$0xff] }
0x1e93   : > { %4757 = vmatpush.msra.mxu1 %v6369_v62 }
0x1e94   : > { %v4608_v1 = vpop.f32.mrf.mxu1 }
0x1e95   : > { %v4611_v48 = vmul.f32 0.25, %v4608_v1  ;;  %v6388_v1 = vld [vmem:[%s8711_s14 + $0x2b8] sm:$0xff] }
0x1e97   : > { %v4612_v3 = vadd.f32 %v4611_v48, %v7578_v4  ;;  %v6368_v48 = vld [vmem:[%s8711_s14 + $0x218] sm:$0xff] }
0x1e98   : > { %4758 = vmatpush.msra.mxu1 %v6368_v48 }
0x1e99   : > { %v4613_v58 = vsel %vm1772_vm5, %v4612_v3, -inf }
0x1e9a   : > { %4614 = vmax.xlane.f32.xlu1 %v4613_v58  ;;  %v6367_v58 = vld [vmem:[%s8711_s14 + $0x210] sm:$0xff] }
0x1e9b   : > { %4759 = vmatpush.msra.mxu1 %v6367_v58  ;;  %v6411_v58 = vld [vmem:[%s8747_s7 + $0x120] sm:$0xff] }
0x1eb3   : > { %4626 = vrot.lane.b32.xlu1 %v8198_v13, %s8745_s15 }
0x1f05   : > { %v4501_v6 = vpop.xlane.xlu0 %4500 }
0x1f06   : > { %v4502_v7 = vsub.f32 %v4498_v25, %v4501_v6  ;;  %v6389_v25 = vld [vmem:[%s8711_s14 + $0x2c0] sm:$0xff]  ;;  %v6386_v6 = vld [vmem:[%s8711_s14 + $0x2a8] sm:$0xff] }
0x1f08   : > { %v4503_v59 = vmul.f32 1.442695, %v4502_v7  ;;  %v6763_v7 = vld [vmem:[%s7663_s9 + $0x8] sm:$0xff]  ;;  %s8363_s9 = scalar_lea.vmem [#allocation13], %s7592_s11 }
0x1f0a   : > { %6732 = vpow2.f32 %v4503_v59  ;;  %v6366_v59 = vld [vmem:[%s8711_s14 + $0x208] sm:$0xff] }
0x1f0b   : > { %4760 = vmatpush.msra.mxu1 %v6366_v59 }
0x1f0d   : > { %v4615_v8 = vpop.xlane.xlu1 %4614 }
0x1f0e   : > { %v4616_v9 = vsub.f32 %v4612_v3, %v4615_v8  ;;  %v6387_v3 = vld [vmem:[%s8711_s14 + $0x2b0] sm:$0xff]  ;;  %v6385_v8 = vld [vmem:[%s8711_s14 + $0x2a0] sm:$0xff] }
0x1f10   : > { %v6733_v10 = vpop.eup %6732  ;;  %v4617_v11 = vmul.f32 1.442695, %v4616_v9  ;;  %v6365_v9 = vld [vmem:[%s8711_s14 + $0x200] sm:$0xff] }
0x1f11   : > { %v4505_v12 = vsel %vm1772_vm5, %v6733_v10, 0.0  ;;  %4761 = vmatpush.msra.mxu1 %v6365_v9  ;;  %v6408_v9 = vld [vmem:[%s8747_s7 + $0x108] sm:$0xff] }
0x1f12   : > { %6734 = vpow2.f32 %v4617_v11  ;;  %4506 = vadd.xlane.f32.xlu0 %v4505_v12  ;;  %v6383_v11 = vld [vmem:[%s8711_s14 + $0x290] sm:$0xff]  ;;  %v6382_v12 = vld [vmem:[%s8711_s14 + $0x288] sm:$0xff] }
0x1f13   : > { %5046 = vmatpush.msrb.mxu1 %v6409_v24 }
0x1f18   : > { %v6735_v4 = vpop.eup %6734 }
0x1f19   : > { %v4619_v16 = vsel %vm1772_vm5, %v6735_v4, 0.0 }
0x1f1a   : > { %4620 = vadd.xlane.f32.xlu2 %v4619_v16  ;;  %v4446_v16 = vpop.f32.mrf.mxu0 }
0x1f25   : > { %v4627_v23 = vpop.permute.xlu1 %4626 }
0x1f26   : > { %4512 = vrot.lane.b32.xlu0 %v8198_v13, %s8744_s27 }
0x1f85   : > { %v4507_v42 = vpop.xlane.xlu0 %4506 }
0x1f86   : > { %6736 = vrcp.f32 %v4507_v42  ;;  %v4447_v42 = vadd.f32 %v4446_v16, %v8245_v61 }
0x1f8c   : > { %v6737_v15 = vpop.eup %6736 }
0x1f8d   : > { %v4509_v47 = vmul.f32 %v6737_v15, %v6733_v10  ;;  %v4621_v20 = vpop.xlane.xlu2 %4620  ;;  %v6384_v10 = vld [vmem:[%s8711_s14 + $0x298] sm:$0xff] }
0x1f8e   : > { %6738 = vrcp.f32 %v4621_v20 }
0x1f8f   : > { %6354 = vst.msk [vmem:[%s8226_s25 + $0x10] sm:$0xff] %vm1772_vm5, %v4509_v47 }
0x1f94   : > { %v6739_v21 = vpop.eup %6738 }
0x1f95   : > { %v4623_v22 = vmul.f32 %v6739_v21, %v6735_v4  ;;  %v6381_v4 = vld [vmem:[%s8711_s14 + $0x280] sm:$0xff] }
0x1f97   : > { %6360 = vst.msk [vmem:[%s8226_s25 + $0x18] sm:$0xff] %vm1772_vm5, %v4623_v22 }
0x1f98   : > { %v4513_v13 = vpop.permute.xlu0 %4512 }
0x1f99   : > { %4533 = vmatpush.msra.mxu3 %v4513_v13 }
0x1f9a   : > { %6355 = vmatmul.msk.f32.vlgmr.msra.gmra.mxu3 %vm1772_vm5, %v4509_v47  ;;  %v6364_v47 = vld [vmem:[%s8737_s6 + $0x4] sm:$0x3] }
0x1f9b   : > { %4647 = vmatpush.msrb.mxu3 %v4627_v23  ;;  %v4702_v13 = vperm.slane %v6364_v47, 0  ;;  %v4467_v23 = vadd.f32 %v4466_v17, %v8284_v45  ;;  %v4703_v28 = vperm.slane %v6364_v47, 1 }
0x1f9d   : > { %4766 = vmatpush.msra.mxu3 %v6396_v32 }
0x1f9f   : > { %4767 = vmatpush.msra.mxu3 %v6395_v34 }
0x1fa1   : > { %4768 = vmatpush.msra.mxu3 %v6394_v35 }
0x1fa2   : > { %6361 = vmatmul.msk.f32.vlgmr.msrb.gmra.mxu3 %vm1772_vm5, %v4623_v22 }
0x1fa3   : > { %4769 = vmatpush.msra.mxu3 %v6393_v38 }
0x1fa5   : > { %4770 = vmatpush.msra.mxu3 %v6392_v41 }
0x1fa7   : > { %4771 = vmatpush.msra.mxu3 %v6391_v56 }
0x1fa9   : > { %4772 = vmatpush.msra.mxu3 %v6390_v60 }
0x1fab   : > { %4773 = vmatpush.msra.mxu3 %v6389_v25  ;;  %v6410_v25 = vld [vmem:[%s8747_s7 + $0x118] sm:$0xff] }
0x1fad   : > { %4774 = vmatpush.msra.mxu3 %v6388_v1  ;;  %v6413_v1 = vld [vmem:[%s8747_s7 + $0x130] sm:$0xff] }
0x1faf   : > { %4775 = vmatpush.msra.mxu3 %v6387_v3 }
0x1fb1   : > { %4776 = vmatpush.msra.mxu3 %v6386_v6 }
0x1fb3   : > { %4777 = vmatpush.msra.mxu3 %v6385_v8  ;;  %v6407_v8 = vld [vmem:[%s8747_s7 + $0x100] sm:$0xff] }
0x1fb4   : > { %5047 = vmatpush.msrb.mxu1 %v6407_v8 }
0x1fb5   : > { %4778 = vmatpush.msra.mxu3 %v6384_v10 }
0x1fb7   : > { %4779 = vmatpush.msra.mxu3 %v6383_v11 }
0x1fb9   : > { %4780 = vmatpush.msra.mxu3 %v6382_v12 }
0x1fbb   : > { %4781 = vmatpush.msra.mxu3 %v6381_v4 }
0x1fbd   : > { %5066 = vmatpush.msrb.mxu3 %v6410_v25 }
0x1fbf   : > { %5067 = vmatpush.msrb.mxu3 %v6408_v9 }
0x201d   : > { %v4535_v49 = vpop.f32.mrf.mxu3 }
0x201e   : > { %6356 = vmatmul.msk.f32.vlgmr.msrb.gmra.mxu0 %vm1745_vm4, %v4535_v49  ;;  %6357 = vmatmul.msk.f32.vlgmr.msrb.gmra.mxu2 %vm1745_vm4, %v4535_v49 }
0x201f   : > { %4808 = vmatpush.msrb.mxu0 %v6403_v46 }
0x2021   : > { %4809 = vmatpush.msrb.mxu0 %v6402_v36 }
0x2023   : > { %4810 = vmatpush.msrb.mxu0 %v6401_v50 }
0x2025   : > { %v4649_v53 = vpop.f32.mrf.mxu3  ;;  %4811 = vmatpush.msrb.mxu0 %v6400_v51 }
0x2026   : > { %6362 = vmatmul.msk.f32.vlgmr.msra.gmra.mxu0 %vm1745_vm4, %v4649_v53  ;;  %6363 = vmatmul.msk.f32.vlgmr.msra.gmra.mxu2 %vm1745_vm4, %v4649_v53 }
0x2027   : > { %4812 = vmatpush.msrb.mxu0 %v6399_v52 }
0x2029   : > { %4813 = vmatpush.msrb.mxu0 %v6398_v54 }
0x202e   : > { %6405 = vmatmul.msk.f32.vlgmr.msrb.gmra.mxu0 %vm2288_vm6, %v6762_v63 }
0x2036   : > { %6406 = vmatmul.msk.f32.gmra.mxu0 %vm2288_vm6, %v6763_v7 }
0x209b   : > { %v4558_v19 = vpop.f32.mrf.mxu0 }
0x209c   : > { %v4581_v20 = vadd.f32 %v4558_v19, %v4447_v42 }
0x20a1   : > { %v4578_v15 = vpop.f32.mrf.mxu2 }
0x20a2   : > { %v4582_v2 = vadd.f32 %v4578_v15, %v4467_v23  ;;  %v6412_v23 = vld [vmem:[%s8747_s7 + $0x128] sm:$0xff] }
0x20a3   : > { %v4672_v21 = vpop.f32.mrf.mxu0 }
0x20a4   : > { %v4695_v22 = vadd.f32 %v4672_v21, %v4581_v20  ;;  %v6414_v20 = vld [vmem:[%s8747_s7 + $0x138] sm:$0xff] }
0x20a6   : > { %v4697_v18 = vadd.f32 %v4695_v22, %v8189_v0 }
0x20a8   : > { %v8323_v14 = vadd.f32 %v4702_v13, %v4697_v18 }
0x20a9   : > { %v4692_v40 = vpop.f32.mrf.mxu2 }
0x20aa   : > { %v4696_v27 = vadd.f32 %v4692_v40, %v4582_v2  ;;  %4762 = vmatmul.f32.vlgmr.msra.gmra.mxu1 %v8323_v14 }
0x20ab   : > { %v4815_v32 = vpop.f32.mrf.mxu0 }
0x20ac   : > { %v4698_v61 = vadd.f32 %v4696_v27, %v8193_v57  ;;  %v8331_v33 = vadd.f32 %v6656_v30, %v4815_v32  ;;  %v6657_v57 = vld [vmem:[%s8739_s12 + $0x2] ss:$0 sm:$0xff] }
0x20ae   : > { %v8327_v29 = vadd.f32 %v4703_v28, %v4698_v61  ;;  %4912 = vrot.lane.b32.xlu1 %v8331_v33, %s8741_s20 }
0x20b0   : > { %4782 = vmatmul.f32.vlgmr.msra.gmra.mxu3 %v8327_v29 }
0x20b3   : > { %v4818_v0 = vpop.f32.mrf.mxu0 }
0x20b4   : > { %v4819_v34 = vadd.f32 %v6656_v30, %v4818_v0 }
0x20b6   : > { %6423 = vmatpush.xpose.msk.msrb.mxu2 %vm1745_vm4, %v4819_v34  ;;  %4914 = vrot.lane.b32.xlu0 %v4819_v34, %s8741_s20  ;;  %v8350_v51 = vpack.i.bf16 %v8331_v33, %v4819_v34 }
0x20ba   : > { %6424 = vmatpush.xpose.msk.msrb.mxu2 %vm1745_vm4, %v8331_v33 }
0x2120   : > { %v4913_v48 = vpop.permute.xlu1 %4912 }
0x2127   : > { %v4763_v35 = vpop.f32.mrf.mxu1 }
0x2128   : > { %v4764_v37 = vadd.f32 %v6657_v57, %v4763_v35  ;;  %v4915_v5 = vpop.permute.xlu0 %4914 }
0x2133   : > { %v4783_v38 = vpop.f32.mrf.mxu3 }
0x2134   : > { %v8340_v39 = vadd.f32 %v4783_v38, %v4764_v37 }
0x2136   : > { %4910 = vrot.lane.b32.xlu0 %v8340_v39, %s8741_s20  ;;  %6425 = vmatmul.msk.f32.vlgmr.msrb.gmra.mxu2 %vm1745_vm4, %v8340_v39  ;;  %s8752_s20 = sld [smem:[#allocation38_spill]] }
0x21a8   : > { %v4911_v6 = vpop.permute.xlu0 %4910 }
0x21b9   : > { %v4864_v41 = vpop.f32.mrf.mxu2 }
0x21ba   : > { %v4867_v43 = vmul.f32 0.25, %v4864_v41 }
0x21bc   : > { %v4868_v31 = vadd.f32 %v4867_v43, %v7724_v26 }
0x21be   : > { %v4869_v44 = vsel %vm1745_vm4, %v4868_v31, -inf }
0x21bf   : > { %4870 = vmax.xlane.f32.xlu2 %v4869_v44 }
0x2232   : > { %v4871_v45 = vpop.xlane.xlu2 %4870 }
0x2233   : > { %v4872_v46 = vsub.f32 %v4868_v31, %v4871_v45 }
0x2235   : > { %v4873_v49 = vmul.f32 1.442695, %v4872_v46 }
0x2237   : > { %6740 = vpow2.f32 %v4873_v49 }
0x223d   : > { %v6741_v36 = vpop.eup %6740 }
0x223e   : > { %v4875_v50 = vsel %vm1745_vm4, %v6741_v36, 0.0 }
0x223f   : > { %4876 = vadd.xlane.f32.xlu2 %v4875_v50 }
0x2257   : > { %6633 = vrot.lane.b32.xlu2 %v8350_v51, %s8742_s17  ;;  %s8508_s17 = sand.u32 1, %s7238_s0  }
0x2258   : > { %s8682_s3 = scalar_lea.sflag [#allocation6], %s8508_s17 }
0x225f   : > { %6638 = vrot.lane.b32.xlu2 %v8350_v51, %s8743_s21  ;;  %s5570_s21 = sshll.u32 %s7595_s24, 4  ;;  %s5571_s21 = int_to_ptr.vmem [resolvable:$true] %s5570_s21 }
0x2267   : > { %5076 = vrot.lane.b32.xlu2 %v4819_v34, %s8744_s27 }
0x226f   : > { %5074 = vrot.lane.b32.xlu2 %v8331_v33, %s8744_s27 }
0x2277   : > { %5072 = vrot.lane.b32.xlu2 %v8340_v39, %s8744_s27  ;;  %s8753_s27 = sld [smem:[#allocation40_spill]] }
0x227d   : > { %v5424_v9 = vld [vmem:[%s8753_s27 + $0x78] sm:$0xff] }
0x227f   : > { %5197 = vrot.lane.b32.xlu2 %v4819_v34, %s8745_s15 }
0x22b2   : > { %v4877_v52 = vpop.xlane.xlu2 %4876 }
0x22b3   : > { %6742 = vrcp.f32 %v4877_v52 }
0x22b9   : > { %v6743_v53 = vpop.eup %6742 }
0x22ba   : > { %v4879_v54 = vmul.f32 %v6743_v53, %v6741_v36  ;;  %v6634_v55 = vpop.permute.xlu2 %6633  ;;  %v6417_v53 = vld [vmem:[%s8747_s7 + $0x150] sm:$0xff] }
0x22bb   : > { %v6635_v56 = vunpack.i.l.bf16 %v6634_v55  ;;  %v6636_v60 = vunpack.i.h.bf16 %v6634_v55  ;;  %5165 = vmatpush.msra.mxu1 %v6417_v53  ;;  %v5432_v53 = vld [vmem:[%s8753_s27 + $0xb8] sm:$0xff] }
0x22bc   : > { %4880 = vst.msk [vmem:[%s8363_s9] sm:$0xff] %vm1745_vm4, %v4879_v54 }
0x22bd   : > { %4904 = vmatpush.msra.mxu2 %v6635_v56 }
0x22bf   : > { %4905 = vmatpush.msra.mxu2 %v6636_v60 }
0x22c0   : > { %6426 = vmatmul.msk.f32.vlgmr.msra.gmra.mxu2 %vm1745_vm4, %v4879_v54  ;;  %v6418_v54 = vld [vmem:[%s8747_s7 + $0x158] sm:$0xff] }
0x22c1   : > { %6427 = vmatpush.xpose.msk.msrb.mxu2 %vm1745_vm4, %v4915_v5  ;;  %5185 = vmatpush.msra.mxu3 %v6418_v54  ;;  %v5334_v54 = vld [vmem:[%s8752_s20 + $0x18] sm:$0xff] }
0x22c2   : > { %v6639_v63 = vpop.permute.xlu2 %6638 }
0x22c3   : > { %v6640_v62 = vunpack.i.l.bf16 %v6639_v63  ;;  %v6641_v3 = vunpack.i.h.bf16 %v6639_v63 }
0x22c5   : > { %6428 = vmatpush.xpose.msk.msrb.mxu2 %vm1745_vm4, %v4913_v48  ;;  %4980 = vmatpush.msra.mxu0 %v6640_v62  ;;  %v6416_v48 = vld [vmem:[%s8747_s7 + $0x148] sm:$0xff] }
0x22c6   : > { %5186 = vmatpush.msra.mxu3 %v6416_v48  ;;  %v5429_v48 = vld [vmem:[%s8753_s27 + $0xa0] sm:$0xff] }
0x22c7   : > { %4981 = vmatpush.msra.mxu0 %v6641_v3  ;;  %v6421_v3 = vld [vmem:[%s8747_s7 + $0x170] sm:$0xff] }
0x22c8   : > { %6429 = vmatmul.msk.f32.vlgmr.msrb.gmra.mxu2 %vm1745_vm4, %v4911_v6  ;;  %v6419_v6 = vld [vmem:[%s8747_s7 + $0x160] sm:$0xff] }
0x22c9   : > { %5003 = vmatpush.msra.mxu2 %v6413_v1  ;;  %5023 = vmatpush.msrb.mxu0 %v6414_v20  ;;  %v6415_v1 = vld [vmem:[%s8747_s7 + $0x140] sm:$0xff]  ;;  %v5342_v20 = vld [vmem:[%s8752_s20 + $0x58] sm:$0xff] }
0x22ca   : > { %v5077_v7 = vpop.permute.xlu2 %5076  ;;  %5166 = vmatpush.msra.mxu1 %v6415_v1  ;;  %v5410_v1 = vld [vmem:[%s8753_s27 + $0x8] sm:$0xff] }
0x22cb   : > { %5004 = vmatpush.msra.mxu2 %v6411_v58  ;;  %5024 = vmatpush.msrb.mxu0 %v6412_v23  ;;  %v6422_v58 = vld [vmem:[%s8747_s7 + $0x178] sm:$0xff]  ;;  %v5341_v23 = vld [vmem:[%s8752_s20 + $0x50] sm:$0xff] }
0x22cd   : > { %6436 = vmatpush.xpose.msk.msrb.mxu2 %vm1745_vm4, %v5077_v7  ;;  %v6420_v7 = vld [vmem:[%s8747_s7 + $0x168] sm:$0xff]  ;;  %s6784_s7 = scalar_lea.hbm %s8712_s8, 64 }
0x22d2   : > { %v5075_v59 = vpop.permute.xlu2 %5074 }
0x22d3   : > { %6437 = vmatpush.xpose.msk.msrb.mxu2 %vm1745_vm4, %v5075_v59  ;;  %v5346_v59 = vld [vmem:[%s8752_s20 + $0x78] sm:$0xff] }
0x22da   : > { %v5073_v18 = vpop.permute.xlu2 %5072 }
0x22e2   : > { %v5198_v40 = vpop.permute.xlu2 %5197 }
0x2343   : > { %v4907_v10 = vpop.f32.mrf.mxu2 }
0x2344   : > { %6434 = vmatmul.msk.f32.vlgmr.msrb.gmra.mxu1 %vm1745_vm4, %v4907_v10  ;;  %6435 = vmatmul.msk.f32.vlgmr.msrb.gmra.mxu3 %vm1745_vm4, %v4907_v10 }
0x2345   : > { %5286 = vmatpush.msrb.mxu1 %v6421_v3  ;;  %5306 = vmatpush.msrb.mxu3 %v6422_v58  ;;  %v5331_v3 = vld [vmem:[%s8752_s20] sm:$0xff]  ;;  %v5350_v58 = vld [vmem:[%s8752_s20 + $0x98] sm:$0xff] }
0x2347   : > { %5287 = vmatpush.msrb.mxu1 %v6419_v6  ;;  %5307 = vmatpush.msrb.mxu3 %v6420_v7  ;;  %v5409_v6 = vld [vmem:[%s8753_s27] sm:$0xff]  ;;  %v5428_v7 = vld [vmem:[%s8753_s27 + $0x98] sm:$0xff] }
0x234b   : > { %v4939_v11 = vpop.f32.mrf.mxu2 }
0x234c   : > { %v4942_v12 = vmul.f32 0.25, %v4939_v11 }
0x234e   : > { %v4943_v4 = vadd.f32 %v4942_v12, %v7724_v26  ;;  %v5345_v12 = vld [vmem:[%s8752_s20 + $0x70] sm:$0xff] }
0x2350   : > { %v4944_v16 = vsel %vm1745_vm4, %v4943_v4, -inf }
0x2351   : > { %4945 = vmax.xlane.f32.xlu1 %v4944_v16  ;;  %v5344_v16 = vld [vmem:[%s8752_s20 + $0x68] sm:$0xff] }
0x236a   : > { %5195 = vrot.lane.b32.xlu1 %v8331_v33, %s8745_s15 }
0x23c4   : > { %v4946_v17 = vpop.xlane.xlu1 %4945 }
0x23c5   : > { %v4947_v19 = vsub.f32 %v4943_v4, %v4946_v17  ;;  %v5423_v4 = vld [vmem:[%s8753_s27 + $0x70] sm:$0xff]  ;;  %v5422_v17 = vld [vmem:[%s8753_s27 + $0x68] sm:$0xff] }
0x23c7   : > { %v4948_v42 = vmul.f32 1.442695, %v4947_v19  ;;  %v5362_v19 = vld [vmem:[%s8752_s20 + $0xf8] sm:$0xff] }
0x23c9   : > { %6744 = vpow2.f32 %v4948_v42  ;;  %v5343_v42 = vld [vmem:[%s8752_s20 + $0x60] sm:$0xff] }
0x23cf   : > { %v6745_v15 = vpop.eup %6744 }
0x23d0   : > { %v4950_v47 = vsel %vm1745_vm4, %v6745_v15, 0.0 }
0x23d1   : > { %4951 = vadd.xlane.f32.xlu0 %v4950_v47  ;;  %v5440_v47 = vld [vmem:[%s8753_s27 + $0xf8] sm:$0xff] }
0x23dc   : > { %v5196_v27 = vpop.permute.xlu1 %5195 }
0x23e5   : > { %5193 = vrot.lane.b32.xlu0 %v8340_v39, %s8745_s15  ;;  %s8501_s15 = sshll.u32 %s7238_s0, 5 }
0x23e6   : > { %s5603_s11 = scalar_lea.hbm %s7200_s19, %s8501_s15 }
0x2444   : > { %v4952_v21 = vpop.xlane.xlu0 %4951 }
0x2445   : > { %6746 = vrcp.f32 %v4952_v21  ;;  %v5361_v21 = vld [vmem:[%s8752_s20 + $0xf0] sm:$0xff] }
0x244b   : > { %v6747_v22 = vpop.eup %6746 }
0x244c   : > { %v4954_v13 = vmul.f32 %v6747_v22, %v6745_v15  ;;  %v5421_v15 = vld [vmem:[%s8753_s27 + $0x60] sm:$0xff]  ;;  %v5420_v22 = vld [vmem:[%s8753_s27 + $0x58] sm:$0xff] }
0x244e   : > { %6430 = vst.msk [vmem:[%s8363_s9 + $0x8] sm:$0xff] %vm1745_vm4, %v4954_v13  ;;  %6431 = vmatmul.msk.f32.vlgmr.msra.gmra.mxu0 %vm1745_vm4, %v4954_v13  ;;  %v5439_v13 = vld [vmem:[%s8753_s27 + $0xf0] sm:$0xff] }
0x2457   : > { %v5194_v28 = vpop.permute.xlu0 %5193 }
0x24cb   : > { %v4983_v2 = vpop.f32.mrf.mxu0 }
0x24cc   : > { %6432 = vmatmul.msk.f32.vlgmr.msra.gmra.mxu2 %vm1745_vm4, %v4983_v2  ;;  %6433 = vmatmul.msk.f32.vlgmr.msrb.gmra.mxu0 %vm1745_vm4, %v4983_v2  ;;  %v5419_v2 = vld [vmem:[%s8753_s27 + $0x50] sm:$0xff] }
0x24cd   : > { %6443 = vmatpush.xpose.msk.msra.mxu2 %vm1745_vm4, %v5198_v40  ;;  %v5438_v40 = vld [vmem:[%s8753_s27 + $0xe8] sm:$0xff] }
0x24d1   : > { %6444 = vmatpush.xpose.msk.msra.mxu2 %vm1745_vm4, %v5196_v27  ;;  %v5340_v27 = vld [vmem:[%s8752_s20 + $0x48] sm:$0xff] }
0x24d4   : > { %6438 = vmatmul.msk.f32.vlgmr.msrb.gmra.mxu2 %vm1745_vm4, %v5073_v18  ;;  %v5360_v18 = vld [vmem:[%s8752_s20 + $0xe8] sm:$0xff] }
0x24d5   : > { %5367 = vmatpush.msrb.mxu2 %v5346_v59  ;;  %v5349_v59 = vld [vmem:[%s8752_s20 + $0x90] sm:$0xff] }
0x24d7   : > { %5368 = vmatpush.msrb.mxu2 %v5345_v12  ;;  %v5347_v12 = vld [vmem:[%s8752_s20 + $0x80] sm:$0xff] }
0x24d9   : > { %5369 = vmatpush.msrb.mxu2 %v5344_v16  ;;  %v5049_v16 = vpop.f32.mrf.mxu1 }
0x24db   : > { %5370 = vmatpush.msrb.mxu2 %v5343_v42 }
0x24dc   : > { %6445 = vmatmul.msk.f32.vlgmr.msra.gmra.mxu2 %vm1745_vm4, %v5194_v28  ;;  %v5359_v28 = vld [vmem:[%s8752_s20 + $0xe0] sm:$0xff] }
0x24dd   : > { %5371 = vmatpush.msrb.mxu2 %v5342_v20 }
0x24df   : > { %5372 = vmatpush.msrb.mxu2 %v5341_v23 }
0x24e1   : > { %5373 = vmatpush.msrb.mxu2 %v5340_v27 }
0x2549   : > { %v8426_v8 = vpop.f32.mrf.mxu0 }
0x254f   : > { %v8399_v61 = vpop.f32.mrf.mxu2 }
0x2550   : > { %v5050_v42 = vadd.f32 %v5049_v16, %v8399_v61 }
0x2557   : > { %v5101_v30 = vpop.f32.mrf.mxu2 }
0x2558   : > { %v5104_v32 = vmul.f32 0.25, %v5101_v30  ;;  %v5418_v30 = vld [vmem:[%s8753_s27 + $0x48] sm:$0xff] }
0x255a   : > { %v5105_v33 = vadd.f32 %v5104_v32, %v7724_v26  ;;  %v5437_v32 = vld [vmem:[%s8753_s27 + $0xe0] sm:$0xff] }
0x255c   : > { %v5106_v0 = vsel %vm1745_vm4, %v5105_v33, -inf }
0x255d   : > { %5107 = vmax.xlane.f32.xlu2 %v5106_v0  ;;  %v5358_v0 = vld [vmem:[%s8752_s20 + $0xd8] sm:$0xff] }
0x255f   : > { %v5222_v34 = vpop.f32.mrf.mxu2 }
0x2560   : > { %v5225_v57 = vmul.f32 0.25, %v5222_v34  ;;  %v5417_v34 = vld [vmem:[%s8753_s27 + $0x40] sm:$0xff] }
0x2562   : > { %v5226_v35 = vadd.f32 %v5225_v57, %v7724_v26  ;;  %v5436_v57 = vld [vmem:[%s8753_s27 + $0xd8] sm:$0xff] }
0x2564   : > { %v5227_v37 = vsel %vm1745_vm4, %v5226_v35, -inf }
0x2565   : > { %5228 = vmax.xlane.f32.xlu0 %v5227_v37  ;;  %v5357_v37 = vld [vmem:[%s8752_s20 + $0xd0] sm:$0xff] }
0x2575   : > { %6643 = vrot.lane.b32.xlu2 %v8350_v51, %s8748_s2 }
0x25d0   : > { %v5108_v38 = vpop.xlane.xlu2 %5107 }
0x25d1   : > { %v5109_v39 = vsub.f32 %v5105_v33, %v5108_v38  ;;  %v5339_v33 = vld [vmem:[%s8752_s20 + $0x40] sm:$0xff]  ;;  %v5416_v38 = vld [vmem:[%s8753_s27 + $0x38] sm:$0xff] }
0x25d2   : > { %5374 = vmatpush.msrb.mxu2 %v5339_v33 }
0x25d3   : > { %v5110_v41 = vmul.f32 1.442695, %v5109_v39  ;;  %v5435_v39 = vld [vmem:[%s8753_s27 + $0xd0] sm:$0xff] }
0x25d5   : > { %6748 = vpow2.f32 %v5110_v41  ;;  %v5337_v41 = vld [vmem:[%s8752_s20 + $0x30] sm:$0xff] }
0x25d8   : > { %v6644_v43 = vpop.permute.xlu2 %6643  ;;  %v5229_v31 = vpop.xlane.xlu0 %5228 }
0x25d9   : > { %v6645_v44 = vunpack.i.l.bf16 %v6644_v43  ;;  %v5230_v45 = vsub.f32 %v5226_v35, %v5229_v31  ;;  %v6646_v49 = vunpack.i.h.bf16 %v6644_v43  ;;  %v5338_v35 = vld [vmem:[%s8752_s20 + $0x38] sm:$0xff]  ;;  %v5356_v43 = vld [vmem:[%s8752_s20 + $0xc8] sm:$0xff]  ;;  %v5415_v31 = vld [vmem:[%s8753_s27 + $0x30] sm:$0xff] }
0x25da   : > { %5375 = vmatpush.msrb.mxu2 %v5338_v35 }
0x25db   : > { %v6749_v46 = vpop.eup %6748  ;;  %v5231_v36 = vmul.f32 1.442695, %v5230_v45  ;;  %5142 = vmatpush.msra.mxu0 %v6645_v44  ;;  %v5434_v44 = vld [vmem:[%s8753_s27 + $0xc8] sm:$0xff] }
0x25dc   : > { %v5112_v26 = vsel %vm1745_vm4, %v6749_v46, 0.0  ;;  %v5336_v45 = vld [vmem:[%s8752_s20 + $0x28] sm:$0xff]  ;;  %5376 = vmatpush.msrb.mxu2 %v5337_v41 }
0x25dd   : > { %6750 = vpow2.f32 %v5231_v36  ;;  %5113 = vadd.xlane.f32.xlu1 %v5112_v26  ;;  %5143 = vmatpush.msra.mxu0 %v6646_v49  ;;  %v5414_v49 = vld [vmem:[%s8753_s27 + $0x28] sm:$0xff]  ;;  %v5433_v36 = vld [vmem:[%s8753_s27 + $0xc0] sm:$0xff] }
0x25de   : > { %5377 = vmatpush.msrb.mxu2 %v5336_v45  ;;  %v5335_v26 = vld [vmem:[%s8752_s20 + $0x20] sm:$0xff] }
0x25e0   : > { %5378 = vmatpush.msrb.mxu2 %v5335_v26 }
0x25e2   : > { %5379 = vmatpush.msrb.mxu2 %v5334_v54 }
0x25e3   : > { %v6751_v50 = vpop.eup %6750 }
0x25e4   : > { %v5233_v52 = vsel %vm1745_vm4, %v6751_v50, 0.0 }
0x25e5   : > { %5234 = vadd.xlane.f32.xlu0 %v5233_v52  ;;  %v5413_v52 = vld [vmem:[%s8753_s27 + $0x20] sm:$0xff] }
0x25f6   : > { %6648 = vrot.lane.b32.xlu1 %v8350_v51, %s8749_s23  ;;  %s5569_s23 = scalar_lea.hbm %s8712_s8, %s8501_s15 }
0x25f7   : > { %s5572_s2 = sshll.u32 %s5569_s23, 4  ;;  %s5573_s2 = int_to_ptr.hbm [resolvable:$true] %s5572_s2 }
0x25f8   : > { %s6778_s5 = sshra.s32 %s5573_s2, 4  ;;  %s6779_s5 = int_to_ptr.hbm [resolvable:$true] %s6778_s5 }
0x25f9   : > { %s6780_s6 = scalar_lea.hbm %s6779_s5, 32  ;;  %p6785_p0 = scmp.lt.s32.totalorder %s6779_s5, %s8712_s8 }
0x25fa   : > { %p6781_p11 = scmp.ne.s32.totalorder %s6779_s5, %s6780_s6  ;;  %p6786_p1 = scmp.lt.s32.totalorder %s6784_s7, %s6780_s6 }
0x25fc   : > { %p6782_p12 = pnand %p6781_p11, %p7257_p5  ;;  %p6787_p2 = por %p6786_p1, %p6785_p0 }
0x25fe   : > { %p6783_p13 = pneg %p6782_p12 }
0x2600   : > { %p6788_p3 = pnand %p6787_p2, %p6783_p13 }
0x2650   : > { %v5114_v55 = vpop.xlane.xlu1 %5113 }
0x2651   : > { %6752 = vrcp.f32 %v5114_v55  ;;  %v5353_v55 = vld [vmem:[%s8752_s20 + $0xb0] sm:$0xff] }
0x2657   : > { %v6753_v56 = vpop.eup %6752 }
0x2658   : > { %v5116_v5 = vmul.f32 %v6753_v56, %v6749_v46  ;;  %v5235_v60 = vpop.xlane.xlu0 %5234  ;;  %v5355_v46 = vld [vmem:[%s8752_s20 + $0xc0] sm:$0xff]  ;;  %v5412_v56 = vld [vmem:[%s8753_s27 + $0x18] sm:$0xff] }
0x2659   : > { %6754 = vrcp.f32 %v5235_v60  ;;  %v5333_v60 = vld [vmem:[%s8752_s20 + $0x10] sm:$0xff] }
0x265a   : > { %6439 = vst.msk [vmem:[%s8363_s9 + $0x10] sm:$0xff] %vm1745_vm4, %v5116_v5  ;;  %6440 = vmatmul.msk.f32.vlgmr.msra.gmra.mxu0 %vm1745_vm4, %v5116_v5  ;;  %v5431_v5 = vld [vmem:[%s8753_s27 + $0xb0] sm:$0xff]  ;;  %5380 = vmatpush.msrb.mxu2 %v5333_v60 }
0x265f   : > { %v6755_v63 = vpop.eup %6754 }
0x2660   : > { %v5237_v51 = vmul.f32 %v6755_v63, %v6751_v50  ;;  %v5354_v50 = vld [vmem:[%s8752_s20 + $0xb8] sm:$0xff]  ;;  %v5352_v63 = vld [vmem:[%s8752_s20 + $0xa8] sm:$0xff] }
0x2662   : > { %6446 = vst.msk [vmem:[%s8363_s9 + $0x18] sm:$0xff] %vm1745_vm4, %v5237_v51 }
0x2668   : > { %v6649_v24 = vpop.permute.xlu1 %6648 }
0x2669   : > { %v6650_v25 = vunpack.i.l.bf16 %v6649_v24  ;;  %v6651_v62 = vunpack.i.h.bf16 %v6649_v24  ;;  %v5430_v24 = vld [vmem:[%s8753_s27 + $0xa8] sm:$0xff] }
0x266b   : > { %5263 = vmatpush.msrb.mxu0 %v6650_v25  ;;  %v5332_v25 = vld [vmem:[%s8752_s20 + $0x8] sm:$0xff] }
0x266c   : > { %5381 = vmatpush.msrb.mxu2 %v5332_v25 }
0x266d   : > { %5264 = vmatpush.msrb.mxu0 %v6651_v62  ;;  %v5351_v62 = vld [vmem:[%s8752_s20 + $0xa0] sm:$0xff] }
0x266e   : > { %6447 = vmatmul.msk.f32.vlgmr.msrb.gmra.mxu0 %vm1745_vm4, %v5237_v51  ;;  %v5411_v51 = vld [vmem:[%s8753_s27 + $0x10] sm:$0xff]  ;;  %5382 = vmatpush.msrb.mxu2 %v5331_v3 }
0x266f   : > { %5387 = vmatpush.msra.mxu0 %v5362_v19 }
0x2671   : > { %5388 = vmatpush.msra.mxu0 %v5361_v21 }
0x2673   : > { %5389 = vmatpush.msra.mxu0 %v5360_v18 }
0x2675   : > { %5390 = vmatpush.msra.mxu0 %v5359_v28 }
0x2677   : > { %5391 = vmatpush.msra.mxu0 %v5358_v0 }
0x2679   : > { %5392 = vmatpush.msra.mxu0 %v5357_v37 }
0x267b   : > { %5393 = vmatpush.msra.mxu0 %v5356_v43 }
0x267d   : > { %5394 = vmatpush.msra.mxu0 %v5355_v46 }
0x267f   : > { %5395 = vmatpush.msra.mxu0 %v5354_v50 }
0x2681   : > { %5396 = vmatpush.msra.mxu0 %v5353_v55 }
0x2683   : > { %5397 = vmatpush.msra.mxu0 %v5352_v63 }
0x2685   : > { %5398 = vmatpush.msra.mxu0 %v5351_v62 }
0x2687   : > { %5399 = vmatpush.msra.mxu0 %v5350_v58 }
0x2689   : > { %5400 = vmatpush.msra.mxu0 %v5349_v59 }
0x26d7   : > { %v5145_v10 = vpop.f32.mrf.mxu0 }
0x26d8   : > { %6441 = vmatmul.msk.f32.vlgmr.msra.gmra.mxu1 %vm1745_vm4, %v5145_v10  ;;  %6442 = vmatmul.msk.f32.vlgmr.msra.gmra.mxu3 %vm1745_vm4, %v5145_v10  ;;  %v5348_v10 = vld [vmem:[%s8752_s20 + $0x88] sm:$0xff] }
0x26d9   : > { %5445 = vmatpush.msra.mxu1 %v5424_v9  ;;  %5465 = vmatpush.msra.mxu3 %v5440_v47  ;;  %v5427_v9 = vld [vmem:[%s8753_s27 + $0x90] sm:$0xff]  ;;  %v6450_v47 = vld [vmem:[%s8751_s26 + $0x4] sm:$0x3] }
0x26da   : > { %5401 = vmatpush.msra.mxu0 %v5348_v10  ;;  %v5320_v61 = vperm.slane %v6450_v47, 1 }
0x26db   : > { %5446 = vmatpush.msra.mxu1 %v5423_v4  ;;  %5466 = vmatpush.msra.mxu3 %v5439_v13  ;;  %v5425_v4 = vld [vmem:[%s8753_s27 + $0x80] sm:$0xff]  ;;  %v5319_v13 = vperm.slane %v6450_v47, 0 }
0x26dc   : > { %5402 = vmatpush.msra.mxu0 %v5347_v12 }
0x26dd   : > { %5447 = vmatpush.msra.mxu1 %v5422_v17  ;;  %5467 = vmatpush.msra.mxu3 %v5438_v40  ;;  %v5069_v17 = vpop.f32.mrf.mxu3 }
0x26de   : > { %v5070_v23 = vadd.f32 %v5069_v17, %v8426_v8 }
0x26df   : > { %5448 = vmatpush.msra.mxu1 %v5421_v15  ;;  %5468 = vmatpush.msra.mxu3 %v5437_v32 }
0x26e1   : > { %5449 = vmatpush.msra.mxu1 %v5420_v22  ;;  %5469 = vmatpush.msra.mxu3 %v5436_v57 }
0x26e3   : > { %5450 = vmatpush.msra.mxu1 %v5419_v2  ;;  %5470 = vmatpush.msra.mxu3 %v5435_v39 }
0x26e5   : > { %5451 = vmatpush.msra.mxu1 %v5418_v30  ;;  %5471 = vmatpush.msra.mxu3 %v5434_v44 }
0x26e7   : > { %5452 = vmatpush.msra.mxu1 %v5417_v34  ;;  %5472 = vmatpush.msra.mxu3 %v5433_v36 }
0x26e9   : > { %5453 = vmatpush.msra.mxu1 %v5416_v38  ;;  %5473 = vmatpush.msra.mxu3 %v5432_v53 }
0x26eb   : > { %v5266_v11 = vpop.f32.mrf.mxu0  ;;  %5454 = vmatpush.msra.mxu1 %v5415_v31  ;;  %5474 = vmatpush.msra.mxu3 %v5431_v5 }
0x26ec   : > { %6448 = vmatmul.msk.f32.vlgmr.msrb.gmra.mxu1 %vm1745_vm4, %v5266_v11  ;;  %6449 = vmatmul.msk.f32.vlgmr.msrb.gmra.mxu3 %vm1745_vm4, %v5266_v11  ;;  %v5426_v11 = vld [vmem:[%s8753_s27 + $0x88] sm:$0xff] }
0x26ed   : > { %5455 = vmatpush.msra.mxu1 %v5414_v49  ;;  %5475 = vmatpush.msra.mxu3 %v5430_v24 }
0x26ef   : > { %5456 = vmatpush.msra.mxu1 %v5413_v52  ;;  %5476 = vmatpush.msra.mxu3 %v5429_v48 }
0x26f1   : > { %5457 = vmatpush.msra.mxu1 %v5412_v56  ;;  %5477 = vmatpush.msra.mxu3 %v5428_v7 }
0x26f3   : > { %5458 = vmatpush.msra.mxu1 %v5411_v51  ;;  %5478 = vmatpush.msra.mxu3 %v5427_v9 }
0x26f5   : > { %5459 = vmatpush.msra.mxu1 %v5410_v1  ;;  %5479 = vmatpush.msra.mxu3 %v5426_v11 }
0x26f7   : > { %5460 = vmatpush.msra.mxu1 %v5409_v6  ;;  %5480 = vmatpush.msra.mxu3 %v5425_v4 }
0x2755   : > { %v5168_v19 = vpop.f32.mrf.mxu1 }
0x2756   : > { %v5191_v20 = vadd.f32 %v5168_v19, %v5050_v42 }
0x275b   : > { %v5188_v15 = vpop.f32.mrf.mxu3 }
0x275c   : > { %v5192_v2 = vadd.f32 %v5188_v15, %v5070_v23 }
0x2769   : > { %v5289_v21 = vpop.f32.mrf.mxu1 }
0x276a   : > { %v5312_v22 = vadd.f32 %v5289_v21, %v5191_v20 }
0x276c   : > { %v5314_v18 = vadd.f32 %v5312_v22, %v8323_v14 }
0x276e   : > { %v5323_v40 = vadd.f32 %v5319_v13, %v5314_v18 }
0x276f   : > { %v5309_v27 = vpop.f32.mrf.mxu3 }
0x2770   : > { %v5327_v28 = vmul.f32 0.01, %v5323_v40  ;;  %v5313_v30 = vadd.f32 %v5309_v27, %v5192_v2  ;;  %vm5325_vm11 = vcmp.ge.f32.partialorder %v5323_v40, 0.0 }
0x2772   : > { %v5315_v32 = vadd.f32 %v5313_v30, %v8327_v29  ;;  %v5329_v33 = vsel %vm5325_vm11, %v5323_v40, %v5327_v28 }
0x2773   : > { %5383 = vmatmul.f32.vlgmr.msrb.gmra.mxu2 %v5329_v33  ;;  %5461 = vmatmul.f32.vlgmr.msra.gmra.mxu1 %v5329_v33 }
0x2774   : > { %v5324_v8 = vadd.f32 %v5320_v61, %v5315_v32 }
0x2776   : > { %v5328_v0 = vmul.f32 0.01, %v5324_v8  ;;  %vm5326_vm12 = vcmp.ge.f32.partialorder %v5324_v8, 0.0 }
0x2778   : > { %v5330_v14 = vsel %vm5326_vm12, %v5324_v8, %v5328_v0 }
0x2779   : > { %5403 = vmatmul.f32.vlgmr.msra.gmra.mxu0 %v5330_v14  ;;  %5481 = vmatmul.f32.vlgmr.msra.gmra.mxu3 %v5330_v14 }
0x277a   : > { %6791 = shalt.err (!%p6788_p3)
}
0x277b   : > { %s7047_s12 = smov 128   ;;  %s7048_s24 = smov 8  }
0x277c   : > { %6483 = dma.vmem_to_hbm [thread:$0]  (%p7257_p5), %s5571_s21, 512, %s5573_s2, %s8682_s3, %s7047_s12, %s7047_s12, %s7048_s24  }
0x277d   : > { %s5604_s5 = sshll.u32 %s8226_s25, 4  ;;  %s5606_s7 = sshll.u32 %s5603_s11, 4  ;;  %s5605_s5 = int_to_ptr.vmem [resolvable:$true] %s5604_s5  ;;  %s5607_s7 = int_to_ptr.hbm [resolvable:$true] %s5606_s7 }
0x277e   : > { %s8681_s6 = scalar_lea.sflag [#allocation9], %s8508_s17  ;;  %s6806_s23 = sshra.s32 %s5607_s7, 4  ;;  %s6807_s23 = int_to_ptr.hbm [resolvable:$true] %s6806_s23 }
0x277f   : > { %s6808_s8 = scalar_lea.hbm %s6807_s23, 32  ;;  %s6812_s14 = scalar_lea.hbm %s7200_s19, 64 }
0x2780   : > { %p6809_p4 = scmp.ne.s32.totalorder %s6807_s23, %s6808_s8  ;;  %p6813_p9 = scmp.lt.s32.totalorder %s6807_s23, %s7200_s19 }
0x2781   : > { %p6814_p10 = scmp.lt.s32.totalorder %s6812_s14, %s6808_s8 }
0x2782   : > { %p6810_p7 = pnand %p6809_p4, %p7257_p5 }
0x2783   : > { %p6815_p11 = por %p6814_p10, %p6813_p9 }
0x2784   : > { %p6811_p8 = pneg %p6810_p7 }
0x2786   : > { %p6816_p12 = pnand %p6815_p11, %p6811_p8 }
0x2788   : > { %6819 = shalt.err (!%p6816_p12)
}
0x2789   : > { %6485 = dma.vmem_to_hbm [thread:$0]  (%p7257_p5), %s5605_s5, 512, %s5607_s7, %s8681_s6, %s7047_s12, %s7047_s12, %s7048_s24  }
0x278a   : > { %s5637_s25 = scalar_lea.hbm %s7210_s22, %s8501_s15  ;;  %s5638_s8 = sshll.u32 %s8052_s10, 4  ;;  %s5639_s8 = int_to_ptr.vmem [resolvable:$true] %s5638_s8 }
0x278b   : > { %s5640_s14 = sshll.u32 %s5637_s25, 4  ;;  %s5536_s11 = scalar_lea.sflag [#allocation12], %s8508_s17  ;;  %s5641_s14 = int_to_ptr.hbm [resolvable:$true] %s5640_s14 }
0x278c   : > { %s6834_s21 = sshra.s32 %s5641_s14, 4  ;;  %s6840_s23 = scalar_lea.hbm %s7210_s22, 64  ;;  %s6835_s21 = int_to_ptr.hbm [resolvable:$true] %s6834_s21 }
0x278d   : > { %s6836_s2 = scalar_lea.hbm %s6835_s21, 32  ;;  %p6841_p2 = scmp.lt.s32.totalorder %s6835_s21, %s7210_s22 }
0x278e   : > { %p6837_p13 = scmp.ne.s32.totalorder %s6835_s21, %s6836_s2  ;;  %p6842_p3 = scmp.lt.s32.totalorder %s6840_s23, %s6836_s2 }
0x2790   : > { %p6838_p0 = pnand %p6837_p13, %p7257_p5  ;;  %p6843_p4 = por %p6842_p3, %p6841_p2 }
0x2792   : > { %p6839_p1 = pneg %p6838_p0 }
0x2794   : > { %p6844_p7 = pnand %p6843_p4, %p6839_p1 }
0x2796   : > { %6847 = shalt.err (!%p6844_p7)
}
0x2797   : > { %s8754_s10 = sld [smem:[#allocation44_spill]]  ;;  %s5587_s7 = sshll.u32 %s7914_s13, 4  ;;  %s5588_s7 = int_to_ptr.vmem [resolvable:$true] %s5587_s7 }
0x2798   : > { %6487 = dma.vmem_to_hbm [thread:$0]  (%p7257_p5), %s5639_s8, 512, %s5641_s14, %s5536_s11, %s7047_s12, %s7047_s12, %s7048_s24  }
0x2799   : > { %s5621_s25 = sshll.u32 %s7743_s28, 4  ;;  %s5655_s2 = sshll.u32 %s8363_s9, 4  ;;  %s8558_s25 = int_to_ptr.vmem [resolvable:$true] %s5621_s25  ;;  %s8573_s2 = int_to_ptr.vmem [resolvable:$true] %s5655_s2 }
0x279a   : > { %s5620_s6 = scalar_lea.hbm %s7205_s30, %s8501_s15 }
0x279d   : > { %s8755_s5 = smov %s8754_s10  ;;  %s5586_s21 = scalar_lea.hbm %s8754_s10, %s8501_s15 }
0x279e   : > { %s5589_s23 = sshll.u32 %s5586_s21, 4  ;;  %s6868_s8 = scalar_lea.hbm %s8755_s5, 64  ;;  %s5590_s23 = int_to_ptr.hbm [resolvable:$true] %s5589_s23 }
0x279f   : > { %s6862_s3 = sshra.s32 %s5590_s23, 4  ;;  %s6863_s3 = int_to_ptr.hbm [resolvable:$true] %s6862_s3 }
0x27a0   : > { %s6864_s16 = scalar_lea.hbm %s6863_s3, 32  ;;  %p6869_p11 = scmp.lt.s32.totalorder %s6863_s3, %s8755_s5 }
0x27a1   : > { %p6865_p8 = scmp.ne.s32.totalorder %s6863_s3, %s6864_s16  ;;  %p6870_p12 = scmp.lt.s32.totalorder %s6868_s8, %s6864_s16 }
0x27a3   : > { %p6866_p9 = pnand %p6865_p8, %p7257_p5  ;;  %p6871_p13 = por %p6870_p12, %p6869_p11 }
0x27a5   : > { %p6867_p10 = pneg %p6866_p9 }
0x27a7   : > { %p6872_p0 = pnand %p6871_p13, %p6867_p10 }
0x27a9   : > { %6875 = shalt.err (!%p6872_p0)
}
0x27aa   : > { %s8756_s28 = scalar_lea.sflag [#allocation6], %s8508_s17  ;;  %s5623_s13 = sshll.u32 %s5620_s6, 4  ;;  %s5624_s13 = int_to_ptr.hbm [resolvable:$true] %s5623_s13 }
0x27ab   : > { %6484 = dma.vmem_to_hbm [thread:$0]  (%p7257_p5), %s5588_s7, 512, %s5590_s23, %s8756_s28, %s7047_s12, %s7047_s12, %s7048_s24  }
0x27ac   : > { %s5654_s9 = scalar_lea.hbm %s7215_s1, %s8501_s15  ;;  %s6890_s3 = sshra.s32 %s5624_s13, 4  ;;  %s6891_s3 = int_to_ptr.hbm [resolvable:$true] %s6890_s3 }
0x27ad   : > { %s6892_s16 = scalar_lea.hbm %s6891_s3, 32  ;;  %s6896_s14 = scalar_lea.hbm %s7205_s30, 64 }
0x27ae   : > { %p6893_p1 = scmp.ne.s32.totalorder %s6891_s3, %s6892_s16  ;;  %p6897_p4 = scmp.lt.s32.totalorder %s6891_s3, %s7205_s30 }
0x27af   : > { %p6898_p7 = scmp.lt.s32.totalorder %s6896_s14, %s6892_s16 }
0x27b0   : > { %p6894_p2 = pnand %p6893_p1, %p7257_p5 }
0x27b1   : > { %p6899_p8 = por %p6898_p7, %p6897_p4 }
0x27b2   : > { %p6895_p3 = pneg %p6894_p2 }
0x27b4   : > { %p6900_p9 = pnand %p6899_p8, %p6895_p3 }
0x27b6   : > { %6903 = shalt.err (!%p6900_p9)
}
0x27b7   : > { %s8757_s15 = scalar_lea.sflag [#allocation9], %s8508_s17  ;;  %s5657_s6 = sshll.u32 %s5654_s9, 4  ;;  %s5658_s6 = int_to_ptr.hbm [resolvable:$true] %s5657_s6 }
0x27b8   : > { %6486 = dma.vmem_to_hbm [thread:$0]  (%p7257_p5), %s8558_s25, 512, %s5624_s13, %s8757_s15, %s7047_s12, %s7047_s12, %s7048_s24  }
0x27b9   : > { %s6918_s10 = sshra.s32 %s5658_s6, 4  ;;  %s6924_s21 = scalar_lea.hbm %s7215_s1, 64  ;;  %s6919_s10 = int_to_ptr.hbm [resolvable:$true] %s6918_s10 }
0x27ba   : > { %s6920_s7 = scalar_lea.hbm %s6919_s10, 32  ;;  %p6925_p13 = scmp.lt.s32.totalorder %s6919_s10, %s7215_s1 }
0x27bb   : > { %p6921_p10 = scmp.ne.s32.totalorder %s6919_s10, %s6920_s7  ;;  %p6926_p0 = scmp.lt.s32.totalorder %s6924_s21, %s6920_s7 }
0x27bd   : > { %p6922_p11 = pnand %p6921_p10, %p7257_p5  ;;  %p6927_p1 = por %p6926_p0, %p6925_p13 }
0x27bf   : > { %p6923_p12 = pneg %p6922_p11 }
0x27c1   : > { %p6928_p2 = pnand %p6927_p1, %p6923_p12 }
0x27c3   : > { %6931 = shalt.err (!%p6928_p2)
}
0x27c4   : > { %s8758_s25 = sld [smem:[#allocation39_spill]]  ;;  %s6459_s8 = sshll.u32 %s7238_s0, 3  ;;  %v6658_v57 = vld [vmem:[#allocation2] ss:$0 sm:$0xff]  ;;  %vm5407_vm13 = vcmask 261120  }
0x27c5   : > { %s8759_s23 = sld [smem:[#allocation41_spill]]  ;;  %s6002_s28 = sshll.u32 %s7589_s4, 3 }
0x27c6   : > { %6488 = dma.vmem_to_hbm [thread:$0]  (%p7257_p5), %s8573_s2, 512, %s5658_s6, %s5536_s11, %s7047_s12, %s7047_s12, %s7048_s24  }
0x27c7   : > { %s1030_s9 = scalar_lea.vmem [#allocation3], %s6002_s28  ;;  %s5507_s12 = scalar_lea.sflag [#allocation4], %s7589_s4 }
0x27c8   : > { %s5553_s3 = sshll.u32 %s1030_s9, 4  ;;  %s5554_s3 = int_to_ptr.vmem [resolvable:$true] %s5553_s3 }
0x27ca   : > { %v6659_v29 = vld [vmem:[%s8758_s25] ss:$0 sm:$0xff] }
0x27cb   : > { %s5551_s13 = scalar_lea.hbm %s8759_s23, %s6459_s8  ;;  %s6952_s24 = scalar_lea.hbm %s8759_s23, 16 }
0x27cc   : > { %s5555_s16 = sshll.u32 %s5551_s13, 4  ;;  %s5556_s16 = int_to_ptr.hbm [resolvable:$true] %s5555_s16 }
0x27cd   : > { %s6946_s0 = sshra.s32 %s5556_s16, 4  ;;  %s6947_s0 = int_to_ptr.hbm [resolvable:$true] %s6946_s0 }
0x27ce   : > { %s6948_s17 = scalar_lea.hbm %s6947_s0, 8  ;;  %p6953_p8 = scmp.lt.s32.totalorder %s6947_s0, %s8759_s23 }
0x27cf   : > { %p6949_p3 = scmp.ne.s32.totalorder %s6947_s0, %s6948_s17  ;;  %p6954_p9 = scmp.lt.s32.totalorder %s6952_s24, %s6948_s17 }
0x27d1   : > { %p6950_p4 = pnand %p6949_p3, %p7257_p5  ;;  %p6955_p10 = por %p6954_p9, %p6953_p8 }
0x27d3   : > { %p6951_p7 = pneg %p6950_p4 }
0x27d5   : > { %p6956_p11 = pnand %p6955_p10, %p6951_p7 }
0x27f0   : > { %v5462_v37 = vpop.f32.mrf.mxu1 }
0x27f1   : > { %v5463_v41 = vadd.f32 %v6658_v57, %v5462_v37 }
0x27f6   : > { %v5384_v34 = vpop.f32.mrf.mxu2  ;;  %v5404_v38 = vpop.f32.mrf.mxu0 }
0x27f7   : > { %v5385_v35 = vadd.f32 %v6659_v29, %v5384_v34 }
0x27f9   : > { %v5405_v39 = vadd.f32 %v5404_v38, %v5385_v35 }
0x27fb   : > { %5408 = vst.msk [vmem:[%s1030_s9] sm:$0xff] %vm5407_vm13, %v5405_v39 }
0x27fc   : > { %v5482_v43 = vpop.f32.mrf.mxu3 }
0x27fd   : > { %6959 = shalt.err (!%p6956_p11)
}
0x27fe   : > { %6482 = dma.vmem_to_hbm [thread:$0]  (%p7257_p5), %s5554_s3, 128, %s5556_s16, %s5507_s12   ;;  %v5483_v31 = vadd.f32 %v5482_v43, %v5463_v41  ;;  %vm5504_vm1 = vcmask 7168  }
0x27ff   : > { %s8760_s11 = sld [smem:[#allocation52_spill]] }
0x2800   : > { %s8761_s2 = sld [smem:[#allocation42_spill]]  ;;  %v6451_v44 = vmul.f32 -1.442695, %v5483_v31 }
0x2802   : > { %6756 = vpow2.f32 %v6451_v44 }
0x2805   : > { %s8762_s4 = sshll.u32 %s8760_s11, 3 }
0x2806   : > { %s1099_s18 = scalar_lea.vmem %s8761_s2, %s8762_s4 }
0x2808   : > { %v6757_v45 = vpop.eup %6756 }
0x2809   : > { %v5488_v46 = vadd.f32 1.0, %v6757_v45 }
0x280b   : > { %6758 = vrcp.f32 %v5488_v46  ;;  %v5500_v50 = vand.u32 2147483648, %v5488_v46  ;;  %v5498_v53 = vand.u32 2147483647, %v5488_v46  ;;  %vm5494_vm15 = vweird.f32 %v5488_v46 }
0x280d   : > { %v5501_v55 = vor.u32 1.1754944e-38, %v5500_v50  ;;  %vm5499_vm2 = vcmp.eq.f32.partialorder %v5498_v53, 8.507059e+37 }
0x2811   : > { %v6759_v49 = vpop.eup %6758 }
0x2812   : > { %v5490_v36 = vmul.f32 %v6759_v49, %v5488_v46  ;;  %vm5495_vm14 = vweird.f32 %v6759_v49 }
0x2813   : > { %vm5496_vm0 = vmor %vm5494_vm15, %vm5495_vm14 }
0x2814   : > { %v5491_v26 = vsub.f32 1.0, %v5490_v36 }
0x2816   : > { %v5492_v52 = vmul.f32 %v6759_v49, %v5491_v26 }
0x2818   : > { %v5493_v54 = vadd.f32 %v6759_v49, %v5492_v52 }
0x281a   : > { %v5497_v56 = vsel %vm5496_vm0, %v6759_v49, %v5493_v54 }
0x281b   : > { %v5502_v5 = vsel %vm5499_vm2, %v5501_v55, %v5497_v56 }
0x281c   : > { %5505 = vst.msk [vmem:[%s1099_s18] sm:$0xff] %vm5504_vm1, %v5502_v5 }
0x281d PF: > { %s8763_s14 = sld [smem:[#allocation48_spill]] }
0x281e   : > { %s8764_s15 = sld [smem:[#allocation45_spill]] }
0x2823   : > { %p6518_p5 = scmp.ge.s32.totalorder %s8763_s14, 2 }
0x2824   : > { %s5672_s10 = sand.u32 1, %s8764_s15  }
0x2825   : > { %p6497_p12 = pnand %p6518_p5, %p7261_p6  ;;  %s5673_s7 = scalar_lea.sflag [#allocation4], %s5672_s10 }
0x2827   : > { %p6498_p13 = pneg %p6497_p12 }
0x2829   : > { %6977 = dma.done.wait (%p6498_p13), %s5673_s7, 128  }
0x282a   : > { %6979 = vsyncadd (%p6498_p13), %s5673_s7, 4294967168  ;;  %s8766_s21 = sadd.s32 4294967294, %s8763_s14  }
0x282b   : > { %s5689_s25 = sand.u32 1, %s8766_s21  }
0x282c   : > { %s5690_s8 = scalar_lea.sflag [#allocation6], %s5689_s25 }
0x282d   : > { %6981 = dma.done.wait (%p6498_p13), %s5690_s8, 1024  }
0x282e   : > { %6983 = vsyncadd (%p6498_p13), %s5690_s8, 4294966272  ;;  %s5710_s28 = scalar_lea.sflag [#allocation9], %s5689_s25 }
0x282f   : > { %6985 = dma.done.wait (%p6498_p13), %s5710_s28, 1024  }
0x2830   : > { %6987 = vsyncadd (%p6498_p13), %s5710_s28, 4294966272  ;;  %s5730_s13 = scalar_lea.sflag [#allocation12], %s5689_s25 }
0x2831   : > { %6989 = dma.done.wait (%p6498_p13), %s5730_s13, 1024  }
0x2832   : > { %6991 = vsyncadd (%p6498_p13), %s5730_s13, 4294966272  ;;  %s8767_s10 = sld [smem:[#allocation49_spill]] }
0x2833   : > { %s8768_s13 = sld [smem:[#allocation46_spill]] }
0x2834   : > { %s8769_s28 = sld [smem:[#allocation47_spill]] }
0x2835   : > { %s8770_s2 = sld [smem:[#allocation50_spill]] }
0x2838   : > { %p87_p6 = scmp.ge.s32.totalorder %s8767_s10, 4  }
0x283a   :  { %89 = sbr.rel (!%p87_p6) target bundleno = 71 (0x47), region = 342 }
0x283f   :  { %5746 = vsyncpa [#allocation4], 1 }
0x2840   :  { %5748 = vsyncpa [#allocation4 + $0x1], 1 }
0x2841   :  { %5749 = vsyncpa [#allocation6], 1 }
0x2842   :  { %5751 = vsyncpa [#allocation6 + $0x1], 1 }
0x2843   :  { %5752 = vsyncpa [#allocation9], 1 }
0x2844   :  { %5754 = vsyncpa [#allocation9 + $0x1], 1 }
0x2845   :  { %5755 = vsyncpa [#allocation12], 1 }
0x2846   :  { %5757 = vsyncpa [#allocation12 + $0x1], 1 }

</bundles_post_ra>
